<compile_context>
chip_gen: v5e
topology: v5e:2x2
jax: 0.10.0
libtpu: 0.0.40
codegen_flags: <defaults>
</compile_context>

<pallas_src>
import functools

import jax
import jax.numpy as jnp
from jax.experimental import pallas as pl
from jax.experimental.pallas import tpu as pltpu


_CONV_CHANNELS = ((1, 8), (8, 16), (16, 32), (32, 64), (64, 128))


# ----------------------------------------------------------------------------
# Fused kernel: 5x (Conv1d(3) + ReLU + MaxPool1d(3)) + BiGRU + RNNPooling + MLP
# ----------------------------------------------------------------------------
def _fused_kernel(stage_dims, bb, t_gru,
                  x_ref,
                  w1, b1, w2, b2, w3, b3, w4, b4, w5, b5,
                  wi_ref, wh_ref, bi_ref, bh_ref,
                  wl1_ref, bl1_ref, wl2_ref, bl2_ref,
                  o_ref,
                  s1, s2, s3, s4, s5):
    """
    x_ref : (bb, L, 1)            input block, channels-last
    w_s   : (3*C_in, C_out)       conv weight, rows ordered [tap0|tap1|tap2]
    b_s   : (1, C_out)
    wi/wh : (2, 128, 96)/(2,32,96) fused GRU gate weights (cols ordered r|z|n)
    bi/bh : (2, 1, 96)
    wl1   : (192, 30), bl1 (1,30), wl2 (30,1), bl2 (1,1)
    o_ref : (1, bb, 1)
    s1..s5: VMEM scratch (T_conv_s, C_out_s) for the fused maxpool
    """
    conv_w = (w1, w2, w3, w4, w5)
    conv_b = (b1, b2, b3, b4, b5)
    conv_scratch = (s1, s2, s3, s4, s5)
    f32 = jnp.float32

    def conv_relu_pool(h, w_ref, b_ref, y_ref, t_conv, t_pool):
        # Conv1d(k=3, no pad) as a single im2col matmul.
        if w_ref.shape[0] == 3:  # C_in == 1: rank-1 taps, cheaper on the VPU
            y = (h[0:t_conv, :] * w_ref[0:1, :]
                 + h[1:1 + t_conv, :] * w_ref[1:2, :]
                 + h[2:2 + t_conv, :] * w_ref[2:3, :])
        else:
            xi = jnp.concatenate([h[k:k + t_conv, :] for k in range(3)], axis=1)
            y = jnp.dot(xi, w_ref[...], preferred_element_type=f32)
        # Park conv output in VMEM scratch, then MaxPool1d(3) via three
        # sublane-strided reads.  Bias + ReLU commute with the max, so apply
        # them on the pooled (smaller) tensor.
        y_ref[...] = y
        p = y_ref[pl.ds(0, t_pool, stride=3), :]
        p = jnp.maximum(p, y_ref[pl.ds(1, t_pool, stride=3), :])
        p = jnp.maximum(p, y_ref[pl.ds(2, t_pool, stride=3), :])
        return jnp.maximum(p + b_ref[...], 0.0)

    # ---- 5 conv stages per sample; intermediates never leave the core ----
    seqs = []
    for s in range(bb):
        h = x_ref[s]                                          # (L, 1)
        for (t_conv, t_pool), w_ref, b_ref, y_ref in zip(
                stage_dims, conv_w, conv_b, conv_scratch):
            h = conv_relu_pool(h, w_ref, b_ref, y_ref, t_conv, t_pool)
        seqs.append(h)                                        # (t_gru, 128)

    # ---- batched GRU inputs (computed once, reused by both directions) ----
    def x_at(t):
        if bb == 1:
            return seqs[0][t:t + 1, :]
        return jnp.concatenate([sq[t:t + 1, :] for sq in seqs], axis=0)

    xs = [x_at(t) for t in range(t_gru)]                      # each (bb, 128)
    hdim = wh_ref.shape[1]                                    # 32

    def run_direction(d, inputs):
        h = jnp.zeros((bb, hdim), f32)
        h_max = None
        h_sum = None
        for x_t in inputs:
            gi = jnp.dot(x_t, wi_ref[d], preferred_element_type=f32) + bi_ref[d]
            gh = jnp.dot(h, wh_ref[d], preferred_element_type=f32) + bh_ref[d]
            r = jax.nn.sigmoid(gi[:, :hdim] + gh[:, :hdim])
            z = jax.nn.sigmoid(gi[:, hdim:2 * hdim] + gh[:, hdim:2 * hdim])
            n = jnp.tanh(gi[:, 2 * hdim:] + r * gh[:, 2 * hdim:])
            h = (1.0 - z) * n + z * h
            h_max = h if h_max is None else jnp.maximum(h_max, h)
            h_sum = h if h_sum is None else h_sum + h
        return h, h_max, h_sum * (1.0 / len(inputs))

    # TODO(synk): for much longer reads, replace this static unroll with a
    # lax.fori_loop carrying (h, h_max, h_sum) to bound trace/code size.
    h_f, max_f, mean_f = run_direction(0, xs)                 # forward
    h_b, max_b, mean_b = run_direction(1, xs[::-1])           # reverse

    # RNNPooling order: [max_pooled(2H) | mean_pooled(2H) | h_n (fwd, bwd)]
    feat = jnp.concatenate([max_f, max_b, mean_f, mean_b, h_f, h_b], axis=1)
    hid = jnp.dot(feat, wl1_ref[...], preferred_element_type=f32) + bl1_ref[...]
    hid = jnp.maximum(hid, 0.0)
    logit = jnp.dot(hid, wl2_ref[...], preferred_element_type=f32) + bl2_ref[...]
    o_ref[0] = jax.nn.sigmoid(logit)                          # (bb, 1)


# ----------------------------------------------------------------------------
# Wrapper
# ----------------------------------------------------------------------------
def _stage_dims(length):
    dims = []
    t = length
    for _ in _CONV_CHANNELS:
        t_conv = t - 2
        t_pool = t_conv // 3                 # MaxPool1d(3), ceil_mode=False
        assert t_pool >= 1, f"input length {length} too short for RNAkinet"
        dims.append((t_conv, t_pool))
        t = t_pool
    return tuple(dims), t                    # final t == GRU sequence length


def _pick_block_batch(batch):
    # Keep >= 2 grid steps (v7x has 2 TensorCores) while batching rows per step
    # so GRU/MLP matmuls present more sublanes on v5e/v6e; cap the in-kernel
    # unroll / input-block VMEM at 8 samples per step.
    if batch <= 1:
        return 1
    return max(1, min(8, (batch + 1) // 2))


def rnakinet_forward(x, params, block_batch=None):
    """x: (B, 1, L) float32 (PyTorch NCW) -> (B, 1) sigmoid output."""
    batch, _, length = x.shape
    stage_dims, t_gru = _stage_dims(length)

    bb = block_batch if block_batch is not None else _pick_block_batch(batch)
    g = pl.cdiv(batch, bb)

    xb = jnp.transpose(x, (0, 2, 1))                          # (B, L, 1)
    if g * bb != batch:
        xb = jnp.pad(xb, ((0, g * bb - batch), (0, 0), (0, 0)))

    weight_args = []
    for w, b in params["convs"]:
        weight_args += [w, b]
    wi, wh, bi, bh = params["gru"]
    wl1, bl1, wl2, bl2 = params["mlp"]
    weight_args += [wi, wh, bi, bh, wl1, bl1, wl2, bl2]

    def _const_spec(a):
        return pl.BlockSpec(a.shape, lambda i, _n=a.ndim: (0,) * _n)

    in_specs = [pl.BlockSpec((bb, length, 1), lambda i: (i, 0, 0))]
    in_specs += [_const_spec(a) for a in weight_args]

    scratch_shapes = [
        pltpu.VMEM((t_conv, c_out), jnp.float32)
        for (t_conv, _), (_, c_out) in zip(stage_dims, _CONV_CHANNELS)
    ]

    kernel = functools.partial(_fused_kernel, stage_dims, bb, t_gru)
    out = pl.pallas_call(
        kernel,
        out_shape=jax.ShapeDtypeStruct((g, bb, 1), jnp.float32),
        grid=(g,),
        in_specs=in_specs,
        out_specs=pl.BlockSpec((1, bb, 1), lambda i: (i, 0, 0)),
        scratch_shapes=scratch_shapes,
        compiler_params=pltpu.CompilerParams(
            dimension_semantics=("parallel",)),
    )(xb, *weight_args)
    return out.reshape(g * bb, 1)[:batch]


# ----------------------------------------------------------------------------
# Parameter init (deterministic, PyTorch-like uniform fan-in init) -- produced
# directly in the kernel's layouts.
# ----------------------------------------------------------------------------
def init_params(key):
    params = {}

    convs = []
    for cin, cout in _CONV_CHANNELS:
        key, kw, kb = jax.random.split(key, 3)
        bound = 1.0 / (cin * 3) ** 0.5
        w = jax.random.uniform(kw, (cout, cin, 3), jnp.float32, -bound, bound)  # torch layout
        b = jax.random.uniform(kb, (cout,), jnp.float32, -bound, bound)
        # kernel layout: (3*cin, cout) with rows ordered [tap0: cin | tap1 | tap2]
        w_k = jnp.transpose(w, (2, 1, 0)).reshape(3 * cin, cout)
        convs.append((w_k, b[None, :]))
    params["convs"] = convs

    hid, inp = 32, 128
    bound = 1.0 / hid ** 0.5
    wi, wh, bi, bh = [], [], [], []
    for _ in range(2):                                    # forward / reverse
        key, k1, k2, k3, k4 = jax.random.split(key, 5)
        w_ih = jax.random.uniform(k1, (3 * hid, inp), jnp.float32, -bound, bound)
        w_hh = jax.random.uniform(k2, (3 * hid, hid), jnp.float32, -bound, bound)
        b_ih = jax.random.uniform(k3, (3 * hid,), jnp.float32, -bound, bound)
        b_hh = jax.random.uniform(k4, (3 * hid,), jnp.float32, -bound, bound)
        wi.append(w_ih.T)                                 # (128, 96), cols r|z|n
        wh.append(w_hh.T)                                 # (32, 96)
        bi.append(b_ih[None, :])                          # (1, 96)
        bh.append(b_hh[None, :])
    params["gru"] = (jnp.stack(wi), jnp.stack(wh), jnp.stack(bi), jnp.stack(bh))

    key, k1, k2, k3, k4 = jax.random.split(key, 5)
    bound1 = 1.0 / (6 * hid) ** 0.5
    w1 = jax.random.uniform(k1, (30, 6 * hid), jnp.float32, -bound1, bound1)  # torch layout
    b1 = jax.random.uniform(k2, (30,), jnp.float32, -bound1, bound1)
    bound2 = 1.0 / 30 ** 0.5
    w2 = jax.random.uniform(k3, (1, 30), jnp.float32, -bound2, bound2)
    b2 = jax.random.uniform(k4, (1,), jnp.float32, -bound2, bound2)
    params["mlp"] = (w1.T, b1[None, :], w2.T, b2[None, :])  # (192,30),(1,30),(30,1),(1,1)
    return params


if __name__ == "__main__":
    key = jax.random.PRNGKey(0)
    pkey, xkey = jax.random.split(key)
    params = init_params(pkey)

    # L=1000: 1000 -> 998 -> 332 -> 330 -> 110 -> 108 -> 36 -> 34 -> 11 -> 9 -> 3 GRU steps.
    B, L = 2, 1000
    x = jax.random.normal(xkey, (B, 1, L), jnp.float32)

    fwd = jax.jit(rnakinet_forward)
    out = jax.block_until_ready(fwd(x, params))
    assert out.shape == (B, 1)
    assert bool(jnp.all(jnp.isfinite(out)))
    print("KERNEL_OK")
</pallas_src>

<mosaic_0001>
module attributes {stable_mosaic.version = 11 : i64} {
  func.func @_fused_kernel(%arg0: i32, %arg1: memref<1x1000x1xf32, #tpu.memory_space<vmem>>, %arg2: memref<3x8xf32, #tpu.memory_space<vmem>>, %arg3: memref<1x8xf32, #tpu.memory_space<vmem>>, %arg4: memref<24x16xf32, #tpu.memory_space<vmem>>, %arg5: memref<1x16xf32, #tpu.memory_space<vmem>>, %arg6: memref<48x32xf32, #tpu.memory_space<vmem>>, %arg7: memref<1x32xf32, #tpu.memory_space<vmem>>, %arg8: memref<96x64xf32, #tpu.memory_space<vmem>>, %arg9: memref<1x64xf32, #tpu.memory_space<vmem>>, %arg10: memref<192x128xf32, #tpu.memory_space<vmem>>, %arg11: memref<1x128xf32, #tpu.memory_space<vmem>>, %arg12: memref<2x128x96xf32, #tpu.memory_space<vmem>>, %arg13: memref<2x32x96xf32, #tpu.memory_space<vmem>>, %arg14: memref<2x1x96xf32, #tpu.memory_space<vmem>>, %arg15: memref<2x1x96xf32, #tpu.memory_space<vmem>>, %arg16: memref<192x30xf32, #tpu.memory_space<vmem>>, %arg17: memref<1x30xf32, #tpu.memory_space<vmem>>, %arg18: memref<30x1xf32, #tpu.memory_space<vmem>>, %arg19: memref<1x1xf32, #tpu.memory_space<vmem>>, %arg20: memref<1x1x1xf32, #tpu.memory_space<vmem>>, %arg21: memref<998x8xf32, #tpu.memory_space<vmem>>, %arg22: memref<330x16xf32, #tpu.memory_space<vmem>>, %arg23: memref<108x32xf32, #tpu.memory_space<vmem>>, %arg24: memref<34x64xf32, #tpu.memory_space<vmem>>, %arg25: memref<9x128xf32, #tpu.memory_space<vmem>>) attributes {dimension_semantics = [#tpu.dimension_semantics<parallel>], iteration_bounds = array<i64: 2>, scalar_prefetch = 0 : i64, scratch_operands = 5 : i64, tpu.core_type = #tpu.core_type<tc>, window_params = [{transform_indices = @transform_0, window_bounds = array<i64: 1, 1000, 1>}, {pipeline_mode = #tpu.pipeline_mode<synchronous>, transform_indices = @transform_1, window_bounds = array<i64: 3, 8>}, {pipeline_mode = #tpu.pipeline_mode<synchronous>, transform_indices = @transform_2, window_bounds = array<i64: 1, 8>}, {pipeline_mode = #tpu.pipeline_mode<synchronous>, transform_indices = @transform_3, window_bounds = array<i64: 24, 16>}, {pipeline_mode = #tpu.pipeline_mode<synchronous>, transform_indices = @transform_4, window_bounds = array<i64: 1, 16>}, {pipeline_mode = #tpu.pipeline_mode<synchronous>, transform_indices = @transform_5, window_bounds = array<i64: 48, 32>}, {pipeline_mode = #tpu.pipeline_mode<synchronous>, transform_indices = @transform_6, window_bounds = array<i64: 1, 32>}, {pipeline_mode = #tpu.pipeline_mode<synchronous>, transform_indices = @transform_7, window_bounds = array<i64: 96, 64>}, {pipeline_mode = #tpu.pipeline_mode<synchronous>, transform_indices = @transform_8, window_bounds = array<i64: 1, 64>}, {pipeline_mode = #tpu.pipeline_mode<synchronous>, transform_indices = @transform_9, window_bounds = array<i64: 192, 128>}, {pipeline_mode = #tpu.pipeline_mode<synchronous>, transform_indices = @transform_10, window_bounds = array<i64: 1, 128>}, {pipeline_mode = #tpu.pipeline_mode<synchronous>, transform_indices = @transform_11, window_bounds = array<i64: 2, 128, 96>}, {pipeline_mode = #tpu.pipeline_mode<synchronous>, transform_indices = @transform_12, window_bounds = array<i64: 2, 32, 96>}, {pipeline_mode = #tpu.pipeline_mode<synchronous>, transform_indices = @transform_13, window_bounds = array<i64: 2, 1, 96>}, {pipeline_mode = #tpu.pipeline_mode<synchronous>, transform_indices = @transform_14, window_bounds = array<i64: 2, 1, 96>}, {pipeline_mode = #tpu.pipeline_mode<synchronous>, transform_indices = @transform_15, window_bounds = array<i64: 192, 30>}, {pipeline_mode = #tpu.pipeline_mode<synchronous>, transform_indices = @transform_16, window_bounds = array<i64: 1, 30>}, {pipeline_mode = #tpu.pipeline_mode<synchronous>, transform_indices = @transform_17, window_bounds = array<i64: 30, 1>}, {pipeline_mode = #tpu.pipeline_mode<synchronous>, transform_indices = @transform_18, window_bounds = array<i64: 1, 1>}, {transform_indices = @transform_19, window_bounds = array<i64: 1, 1, 1>}]} {
    %c0 = arith.constant 0 : index
    %c0_0 = arith.constant 0 : index
    %c0_1 = arith.constant 0 : index
    %0 = vector.load %arg1[%c0, %c0_0, %c0_1] : memref<1x1000x1xf32, #tpu.memory_space<vmem>>, vector<1x1000x1xf32>
    %1 = vector.shape_cast %0 : vector<1x1000x1xf32> to vector<1000x1xf32>
    %2 = vector.extract_strided_slice %1 {offsets = [0, 0], sizes = [998, 1], strides = [1, 1]} : vector<1000x1xf32> to vector<998x1xf32>
    %c0_2 = arith.constant 0 : index
    %c0_3 = arith.constant 0 : index
    %3 = vector.load %arg2[%c0_2, %c0_3] : memref<3x8xf32, #tpu.memory_space<vmem>>, vector<1x8xf32>
    %4 = vector.broadcast %2 : vector<998x1xf32> to vector<998x8xf32>
    %5 = vector.broadcast %3 : vector<1x8xf32> to vector<998x8xf32>
    %6 = arith.mulf %4, %5 : vector<998x8xf32>
    %7 = vector.extract_strided_slice %1 {offsets = [1, 0], sizes = [998, 1], strides = [1, 1]} : vector<1000x1xf32> to vector<998x1xf32>
    %c1 = arith.constant 1 : index
    %c0_4 = arith.constant 0 : index
    %8 = vector.load %arg2[%c1, %c0_4] : memref<3x8xf32, #tpu.memory_space<vmem>>, vector<1x8xf32>
    %9 = vector.broadcast %7 : vector<998x1xf32> to vector<998x8xf32>
    %10 = vector.broadcast %8 : vector<1x8xf32> to vector<998x8xf32>
    %11 = arith.mulf %9, %10 : vector<998x8xf32>
    %12 = arith.addf %6, %11 : vector<998x8xf32>
    %13 = vector.extract_strided_slice %1 {offsets = [2, 0], sizes = [998, 1], strides = [1, 1]} : vector<1000x1xf32> to vector<998x1xf32>
    %c2 = arith.constant 2 : index
    %c0_5 = arith.constant 0 : index
    %14 = vector.load %arg2[%c2, %c0_5] : memref<3x8xf32, #tpu.memory_space<vmem>>, vector<1x8xf32>
    %15 = vector.broadcast %13 : vector<998x1xf32> to vector<998x8xf32>
    %16 = vector.broadcast %14 : vector<1x8xf32> to vector<998x8xf32>
    %17 = arith.mulf %15, %16 : vector<998x8xf32>
    %18 = arith.addf %12, %17 : vector<998x8xf32>
    %c0_6 = arith.constant 0 : index
    %c0_7 = arith.constant 0 : index
    %19 = vector.load %arg21[%c0_6, %c0_7] : memref<998x8xf32, #tpu.memory_space<vmem>>, vector<998x8xf32>
    tpu.vector_store %arg21[%c0_6, %c0_7], %18 {strides = array<i32>} : memref<998x8xf32, #tpu.memory_space<vmem>>, vector<998x8xf32>,
    %c0_8 = arith.constant 0 : index
    %c0_9 = arith.constant 0 : index
    %20 = tpu.strided_load %arg21[%c0_8, %c0_9] {strides = array<i32: 3, 1>} : memref<998x8xf32, #tpu.memory_space<vmem>>, vector<332x8xf32>
    %c1_10 = arith.constant 1 : index
    %c0_11 = arith.constant 0 : index
    %21 = tpu.strided_load %arg21[%c1_10, %c0_11] {strides = array<i32: 3, 1>} : memref<998x8xf32, #tpu.memory_space<vmem>>, vector<332x8xf32>
    %22 = arith.maximumf %20, %21 : vector<332x8xf32>
    %c2_12 = arith.constant 2 : index
    %c0_13 = arith.constant 0 : index
    %23 = tpu.strided_load %arg21[%c2_12, %c0_13] {strides = array<i32: 3, 1>} : memref<998x8xf32, #tpu.memory_space<vmem>>, vector<332x8xf32>
    %24 = arith.maximumf %22, %23 : vector<332x8xf32>
    %c0_14 = arith.constant 0 : index
    %c0_15 = arith.constant 0 : index
    %25 = vector.load %arg3[%c0_14, %c0_15] : memref<1x8xf32, #tpu.memory_space<vmem>>, vector<1x8xf32>
    %26 = vector.broadcast %25 : vector<1x8xf32> to vector<332x8xf32>
    %27 = arith.addf %24, %26 : vector<332x8xf32>
    %cst = arith.constant 0.000000e+00 : f32
    %28 = vector.broadcast %cst : f32 to vector<332x8xf32>
    %29 = arith.maximumf %27, %28 : vector<332x8xf32>
    %30 = vector.extract_strided_slice %29 {offsets = [0, 0], sizes = [330, 8], strides = [1, 1]} : vector<332x8xf32> to vector<330x8xf32>
    %31 = vector.extract_strided_slice %29 {offsets = [1, 0], sizes = [330, 8], strides = [1, 1]} : vector<332x8xf32> to vector<330x8xf32>
    %32 = vector.extract_strided_slice %29 {offsets = [2, 0], sizes = [330, 8], strides = [1, 1]} : vector<332x8xf32> to vector<330x8xf32>
    %33 = tpu.concatenate %30, %31, %32 in 1 : vector<330x8xf32>, vector<330x8xf32>, vector<330x8xf32> -> vector<330x24xf32>
    %c0_16 = arith.constant 0 : index
    %c0_17 = arith.constant 0 : index
    %34 = vector.load %arg4[%c0_16, %c0_17] : memref<24x16xf32, #tpu.memory_space<vmem>>, vector<24x16xf32>
    %cst_18 = arith.constant dense<0.000000e+00> : vector<330x16xf32>
    %35 = tpu.matmul %33, %34, %cst_18 {dimension_numbers = #tpu.dot_dimension_numbers<[1], [0], [0], [1], [0, 0, 1, 1], [], []>} : vector<330x24xf32>, vector<24x16xf32>, vector<330x16xf32> -> vector<330x16xf32>
    %c0_19 = arith.constant 0 : index
    %c0_20 = arith.constant 0 : index
    %36 = vector.load %arg22[%c0_19, %c0_20] : memref<330x16xf32, #tpu.memory_space<vmem>>, vector<330x16xf32>
    tpu.vector_store %arg22[%c0_19, %c0_20], %35 {strides = array<i32>} : memref<330x16xf32, #tpu.memory_space<vmem>>, vector<330x16xf32>,
    %c0_21 = arith.constant 0 : index
    %c0_22 = arith.constant 0 : index
    %37 = tpu.strided_load %arg22[%c0_21, %c0_22] {strides = array<i32: 3, 1>} : memref<330x16xf32, #tpu.memory_space<vmem>>, vector<110x16xf32>
    %c1_23 = arith.constant 1 : index
    %c0_24 = arith.constant 0 : index
    %38 = tpu.strided_load %arg22[%c1_23, %c0_24] {strides = array<i32: 3, 1>} : memref<330x16xf32, #tpu.memory_space<vmem>>, vector<110x16xf32>
    %39 = arith.maximumf %37, %38 : vector<110x16xf32>
    %c2_25 = arith.constant 2 : index
    %c0_26 = arith.constant 0 : index
    %40 = tpu.strided_load %arg22[%c2_25, %c0_26] {strides = array<i32: 3, 1>} : memref<330x16xf32, #tpu.memory_space<vmem>>, vector<110x16xf32>
    %41 = arith.maximumf %39, %40 : vector<110x16xf32>
    %c0_27 = arith.constant 0 : index
    %c0_28 = arith.constant 0 : index
    %42 = vector.load %arg5[%c0_27, %c0_28] : memref<1x16xf32, #tpu.memory_space<vmem>>, vector<1x16xf32>
    %43 = vector.broadcast %42 : vector<1x16xf32> to vector<110x16xf32>
    %44 = arith.addf %41, %43 : vector<110x16xf32>
    %cst_29 = arith.constant 0.000000e+00 : f32
    %45 = vector.broadcast %cst_29 : f32 to vector<110x16xf32>
    %46 = arith.maximumf %44, %45 : vector<110x16xf32>
    %47 = vector.extract_strided_slice %46 {offsets = [0, 0], sizes = [108, 16], strides = [1, 1]} : vector<110x16xf32> to vector<108x16xf32>
    %48 = vector.extract_strided_slice %46 {offsets = [1, 0], sizes = [108, 16], strides = [1, 1]} : vector<110x16xf32> to vector<108x16xf32>
    %49 = vector.extract_strided_slice %46 {offsets = [2, 0], sizes = [108, 16], strides = [1, 1]} : vector<110x16xf32> to vector<108x16xf32>
    %50 = tpu.concatenate %47, %48, %49 in 1 : vector<108x16xf32>, vector<108x16xf32>, vector<108x16xf32> -> vector<108x48xf32>
    %c0_30 = arith.constant 0 : index
    %c0_31 = arith.constant 0 : index
    %51 = vector.load %arg6[%c0_30, %c0_31] : memref<48x32xf32, #tpu.memory_space<vmem>>, vector<48x32xf32>
    %cst_32 = arith.constant dense<0.000000e+00> : vector<108x32xf32>
    %52 = tpu.matmul %50, %51, %cst_32 {dimension_numbers = #tpu.dot_dimension_numbers<[1], [0], [0], [1], [0, 0, 1, 1], [], []>} : vector<108x48xf32>, vector<48x32xf32>, vector<108x32xf32> -> vector<108x32xf32>
    %c0_33 = arith.constant 0 : index
    %c0_34 = arith.constant 0 : index
    %53 = vector.load %arg23[%c0_33, %c0_34] : memref<108x32xf32, #tpu.memory_space<vmem>>, vector<108x32xf32>
    tpu.vector_store %arg23[%c0_33, %c0_34], %52 {strides = array<i32>} : memref<108x32xf32, #tpu.memory_space<vmem>>, vector<108x32xf32>,
    %c0_35 = arith.constant 0 : index
    %c0_36 = arith.constant 0 : index
    %54 = tpu.strided_load %arg23[%c0_35, %c0_36] {strides = array<i32: 3, 1>} : memref<108x32xf32, #tpu.memory_space<vmem>>, vector<36x32xf32>
    %c1_37 = arith.constant 1 : index
    %c0_38 = arith.constant 0 : index
    %55 = tpu.strided_load %arg23[%c1_37, %c0_38] {strides = array<i32: 3, 1>} : memref<108x32xf32, #tpu.memory_space<vmem>>, vector<36x32xf32>
    %56 = arith.maximumf %54, %55 : vector<36x32xf32>
    %c2_39 = arith.constant 2 : index
    %c0_40 = arith.constant 0 : index
    %57 = tpu.strided_load %arg23[%c2_39, %c0_40] {strides = array<i32: 3, 1>} : memref<108x32xf32, #tpu.memory_space<vmem>>, vector<36x32xf32>
    %58 = arith.maximumf %56, %57 : vector<36x32xf32>
    %c0_41 = arith.constant 0 : index
    %c0_42 = arith.constant 0 : index
    %59 = vector.load %arg7[%c0_41, %c0_42] : memref<1x32xf32, #tpu.memory_space<vmem>>, vector<1x32xf32>
    %60 = vector.broadcast %59 : vector<1x32xf32> to vector<36x32xf32>
    %61 = arith.addf %58, %60 : vector<36x32xf32>
    %cst_43 = arith.constant 0.000000e+00 : f32
    %62 = vector.broadcast %cst_43 : f32 to vector<36x32xf32>
    %63 = arith.maximumf %61, %62 : vector<36x32xf32>
    %64 = vector.extract_strided_slice %63 {offsets = [0, 0], sizes = [34, 32], strides = [1, 1]} : vector<36x32xf32> to vector<34x32xf32>
    %65 = vector.extract_strided_slice %63 {offsets = [1, 0], sizes = [34, 32], strides = [1, 1]} : vector<36x32xf32> to vector<34x32xf32>
    %66 = vector.extract_strided_slice %63 {offsets = [2, 0], sizes = [34, 32], strides = [1, 1]} : vector<36x32xf32> to vector<34x32xf32>
    %67 = tpu.concatenate %64, %65, %66 in 1 : vector<34x32xf32>, vector<34x32xf32>, vector<34x32xf32> -> vector<34x96xf32>
    %c0_44 = arith.constant 0 : index
    %c0_45 = arith.constant 0 : index
    %68 = vector.load %arg8[%c0_44, %c0_45] : memref<96x64xf32, #tpu.memory_space<vmem>>, vector<96x64xf32>
    %cst_46 = arith.constant dense<0.000000e+00> : vector<34x64xf32>
    %69 = tpu.matmul %67, %68, %cst_46 {dimension_numbers = #tpu.dot_dimension_numbers<[1], [0], [0], [1], [0, 0, 1, 1], [], []>} : vector<34x96xf32>, vector<96x64xf32>, vector<34x64xf32> -> vector<34x64xf32>
    %c0_47 = arith.constant 0 : index
    %c0_48 = arith.constant 0 : index
    %70 = vector.load %arg24[%c0_47, %c0_48] : memref<34x64xf32, #tpu.memory_space<vmem>>, vector<34x64xf32>
    tpu.vector_store %arg24[%c0_47, %c0_48], %69 {strides = array<i32>} : memref<34x64xf32, #tpu.memory_space<vmem>>, vector<34x64xf32>,
    %c0_49 = arith.constant 0 : index
    %c0_50 = arith.constant 0 : index
    %71 = tpu.strided_load %arg24[%c0_49, %c0_50] {strides = array<i32: 3, 1>} : memref<34x64xf32, #tpu.memory_space<vmem>>, vector<11x64xf32>
    %c1_51 = arith.constant 1 : index
    %c0_52 = arith.constant 0 : index
    %72 = tpu.strided_load %arg24[%c1_51, %c0_52] {strides = array<i32: 3, 1>} : memref<34x64xf32, #tpu.memory_space<vmem>>, vector<11x64xf32>
    %73 = arith.maximumf %71, %72 : vector<11x64xf32>
    %c2_53 = arith.constant 2 : index
    %c0_54 = arith.constant 0 : index
    %74 = tpu.strided_load %arg24[%c2_53, %c0_54] {strides = array<i32: 3, 1>} : memref<34x64xf32, #tpu.memory_space<vmem>>, vector<11x64xf32>
    %75 = arith.maximumf %73, %74 : vector<11x64xf32>
    %c0_55 = arith.constant 0 : index
    %c0_56 = arith.constant 0 : index
    %76 = vector.load %arg9[%c0_55, %c0_56] : memref<1x64xf32, #tpu.memory_space<vmem>>, vector<1x64xf32>
    %77 = vector.broadcast %76 : vector<1x64xf32> to vector<11x64xf32>
    %78 = arith.addf %75, %77 : vector<11x64xf32>
    %cst_57 = arith.constant 0.000000e+00 : f32
    %79 = vector.broadcast %cst_57 : f32 to vector<11x64xf32>
    %80 = arith.maximumf %78, %79 : vector<11x64xf32>
    %81 = vector.extract_strided_slice %80 {offsets = [0, 0], sizes = [9, 64], strides = [1, 1]} : vector<11x64xf32> to vector<9x64xf32>
    %82 = vector.extract_strided_slice %80 {offsets = [1, 0], sizes = [9, 64], strides = [1, 1]} : vector<11x64xf32> to vector<9x64xf32>
    %83 = vector.extract_strided_slice %80 {offsets = [2, 0], sizes = [9, 64], strides = [1, 1]} : vector<11x64xf32> to vector<9x64xf32>
    %84 = tpu.concatenate %81, %82, %83 in 1 : vector<9x64xf32>, vector<9x64xf32>, vector<9x64xf32> -> vector<9x192xf32>
    %c0_58 = arith.constant 0 : index
    %c0_59 = arith.constant 0 : index
    %85 = vector.load %arg10[%c0_58, %c0_59] : memref<192x128xf32, #tpu.memory_space<vmem>>, vector<192x128xf32>
    %cst_60 = arith.constant dense<0.000000e+00> : vector<9x128xf32>
    %86 = tpu.matmul %84, %85, %cst_60 {dimension_numbers = #tpu.dot_dimension_numbers<[1], [0], [0], [1], [0, 0, 1, 1], [], []>} : vector<9x192xf32>, vector<192x128xf32>, vector<9x128xf32> -> vector<9x128xf32>
    %c0_61 = arith.constant 0 : index
    %c0_62 = arith.constant 0 : index
    %87 = vector.load %arg25[%c0_61, %c0_62] : memref<9x128xf32, #tpu.memory_space<vmem>>, vector<9x128xf32>
    tpu.vector_store %arg25[%c0_61, %c0_62], %86 {strides = array<i32>} : memref<9x128xf32, #tpu.memory_space<vmem>>, vector<9x128xf32>,
    %c0_63 = arith.constant 0 : index
    %c0_64 = arith.constant 0 : index
    %88 = tpu.strided_load %arg25[%c0_63, %c0_64] {strides = array<i32: 3, 1>} : memref<9x128xf32, #tpu.memory_space<vmem>>, vector<3x128xf32>
    %c1_65 = arith.constant 1 : index
    %c0_66 = arith.constant 0 : index
    %89 = tpu.strided_load %arg25[%c1_65, %c0_66] {strides = array<i32: 3, 1>} : memref<9x128xf32, #tpu.memory_space<vmem>>, vector<3x128xf32>
    %90 = arith.maximumf %88, %89 : vector<3x128xf32>
    %c2_67 = arith.constant 2 : index
    %c0_68 = arith.constant 0 : index
    %91 = tpu.strided_load %arg25[%c2_67, %c0_68] {strides = array<i32: 3, 1>} : memref<9x128xf32, #tpu.memory_space<vmem>>, vector<3x128xf32>
    %92 = arith.maximumf %90, %91 : vector<3x128xf32>
    %c0_69 = arith.constant 0 : index
    %c0_70 = arith.constant 0 : index
    %93 = vector.load %arg11[%c0_69, %c0_70] : memref<1x128xf32, #tpu.memory_space<vmem>>, vector<1x128xf32>
    %94 = vector.broadcast %93 : vector<1x128xf32> to vector<3x128xf32>
    %95 = arith.addf %92, %94 : vector<3x128xf32>
    %cst_71 = arith.constant 0.000000e+00 : f32
    %96 = vector.broadcast %cst_71 : f32 to vector<3x128xf32>
    %97 = arith.maximumf %95, %96 : vector<3x128xf32>
    %98 = vector.extract_strided_slice %97 {offsets = [0, 0], sizes = [1, 128], strides = [1, 1]} : vector<3x128xf32> to vector<1x128xf32>
    %99 = vector.extract_strided_slice %97 {offsets = [1, 0], sizes = [1, 128], strides = [1, 1]} : vector<3x128xf32> to vector<1x128xf32>
    %100 = vector.extract_strided_slice %97 {offsets = [2, 0], sizes = [1, 128], strides = [1, 1]} : vector<3x128xf32> to vector<1x128xf32>
    %cst_72 = arith.constant 0.000000e+00 : f32
    %101 = vector.broadcast %cst_72 : f32 to vector<1x32xf32>
    %c0_73 = arith.constant 0 : index
    %c0_74 = arith.constant 0 : index
    %c0_75 = arith.constant 0 : index
    %102 = vector.load %arg12[%c0_73, %c0_74, %c0_75] : memref<2x128x96xf32, #tpu.memory_space<vmem>>, vector<1x128x96xf32>
    %103 = vector.shape_cast %102 : vector<1x128x96xf32> to vector<128x96xf32>
    %cst_76 = arith.constant dense<0.000000e+00> : vector<1x96xf32>
    %104 = tpu.matmul %98, %103, %cst_76 {dimension_numbers = #tpu.dot_dimension_numbers<[1], [0], [0], [1], [0, 0, 1, 1], [], []>} : vector<1x128xf32>, vector<128x96xf32>, vector<1x96xf32> -> vector<1x96xf32>
    %c0_77 = arith.constant 0 : index
    %c0_78 = arith.constant 0 : index
    %c0_79 = arith.constant 0 : index
    %105 = vector.load %arg14[%c0_77, %c0_78, %c0_79] : memref<2x1x96xf32, #tpu.memory_space<vmem>>, vector<1x1x96xf32>
    %106 = vector.shape_cast %105 : vector<1x1x96xf32> to vector<1x96xf32>
    %107 = arith.addf %104, %106 : vector<1x96xf32>
    %c0_80 = arith.constant 0 : index
    %c0_81 = arith.constant 0 : index
    %c0_82 = arith.constant 0 : index
    %108 = vector.load %arg13[%c0_80, %c0_81, %c0_82] : memref<2x32x96xf32, #tpu.memory_space<vmem>>, vector<1x32x96xf32>
    %109 = vector.shape_cast %108 : vector<1x32x96xf32> to vector<32x96xf32>
    %cst_83 = arith.constant dense<0.000000e+00> : vector<1x96xf32>
    %110 = tpu.matmul %101, %109, %cst_83 {dimension_numbers = #tpu.dot_dimension_numbers<[1], [0], [0], [1], [0, 0, 1, 1], [], []>} : vector<1x32xf32>, vector<32x96xf32>, vector<1x96xf32> -> vector<1x96xf32>
    %c0_84 = arith.constant 0 : index
    %c0_85 = arith.constant 0 : index
    %c0_86 = arith.constant 0 : index
    %111 = vector.load %arg15[%c0_84, %c0_85, %c0_86] : memref<2x1x96xf32, #tpu.memory_space<vmem>>, vector<1x1x96xf32>
    %112 = vector.shape_cast %111 : vector<1x1x96xf32> to vector<1x96xf32>
    %113 = arith.addf %110, %112 : vector<1x96xf32>
    %114 = vector.extract_strided_slice %107 {offsets = [0, 0], sizes = [1, 32], strides = [1, 1]} : vector<1x96xf32> to vector<1x32xf32>
    %115 = vector.extract_strided_slice %113 {offsets = [0, 0], sizes = [1, 32], strides = [1, 1]} : vector<1x96xf32> to vector<1x32xf32>
    %116 = arith.addf %114, %115 : vector<1x32xf32>
    %117 = arith.negf %116 : vector<1x32xf32>
    %118 = math.exp %117 : vector<1x32xf32>
    %cst_87 = arith.constant 1.000000e+00 : f32
    %119 = vector.broadcast %cst_87 : f32 to vector<1x32xf32>
    %120 = arith.addf %119, %118 : vector<1x32xf32>
    %121 = arith.divf %119, %120 : vector<1x32xf32>
    %122 = vector.extract_strided_slice %107 {offsets = [0, 32], sizes = [1, 32], strides = [1, 1]} : vector<1x96xf32> to vector<1x32xf32>
    %123 = vector.extract_strided_slice %113 {offsets = [0, 32], sizes = [1, 32], strides = [1, 1]} : vector<1x96xf32> to vector<1x32xf32>
    %124 = arith.addf %122, %123 : vector<1x32xf32>
    %125 = arith.negf %124 : vector<1x32xf32>
    %126 = math.exp %125 : vector<1x32xf32>
    %cst_88 = arith.constant 1.000000e+00 : f32
    %127 = vector.broadcast %cst_88 : f32 to vector<1x32xf32>
    %128 = arith.addf %127, %126 : vector<1x32xf32>
    %129 = arith.divf %127, %128 : vector<1x32xf32>
    %130 = vector.extract_strided_slice %107 {offsets = [0, 64], sizes = [1, 32], strides = [1, 1]} : vector<1x96xf32> to vector<1x32xf32>
    %131 = vector.extract_strided_slice %113 {offsets = [0, 64], sizes = [1, 32], strides = [1, 1]} : vector<1x96xf32> to vector<1x32xf32>
    %132 = arith.mulf %121, %131 : vector<1x32xf32>
    %133 = arith.addf %130, %132 : vector<1x32xf32>
    %134 = math.tanh %133 : vector<1x32xf32>
    %cst_89 = arith.constant 1.000000e+00 : f32
    %135 = vector.broadcast %cst_89 : f32 to vector<1x32xf32>
    %136 = arith.subf %135, %129 : vector<1x32xf32>
    %137 = arith.mulf %136, %134 : vector<1x32xf32>
    %138 = arith.mulf %129, %101 : vector<1x32xf32>
    %139 = arith.addf %137, %138 : vector<1x32xf32>
    %c0_90 = arith.constant 0 : index
    %c0_91 = arith.constant 0 : index
    %c0_92 = arith.constant 0 : index
    %140 = vector.load %arg12[%c0_90, %c0_91, %c0_92] : memref<2x128x96xf32, #tpu.memory_space<vmem>>, vector<1x128x96xf32>
    %141 = vector.shape_cast %140 : vector<1x128x96xf32> to vector<128x96xf32>
    %cst_93 = arith.constant dense<0.000000e+00> : vector<1x96xf32>
    %142 = tpu.matmul %99, %141, %cst_93 {dimension_numbers = #tpu.dot_dimension_numbers<[1], [0], [0], [1], [0, 0, 1, 1], [], []>} : vector<1x128xf32>, vector<128x96xf32>, vector<1x96xf32> -> vector<1x96xf32>
    %c0_94 = arith.constant 0 : index
    %c0_95 = arith.constant 0 : index
    %c0_96 = arith.constant 0 : index
    %143 = vector.load %arg14[%c0_94, %c0_95, %c0_96] : memref<2x1x96xf32, #tpu.memory_space<vmem>>, vector<1x1x96xf32>
    %144 = vector.shape_cast %143 : vector<1x1x96xf32> to vector<1x96xf32>
    %145 = arith.addf %142, %144 : vector<1x96xf32>
    %c0_97 = arith.constant 0 : index
    %c0_98 = arith.constant 0 : index
    %c0_99 = arith.constant 0 : index
    %146 = vector.load %arg13[%c0_97, %c0_98, %c0_99] : memref<2x32x96xf32, #tpu.memory_space<vmem>>, vector<1x32x96xf32>
    %147 = vector.shape_cast %146 : vector<1x32x96xf32> to vector<32x96xf32>
    %cst_100 = arith.constant dense<0.000000e+00> : vector<1x96xf32>
    %148 = tpu.matmul %139, %147, %cst_100 {dimension_numbers = #tpu.dot_dimension_numbers<[1], [0], [0], [1], [0, 0, 1, 1], [], []>} : vector<1x32xf32>, vector<32x96xf32>, vector<1x96xf32> -> vector<1x96xf32>
    %c0_101 = arith.constant 0 : index
    %c0_102 = arith.constant 0 : index
    %c0_103 = arith.constant 0 : index
    %149 = vector.load %arg15[%c0_101, %c0_102, %c0_103] : memref<2x1x96xf32, #tpu.memory_space<vmem>>, vector<1x1x96xf32>
    %150 = vector.shape_cast %149 : vector<1x1x96xf32> to vector<1x96xf32>
    %151 = arith.addf %148, %150 : vector<1x96xf32>
    %152 = vector.extract_strided_slice %145 {offsets = [0, 0], sizes = [1, 32], strides = [1, 1]} : vector<1x96xf32> to vector<1x32xf32>
    %153 = vector.extract_strided_slice %151 {offsets = [0, 0], sizes = [1, 32], strides = [1, 1]} : vector<1x96xf32> to vector<1x32xf32>
    %154 = arith.addf %152, %153 : vector<1x32xf32>
    %155 = arith.negf %154 : vector<1x32xf32>
    %156 = math.exp %155 : vector<1x32xf32>
    %cst_104 = arith.constant 1.000000e+00 : f32
    %157 = vector.broadcast %cst_104 : f32 to vector<1x32xf32>
    %158 = arith.addf %157, %156 : vector<1x32xf32>
    %159 = arith.divf %157, %158 : vector<1x32xf32>
    %160 = vector.extract_strided_slice %145 {offsets = [0, 32], sizes = [1, 32], strides = [1, 1]} : vector<1x96xf32> to vector<1x32xf32>
    %161 = vector.extract_strided_slice %151 {offsets = [0, 32], sizes = [1, 32], strides = [1, 1]} : vector<1x96xf32> to vector<1x32xf32>
    %162 = arith.addf %160, %161 : vector<1x32xf32>
    %163 = arith.negf %162 : vector<1x32xf32>
    %164 = math.exp %163 : vector<1x32xf32>
    %cst_105 = arith.constant 1.000000e+00 : f32
    %165 = vector.broadcast %cst_105 : f32 to vector<1x32xf32>
    %166 = arith.addf %165, %164 : vector<1x32xf32>
    %167 = arith.divf %165, %166 : vector<1x32xf32>
    %168 = vector.extract_strided_slice %145 {offsets = [0, 64], sizes = [1, 32], strides = [1, 1]} : vector<1x96xf32> to vector<1x32xf32>
    %169 = vector.extract_strided_slice %151 {offsets = [0, 64], sizes = [1, 32], strides = [1, 1]} : vector<1x96xf32> to vector<1x32xf32>
    %170 = arith.mulf %159, %169 : vector<1x32xf32>
    %171 = arith.addf %168, %170 : vector<1x32xf32>
    %172 = math.tanh %171 : vector<1x32xf32>
    %cst_106 = arith.constant 1.000000e+00 : f32
    %173 = vector.broadcast %cst_106 : f32 to vector<1x32xf32>
    %174 = arith.subf %173, %167 : vector<1x32xf32>
    %175 = arith.mulf %174, %172 : vector<1x32xf32>
    %176 = arith.mulf %167, %139 : vector<1x32xf32>
    %177 = arith.addf %175, %176 : vector<1x32xf32>
    %178 = arith.maximumf %139, %177 : vector<1x32xf32>
    %179 = arith.addf %139, %177 : vector<1x32xf32>
    %c0_107 = arith.constant 0 : index
    %c0_108 = arith.constant 0 : index
    %c0_109 = arith.constant 0 : index
    %180 = vector.load %arg12[%c0_107, %c0_108, %c0_109] : memref<2x128x96xf32, #tpu.memory_space<vmem>>, vector<1x128x96xf32>
    %181 = vector.shape_cast %180 : vector<1x128x96xf32> to vector<128x96xf32>
    %cst_110 = arith.constant dense<0.000000e+00> : vector<1x96xf32>
    %182 = tpu.matmul %100, %181, %cst_110 {dimension_numbers = #tpu.dot_dimension_numbers<[1], [0], [0], [1], [0, 0, 1, 1], [], []>} : vector<1x128xf32>, vector<128x96xf32>, vector<1x96xf32> -> vector<1x96xf32>
    %c0_111 = arith.constant 0 : index
    %c0_112 = arith.constant 0 : index
    %c0_113 = arith.constant 0 : index
    %183 = vector.load %arg14[%c0_111, %c0_112, %c0_113] : memref<2x1x96xf32, #tpu.memory_space<vmem>>, vector<1x1x96xf32>
    %184 = vector.shape_cast %183 : vector<1x1x96xf32> to vector<1x96xf32>
    %185 = arith.addf %182, %184 : vector<1x96xf32>
    %c0_114 = arith.constant 0 : index
    %c0_115 = arith.constant 0 : index
    %c0_116 = arith.constant 0 : index
    %186 = vector.load %arg13[%c0_114, %c0_115, %c0_116] : memref<2x32x96xf32, #tpu.memory_space<vmem>>, vector<1x32x96xf32>
    %187 = vector.shape_cast %186 : vector<1x32x96xf32> to vector<32x96xf32>
    %cst_117 = arith.constant dense<0.000000e+00> : vector<1x96xf32>
    %188 = tpu.matmul %177, %187, %cst_117 {dimension_numbers = #tpu.dot_dimension_numbers<[1], [0], [0], [1], [0, 0, 1, 1], [], []>} : vector<1x32xf32>, vector<32x96xf32>, vector<1x96xf32> -> vector<1x96xf32>
    %c0_118 = arith.constant 0 : index
    %c0_119 = arith.constant 0 : index
    %c0_120 = arith.constant 0 : index
    %189 = vector.load %arg15[%c0_118, %c0_119, %c0_120] : memref<2x1x96xf32, #tpu.memory_space<vmem>>, vector<1x1x96xf32>
    %190 = vector.shape_cast %189 : vector<1x1x96xf32> to vector<1x96xf32>
    %191 = arith.addf %188, %190 : vector<1x96xf32>
    %192 = vector.extract_strided_slice %185 {offsets = [0, 0], sizes = [1, 32], strides = [1, 1]} : vector<1x96xf32> to vector<1x32xf32>
    %193 = vector.extract_strided_slice %191 {offsets = [0, 0], sizes = [1, 32], strides = [1, 1]} : vector<1x96xf32> to vector<1x32xf32>
    %194 = arith.addf %192, %193 : vector<1x32xf32>
    %195 = arith.negf %194 : vector<1x32xf32>
    %196 = math.exp %195 : vector<1x32xf32>
    %cst_121 = arith.constant 1.000000e+00 : f32
    %197 = vector.broadcast %cst_121 : f32 to vector<1x32xf32>
    %198 = arith.addf %197, %196 : vector<1x32xf32>
    %199 = arith.divf %197, %198 : vector<1x32xf32>
    %200 = vector.extract_strided_slice %185 {offsets = [0, 32], sizes = [1, 32], strides = [1, 1]} : vector<1x96xf32> to vector<1x32xf32>
    %201 = vector.extract_strided_slice %191 {offsets = [0, 32], sizes = [1, 32], strides = [1, 1]} : vector<1x96xf32> to vector<1x32xf32>
    %202 = arith.addf %200, %201 : vector<1x32xf32>
    %203 = arith.negf %202 : vector<1x32xf32>
    %204 = math.exp %203 : vector<1x32xf32>
    %cst_122 = arith.constant 1.000000e+00 : f32
    %205 = vector.broadcast %cst_122 : f32 to vector<1x32xf32>
    %206 = arith.addf %205, %204 : vector<1x32xf32>
    %207 = arith.divf %205, %206 : vector<1x32xf32>
    %208 = vector.extract_strided_slice %185 {offsets = [0, 64], sizes = [1, 32], strides = [1, 1]} : vector<1x96xf32> to vector<1x32xf32>
    %209 = vector.extract_strided_slice %191 {offsets = [0, 64], sizes = [1, 32], strides = [1, 1]} : vector<1x96xf32> to vector<1x32xf32>
    %210 = arith.mulf %199, %209 : vector<1x32xf32>
    %211 = arith.addf %208, %210 : vector<1x32xf32>
    %212 = math.tanh %211 : vector<1x32xf32>
    %cst_123 = arith.constant 1.000000e+00 : f32
    %213 = vector.broadcast %cst_123 : f32 to vector<1x32xf32>
    %214 = arith.subf %213, %207 : vector<1x32xf32>
    %215 = arith.mulf %214, %212 : vector<1x32xf32>
    %216 = arith.mulf %207, %177 : vector<1x32xf32>
    %217 = arith.addf %215, %216 : vector<1x32xf32>
    %218 = arith.maximumf %178, %217 : vector<1x32xf32>
    %219 = arith.addf %179, %217 : vector<1x32xf32>
    %cst_124 = arith.constant 0.333333343 : f32
    %220 = vector.broadcast %cst_124 : f32 to vector<1x32xf32>
    %221 = arith.mulf %219, %220 : vector<1x32xf32>
    %cst_125 = arith.constant 0.000000e+00 : f32
    %222 = vector.broadcast %cst_125 : f32 to vector<1x32xf32>
    %c1_126 = arith.constant 1 : index
    %c0_127 = arith.constant 0 : index
    %c0_128 = arith.constant 0 : index
    %223 = vector.load %arg12[%c1_126, %c0_127, %c0_128] : memref<2x128x96xf32, #tpu.memory_space<vmem>>, vector<1x128x96xf32>
    %224 = vector.shape_cast %223 : vector<1x128x96xf32> to vector<128x96xf32>
    %cst_129 = arith.constant dense<0.000000e+00> : vector<1x96xf32>
    %225 = tpu.matmul %100, %224, %cst_129 {dimension_numbers = #tpu.dot_dimension_numbers<[1], [0], [0], [1], [0, 0, 1, 1], [], []>} : vector<1x128xf32>, vector<128x96xf32>, vector<1x96xf32> -> vector<1x96xf32>
    %c1_130 = arith.constant 1 : index
    %c0_131 = arith.constant 0 : index
    %c0_132 = arith.constant 0 : index
    %226 = vector.load %arg14[%c1_130, %c0_131, %c0_132] : memref<2x1x96xf32, #tpu.memory_space<vmem>>, vector<1x1x96xf32>
    %227 = vector.shape_cast %226 : vector<1x1x96xf32> to vector<1x96xf32>
    %228 = arith.addf %225, %227 : vector<1x96xf32>
    %c1_133 = arith.constant 1 : index
    %c0_134 = arith.constant 0 : index
    %c0_135 = arith.constant 0 : index
    %229 = vector.load %arg13[%c1_133, %c0_134, %c0_135] : memref<2x32x96xf32, #tpu.memory_space<vmem>>, vector<1x32x96xf32>
    %230 = vector.shape_cast %229 : vector<1x32x96xf32> to vector<32x96xf32>
    %cst_136 = arith.constant dense<0.000000e+00> : vector<1x96xf32>
    %231 = tpu.matmul %222, %230, %cst_136 {dimension_numbers = #tpu.dot_dimension_numbers<[1], [0], [0], [1], [0, 0, 1, 1], [], []>} : vector<1x32xf32>, vector<32x96xf32>, vector<1x96xf32> -> vector<1x96xf32>
    %c1_137 = arith.constant 1 : index
    %c0_138 = arith.constant 0 : index
    %c0_139 = arith.constant 0 : index
    %232 = vector.load %arg15[%c1_137, %c0_138, %c0_139] : memref<2x1x96xf32, #tpu.memory_space<vmem>>, vector<1x1x96xf32>
    %233 = vector.shape_cast %232 : vector<1x1x96xf32> to vector<1x96xf32>
    %234 = arith.addf %231, %233 : vector<1x96xf32>
    %235 = vector.extract_strided_slice %228 {offsets = [0, 0], sizes = [1, 32], strides = [1, 1]} : vector<1x96xf32> to vector<1x32xf32>
    %236 = vector.extract_strided_slice %234 {offsets = [0, 0], sizes = [1, 32], strides = [1, 1]} : vector<1x96xf32> to vector<1x32xf32>
    %237 = arith.addf %235, %236 : vector<1x32xf32>
    %238 = arith.negf %237 : vector<1x32xf32>
    %239 = math.exp %238 : vector<1x32xf32>
    %cst_140 = arith.constant 1.000000e+00 : f32
    %240 = vector.broadcast %cst_140 : f32 to vector<1x32xf32>
    %241 = arith.addf %240, %239 : vector<1x32xf32>
    %242 = arith.divf %240, %241 : vector<1x32xf32>
    %243 = vector.extract_strided_slice %228 {offsets = [0, 32], sizes = [1, 32], strides = [1, 1]} : vector<1x96xf32> to vector<1x32xf32>
    %244 = vector.extract_strided_slice %234 {offsets = [0, 32], sizes = [1, 32], strides = [1, 1]} : vector<1x96xf32> to vector<1x32xf32>
    %245 = arith.addf %243, %244 : vector<1x32xf32>
    %246 = arith.negf %245 : vector<1x32xf32>
    %247 = math.exp %246 : vector<1x32xf32>
    %cst_141 = arith.constant 1.000000e+00 : f32
    %248 = vector.broadcast %cst_141 : f32 to vector<1x32xf32>
    %249 = arith.addf %248, %247 : vector<1x32xf32>
    %250 = arith.divf %248, %249 : vector<1x32xf32>
    %251 = vector.extract_strided_slice %228 {offsets = [0, 64], sizes = [1, 32], strides = [1, 1]} : vector<1x96xf32> to vector<1x32xf32>
    %252 = vector.extract_strided_slice %234 {offsets = [0, 64], sizes = [1, 32], strides = [1, 1]} : vector<1x96xf32> to vector<1x32xf32>
    %253 = arith.mulf %242, %252 : vector<1x32xf32>
    %254 = arith.addf %251, %253 : vector<1x32xf32>
    %255 = math.tanh %254 : vector<1x32xf32>
    %cst_142 = arith.constant 1.000000e+00 : f32
    %256 = vector.broadcast %cst_142 : f32 to vector<1x32xf32>
    %257 = arith.subf %256, %250 : vector<1x32xf32>
    %258 = arith.mulf %257, %255 : vector<1x32xf32>
    %259 = arith.mulf %250, %222 : vector<1x32xf32>
    %260 = arith.addf %258, %259 : vector<1x32xf32>
    %c1_143 = arith.constant 1 : index
    %c0_144 = arith.constant 0 : index
    %c0_145 = arith.constant 0 : index
    %261 = vector.load %arg12[%c1_143, %c0_144, %c0_145] : memref<2x128x96xf32, #tpu.memory_space<vmem>>, vector<1x128x96xf32>
    %262 = vector.shape_cast %261 : vector<1x128x96xf32> to vector<128x96xf32>
    %cst_146 = arith.constant dense<0.000000e+00> : vector<1x96xf32>
    %263 = tpu.matmul %99, %262, %cst_146 {dimension_numbers = #tpu.dot_dimension_numbers<[1], [0], [0], [1], [0, 0, 1, 1], [], []>} : vector<1x128xf32>, vector<128x96xf32>, vector<1x96xf32> -> vector<1x96xf32>
    %c1_147 = arith.constant 1 : index
    %c0_148 = arith.constant 0 : index
    %c0_149 = arith.constant 0 : index
    %264 = vector.load %arg14[%c1_147, %c0_148, %c0_149] : memref<2x1x96xf32, #tpu.memory_space<vmem>>, vector<1x1x96xf32>
    %265 = vector.shape_cast %264 : vector<1x1x96xf32> to vector<1x96xf32>
    %266 = arith.addf %263, %265 : vector<1x96xf32>
    %c1_150 = arith.constant 1 : index
    %c0_151 = arith.constant 0 : index
    %c0_152 = arith.constant 0 : index
    %267 = vector.load %arg13[%c1_150, %c0_151, %c0_152] : memref<2x32x96xf32, #tpu.memory_space<vmem>>, vector<1x32x96xf32>
    %268 = vector.shape_cast %267 : vector<1x32x96xf32> to vector<32x96xf32>
    %cst_153 = arith.constant dense<0.000000e+00> : vector<1x96xf32>
    %269 = tpu.matmul %260, %268, %cst_153 {dimension_numbers = #tpu.dot_dimension_numbers<[1], [0], [0], [1], [0, 0, 1, 1], [], []>} : vector<1x32xf32>, vector<32x96xf32>, vector<1x96xf32> -> vector<1x96xf32>
    %c1_154 = arith.constant 1 : index
    %c0_155 = arith.constant 0 : index
    %c0_156 = arith.constant 0 : index
    %270 = vector.load %arg15[%c1_154, %c0_155, %c0_156] : memref<2x1x96xf32, #tpu.memory_space<vmem>>, vector<1x1x96xf32>
    %271 = vector.shape_cast %270 : vector<1x1x96xf32> to vector<1x96xf32>
    %272 = arith.addf %269, %271 : vector<1x96xf32>
    %273 = vector.extract_strided_slice %266 {offsets = [0, 0], sizes = [1, 32], strides = [1, 1]} : vector<1x96xf32> to vector<1x32xf32>
    %274 = vector.extract_strided_slice %272 {offsets = [0, 0], sizes = [1, 32], strides = [1, 1]} : vector<1x96xf32> to vector<1x32xf32>
    %275 = arith.addf %273, %274 : vector<1x32xf32>
    %276 = arith.negf %275 : vector<1x32xf32>
    %277 = math.exp %276 : vector<1x32xf32>
    %cst_157 = arith.constant 1.000000e+00 : f32
    %278 = vector.broadcast %cst_157 : f32 to vector<1x32xf32>
    %279 = arith.addf %278, %277 : vector<1x32xf32>
    %280 = arith.divf %278, %279 : vector<1x32xf32>
    %281 = vector.extract_strided_slice %266 {offsets = [0, 32], sizes = [1, 32], strides = [1, 1]} : vector<1x96xf32> to vector<1x32xf32>
    %282 = vector.extract_strided_slice %272 {offsets = [0, 32], sizes = [1, 32], strides = [1, 1]} : vector<1x96xf32> to vector<1x32xf32>
    %283 = arith.addf %281, %282 : vector<1x32xf32>
    %284 = arith.negf %283 : vector<1x32xf32>
    %285 = math.exp %284 : vector<1x32xf32>
    %cst_158 = arith.constant 1.000000e+00 : f32
    %286 = vector.broadcast %cst_158 : f32 to vector<1x32xf32>
    %287 = arith.addf %286, %285 : vector<1x32xf32>
    %288 = arith.divf %286, %287 : vector<1x32xf32>
    %289 = vector.extract_strided_slice %266 {offsets = [0, 64], sizes = [1, 32], strides = [1, 1]} : vector<1x96xf32> to vector<1x32xf32>
    %290 = vector.extract_strided_slice %272 {offsets = [0, 64], sizes = [1, 32], strides = [1, 1]} : vector<1x96xf32> to vector<1x32xf32>
    %291 = arith.mulf %280, %290 : vector<1x32xf32>
    %292 = arith.addf %289, %291 : vector<1x32xf32>
    %293 = math.tanh %292 : vector<1x32xf32>
    %cst_159 = arith.constant 1.000000e+00 : f32
    %294 = vector.broadcast %cst_159 : f32 to vector<1x32xf32>
    %295 = arith.subf %294, %288 : vector<1x32xf32>
    %296 = arith.mulf %295, %293 : vector<1x32xf32>
    %297 = arith.mulf %288, %260 : vector<1x32xf32>
    %298 = arith.addf %296, %297 : vector<1x32xf32>
    %299 = arith.maximumf %260, %298 : vector<1x32xf32>
    %300 = arith.addf %260, %298 : vector<1x32xf32>
    %c1_160 = arith.constant 1 : index
    %c0_161 = arith.constant 0 : index
    %c0_162 = arith.constant 0 : index
    %301 = vector.load %arg12[%c1_160, %c0_161, %c0_162] : memref<2x128x96xf32, #tpu.memory_space<vmem>>, vector<1x128x96xf32>
    %302 = vector.shape_cast %301 : vector<1x128x96xf32> to vector<128x96xf32>
    %cst_163 = arith.constant dense<0.000000e+00> : vector<1x96xf32>
    %303 = tpu.matmul %98, %302, %cst_163 {dimension_numbers = #tpu.dot_dimension_numbers<[1], [0], [0], [1], [0, 0, 1, 1], [], []>} : vector<1x128xf32>, vector<128x96xf32>, vector<1x96xf32> -> vector<1x96xf32>
    %c1_164 = arith.constant 1 : index
    %c0_165 = arith.constant 0 : index
    %c0_166 = arith.constant 0 : index
    %304 = vector.load %arg14[%c1_164, %c0_165, %c0_166] : memref<2x1x96xf32, #tpu.memory_space<vmem>>, vector<1x1x96xf32>
    %305 = vector.shape_cast %304 : vector<1x1x96xf32> to vector<1x96xf32>
    %306 = arith.addf %303, %305 : vector<1x96xf32>
    %c1_167 = arith.constant 1 : index
    %c0_168 = arith.constant 0 : index
    %c0_169 = arith.constant 0 : index
    %307 = vector.load %arg13[%c1_167, %c0_168, %c0_169] : memref<2x32x96xf32, #tpu.memory_space<vmem>>, vector<1x32x96xf32>
    %308 = vector.shape_cast %307 : vector<1x32x96xf32> to vector<32x96xf32>
    %cst_170 = arith.constant dense<0.000000e+00> : vector<1x96xf32>
    %309 = tpu.matmul %298, %308, %cst_170 {dimension_numbers = #tpu.dot_dimension_numbers<[1], [0], [0], [1], [0, 0, 1, 1], [], []>} : vector<1x32xf32>, vector<32x96xf32>, vector<1x96xf32> -> vector<1x96xf32>
    %c1_171 = arith.constant 1 : index
    %c0_172 = arith.constant 0 : index
    %c0_173 = arith.constant 0 : index
    %310 = vector.load %arg15[%c1_171, %c0_172, %c0_173] : memref<2x1x96xf32, #tpu.memory_space<vmem>>, vector<1x1x96xf32>
    %311 = vector.shape_cast %310 : vector<1x1x96xf32> to vector<1x96xf32>
    %312 = arith.addf %309, %311 : vector<1x96xf32>
    %313 = vector.extract_strided_slice %306 {offsets = [0, 0], sizes = [1, 32], strides = [1, 1]} : vector<1x96xf32> to vector<1x32xf32>
    %314 = vector.extract_strided_slice %312 {offsets = [0, 0], sizes = [1, 32], strides = [1, 1]} : vector<1x96xf32> to vector<1x32xf32>
    %315 = arith.addf %313, %314 : vector<1x32xf32>
    %316 = arith.negf %315 : vector<1x32xf32>
    %317 = math.exp %316 : vector<1x32xf32>
    %cst_174 = arith.constant 1.000000e+00 : f32
    %318 = vector.broadcast %cst_174 : f32 to vector<1x32xf32>
    %319 = arith.addf %318, %317 : vector<1x32xf32>
    %320 = arith.divf %318, %319 : vector<1x32xf32>
    %321 = vector.extract_strided_slice %306 {offsets = [0, 32], sizes = [1, 32], strides = [1, 1]} : vector<1x96xf32> to vector<1x32xf32>
    %322 = vector.extract_strided_slice %312 {offsets = [0, 32], sizes = [1, 32], strides = [1, 1]} : vector<1x96xf32> to vector<1x32xf32>
    %323 = arith.addf %321, %322 : vector<1x32xf32>
    %324 = arith.negf %323 : vector<1x32xf32>
    %325 = math.exp %324 : vector<1x32xf32>
    %cst_175 = arith.constant 1.000000e+00 : f32
    %326 = vector.broadcast %cst_175 : f32 to vector<1x32xf32>
    %327 = arith.addf %326, %325 : vector<1x32xf32>
    %328 = arith.divf %326, %327 : vector<1x32xf32>
    %329 = vector.extract_strided_slice %306 {offsets = [0, 64], sizes = [1, 32], strides = [1, 1]} : vector<1x96xf32> to vector<1x32xf32>
    %330 = vector.extract_strided_slice %312 {offsets = [0, 64], sizes = [1, 32], strides = [1, 1]} : vector<1x96xf32> to vector<1x32xf32>
    %331 = arith.mulf %320, %330 : vector<1x32xf32>
    %332 = arith.addf %329, %331 : vector<1x32xf32>
    %333 = math.tanh %332 : vector<1x32xf32>
    %cst_176 = arith.constant 1.000000e+00 : f32
    %334 = vector.broadcast %cst_176 : f32 to vector<1x32xf32>
    %335 = arith.subf %334, %328 : vector<1x32xf32>
    %336 = arith.mulf %335, %333 : vector<1x32xf32>
    %337 = arith.mulf %328, %298 : vector<1x32xf32>
    %338 = arith.addf %336, %337 : vector<1x32xf32>
    %339 = arith.maximumf %299, %338 : vector<1x32xf32>
    %340 = arith.addf %300, %338 : vector<1x32xf32>
    %cst_177 = arith.constant 0.333333343 : f32
    %341 = vector.broadcast %cst_177 : f32 to vector<1x32xf32>
    %342 = arith.mulf %340, %341 : vector<1x32xf32>
    %343 = tpu.concatenate %218, %339, %221, %342, %217, %338 in 1 : vector<1x32xf32>, vector<1x32xf32>, vector<1x32xf32>, vector<1x32xf32>, vector<1x32xf32>, vector<1x32xf32> -> vector<1x192xf32>
    %c0_178 = arith.constant 0 : index
    %c0_179 = arith.constant 0 : index
    %344 = vector.load %arg16[%c0_178, %c0_179] : memref<192x30xf32, #tpu.memory_space<vmem>>, vector<192x30xf32>
    %cst_180 = arith.constant dense<0.000000e+00> : vector<1x30xf32>
    %345 = tpu.matmul %343, %344, %cst_180 {dimension_numbers = #tpu.dot_dimension_numbers<[1], [0], [0], [1], [0, 0, 1, 1], [], []>} : vector<1x192xf32>, vector<192x30xf32>, vector<1x30xf32> -> vector<1x30xf32>
    %c0_181 = arith.constant 0 : index
    %c0_182 = arith.constant 0 : index
    %346 = vector.load %arg17[%c0_181, %c0_182] : memref<1x30xf32, #tpu.memory_space<vmem>>, vector<1x30xf32>
    %347 = arith.addf %345, %346 : vector<1x30xf32>
    %cst_183 = arith.constant 0.000000e+00 : f32
    %348 = vector.broadcast %cst_183 : f32 to vector<1x30xf32>
    %349 = arith.maximumf %347, %348 : vector<1x30xf32>
    %c0_184 = arith.constant 0 : index
    %c0_185 = arith.constant 0 : index
    %350 = vector.load %arg18[%c0_184, %c0_185] : memref<30x1xf32, #tpu.memory_space<vmem>>, vector<30x1xf32>
    %cst_186 = arith.constant dense<0.000000e+00> : vector<1x1xf32>
    %351 = tpu.matmul %349, %350, %cst_186 {dimension_numbers = #tpu.dot_dimension_numbers<[1], [0], [0], [1], [0, 0, 1, 1], [], []>} : vector<1x30xf32>, vector<30x1xf32>, vector<1x1xf32> -> vector<1x1xf32>
    %c0_187 = arith.constant 0 : index
    %c0_188 = arith.constant 0 : index
    %352 = vector.load %arg19[%c0_187, %c0_188] : memref<1x1xf32, #tpu.memory_space<vmem>>, vector<1x1xf32>
    %353 = arith.addf %351, %352 : vector<1x1xf32>
    %354 = arith.negf %353 : vector<1x1xf32>
    %355 = math.exp %354 : vector<1x1xf32>
    %cst_189 = arith.constant 1.000000e+00 : f32
    %356 = vector.broadcast %cst_189 : f32 to vector<1x1xf32>
    %357 = arith.addf %356, %355 : vector<1x1xf32>
    %358 = arith.divf %356, %357 : vector<1x1xf32>
    %c0_190 = arith.constant 0 : index
    %c0_191 = arith.constant 0 : index
    %c0_192 = arith.constant 0 : index
    %359 = vector.load %arg20[%c0_190, %c0_191, %c0_192] : memref<1x1x1xf32, #tpu.memory_space<vmem>>, vector<1x1x1xf32>
    %360 = vector.shape_cast %359 : vector<1x1x1xf32> to vector<1x1xf32>
    %361 = vector.shape_cast %358 : vector<1x1xf32> to vector<1x1x1xf32>
    tpu.vector_store %arg20[%c0_190, %c0_191, %c0_192], %361 {strides = array<i32>} : memref<1x1x1xf32, #tpu.memory_space<vmem>>, vector<1x1x1xf32>,
    return
  }
  func.func @transform_0(%arg0: i32) -> (i32, i32, i32) {
    %c0_i32 = arith.constant 0 : i32
    %c0_i32_0 = arith.constant 0 : i32
    %c0_i32_1 = arith.constant 0 : i32
    return %arg0, %c0_i32, %c0_i32_0 : i32, i32, i32
  }
  func.func @transform_1(%arg0: i32) -> (i32, i32) {
    %c0_i32 = arith.constant 0 : i32
    %c0_i32_0 = arith.constant 0 : i32
    %c0_i32_1 = arith.constant 0 : i32
    return %c0_i32, %c0_i32_0 : i32, i32
  }
  func.func @transform_2(%arg0: i32) -> (i32, i32) {
    %c0_i32 = arith.constant 0 : i32
    %c0_i32_0 = arith.constant 0 : i32
    %c0_i32_1 = arith.constant 0 : i32
    return %c0_i32, %c0_i32_0 : i32, i32
  }
  func.func @transform_3(%arg0: i32) -> (i32, i32) {
    %c0_i32 = arith.constant 0 : i32
    %c0_i32_0 = arith.constant 0 : i32
    %c0_i32_1 = arith.constant 0 : i32
    return %c0_i32, %c0_i32_0 : i32, i32
  }
  func.func @transform_4(%arg0: i32) -> (i32, i32) {
    %c0_i32 = arith.constant 0 : i32
    %c0_i32_0 = arith.constant 0 : i32
    %c0_i32_1 = arith.constant 0 : i32
    return %c0_i32, %c0_i32_0 : i32, i32
  }
  func.func @transform_5(%arg0: i32) -> (i32, i32) {
    %c0_i32 = arith.constant 0 : i32
    %c0_i32_0 = arith.constant 0 : i32
    %c0_i32_1 = arith.constant 0 : i32
    return %c0_i32, %c0_i32_0 : i32, i32
  }
  func.func @transform_6(%arg0: i32) -> (i32, i32) {
    %c0_i32 = arith.constant 0 : i32
    %c0_i32_0 = arith.constant 0 : i32
    %c0_i32_1 = arith.constant 0 : i32
    return %c0_i32, %c0_i32_0 : i32, i32
  }
  func.func @transform_7(%arg0: i32) -> (i32, i32) {
    %c0_i32 = arith.constant 0 : i32
    %c0_i32_0 = arith.constant 0 : i32
    %c0_i32_1 = arith.constant 0 : i32
    return %c0_i32, %c0_i32_0 : i32, i32
  }
  func.func @transform_8(%arg0: i32) -> (i32, i32) {
    %c0_i32 = arith.constant 0 : i32
    %c0_i32_0 = arith.constant 0 : i32
    %c0_i32_1 = arith.constant 0 : i32
    return %c0_i32, %c0_i32_0 : i32, i32
  }
  func.func @transform_9(%arg0: i32) -> (i32, i32) {
    %c0_i32 = arith.constant 0 : i32
    %c0_i32_0 = arith.constant 0 : i32
    %c0_i32_1 = arith.constant 0 : i32
    return %c0_i32, %c0_i32_0 : i32, i32
  }
  func.func @transform_10(%arg0: i32) -> (i32, i32) {
    %c0_i32 = arith.constant 0 : i32
    %c0_i32_0 = arith.constant 0 : i32
    %c0_i32_1 = arith.constant 0 : i32
    return %c0_i32, %c0_i32_0 : i32, i32
  }
  func.func @transform_11(%arg0: i32) -> (i32, i32, i32) {
    %c0_i32 = arith.constant 0 : i32
    %c0_i32_0 = arith.constant 0 : i32
    %c0_i32_1 = arith.constant 0 : i32
    %c0_i32_2 = arith.constant 0 : i32
    return %c0_i32, %c0_i32_0, %c0_i32_1 : i32, i32, i32
  }
  func.func @transform_12(%arg0: i32) -> (i32, i32, i32) {
    %c0_i32 = arith.constant 0 : i32
    %c0_i32_0 = arith.constant 0 : i32
    %c0_i32_1 = arith.constant 0 : i32
    %c0_i32_2 = arith.constant 0 : i32
    return %c0_i32, %c0_i32_0, %c0_i32_1 : i32, i32, i32
  }
  func.func @transform_13(%arg0: i32) -> (i32, i32, i32) {
    %c0_i32 = arith.constant 0 : i32
    %c0_i32_0 = arith.constant 0 : i32
    %c0_i32_1 = arith.constant 0 : i32
    %c0_i32_2 = arith.constant 0 : i32
    return %c0_i32, %c0_i32_0, %c0_i32_1 : i32, i32, i32
  }
  func.func @transform_14(%arg0: i32) -> (i32, i32, i32) {
    %c0_i32 = arith.constant 0 : i32
    %c0_i32_0 = arith.constant 0 : i32
    %c0_i32_1 = arith.constant 0 : i32
    %c0_i32_2 = arith.constant 0 : i32
    return %c0_i32, %c0_i32_0, %c0_i32_1 : i32, i32, i32
  }
  func.func @transform_15(%arg0: i32) -> (i32, i32) {
    %c0_i32 = arith.constant 0 : i32
    %c0_i32_0 = arith.constant 0 : i32
    %c0_i32_1 = arith.constant 0 : i32
    return %c0_i32, %c0_i32_0 : i32, i32
  }
  func.func @transform_16(%arg0: i32) -> (i32, i32) {
    %c0_i32 = arith.constant 0 : i32
    %c0_i32_0 = arith.constant 0 : i32
    %c0_i32_1 = arith.constant 0 : i32
    return %c0_i32, %c0_i32_0 : i32, i32
  }
  func.func @transform_17(%arg0: i32) -> (i32, i32) {
    %c0_i32 = arith.constant 0 : i32
    %c0_i32_0 = arith.constant 0 : i32
    %c0_i32_1 = arith.constant 0 : i32
    return %c0_i32, %c0_i32_0 : i32, i32
  }
  func.func @transform_18(%arg0: i32) -> (i32, i32) {
    %c0_i32 = arith.constant 0 : i32
    %c0_i32_0 = arith.constant 0 : i32
    %c0_i32_1 = arith.constant 0 : i32
    return %c0_i32, %c0_i32_0 : i32, i32
  }
  func.func @transform_19(%arg0: i32) -> (i32, i32, i32) {
    %c0_i32 = arith.constant 0 : i32
    %c0_i32_0 = arith.constant 0 : i32
    %c0_i32_1 = arith.constant 0 : i32
    return %arg0, %c0_i32, %c0_i32_0 : i32, i32, i32
  }
}

</mosaic_0001>

<bundles_post_ra>
// kernel: rnakinet_forward.1
= control target key start
LH: loop header
LB: loop body
LE: loop exit
PB: predicated region body
PF: predicated region fallthrough
CT: control target
= control target key end

     0   :  { %s6216_s20 = smov 0   ;;  %s9954_s0 = inlined_call_operand.vmem [shape: f32[2,1000,1], index: 0, kind: input, shape index: {}]   ;;  %s9955_s1 = inlined_call_operand.vmem [shape: f32[3,8], index: 1, kind: input, shape index: {}]   ;;  %s9956_s2 = inlined_call_operand.vmem [shape: f32[1,8], index: 2, kind: input, shape index: {}]   ;;  %s9957_s3 = inlined_call_operand.vmem [shape: f32[24,16], index: 3, kind: input, shape index: {}]   ;;  %s9958_s4 = inlined_call_operand.vmem [shape: f32[1,16], index: 4, kind: input, shape index: {}]   ;;  %s9959_s5 = inlined_call_operand.vmem [shape: f32[48,32], index: 5, kind: input, shape index: {}]   ;;  %s9960_s6 = inlined_call_operand.vmem [shape: f32[1,32], index: 6, kind: input, shape index: {}]   ;;  %s9961_s7 = inlined_call_operand.vmem [shape: f32[96,64], index: 7, kind: input, shape index: {}]   ;;  %s9962_s8 = inlined_call_operand.vmem [shape: f32[1,64], index: 8, kind: input, shape index: {}]   ;;  %s9963_s9 = inlined_call_operand.vmem [shape: f32[192,128], index: 9, kind: input, shape index: {}]   ;;  %s9964_s10 = inlined_call_operand.vmem [shape: f32[1,128], index: 10, kind: input, shape index: {}]   ;;  %s9965_s11 = inlined_call_operand.vmem [shape: f32[2,128,96], index: 11, kind: input, shape index: {}]   ;;  %s9966_s12 = inlined_call_operand.vmem [shape: f32[2,32,96], index: 12, kind: input, shape index: {}]   ;;  %s9967_s13 = inlined_call_operand.vmem [shape: f32[2,1,96], index: 13, kind: input, shape index: {}]   ;;  %s9968_s14 = inlined_call_operand.vmem [shape: f32[2,1,96], index: 14, kind: input, shape index: {}]   ;;  %s9969_s15 = inlined_call_operand.vmem [shape: f32[192,30], index: 15, kind: input, shape index: {}]   ;;  %s9970_s16 = inlined_call_operand.vmem [shape: f32[1,30], index: 16, kind: input, shape index: {}]   ;;  %s9971_s17 = inlined_call_operand.vmem [shape: f32[30,1], index: 17, kind: input, shape index: {}]   ;;  %s9972_s18 = inlined_call_operand.<no memory space> [shape: f32[1,1], index: 18, kind: input, shape index: {}]   ;;  %s9973_s19 = inlined_call_operand.vmem [shape: f32[2,1,1], index: 19, kind: output, shape index: {}]  }
   0x1   :  { %10015 = sst [smem:[#allocation8_spill]] %s9954_s0  ;;  %v24_v0 = vstv %s9972_s18 }
   0x2   :  { %10016 = sst [smem:[#allocation9_spill]] %s9955_s1  ;;  %25 = vst [vmem:[#allocation7] sm:$0x1] %v24_v0 }
   0x3   :  { %10017 = sst [smem:[#allocation10_spill]] %s9956_s2 }
   0x4   :  { %10018 = sst [smem:[#allocation11_spill]] %s9957_s3 }
   0x5 LB: > { %s5900_s21 = sadd.s32 4294967295, %s6104_s20   ;;  %p5904_p0 = scmp.ge.s32.totalorder %s6104_s20, 1  ;;  %s6104_s20 = sphi %s6216_s20, %s31_s20  }
   0x6   : > { %p539_p1 = scmp.lt.s32.totalorder %s6104_s20, 3 }
   0x8   : > { %p540_p2 = pnand %p5904_p0, %p539_p1 }
   0x9   : > { %p593_p3 = scmp.lt.s32.totalorder (!%p540_p2), %s5900_s21, 1  ;;  %s10019_s2 = sld [smem:[#allocation8_spill]] (!%p540_p2) }
   0xa   : > { %543 = sbr.rel (%p540_p2) target bundleno = 4894 (0x131e), region = 96  ;;  %s10020_s3 = sld [smem:[#allocation9_spill]] (!%p540_p2) }
   0xb   : > { %s6107_s1 = smov (!%p540_p2), 16   ;;  %s6108_s22 = smov (!%p540_p2), 8  }
   0xc   : > { %s10022_s30 = sld [smem:[#allocation11_spill]] (!%p540_p2)  ;;  %s6112_s27 = smov (!%p540_p2), 96  }
   0xd   : > { %s10073_s0 = smov (!%p540_p2), 32   ;;  %s10074_s26 = smov (!%p540_p2), 64  }
   0xf   : > { %v6106_v1 = vmov 0   ;;  %s10076_s21 = smov (!%p593_p3, %s5900_s21), 1  ;;  %vm1730_vm0 = vcmask 1046528   ;;  %vm2482_vm1 = vcmask 1045504   ;;  %vm2982_vm2 = vcmask 64512  }
  0x10   : > { %6034 = vset.pattern.permute.xlu2 %v6106_v1  ;;  %6033 = vset.pattern.permute.xlu1 %v6106_v1  ;;  %s6016_s18 = smul.u32 1000, %s10076_s21  ;;  %v6271_v39 = vld [vmem:[%s10020_s3 + $0x1] ss:$0 sm:$0xff]  ;;  %v6276_v40 = vld [vmem:[%s10020_s3 + $0x2] ss:$0 sm:$0xff]  ;;  %vm4034_vm3 = vcmask 130048  }
  0x11   : > { %6032 = vset.pattern.permute.xlu0 %v6106_v1  ;;  %v6290_v46 = vld [vmem:[%s10020_s3] ss:$0 sm:$0xff]  ;;  %vm4080_vm4 = vcmask 195584   ;;  %vm3107_vm5 = vcmask 62464   ;;  %vm4702_vm6 = vcmask 261120   ;;  %vm4723_vm7 = vcmask 392192  }
  0x12   : > { %s6230_s23 = scalar_lea.vmem %s10019_s2, %s6016_s18  ;;  %s10021_s18 = sld [smem:[#allocation10_spill]]  ;;  %vm4391_vm8 = vcmask 123904   ;;  %vm4951_vm9 = vcmask 523264   ;;  %vm4969_vm10 = vcmask 785408   ;;  %vm4838_vm11 = vcmask 257024  }
  0x13   : > { %v605_v2 = vld [vmem:[%s6230_s23 + $0x20] sm:$0xff]  ;;  %v603_v3 = vld [vmem:[%s6230_s23 + $0x10] sm:$0xff]  ;;  %v606_v5 = vld [vmem:[%s6230_s23 + $0x28] sm:$0xff]  ;;  %s10014_s2 = smov 64   ;;  %vm5021_vm12 = vcmask 517120  }
  0x14   : > { %v601_v4 = vld [vmem:[%s6230_s23] sm:$0xff]  ;;  %749 = vperm.xlu2 %6034, %v605_v2   ;;  %739 = vperm.xlu1 %6033, %v603_v3   ;;  %v604_v6 = vld [vmem:[%s6230_s23 + $0x18] sm:$0xff]  ;;  %v602_v7 = vld [vmem:[%s6230_s23 + $0x8] sm:$0xff] }
  0x15   : > { %729 = vperm.xlu0 %6032, %v601_v4   ;;  %v609_v8 = vld [vmem:[%s6230_s23 + $0x40] sm:$0xff]  ;;  %v608_v9 = vld [vmem:[%s6230_s23 + $0x38] sm:$0xff]  ;;  %v607_v10 = vld [vmem:[%s6230_s23 + $0x30] sm:$0xff] }
  0x16   : > { %v612_v11 = vld [vmem:[%s6230_s23 + $0x58] sm:$0xff]  ;;  %v611_v12 = vld [vmem:[%s6230_s23 + $0x50] sm:$0xff]  ;;  %v610_v13 = vld [vmem:[%s6230_s23 + $0x48] sm:$0xff] }
  0x17   : > { %v615_v14 = vld [vmem:[%s6230_s23 + $0x70] sm:$0xff]  ;;  %v614_v15 = vld [vmem:[%s6230_s23 + $0x68] sm:$0xff]  ;;  %v613_v16 = vld [vmem:[%s6230_s23 + $0x60] sm:$0xff] }
  0x18   : > { %v618_v17 = vld [vmem:[%s6230_s23 + $0x88] sm:$0xff]  ;;  %v617_v18 = vld [vmem:[%s6230_s23 + $0x80] sm:$0xff]  ;;  %v616_v19 = vld [vmem:[%s6230_s23 + $0x78] sm:$0xff] }
  0x19   : > { %v621_v20 = vld [vmem:[%s6230_s23 + $0xa0] sm:$0xff]  ;;  %v620_v21 = vld [vmem:[%s6230_s23 + $0x98] sm:$0xff]  ;;  %v619_v22 = vld [vmem:[%s6230_s23 + $0x90] sm:$0xff] }
  0x1a   : > { %v624_v23 = vld [vmem:[%s6230_s23 + $0xb8] sm:$0xff]  ;;  %v623_v24 = vld [vmem:[%s6230_s23 + $0xb0] sm:$0xff]  ;;  %v622_v25 = vld [vmem:[%s6230_s23 + $0xa8] sm:$0xff] }
  0x1b   : > { %v627_v26 = vld [vmem:[%s6230_s23 + $0xd0] sm:$0xff]  ;;  %v626_v27 = vld [vmem:[%s6230_s23 + $0xc8] sm:$0xff]  ;;  %v625_v28 = vld [vmem:[%s6230_s23 + $0xc0] sm:$0xff] }
  0x1c   : > { %754 = vperm.xlu2 %6034, %v606_v5   ;;  %744 = vperm.xlu1 %6033, %v604_v6   ;;  %v630_v29 = vld [vmem:[%s6230_s23 + $0xe8] sm:$0xff]  ;;  %v629_v30 = vld [vmem:[%s6230_s23 + $0xe0] sm:$0xff]  ;;  %v628_v31 = vld [vmem:[%s6230_s23 + $0xd8] sm:$0xff] }
  0x1d   : > { %734 = vperm.xlu0 %6032, %v602_v7   ;;  %v634_v32 = vld [vmem:[%s6230_s23 + $0x108] sm:$0xff]  ;;  %v633_v33 = vld [vmem:[%s6230_s23 + $0x100] sm:$0xff]  ;;  %v631_v34 = vld [vmem:[%s6230_s23 + $0xf0] sm:$0xff] }
  0x1e   : > { %v635_v35 = vld [vmem:[%s6230_s23 + $0x110] sm:$0xff]  ;;  %v637_v36 = vld [vmem:[%s6230_s23 + $0x120] sm:$0xff]  ;;  %v632_v37 = vld [vmem:[%s6230_s23 + $0xf8] sm:$0xff] }
  0x1f   : > { %v639_v41 = vld [vmem:[%s6230_s23 + $0x130] sm:$0xff]  ;;  %v638_v42 = vld [vmem:[%s6230_s23 + $0x128] sm:$0xff]  ;;  %v636_v43 = vld [vmem:[%s6230_s23 + $0x118] sm:$0xff] }
  0x20   : > { %v643_v55 = vld [vmem:[%s6230_s23 + $0x150] sm:$0xff]  ;;  %v642_v56 = vld [vmem:[%s6230_s23 + $0x148] sm:$0xff]  ;;  %v640_v57 = vld [vmem:[%s6230_s23 + $0x138] sm:$0xff] }
  0x21   : > { %v644_v63 = vld [vmem:[%s6230_s23 + $0x158] sm:$0xff]  ;;  %v646_v0 = vld [vmem:[%s6230_s23 + $0x168] sm:$0xff]  ;;  %v641_v1 = vld [vmem:[%s6230_s23 + $0x140] sm:$0xff] }
  0x22   : > { %v645_v5 = vld [vmem:[%s6230_s23 + $0x160] sm:$0xff] }
  0x24   : > { %769 = vperm.xlu2 %6034, %v609_v8   ;;  %764 = vperm.xlu1 %6033, %v608_v9  }
  0x25   : > { %759 = vperm.xlu0 %6032, %v607_v10  }
  0x2c   : > { %784 = vperm.xlu2 %6034, %v612_v11   ;;  %779 = vperm.xlu1 %6033, %v611_v12  }
  0x2d   : > { %774 = vperm.xlu0 %6032, %v610_v13  }
  0x34   : > { %799 = vperm.xlu2 %6034, %v615_v14   ;;  %794 = vperm.xlu1 %6033, %v614_v15  }
  0x35   : > { %789 = vperm.xlu0 %6032, %v613_v16  }
  0x3c   : > { %814 = vperm.xlu2 %6034, %v618_v17   ;;  %809 = vperm.xlu1 %6033, %v617_v18  }
  0x3d   : > { %804 = vperm.xlu0 %6032, %v616_v19  }
  0x44   : > { %829 = vperm.xlu2 %6034, %v621_v20   ;;  %824 = vperm.xlu1 %6033, %v620_v21  }
  0x45   : > { %819 = vperm.xlu0 %6032, %v619_v22  }
  0x4c   : > { %844 = vperm.xlu2 %6034, %v624_v23   ;;  %839 = vperm.xlu1 %6033, %v623_v24  }
  0x4d   : > { %834 = vperm.xlu0 %6032, %v622_v25  }
  0x54   : > { %859 = vperm.xlu2 %6034, %v627_v26   ;;  %854 = vperm.xlu1 %6033, %v626_v27  }
  0x55   : > { %849 = vperm.xlu0 %6032, %v625_v28  }
  0x5c   : > { %874 = vperm.xlu2 %6034, %v630_v29   ;;  %869 = vperm.xlu1 %6033, %v629_v30  }
  0x5d   : > { %864 = vperm.xlu0 %6032, %v628_v31  }
  0x64   : > { %894 = vperm.xlu2 %6034, %v634_v32   ;;  %889 = vperm.xlu1 %6033, %v633_v33  }
  0x65   : > { %879 = vperm.xlu0 %6032, %v631_v34  }
  0x6c   : > { %899 = vperm.xlu2 %6034, %v635_v35   ;;  %909 = vperm.xlu1 %6033, %v637_v36  }
  0x6d   : > { %884 = vperm.xlu0 %6032, %v632_v37  }
  0x6e   : > { %v750_v38 = vpop.permute.xlu2 %749 }
  0x6f   : > { %v6282_v44 = vmul.f32 %v6271_v39, %v750_v38  ;;  %v6285_v45 = vmul.f32 %v6276_v40, %v750_v38  ;;  %v1357_v52 = vmul.f32 %v6290_v46, %v750_v38 }
  0x71   : > { %v1738_v48 = vrot.slane %v6282_v44, 1  ;;  %v2490_v49 = vrot.slane %v6285_v45, 2 }
  0x74   : > { %919 = vperm.xlu2 %6034, %v639_v41   ;;  %914 = vperm.xlu1 %6033, %v638_v42  }
  0x75   : > { %904 = vperm.xlu0 %6032, %v636_v43  }
  0x76   : > { %v6292_v47 = vpop.permute.xlu2 %754 }
  0x77   : > { %v6298_v50 = vmul.f32 %v6271_v39, %v6292_v47  ;;  %v6302_v51 = vmul.f32 %v6276_v40, %v6292_v47 }
  0x79   : > { %v1740_v53 = vrot.slane %v6298_v50, 1  ;;  %v2492_v54 = vrot.slane %v6302_v51, 2 }
  0x7b   : > { %v1741_v58 = vsel %vm1730_vm0, %v1738_v48, %v1740_v53  ;;  %v2493_v59 = vsel %vm2482_vm1, %v2490_v49, %v2492_v54 }
  0x7c   : > { %v2109_v60 = vadd.f32 %v1741_v58, %v1357_v52  ;;  %939 = vperm.xlu2 %6034, %v643_v55   ;;  %934 = vperm.xlu1 %6033, %v642_v56  }
  0x7d   : > { %924 = vperm.xlu0 %6032, %v640_v57  }
  0x7e   : > { %v2861_v61 = vadd.f32 %v2493_v59, %v2109_v60  ;;  %v6318_v62 = vpop.permute.xlu2 %769 }
  0x7f   : > { %v6338_v17 = vmul.f32 %v6271_v39, %v6318_v62  ;;  %v6359_v59 = vmul.f32 %v6276_v40, %v6318_v62 }
  0x80   : > { %2987 = vst.msk [vmem:[#allocation2 + $0x20] sm:$0xff] %vm2982_vm2, %v2861_v61 }
  0x84   : > { %944 = vperm.xlu2 %6034, %v644_v63   ;;  %954 = vperm.xlu1 %6033, %v646_v0   ;;  %v1746_v63 = vrot.slane %v6338_v17, 1 }
  0x85   : > { %929 = vperm.xlu0 %6032, %v641_v1  }
  0x86   : > { %v6324_v2 = vpop.permute.xlu2 %784  ;;  %v740_v3 = vpop.permute.xlu1 %739 }
  0x87   : > { %v730_v4 = vpop.permute.xlu0 %729  ;;  %v1482_v6 = vmul.f32 %v6271_v39, %v740_v3  ;;  %v2234_v7 = vmul.f32 %v6276_v40, %v740_v3  ;;  %v1355_v18 = vmul.f32 %v6290_v46, %v740_v3 }
  0x88   : > { %v1480_v10 = vmul.f32 %v6271_v39, %v730_v4  ;;  %v2232_v11 = vmul.f32 %v6276_v40, %v730_v4  ;;  %v1353_v24 = vmul.f32 %v6290_v46, %v730_v4 }
  0x89   : > { %v1734_v13 = vrot.slane %v1482_v6, 1  ;;  %v2486_v20 = vrot.slane %v2234_v7, 2  ;;  %v1358_v6 = vmul.f32 %v6290_v46, %v6292_v47  ;;  %v2498_v7 = vrot.slane %v6359_v59, 2 }
  0x8a   : > { %v1731_v25 = vrot.slane %v1480_v10, 1  ;;  %v2483_v28 = vrot.slane %v2232_v11, 2  ;;  %v6378_v11 = vmul.f32 %v6271_v39, %v6324_v2 }
  0x8d   : > { %949 = vperm.xlu0 %6032, %v645_v5  }
  0x8e   : > { %v6329_v8 = vpop.permute.xlu2 %799  ;;  %v745_v9 = vpop.permute.xlu1 %744 }
  0x8f   : > { %v735_v12 = vpop.permute.xlu0 %734  ;;  %v1483_v14 = vmul.f32 %v6271_v39, %v745_v9  ;;  %v2235_v15 = vmul.f32 %v6276_v40, %v745_v9  ;;  %v1356_v26 = vmul.f32 %v6290_v46, %v745_v9 }
  0x90   : > { %v1481_v16 = vmul.f32 %v6271_v39, %v735_v12  ;;  %v2233_v19 = vmul.f32 %v6276_v40, %v735_v12  ;;  %v1354_v31 = vmul.f32 %v6290_v46, %v735_v12 }
  0x91   : > { %v1736_v21 = vrot.slane %v1483_v14, 1  ;;  %v2488_v22 = vrot.slane %v2235_v15, 2 }
  0x92   : > { %v1732_v23 = vrot.slane %v1481_v16, 1  ;;  %v2484_v27 = vrot.slane %v2233_v19, 2  ;;  %v6388_v16 = vmul.f32 %v6276_v40, %v6324_v2 }
  0x93   : > { %v1737_v29 = vsel %vm1730_vm0, %v1734_v13, %v1736_v21  ;;  %v1739_v30 = vsel %vm1730_vm0, %v1736_v21, %v1738_v48  ;;  %v2489_v36 = vsel %vm2482_vm1, %v2486_v20, %v2488_v22  ;;  %v2491_v37 = vsel %vm2482_vm1, %v2488_v22, %v2490_v49 }
  0x94   : > { %v2107_v32 = vadd.f32 %v1737_v29, %v1355_v18  ;;  %v2108_v33 = vadd.f32 %v1739_v30, %v1356_v26  ;;  %v1733_v34 = vsel %vm1730_vm0, %v1731_v25, %v1732_v23  ;;  %v1735_v35 = vsel %vm1730_vm0, %v1732_v23, %v1734_v13 }
  0x95   : > { %v2105_v38 = vadd.f32 %v1733_v34, %v1353_v24  ;;  %v2106_v41 = vadd.f32 %v1735_v35, %v1354_v31  ;;  %v2485_v52 = vsel %vm2482_vm1, %v2483_v28, %v2484_v27  ;;  %v2487_v55 = vsel %vm2482_vm1, %v2484_v27, %v2486_v20 }
  0x96   : > { %v6353_v42 = vpop.permute.xlu2 %814  ;;  %v765_v43 = vpop.permute.xlu1 %764  ;;  %v2859_v44 = vadd.f32 %v2489_v36, %v2107_v32  ;;  %v2860_v48 = vadd.f32 %v2491_v37, %v2108_v33  ;;  %v6393_v21 = vmul.f32 %v6271_v39, %v6329_v8  ;;  %v1361_v27 = vmul.f32 %v6290_v46, %v6318_v62 }
  0x97   : > { %v760_v56 = vpop.permute.xlu0 %759  ;;  %v2857_v57 = vadd.f32 %v2485_v52, %v2105_v38  ;;  %v2858_v58 = vadd.f32 %v2487_v55, %v2106_v41  ;;  %v1487_v45 = vmul.f32 %v6271_v39, %v765_v43  ;;  %v2239_v49 = vmul.f32 %v6276_v40, %v765_v43 }
  0x98   : > { %2985 = vst.msk [vmem:[#allocation2 + $0x10] sm:$0xff] %vm2982_vm2, %v2859_v44  ;;  %v1486_v60 = vmul.f32 %v6271_v39, %v760_v56  ;;  %v2238_v61 = vmul.f32 %v6276_v40, %v760_v56  ;;  %v1360_v3 = vmul.f32 %v6290_v46, %v765_v43  ;;  %v1359_v10 = vmul.f32 %v6290_v46, %v760_v56 }
  0x99   : > { %2986 = vst.msk [vmem:[#allocation2 + $0x18] sm:$0xff] %vm2982_vm2, %v2860_v48  ;;  %v1744_v0 = vrot.slane %v1487_v45, 1  ;;  %v2496_v1 = vrot.slane %v2239_v49, 2  ;;  %v6405_v28 = vmul.f32 %v6290_v46, %v6324_v2  ;;  %v1752_v29 = vrot.slane %v6378_v11, 1 }
  0x9a   : > { %2983 = vst.msk [vmem:[#allocation2] sm:$0xff] %vm2982_vm2, %v2857_v57  ;;  %v1742_v4 = vrot.slane %v1486_v60, 1  ;;  %v2494_v5 = vrot.slane %v2238_v61, 2  ;;  %v6415_v62 = vmul.f32 %v6290_v46, %v6329_v8  ;;  %v6419_v2 = vmul.f32 %v6276_v40, %v6329_v8 }
  0x9b   : > { %2984 = vst.msk [vmem:[#allocation2 + $0x8] sm:$0xff] %vm2982_vm2, %v2858_v58  ;;  %v1747_v9 = vsel %vm1730_vm0, %v1744_v0, %v1746_v63  ;;  %v2499_v17 = vsel %vm2482_vm1, %v2496_v1, %v2498_v7  ;;  %v1758_v37 = vrot.slane %v6393_v21, 1  ;;  %v6430_v8 = vmul.f32 %v6271_v39, %v6353_v42 }
  0x9c   : > { %v2112_v12 = vadd.f32 %v1747_v9, %v1360_v3  ;;  %v1743_v13 = vsel %vm1730_vm0, %v1740_v53, %v1742_v4  ;;  %v1745_v14 = vsel %vm1730_vm0, %v1742_v4, %v1744_v0  ;;  %v2495_v53 = vsel %vm2482_vm1, %v2492_v54, %v2494_v5 }
  0x9d   : > { %v2110_v18 = vadd.f32 %v1743_v13, %v1358_v6  ;;  %v2111_v19 = vadd.f32 %v1745_v14, %v1359_v10  ;;  %v2497_v22 = vsel %vm2482_vm1, %v2494_v5, %v2496_v1  ;;  %v2504_v54 = vrot.slane %v6388_v16, 2 }
  0x9e   : > { %v6384_v15 = vpop.permute.xlu2 %829  ;;  %v780_v47 = vpop.permute.xlu1 %779  ;;  %v2864_v50 = vadd.f32 %v2499_v17, %v2112_v12  ;;  %v6441_v60 = vmul.f32 %v6276_v40, %v6353_v42  ;;  %v2510_v1 = vrot.slane %v6419_v2, 2  ;;  %v6449_v6 = vmul.f32 %v6290_v46, %v6353_v42 }
  0x9f   : > { %v775_v20 = vpop.permute.xlu0 %774  ;;  %v2862_v23 = vadd.f32 %v2495_v53, %v2110_v18  ;;  %v2863_v24 = vadd.f32 %v2497_v22, %v2111_v19  ;;  %v1490_v25 = vmul.f32 %v6271_v39, %v780_v47  ;;  %v2242_v26 = vmul.f32 %v6276_v40, %v780_v47  ;;  %v6464_v19 = vld [vmem:[%s10021_s18] ss:$0 sm:$0xff] }
  0xa0   : > { %2990 = vst.msk [vmem:[#allocation2 + $0x38] sm:$0xff] %vm2982_vm2, %v2864_v50  ;;  %v1489_v51 = vmul.f32 %v6271_v39, %v775_v20  ;;  %v2241_v32 = vmul.f32 %v6276_v40, %v775_v20  ;;  %v1363_v33 = vmul.f32 %v6290_v46, %v780_v47  ;;  %v1362_v41 = vmul.f32 %v6290_v46, %v775_v20 }
  0xa1   : > { %2988 = vst.msk [vmem:[#allocation2 + $0x28] sm:$0xff] %vm2982_vm2, %v2862_v23  ;;  %v1750_v30 = vrot.slane %v1490_v25, 1  ;;  %v2502_v31 = vrot.slane %v2242_v26, 2  ;;  %v1764_v9 = vrot.slane %v6430_v8, 1  ;;  %v6454_v10 = vmul.f32 %v6271_v39, %v6384_v15 }
  0xa2   : > { %2989 = vst.msk [vmem:[#allocation2 + $0x30] sm:$0xff] %vm2982_vm2, %v2863_v24  ;;  %v1748_v34 = vrot.slane %v1489_v51, 1  ;;  %v3109_v35 = vld [vmem:[#allocation2] ss:$3 sm:$0xff]  ;;  %v3193_v36 = vld [vmem:[#allocation2 + $0x1] ss:$3 sm:$0xff]  ;;  %v6471_v23 = vmul.f32 %v6276_v40, %v6384_v15 }
  0xa3   : > { %v1753_v38 = vsel %vm1730_vm0, %v1750_v30, %v1752_v29  ;;  %v2500_v43 = vrot.slane %v2241_v32, 2  ;;  %v2505_v57 = vsel %vm2482_vm1, %v2502_v31, %v2504_v54  ;;  %v3276_v49 = vmax.f32 %v3109_v35, %v3193_v36  ;;  %v3319_v13 = vld [vmem:[#allocation2 + $0x2] ss:$3 sm:$0xff] }
  0xa4   : > { %v2115_v44 = vadd.f32 %v1753_v38, %v1363_v33  ;;  %v1749_v48 = vsel %vm1730_vm0, %v1746_v63, %v1748_v34  ;;  %v1751_v52 = vsel %vm1730_vm0, %v1748_v34, %v1750_v30  ;;  %v2516_v20 = vrot.slane %v6441_v60, 2 }
  0xa5   : > { %v2113_v58 = vadd.f32 %v1749_v48, %v1361_v27  ;;  %v2114_v59 = vadd.f32 %v1751_v52, %v1362_v41  ;;  %v2501_v63 = vsel %vm2482_vm1, %v2498_v7, %v2500_v43  ;;  %v2503_v0 = vsel %vm2482_vm1, %v2500_v43, %v2502_v31 }
  0xa6   : > { %v6434_v55 = vpop.permute.xlu2 %844  ;;  %v795_v56 = vpop.permute.xlu1 %794  ;;  %v2867_v61 = vadd.f32 %v2505_v57, %v2115_v44  ;;  %v3402_v18 = vmax.f32 %v3276_v49, %v3319_v13  ;;  %v6478_v27 = vmul.f32 %v6290_v46, %v6384_v15  ;;  %v1770_v51 = vrot.slane %v6454_v10, 1 }
  0xa7   : > { %v790_v45 = vpop.permute.xlu0 %789  ;;  %v2865_v3 = vadd.f32 %v2501_v63, %v2113_v58  ;;  %v2866_v4 = vadd.f32 %v2503_v0, %v2114_v59  ;;  %v1493_v5 = vmul.f32 %v6271_v39, %v795_v56  ;;  %v2245_v7 = vmul.f32 %v6276_v40, %v795_v56 }
  0xa8   : > { %2993 = vst.msk [vmem:[#allocation2 + $0x50] sm:$0xff] %vm2982_vm2, %v2867_v61  ;;  %v3111_v12 = vld [vmem:[#allocation2 + $0x18] ss:$3 sm:$0xff]  ;;  %v1492_v47 = vmul.f32 %v6271_v39, %v790_v45  ;;  %v2244_v42 = vmul.f32 %v6276_v40, %v790_v45  ;;  %v3195_v17 = vld [vmem:[#allocation2 + $0x19] ss:$3 sm:$0xff]  ;;  %v1366_v50 = vmul.f32 %v6290_v46, %v795_v56  ;;  %v1365_v31 = vmul.f32 %v6290_v46, %v790_v45 }
  0xa9   : > { %2991 = vst.msk [vmem:[#allocation2 + $0x40] sm:$0xff] %vm2982_vm2, %v2865_v3  ;;  %v1756_v14 = vrot.slane %v1493_v5, 1  ;;  %v2508_v53 = vrot.slane %v2245_v7, 2  ;;  %v3277_v22 = vmax.f32 %v3111_v12, %v3195_v17  ;;  %v3321_v38 = vld [vmem:[#allocation2 + $0x1a] ss:$3 sm:$0xff]  ;;  %v3448_v41 = vadd.f32 %v6464_v19, %v3402_v18 }
  0xaa   : > { %2992 = vst.msk [vmem:[#allocation2 + $0x48] sm:$0xff] %vm2982_vm2, %v2866_v4  ;;  %v1754_v25 = vrot.slane %v1492_v47, 1  ;;  %v2506_v26 = vrot.slane %v2244_v42, 2  ;;  %v2522_v56 = vrot.slane %v6471_v23, 2  ;;  %v6501_v58 = vmul.f32 %v6271_v39, %v6434_v55 }
  0xab   : > { %v1759_v24 = vsel %vm1730_vm0, %v1756_v14, %v1758_v37  ;;  %v2511_v34 = vsel %vm2482_vm1, %v2508_v53, %v2510_v1  ;;  %v3403_v52 = vmax.f32 %v3277_v22, %v3321_v38  ;;  %v6507_v49 = vmul.f32 %v6276_v40, %v6434_v55 }
  0xac   : > { %v2118_v30 = vadd.f32 %v1759_v24, %v1366_v50  ;;  %v1755_v35 = vsel %vm1730_vm0, %v1752_v29, %v1754_v25  ;;  %v1757_v36 = vsel %vm1730_vm0, %v1754_v25, %v1756_v14  ;;  %v2507_v57 = vsel %vm2482_vm1, %v2504_v54, %v2506_v26 }
  0xad   : > { %v2116_v44 = vadd.f32 %v1755_v35, %v6405_v28  ;;  %v2117_v48 = vadd.f32 %v1757_v36, %v1365_v31  ;;  %v2509_v11 = vsel %vm2482_vm1, %v2506_v26, %v2508_v53  ;;  %v3449_v5 = vadd.f32 %v6464_v19, %v3403_v52 }
  0xae   : > { %v6482_v32 = vpop.permute.xlu2 %859  ;;  %v810_v33 = vpop.permute.xlu1 %809  ;;  %v2870_v43 = vadd.f32 %v2511_v34, %v2118_v30  ;;  %v6514_v7 = vmax.f32 %v3448_v41, 0.0  ;;  %v6545_v41 = vmul.f32 %v6290_v46, %v6434_v55  ;;  %v2528_v52 = vrot.slane %v6507_v49, 2 }
  0xaf   : > { %v805_v15 = vpop.permute.xlu0 %804  ;;  %v1496_v29 = vmul.f32 %v6271_v39, %v810_v33  ;;  %v2868_v59 = vadd.f32 %v2507_v57, %v2116_v44  ;;  %v2869_v28 = vadd.f32 %v2509_v11, %v2117_v48  ;;  %v2248_v45 = vmul.f32 %v6276_v40, %v810_v33 }
  0xb0   : > { %2996 = vst.msk [vmem:[#allocation2 + $0x68] sm:$0xff] %vm2982_vm2, %v2870_v43  ;;  %v1369_v16 = vmul.f32 %v6290_v46, %v810_v33  ;;  %v1495_v61 = vmul.f32 %v6271_v39, %v805_v15  ;;  %v3113_v63 = vld [vmem:[#allocation2 + $0x30] ss:$3 sm:$0xff]  ;;  %v3197_v0 = vld [vmem:[#allocation2 + $0x31] ss:$3 sm:$0xff]  ;;  %v2247_v4 = vmul.f32 %v6276_v40, %v805_v15  ;;  %v6519_v12 = vmul.f32 %v6271_v39, %v6482_v32 }
  0xb1   : > { %v1762_v54 = vrot.slane %v1496_v29, 1  ;;  %2994 = vst.msk [vmem:[#allocation2 + $0x58] sm:$0xff] %vm2982_vm2, %v2868_v59  ;;  %v2514_v3 = vrot.slane %v2248_v45, 2  ;;  %v1368_v14 = vmul.f32 %v6290_v46, %v805_v15  ;;  %v6525_v18 = vmax.f32 %v3449_v5, 0.0  ;;  %v3323_v59 = vld [vmem:[#allocation2 + $0x32] ss:$3 sm:$0xff] }
  0xb2   : > { %2995 = vst.msk [vmem:[#allocation2 + $0x60] sm:$0xff] %vm2982_vm2, %v2869_v28  ;;  %v1760_v47 = vrot.slane %v1495_v61, 1  ;;  %v2512_v17 = vrot.slane %v2247_v4, 2  ;;  %v3278_v22 = vmax.f32 %v3113_v63, %v3197_v0  ;;  %v3783_v30 = vrot.slane %v6514_v7, 2 }
  0xb3   : > { %v1765_v13 = vsel %vm1730_vm0, %v1762_v54, %v1764_v9  ;;  %v2517_v24 = vsel %vm2482_vm1, %v2514_v3, %v2516_v20  ;;  %v3574_v36 = vrot.slane %v6514_v7, 1  ;;  %v3784_v21 = vrot.slane %v6525_v18, 2 }
  0xb4   : > { %v2121_v42 = vadd.f32 %v1765_v13, %v1369_v16  ;;  %v1761_v25 = vsel %vm1730_vm0, %v1758_v37, %v1760_v47  ;;  %v1763_v26 = vsel %vm1730_vm0, %v1760_v47, %v1762_v54  ;;  %v2513_v15 = vsel %vm2482_vm1, %v2510_v1, %v2512_v17 }
  0xb5   : > { %v2119_v34 = vadd.f32 %v1761_v25, %v6415_v62  ;;  %v2120_v35 = vadd.f32 %v1763_v26, %v1368_v14  ;;  %v2515_v38 = vsel %vm2482_vm1, %v2512_v17, %v2514_v3  ;;  %v3575_v37 = vrot.slane %v6525_v18, 1 }
  0xb6   : > { %v875_v50 = vpop.permute.xlu2 %874  ;;  %v825_v53 = vpop.permute.xlu1 %824  ;;  %v2873_v33 = vadd.f32 %v2517_v24, %v2121_v42  ;;  %v1776_v43 = vrot.slane %v6501_v58, 1  ;;  %v6551_v2 = vmul.f32 %v6290_v46, %v6482_v32  ;;  %v3785_v1 = vsel %vm2482_vm1, %v3783_v30, %v3784_v21 }
  0xb7   : > { %v820_v31 = vpop.permute.xlu0 %819  ;;  %v2871_v62 = vadd.f32 %v2513_v15, %v2119_v34  ;;  %v2872_v44 = vadd.f32 %v2515_v38, %v2120_v35  ;;  %v3576_v48 = vsel %vm1730_vm0, %v3574_v36, %v3575_v37  ;;  %v1499_v55 = vmul.f32 %v6271_v39, %v825_v53  ;;  %3866 = vrot.lane.b32.xlu2 %v3785_v1, %s6107_s1 }
  0xb8   : > { %2999 = vst.msk [vmem:[#allocation2 + $0x80] sm:$0xff] %vm2982_vm2, %v2873_v33  ;;  %v1782_v57 = vrot.slane %v6519_v12, 1  ;;  %v6564_v11 = vmul.f32 %v6276_v40, %v6482_v32  ;;  %3657 = vrot.lane.b32.xlu1 %v3576_v48, %s6108_s22  ;;  %v2251_v29 = vmul.f32 %v6276_v40, %v825_v53  ;;  %v1498_v45 = vmul.f32 %v6271_v39, %v820_v31  ;;  %v3115_v54 = vld [vmem:[#allocation2 + $0x48] ss:$3 sm:$0xff]  ;;  %v3199_v61 = vld [vmem:[#allocation2 + $0x49] ss:$3 sm:$0xff] }
  0xb9   : > { %2997 = vst.msk [vmem:[#allocation2 + $0x70] sm:$0xff] %vm2982_vm2, %v2871_v62  ;;  %v1768_v28 = vrot.slane %v1499_v55, 1  ;;  %v2250_v16 = vmul.f32 %v6276_v40, %v820_v31  ;;  %v3404_v32 = vmax.f32 %v3278_v22, %v3323_v59  ;;  %v6574_v63 = vmul.f32 %v6290_v46, %v875_v50 }
  0xba   : > { %2998 = vst.msk [vmem:[#allocation2 + $0x78] sm:$0xff] %vm2982_vm2, %v2872_v44  ;;  %v6577_v0 = vmul.f32 %v6271_v39, %v875_v50  ;;  %v1372_v3 = vmul.f32 %v6290_v46, %v825_v53  ;;  %v2520_v4 = vrot.slane %v2251_v29, 2  ;;  %v1766_v47 = vrot.slane %v1498_v45, 1 }
  0xbb   : > { %v1771_v14 = vsel %vm1730_vm0, %v1768_v28, %v1770_v51  ;;  %v2518_v42 = vrot.slane %v2250_v16, 2  ;;  %v3450_v17 = vadd.f32 %v6464_v19, %v3404_v32  ;;  %v6585_v24 = vmul.f32 %v6276_v40, %v875_v50  ;;  %v3325_v32 = vld [vmem:[#allocation2 + $0x4a] ss:$3 sm:$0xff] }
  0xbc   : > { %v2124_v25 = vadd.f32 %v1771_v14, %v1372_v3  ;;  %v1371_v26 = vmul.f32 %v6290_v46, %v820_v31  ;;  %v3279_v30 = vmax.f32 %v3115_v54, %v3199_v61  ;;  %v2523_v53 = vsel %vm2482_vm1, %v2520_v4, %v2522_v56 }
  0xbd   : > { %v1767_v33 = vsel %vm1730_vm0, %v1764_v9, %v1766_v47  ;;  %v1769_v34 = vsel %vm1730_vm0, %v1766_v47, %v1768_v28  ;;  %v6599_v38 = vmax.f32 %v3450_v17, 0.0  ;;  %v2519_v31 = vsel %vm2482_vm1, %v2516_v20, %v2518_v42 }
  0xbe   : > { %v895_v5 = vpop.permute.xlu2 %894  ;;  %v840_v13 = vpop.permute.xlu1 %839  ;;  %v2876_v36 = vadd.f32 %v2523_v53, %v2124_v25  ;;  %v2122_v50 = vadd.f32 %v1767_v33, %v6449_v6  ;;  %v2123_v15 = vadd.f32 %v1769_v34, %v1371_v26  ;;  %v2521_v62 = vsel %vm2482_vm1, %v2518_v42, %v2520_v4 }
  0xbf   : > { %v835_v22 = vpop.permute.xlu0 %834  ;;  %v6596_v35 = vmul.f32 %v6290_v46, %v895_v5  ;;  %v6606_v8 = vmul.f32 %v6271_v39, %v895_v5  ;;  %v1502_v9 = vmul.f32 %v6271_v39, %v840_v13  ;;  %v3786_v6 = vrot.slane %v6599_v38, 2 }
  0xc0   : > { %3002 = vst.msk [vmem:[#allocation2 + $0x98] sm:$0xff] %vm2982_vm2, %v2876_v36  ;;  %v2874_v44 = vadd.f32 %v2519_v31, %v2122_v50  ;;  %v2875_v1 = vadd.f32 %v2521_v62, %v2123_v15  ;;  %v3577_v48 = vrot.slane %v6599_v38, 1  ;;  %v6613_v55 = vmul.f32 %v6276_v40, %v895_v5 }
  0xc1   : > { %v1375_v60 = vmul.f32 %v6290_v46, %v840_v13  ;;  %v1774_v20 = vrot.slane %v1502_v9, 1  ;;  %v2254_v29 = vmul.f32 %v6276_v40, %v840_v13  ;;  %v3787_v59 = vsel %vm2482_vm1, %v3784_v21, %v3786_v6 }
  0xc2   : > { %3000 = vst.msk [vmem:[#allocation2 + $0x88] sm:$0xff] %vm2982_vm2, %v2874_v44  ;;  %v3578_v28 = vsel %vm1730_vm0, %v3575_v37, %v3577_v48  ;;  %v1501_v45 = vmul.f32 %v6271_v39, %v835_v22  ;;  %v2253_v16 = vmul.f32 %v6276_v40, %v835_v22  ;;  %3868 = vrot.lane.b32.xlu1 %v3787_v59, %s6107_s1  ;;  %v1796_v21 = vrot.slane %v6606_v8, 1  ;;  %v3117_v59 = vld [vmem:[#allocation2 + $0x60] ss:$3 sm:$0xff] }
  0xc3   : > { %3001 = vst.msk [vmem:[#allocation2 + $0x90] sm:$0xff] %vm2982_vm2, %v2875_v1  ;;  %3659 = vrot.lane.b32.xlu0 %v3578_v28, %s6108_s22  ;;  %v1777_v37 = vsel %vm1730_vm0, %v1774_v20, %v1776_v43  ;;  %v2526_v3 = vrot.slane %v2254_v29, 2  ;;  %v3405_v4 = vmax.f32 %v3279_v30, %v3325_v32  ;;  %v1374_v14 = vmul.f32 %v6290_v46, %v835_v22  ;;  %v3201_v28 = vld [vmem:[#allocation2 + $0x61] ss:$3 sm:$0xff] }
  0xc4   : > { %v2127_v13 = vadd.f32 %v1777_v37, %v1375_v60  ;;  %v1772_v47 = vrot.slane %v1501_v45, 1  ;;  %v2524_v42 = vrot.slane %v2253_v16, 2  ;;  %v2548_v30 = vrot.slane %v6613_v55, 2 }
  0xc5   : > { %v2529_v17 = vsel %vm2482_vm1, %v2526_v3, %v2528_v52  ;;  %v3451_v25 = vadd.f32 %v6464_v19, %v3405_v4 }
  0xc6   : > { %v6626_v54 = vpop.permute.xlu2 %899  ;;  %v855_v61 = vpop.permute.xlu1 %854  ;;  %v2879_v33 = vadd.f32 %v2529_v17, %v2127_v13  ;;  %v1773_v22 = vsel %vm1730_vm0, %v1770_v51, %v1772_v47  ;;  %v1775_v34 = vsel %vm1730_vm0, %v1772_v47, %v1774_v20  ;;  %v2525_v15 = vsel %vm2482_vm1, %v2522_v56, %v2524_v42 }
  0xc7   : > { %v850_v5 = vpop.permute.xlu0 %849  ;;  %v6642_v26 = vmul.f32 %v6271_v39, %v6626_v54  ;;  %v6646_v53 = vmul.f32 %v6276_v40, %v6626_v54  ;;  %v2125_v36 = vadd.f32 %v1773_v22, %v6478_v27  ;;  %v2126_v50 = vadd.f32 %v1775_v34, %v1374_v14 }
  0xc8   : > { %v6657_v31 = vmax.f32 %v3451_v25, 0.0  ;;  %3005 = vst.msk [vmem:[#allocation2 + $0xb0] sm:$0xff] %vm2982_vm2, %v2879_v33  ;;  %v2527_v62 = vsel %vm2482_vm1, %v2524_v42, %v2526_v3  ;;  %v1505_v51 = vmul.f32 %v6271_v39, %v855_v61  ;;  %v1378_v60 = vmul.f32 %v6290_v46, %v855_v61 }
  0xc9   : > { %v1798_v9 = vrot.slane %v6642_v26, 1  ;;  %v2550_v10 = vrot.slane %v6646_v53, 2  ;;  %v2877_v44 = vadd.f32 %v2525_v15, %v2125_v36  ;;  %v2878_v1 = vadd.f32 %v2527_v62, %v2126_v50  ;;  %v3327_v36 = vld [vmem:[#allocation2 + $0x62] ss:$3 sm:$0xff] }
  0xca   : > { %v3788_v27 = vrot.slane %v6657_v31, 2  ;;  %v3579_v23 = vrot.slane %v6657_v31, 1  ;;  %v1780_v20 = vrot.slane %v1505_v51, 1  ;;  %v2257_v29 = vmul.f32 %v6276_v40, %v855_v61 }
  0xcb   : > { %v1799_v56 = vsel %vm1730_vm0, %v1796_v21, %v1798_v9  ;;  %3003 = vst.msk [vmem:[#allocation2 + $0xa0] sm:$0xff] %vm2982_vm2, %v2877_v44  ;;  %v2551_v61 = vsel %vm2482_vm1, %v2548_v30, %v2550_v10  ;;  %v2534_v13 = vrot.slane %v6564_v11, 2  ;;  %v2256_v42 = vmul.f32 %v6276_v40, %v850_v5 }
  0xcc   : > { %v3789_v32 = vsel %vm2482_vm1, %v3786_v6, %v3788_v27  ;;  %v3580_v37 = vsel %vm1730_vm0, %v3577_v48, %v3579_v23  ;;  %v2138_v3 = vadd.f32 %v1799_v56, %v6596_v35  ;;  %3004 = vst.msk [vmem:[#allocation2 + $0xa8] sm:$0xff] %vm2982_vm2, %v2878_v1  ;;  %v1783_v6 = vsel %vm1730_vm0, %v1780_v20, %v1782_v57 }
  0xcd   : > { %3870 = vrot.lane.b32.xlu0 %v3789_v32, %s6107_s1  ;;  %3661 = vrot.lane.b32.xlu2 %v3580_v37, %s6108_s22  ;;  %v2532_v35 = vrot.slane %v2257_v29, 2  ;;  %v1504_v48 = vmul.f32 %v6271_v39, %v850_v5  ;;  %v2130_v47 = vadd.f32 %v1783_v6, %v1378_v60  ;;  %v3280_v17 = vmax.f32 %v3117_v59, %v3201_v28  ;;  %v3119_v32 = vld [vmem:[#allocation2 + $0x78] ss:$3 sm:$0xff]  ;;  %v3203_v37 = vld [vmem:[#allocation2 + $0x79] ss:$3 sm:$0xff] }
  0xce   : > { %v6673_v45 = vpop.permute.xlu2 %919  ;;  %v870_v16 = vpop.permute.xlu1 %869  ;;  %v2890_v14 = vadd.f32 %v2551_v61, %v2138_v3  ;;  %v1788_v25 = vrot.slane %v6577_v0, 1  ;;  %v2540_v33 = vrot.slane %v6585_v24, 2  ;;  %v1377_v15 = vmul.f32 %v6290_v46, %v850_v5 }
  0xcf   : > { %v865_v4 = vpop.permute.xlu0 %864  ;;  %v2535_v22 = vsel %vm2482_vm1, %v2532_v35, %v2534_v13  ;;  %v1778_v34 = vrot.slane %v1504_v48, 1  ;;  %v2530_v62 = vrot.slane %v2256_v42, 2  ;;  %v3406_v51 = vmax.f32 %v3280_v17, %v3327_v36 }
  0xd0   : > { %3016 = vst.msk [vmem:[#allocation2 + $0x108] sm:$0xff] %vm2982_vm2, %v2890_v14  ;;  %v2882_v50 = vadd.f32 %v2535_v22, %v2130_v47  ;;  %v6706_v44 = vmul.f32 %v6290_v46, %v6626_v54  ;;  %v6714_v60 = vmul.f32 %v6271_v39, %v6673_v45  ;;  %v6723_v58 = vmul.f32 %v6276_v40, %v6673_v45 }
  0xd1   : > { %v1779_v1 = vsel %vm1730_vm0, %v1776_v43, %v1778_v34  ;;  %v1781_v56 = vsel %vm1730_vm0, %v1778_v34, %v1780_v20  ;;  %v2531_v54 = vsel %vm2482_vm1, %v2528_v52, %v2530_v62  ;;  %v2533_v43 = vsel %vm2482_vm1, %v2530_v62, %v2532_v35 }
  0xd2   : > { %3008 = vst.msk [vmem:[#allocation2 + $0xc8] sm:$0xff] %vm2982_vm2, %v2882_v50  ;;  %v2128_v5 = vadd.f32 %v1779_v1, %v6545_v41  ;;  %v2129_v29 = vadd.f32 %v1781_v56, %v1377_v15  ;;  %v3452_v20 = vadd.f32 %v6464_v19, %v3406_v51  ;;  %v1508_v59 = vmul.f32 %v6271_v39, %v870_v16 }
  0xd3   : > { %v2260_v28 = vmul.f32 %v6276_v40, %v870_v16  ;;  %v1381_v52 = vmul.f32 %v6290_v46, %v870_v16  ;;  %v1507_v6 = vmul.f32 %v6271_v39, %v865_v4  ;;  %v2259_v42 = vmul.f32 %v6276_v40, %v865_v4 }
  0xd4   : > { %v2880_v61 = vadd.f32 %v2531_v54, %v2128_v5  ;;  %v2881_v49 = vadd.f32 %v2533_v43, %v2129_v29  ;;  %v6733_v14 = vmax.f32 %v3452_v20, 0.0  ;;  %v1786_v35 = vrot.slane %v1508_v59, 1  ;;  %v3329_v59 = vld [vmem:[#allocation2 + $0x7a] ss:$3 sm:$0xff] }
  0xd5   : > { %v2538_v47 = vrot.slane %v2260_v28, 2  ;;  %v1380_v17 = vmul.f32 %v6290_v46, %v865_v4  ;;  %v1784_v22 = vrot.slane %v1507_v6, 1  ;;  %v3281_v34 = vmax.f32 %v3119_v32, %v3203_v37  ;;  %v3121_v37 = vld [vmem:[#allocation2 + $0x90] ss:$3 sm:$0xff] }
  0xd6   : > { %v940_v41 = vpop.permute.xlu2 %939  ;;  %v890_v3 = vpop.permute.xlu1 %889  ;;  %3006 = vst.msk [vmem:[#allocation2 + $0xb8] sm:$0xff] %vm2982_vm2, %v2880_v61  ;;  %v3790_v16 = vrot.slane %v6733_v14, 2  ;;  %v3581_v50 = vrot.slane %v6733_v14, 1  ;;  %v1789_v15 = vsel %vm1730_vm0, %v1786_v35, %v1788_v25  ;;  %v2536_v56 = vrot.slane %v2259_v42, 2  ;;  %v3205_v61 = vld [vmem:[#allocation2 + $0x91] ss:$3 sm:$0xff] }
  0xd7   : > { %v6731_v48 = vpop.permute.xlu0 %879  ;;  %v6739_v36 = vmul.f32 %v6271_v39, %v940_v41  ;;  %3007 = vst.msk [vmem:[#allocation2 + $0xc0] sm:$0xff] %vm2982_vm2, %v2881_v49  ;;  %v2541_v62 = vsel %vm2482_vm1, %v2538_v47, %v2540_v33  ;;  %v2133_v4 = vadd.f32 %v1789_v15, %v1381_v52  ;;  %v1785_v51 = vsel %vm1730_vm0, %v1782_v57, %v1784_v22 }
  0xd8   : > { %v1787_v1 = vsel %vm1730_vm0, %v1784_v22, %v1786_v35  ;;  %v3791_v5 = vsel %vm2482_vm1, %v3788_v27, %v3790_v16  ;;  %v3582_v29 = vsel %vm1730_vm0, %v3579_v23, %v3581_v50  ;;  %v2131_v54 = vadd.f32 %v1785_v51, %v6551_v2 }
  0xd9   : > { %v2132_v43 = vadd.f32 %v1787_v1, %v1380_v17  ;;  %3872 = vrot.lane.b32.xlu2 %v3791_v5, %s6107_s1  ;;  %3663 = vrot.lane.b32.xlu1 %v3582_v29, %s6108_s22  ;;  %v1806_v12 = vrot.slane %v6714_v60, 1  ;;  %v2885_v57 = vadd.f32 %v2541_v62, %v2133_v4  ;;  %v2537_v20 = vsel %vm2482_vm1, %v2534_v13, %v2536_v56 }
  0xda   : > { %v2539_v27 = vsel %vm2482_vm1, %v2536_v56, %v2538_v47  ;;  %v2883_v28 = vadd.f32 %v2537_v20, %v2131_v54  ;;  %v3407_v23 = vmax.f32 %v3281_v34, %v3329_v59  ;;  %v6769_v2 = vmul.f32 %v6276_v40, %v940_v41  ;;  %v3331_v56 = vld [vmem:[#allocation2 + $0x92] ss:$3 sm:$0xff] }
  0xdb   : > { %v2884_v32 = vadd.f32 %v2539_v27, %v2132_v43  ;;  %3011 = vst.msk [vmem:[#allocation2 + $0xe0] sm:$0xff] %vm2982_vm2, %v2885_v57  ;;  %v1395_v52 = vmul.f32 %v6290_v46, %v940_v41  ;;  %v1814_v11 = vrot.slane %v6739_v36, 1  ;;  %v6775_v13 = vmul.f32 %v6271_v39, %v890_v3 }
  0xdc   : > { %v6778_v6 = vmul.f32 %v6276_v40, %v890_v3  ;;  %3009 = vst.msk [vmem:[#allocation2 + $0xd0] sm:$0xff] %vm2982_vm2, %v2883_v28  ;;  %v3453_v42 = vadd.f32 %v6464_v19, %v3407_v23  ;;  %v1385_v17 = vmul.f32 %v6290_v46, %v890_v3  ;;  %v6787_v41 = vmul.f32 %v6271_v39, %v6731_v48 }
  0xdd   : > { %v6791_v22 = vmul.f32 %v6276_v40, %v6731_v48  ;;  %3010 = vst.msk [vmem:[#allocation2 + $0xd8] sm:$0xff] %vm2982_vm2, %v2884_v32  ;;  %v2566_v34 = vrot.slane %v6769_v2, 2  ;;  %v1794_v15 = vrot.slane %v6775_v13, 1  ;;  %v3282_v4 = vmax.f32 %v3121_v37, %v3205_v61 }
  0xde   : > { %v910_v49 = vpop.permute.xlu1 %909  ;;  %v6780_v35 = vpop.permute.xlu2 %944  ;;  %v2546_v62 = vrot.slane %v6778_v6, 2  ;;  %v6797_v51 = vmax.f32 %v3453_v42, 0.0  ;;  %v1790_v3 = vrot.slane %v6787_v41, 1  ;;  %v1383_v61 = vmul.f32 %v6290_v46, %v6731_v48  ;;  %v6907_v6 = vld [vmem:[%s10020_s3] ss:$0 sm:$0xff] }
  0xdf   : > { %v885_v47 = vpop.permute.xlu0 %884  ;;  %v2542_v1 = vrot.slane %v6791_v22, 2  ;;  %v6803_v5 = vmul.f32 %v6271_v39, %v6780_v35  ;;  %v1797_v29 = vsel %vm1730_vm0, %v1794_v15, %v1796_v21  ;;  %v3408_v43 = vmax.f32 %v3282_v4, %v3331_v56  ;;  %v3123_v4 = vld [vmem:[#allocation2 + $0xa8] ss:$3 sm:$0xff]  ;;  %v3207_v56 = vld [vmem:[#allocation2 + $0xa9] ss:$3 sm:$0xff] }
  0xe0   : > { %v2549_v54 = vsel %vm2482_vm1, %v2546_v62, %v2548_v30  ;;  %v6817_v57 = vmul.f32 %v6276_v40, %v6780_v35  ;;  %v3792_v20 = vrot.slane %v6797_v51, 2  ;;  %v3583_v27 = vrot.slane %v6797_v51, 1 }
  0xe1   : > { %v2137_v8 = vadd.f32 %v1797_v29, %v1385_v17  ;;  %v1791_v21 = vsel %vm1730_vm0, %v1788_v25, %v1790_v3  ;;  %v2543_v30 = vsel %vm2482_vm1, %v2540_v33, %v2542_v1  ;;  %v3454_v59 = vadd.f32 %v6464_v19, %v3408_v43 }
  0xe2   : > { %v2134_v55 = vadd.f32 %v1791_v21, %v6574_v63  ;;  %v1816_v28 = vrot.slane %v6803_v5, 1  ;;  %v3793_v32 = vsel %vm2482_vm1, %v3790_v16, %v3792_v20  ;;  %v3584_v23 = vsel %vm1730_vm0, %v3581_v50, %v3583_v27 }
  0xe3   : > { %v2889_v37 = vadd.f32 %v2549_v54, %v2137_v8  ;;  %v2568_v0 = vrot.slane %v6817_v57, 2  ;;  %v2558_v63 = vrot.slane %v6723_v58, 2  ;;  %3874 = vrot.lane.b32.xlu1 %v3793_v32, %s6107_s1  ;;  %3665 = vrot.lane.b32.xlu0 %v3584_v23, %s6108_s22  ;;  %v6838_v33 = vmax.f32 %v3454_v59, 0.0 }
  0xe4   : > { %v2886_v24 = vadd.f32 %v2543_v30, %v2134_v55  ;;  %v1817_v16 = vsel %vm1730_vm0, %v1814_v11, %v1816_v28  ;;  %v6854_v41 = vmul.f32 %v6271_v39, %v910_v49  ;;  %v6860_v48 = vmul.f32 %v6276_v40, %v910_v49 }
  0xe5   : > { %3015 = vst.msk [vmem:[#allocation2 + $0x100] sm:$0xff] %vm2982_vm2, %v2889_v37  ;;  %v2147_v42 = vadd.f32 %v1817_v16, %v1395_v52  ;;  %v2569_v17 = vsel %vm2482_vm1, %v2566_v34, %v2568_v0  ;;  %v3794_v29 = vrot.slane %v6838_v33, 2  ;;  %v3585_v54 = vrot.slane %v6838_v33, 1  ;;  %v647_v37 = vld [vmem:[%s6230_s23 + $0x170] sm:$0xff] }
  0xe6   : > { %v915_v25 = vpop.permute.xlu1 %914  ;;  %3012 = vst.msk [vmem:[#allocation2 + $0xe8] sm:$0xff] %vm2982_vm2, %v2886_v24  ;;  %v1511_v52 = vmul.f32 %v6271_v39, %v885_v47  ;;  %v1389_v8 = vmul.f32 %v6290_v46, %v910_v49  ;;  %v1384_v21 = vmul.f32 %v6290_v46, %v885_v47  ;;  %v2263_v55 = vmul.f32 %v6276_v40, %v885_v47  ;;  %v3333_v49 = vld [vmem:[#allocation2 + $0xaa] ss:$3 sm:$0xff]  ;;  %v6879_v40 = vld [vmem:[%s10020_s3 + $0x1] ss:$0 sm:$0xff] }
  0xe7   : > { %v905_v50 = vpop.permute.xlu0 %904  ;;  %v2899_v43 = vadd.f32 %v2569_v17, %v2147_v42  ;;  %v3586_v30 = vsel %vm1730_vm0, %v3583_v27, %v3585_v54  ;;  %v1802_v59 = vrot.slane %v6854_v41, 1  ;;  %v3283_v23 = vmax.f32 %v3123_v4, %v3207_v56  ;;  %v6885_v27 = vld [vmem:[%s10020_s3 + $0x2] ss:$0 sm:$0xff] }
  0xe8   : > { %v1792_v32 = vrot.slane %v1511_v52, 1  ;;  %v3795_v39 = vsel %vm2482_vm1, %v3792_v20, %v3794_v29  ;;  %3667 = vrot.lane.b32.xlu2 %v3586_v30, %s6108_s22  ;;  %v2544_v46 = vrot.slane %v2263_v55, 2  ;;  %v1517_v47 = vmul.f32 %v6879_v40, %v915_v25  ;;  %v648_v55 = vld [vmem:[%s6230_s23 + $0x178] sm:$0xff] }
  0xe9   : > { %3025 = vst.msk [vmem:[#allocation2 + $0x150] sm:$0xff] %vm2982_vm2, %v2899_v43  ;;  %v2269_v20 = vmul.f32 %v6885_v27, %v915_v25  ;;  %v2554_v24 = vrot.slane %v6860_v48, 2  ;;  %v3409_v17 = vmax.f32 %v3283_v23, %v3333_v49  ;;  %v1396_v2 = vmul.f32 %v6907_v6, %v6780_v35 }
  0xea   : > { %v1793_v16 = vsel %vm1730_vm0, %v1790_v3, %v1792_v32  ;;  %v1795_v42 = vsel %vm1730_vm0, %v1792_v32, %v1794_v15  ;;  %v2545_v56 = vsel %vm2482_vm1, %v2542_v1, %v2544_v46  ;;  %v2547_v52 = vsel %vm2482_vm1, %v2544_v46, %v2546_v62 }
  0xeb   : > { %v2135_v41 = vadd.f32 %v1793_v16, %v1383_v61  ;;  %v2136_v4 = vadd.f32 %v1795_v42, %v1384_v21  ;;  %959 = vperm.xlu1 %6033, %v647_v37   ;;  %3876 = vrot.lane.b32.xlu0 %v3795_v39, %s6107_s1  ;;  %v3455_v3 = vadd.f32 %v6464_v19, %v3409_v17  ;;  %v1804_v13 = vrot.slane %v1517_v47, 1 }
  0xec   : > { %v2556_v48 = vrot.slane %v2269_v20, 2  ;;  %v1515_v15 = vmul.f32 %v6879_v40, %v905_v50  ;;  %v1390_v62 = vmul.f32 %v6907_v6, %v915_v25  ;;  %v2267_v1 = vmul.f32 %v6885_v27, %v905_v50 }
  0xed   : > { %v2887_v22 = vadd.f32 %v2545_v56, %v2135_v41  ;;  %v2888_v21 = vadd.f32 %v2547_v52, %v2136_v4  ;;  %v6912_v30 = vmax.f32 %v3455_v3, 0.0  ;;  %v1805_v32 = vsel %vm1730_vm0, %v1802_v59, %v1804_v13 }
  0xee   : > { %v935_v61 = vpop.permute.xlu1 %934  ;;  %v1807_v23 = vsel %vm1730_vm0, %v1804_v13, %v1806_v12  ;;  %v1388_v37 = vmul.f32 %v6907_v6, %v905_v50  ;;  %v2141_v39 = vadd.f32 %v1805_v32, %v1389_v8  ;;  %v2557_v25 = vsel %vm2482_vm1, %v2554_v24, %v2556_v48  ;;  %v649_v50 = vld [vmem:[%s6230_s23 + $0x180] sm:$0xff] }
  0xef   : > { %v6902_v43 = vpop.permute.xlu0 %924  ;;  %3013 = vst.msk [vmem:[#allocation2 + $0xf0] sm:$0xff] %vm2982_vm2, %v2887_v22  ;;  %v2142_v46 = vadd.f32 %v1807_v23, %v1390_v62  ;;  %v1800_v49 = vrot.slane %v1515_v15, 1  ;;  %v3587_v47 = vrot.slane %v6912_v30, 1  ;;  %v2559_v20 = vsel %vm2482_vm1, %v2556_v48, %v2558_v63  ;;  %v3125_v15 = vld [vmem:[#allocation2 + $0xc0] ss:$3 sm:$0xff] }
  0xf0   : > { %3014 = vst.msk [vmem:[#allocation2 + $0xf8] sm:$0xff] %vm2982_vm2, %v2888_v21  ;;  %v2552_v16 = vrot.slane %v2267_v1, 2  ;;  %v6927_v42 = vmul.f32 %v6879_v40, %v935_v61  ;;  %964 = vperm.xlu2 %6034, %v648_v55   ;;  %v2893_v17 = vadd.f32 %v2557_v25, %v2141_v39  ;;  %v1394_v13 = vmul.f32 %v6907_v6, %v935_v61 }
  0xf1   : > { %v2894_v8 = vadd.f32 %v2559_v20, %v2142_v46  ;;  %v1801_v41 = vsel %vm1730_vm0, %v1798_v9, %v1800_v49  ;;  %v1803_v4 = vsel %vm1730_vm0, %v1800_v49, %v1802_v59  ;;  %v3588_v56 = vsel %vm1730_vm0, %v3585_v54, %v3587_v47  ;;  %v3209_v54 = vld [vmem:[#allocation2 + $0xc1] ss:$3 sm:$0xff] }
  0xf2   : > { %v2139_v52 = vadd.f32 %v1801_v41, %v6706_v44  ;;  %v2140_v3 = vadd.f32 %v1803_v4, %v1388_v37  ;;  %3019 = vst.msk [vmem:[#allocation2 + $0x120] sm:$0xff] %vm2982_vm2, %v2893_v17  ;;  %v2553_v26 = vsel %vm2482_vm1, %v2550_v10, %v2552_v16  ;;  %v2555_v9 = vsel %vm2482_vm1, %v2552_v16, %v2554_v24  ;;  %v3335_v37 = vld [vmem:[#allocation2 + $0xc2] ss:$3 sm:$0xff] }
  0xf3   : > { %v1812_v59 = vrot.slane %v6927_v42, 1  ;;  %v6948_v48 = vmul.f32 %v6885_v27, %v935_v61  ;;  %969 = vperm.xlu0 %6032, %v649_v50   ;;  %3669 = vrot.lane.b32.xlu1 %v3588_v56, %s6108_s22  ;;  %3020 = vst.msk [vmem:[#allocation2 + $0x128] sm:$0xff] %vm2982_vm2, %v2894_v8  ;;  %v3796_v53 = vrot.slane %v6912_v30, 2  ;;  %v1519_v21 = vmul.f32 %v6879_v40, %v6902_v43  ;;  %v650_v46 = vld [vmem:[%s6230_s23 + $0x188] sm:$0xff] }
  0xf4   : > { %v2891_v44 = vadd.f32 %v2553_v26, %v2139_v52  ;;  %v2892_v22 = vadd.f32 %v2555_v9, %v2140_v3  ;;  %v2271_v62 = vmul.f32 %v6885_v27, %v6902_v43  ;;  %v3284_v55 = vmax.f32 %v3125_v15, %v3209_v54  ;;  %v3127_v50 = vld [vmem:[#allocation2 + $0xd8] ss:$3 sm:$0xff] }
  0xf5   : > { %v1815_v24 = vsel %vm1730_vm0, %v1812_v59, %v1814_v11  ;;  %v2564_v61 = vrot.slane %v6948_v48, 2  ;;  %v1808_v11 = vrot.slane %v1519_v21, 1  ;;  %v1391_v39 = vmul.f32 %v6907_v6, %v6673_v45  ;;  %v652_v15 = vld [vmem:[%s6230_s23 + $0x198] sm:$0xff] }
  0xf6   : > { %3017 = vst.msk [vmem:[#allocation2 + $0x110] sm:$0xff] %vm2982_vm2, %v2891_v44  ;;  %v2146_v1 = vadd.f32 %v1815_v24, %v1394_v13  ;;  %v6962_v32 = vpop.permute.xlu1 %954  ;;  %v2560_v23 = vrot.slane %v2271_v62, 2  ;;  %v3797_v25 = vsel %vm2482_vm1, %v3794_v29, %v3796_v53  ;;  %v3410_v20 = vmax.f32 %v3284_v55, %v3335_v37  ;;  %v3211_v29 = vld [vmem:[#allocation2 + $0xd9] ss:$3 sm:$0xff]  ;;  %v3337_v55 = vld [vmem:[#allocation2 + $0xda] ss:$3 sm:$0xff] }
  0xf7   : > { %v930_v10 = vpop.permute.xlu0 %929  ;;  %3018 = vst.msk [vmem:[#allocation2 + $0x118] sm:$0xff] %vm2982_vm2, %v2892_v22  ;;  %v2567_v36 = vsel %vm2482_vm1, %v2564_v61, %v2566_v34  ;;  %v651_v34 = vld [vmem:[%s6230_s23 + $0x190] sm:$0xff]  ;;  %v1809_v16 = vsel %vm1730_vm0, %v1806_v12, %v1808_v11  ;;  %v6985_v45 = vmul.f32 %v6879_v40, %v6962_v32  ;;  %v1392_v35 = vmul.f32 %v6907_v6, %v6902_v43 }
  0xf8   : > { %v2898_v49 = vadd.f32 %v2567_v36, %v2146_v1  ;;  %3878 = vrot.lane.b32.xlu2 %v3797_v25, %s6107_s1  ;;  %v1520_v42 = vmul.f32 %v6879_v40, %v930_v10  ;;  %v2143_v17 = vadd.f32 %v1809_v16, %v1391_v39  ;;  %v3456_v8 = vadd.f32 %v6464_v19, %v3410_v20  ;;  %v3129_v16 = vld [vmem:[#allocation2 + $0xf0] ss:$3 sm:$0xff] }
  0xf9   : > { %v2272_v60 = vmul.f32 %v6885_v27, %v930_v10  ;;  %v2561_v12 = vsel %vm2482_vm1, %v2558_v63, %v2560_v23  ;;  %v6998_v41 = vmul.f32 %v6885_v27, %v6962_v32  ;;  %v1393_v4 = vmul.f32 %v6907_v6, %v930_v10 }
  0xfa   : > { %3024 = vst.msk [vmem:[#allocation2 + $0x148] sm:$0xff] %vm2982_vm2, %v2898_v49  ;;  %v1810_v56 = vrot.slane %v1520_v42, 1  ;;  %v2895_v43 = vadd.f32 %v2561_v12, %v2143_v17  ;;  %v7001_v52 = vmax.f32 %v3456_v8, 0.0  ;;  %v3285_v26 = vmax.f32 %v3127_v50, %v3211_v29  ;;  %v3213_v42 = vld [vmem:[#allocation2 + $0xf1] ss:$3 sm:$0xff] }
  0xfb   : > { %974 = vperm.xlu0 %6032, %v650_v46   ;;  %979 = vperm.xlu1 %6033, %v651_v34   ;;  %v2562_v3 = vrot.slane %v2272_v60, 2  ;;  %v1820_v58 = vrot.slane %v6985_v45, 1  ;;  %v2572_v39 = vrot.slane %v6998_v41, 2  ;;  %v653_v50 = vld [vmem:[%s6230_s23 + $0x1a0] sm:$0xff]  ;;  %v3286_v57 = vmax.f32 %v3129_v16, %v3213_v42  ;;  %v655_v29 = vld [vmem:[%s6230_s23 + $0x1b0] sm:$0xff] }
  0xfc   : > { %v1811_v63 = vsel %vm1730_vm0, %v1808_v11, %v1810_v56  ;;  %v1813_v9 = vsel %vm1730_vm0, %v1810_v56, %v1812_v59  ;;  %3021 = vst.msk [vmem:[#allocation2 + $0x130] sm:$0xff] %vm2982_vm2, %v2895_v43  ;;  %v3798_v54 = vrot.slane %v7001_v52, 2  ;;  %v3589_v44 = vrot.slane %v7001_v52, 1  ;;  %v3339_v17 = vld [vmem:[#allocation2 + $0xf2] ss:$3 sm:$0xff] }
  0xfd   : > { %v2144_v22 = vadd.f32 %v1811_v63, %v1392_v35  ;;  %v2145_v10 = vadd.f32 %v1813_v9, %v1393_v4  ;;  %v2563_v24 = vsel %vm2482_vm1, %v2560_v23, %v2562_v3  ;;  %v2565_v21 = vsel %vm2482_vm1, %v2562_v3, %v2564_v61  ;;  %v654_v35 = vld [vmem:[%s6230_s23 + $0x1a8] sm:$0xff]  ;;  %v4079_v12 = vld [vmem:[%s10022_s30 + $0x10] sm:$0xff]  ;;  %v656_v3 = vld [vmem:[%s6230_s23 + $0x1b8] sm:$0xff] }
  0xfe   : > { %v3411_v37 = vmax.f32 %v3285_v26, %v3337_v55  ;;  %v3799_v20 = vsel %vm2482_vm1, %v3796_v53, %v3798_v54  ;;  %v3590_v5 = vsel %vm1730_vm0, %v3587_v47, %v3589_v44  ;;  %v3412_v8 = vmax.f32 %v3286_v57, %v3339_v17  ;;  %4220 = vmatpush.msra.mxu0 %v4079_v12  ;;  %v3131_v63 = vld [vmem:[#allocation2 + $0x108] ss:$3 sm:$0xff]  ;;  %v3215_v9 = vld [vmem:[#allocation2 + $0x109] ss:$3 sm:$0xff] }
  0xff   : > { %v950_v13 = vpop.permute.xlu0 %949  ;;  %v2896_v59 = vadd.f32 %v2563_v24, %v2144_v22  ;;  %v2897_v36 = vadd.f32 %v2565_v21, %v2145_v10  ;;  %6008 = vmatpush.msra.mxu2 %v4079_v12  ;;  %6009 = vmatpush.msra.mxu3 %v4079_v12  ;;  %v658_v22 = vld [vmem:[%s6230_s23 + $0x1c8] sm:$0xff]  ;;  %v664_v17 = vld [vmem:[%s6230_s23 + $0x1f8] sm:$0xff] }
 0x100   : > { %v1524_v48 = vmul.f32 %v6879_v40, %v950_v13  ;;  %v2276_v1 = vmul.f32 %v6885_v27, %v950_v13  ;;  %v1397_v11 = vmul.f32 %v6907_v6, %v950_v13  ;;  %984 = vperm.xlu2 %6034, %v652_v15   ;;  %v3457_v47 = vadd.f32 %v6464_v19, %v3411_v37  ;;  %v657_v15 = vld [vmem:[%s6230_s23 + $0x1c0] sm:$0xff]  ;;  %v3341_v10 = vld [vmem:[#allocation2 + $0x10a] ss:$3 sm:$0xff] }
 0x101   : > { %3022 = vst.msk [vmem:[#allocation2 + $0x138] sm:$0xff] %vm2982_vm2, %v2896_v59  ;;  %6007 = vmatpush.msra.mxu1 %v4079_v12  ;;  %v3458_v56 = vadd.f32 %v6464_v19, %v3412_v8  ;;  %v4077_v19 = vld [vmem:[%s10022_s30] sm:$0xff]  ;;  %v659_v59 = vld [vmem:[%s6230_s23 + $0x1d0] sm:$0xff]  ;;  %v662_v57 = vld [vmem:[%s6230_s23 + $0x1e8] sm:$0xff] }
 0x102   : > { %v1818_v62 = vrot.slane %v1524_v48, 1  ;;  %v2570_v23 = vrot.slane %v2276_v1, 2  ;;  %3023 = vst.msk [vmem:[#allocation2 + $0x140] sm:$0xff] %vm2982_vm2, %v2897_v36  ;;  %v4078_v48 = vld [vmem:[%s10022_s30 + $0x8] sm:$0xff]  ;;  %v7074_v1 = vld [vmem:[%s10021_s18] ss:$0 sm:$0xff] }
 0x103   : > { %3880 = vrot.lane.b32.xlu1 %v3799_v20, %s6107_s1  ;;  %3671 = vrot.lane.b32.xlu0 %v3590_v5, %s6108_s22  ;;  %v7056_v26 = vmax.f32 %v3458_v56, 0.0  ;;  %v3133_v37 = vld [vmem:[#allocation2 + $0x120] ss:$3 sm:$0xff]  ;;  %v3343_v5 = vld [vmem:[#allocation2 + $0x122] ss:$3 sm:$0xff] }
 0x104   : > { %v1819_v46 = vsel %vm1730_vm0, %v1816_v28, %v1818_v62  ;;  %v1821_v61 = vsel %vm1730_vm0, %v1818_v62, %v1820_v58  ;;  %v2571_v28 = vsel %vm2482_vm1, %v2568_v0, %v2570_v23  ;;  %v7042_v0 = vmax.f32 %v3457_v47, 0.0  ;;  %4221 = vmatpush.msra.mxu0 %v4078_v48  ;;  %6011 = vmatpush.msra.mxu2 %v4078_v48  ;;  %v663_v8 = vld [vmem:[%s6230_s23 + $0x1f0] sm:$0xff] }
 0x105   : > { %v2148_v25 = vadd.f32 %v1819_v46, %v1396_v2  ;;  %v2149_v49 = vadd.f32 %v1821_v61, %v1397_v11  ;;  %v2573_v2 = vsel %vm2482_vm1, %v2570_v23, %v2572_v39  ;;  %6012 = vmatpush.msra.mxu3 %v4078_v48  ;;  %6010 = vmatpush.msra.mxu1 %v4078_v48  ;;  %v3802_v62 = vrot.slane %v7056_v26, 2  ;;  %v660_v11 = vld [vmem:[%s6230_s23 + $0x1d8] sm:$0xff]  ;;  %v3217_v46 = vld [vmem:[#allocation2 + $0x121] ss:$3 sm:$0xff] }
 0x106   : > { %v3591_v60 = vrot.slane %v7042_v0, 1  ;;  %v3800_v4 = vrot.slane %v7042_v0, 2  ;;  %4222 = vmatpush.msra.mxu0 %v4077_v19  ;;  %6014 = vmatpush.msra.mxu2 %v4077_v19  ;;  %v3288_v23 = vmax.f32 %v3133_v37, %v3217_v46  ;;  %v687_v37 = vld [vmem:[%s6230_s23 + $0x2b0] sm:$0xff] }
 0x107   : > { %v2900_v53 = vadd.f32 %v2571_v28, %v2148_v25  ;;  %v2901_v34 = vadd.f32 %v2573_v2, %v2149_v49  ;;  %6015 = vmatpush.msra.mxu3 %v4077_v19  ;;  %6013 = vmatpush.msra.mxu1 %v4077_v19  ;;  %v661_v25 = vld [vmem:[%s6230_s23 + $0x1e0] sm:$0xff] }
 0x108   : > { %989 = vperm.xlu2 %6034, %v653_v50   ;;  %v3592_v43 = vsel %vm1730_vm0, %v3589_v44, %v3591_v60  ;;  %v3801_v13 = vsel %vm2482_vm1, %v3798_v54, %v3800_v4  ;;  %v3593_v54 = vrot.slane %v7056_v26, 1  ;;  %v3287_v44 = vmax.f32 %v3131_v63, %v3215_v9 }
 0x109   : > { %3026 = vst.msk [vmem:[#allocation2 + $0x158] sm:$0xff] %vm2982_vm2, %v2900_v53  ;;  %v3803_v36 = vsel %vm2482_vm1, %v3800_v4, %v3802_v62  ;;  %v3414_v28 = vmax.f32 %v3288_v23, %v3343_v5  ;;  %v3135_v23 = vld [vmem:[#allocation2 + $0x138] ss:$3 sm:$0xff] }
 0x10a   : > { %3027 = vst.msk [vmem:[#allocation2 + $0x160] sm:$0xff] %vm2982_vm2, %v2901_v34  ;;  %v3594_v24 = vsel %vm1730_vm0, %v3591_v60, %v3593_v54  ;;  %v3413_v21 = vmax.f32 %v3287_v44, %v3341_v10  ;;  %v667_v44 = vld [vmem:[%s6230_s23 + $0x210] sm:$0xff]  ;;  %v700_v5 = vld [vmem:[%s6230_s23 + $0x318] sm:$0xff] }
 0x10b   : > { %999 = vperm.xlu1 %6033, %v655_v29   ;;  %994 = vperm.xlu0 %6032, %v654_v35   ;;  %v3460_v42 = vadd.f32 %v7074_v1, %v3414_v28  ;;  %v683_v10 = vld [vmem:[%s6230_s23 + $0x290] sm:$0xff] }
 0x10c   : > { %v3459_v55 = vadd.f32 %v7074_v1, %v3413_v21  ;;  %v684_v21 = vld [vmem:[%s6230_s23 + $0x298] sm:$0xff] }
 0x10d   : > { %v7096_v29 = vmax.f32 %v3460_v42, 0.0 }
 0x10e   : > { %v7081_v61 = vmax.f32 %v3459_v55, 0.0 }
 0x10f   : > { %v3597_v60 = vrot.slane %v7096_v29, 1  ;;  %v3806_v4 = vrot.slane %v7096_v29, 2 }
 0x110   : > { %3673 = vrot.lane.b32.xlu2 %v3592_v43, %s6108_s22  ;;  %v3804_v49 = vrot.slane %v7081_v61, 2  ;;  %v3595_v20 = vrot.slane %v7081_v61, 1 }
 0x111   : > { %v3867_v2 = vpop.permute.xlu2 %3866 }
 0x112   : > { %v3805_v53 = vsel %vm2482_vm1, %v3802_v62, %v3804_v49  ;;  %v3596_v34 = vsel %vm1730_vm0, %v3593_v54, %v3595_v20  ;;  %v3598_v43 = vsel %vm1730_vm0, %v3595_v20, %v3597_v60  ;;  %v3807_v9 = vsel %vm2482_vm1, %v3804_v49, %v3806_v4  ;;  %v682_v54 = vld [vmem:[%s6230_s23 + $0x288] sm:$0xff] }
 0x113   : > { %1004 = vperm.xlu1 %6033, %v656_v3   ;;  %3882 = vrot.lane.b32.xlu0 %v3801_v13, %s6107_s1  ;;  %v665_v13 = vld [vmem:[%s6230_s23 + $0x200] sm:$0xff] }
 0x118   : > { %1009 = vperm.xlu2 %6034, %v657_v15  }
 0x11b   : > { %1014 = vperm.xlu0 %6032, %v658_v22   ;;  %3675 = vrot.lane.b32.xlu1 %v3594_v24, %s6108_s22  ;;  %v685_v24 = vld [vmem:[%s6230_s23 + $0x2a0] sm:$0xff] }
 0x120   : > { %3884 = vrot.lane.b32.xlu2 %v3803_v36, %s6107_s1  ;;  %v686_v36 = vld [vmem:[%s6230_s23 + $0x2a8] sm:$0xff] }
 0x123   : > { %1019 = vperm.xlu0 %6032, %v659_v59   ;;  %1024 = vperm.xlu1 %6033, %v660_v11   ;;  %v688_v11 = vld [vmem:[%s6230_s23 + $0x2b8] sm:$0xff] }
 0x127   : > { %v3662_v35 = vpop.permute.xlu2 %3661 }
 0x128   : > { %1029 = vperm.xlu2 %6034, %v661_v25   ;;  %v3994_v48 = vsel %vm2982_vm2, %v6599_v38, %v3662_v35  ;;  %v3219_v25 = vld [vmem:[#allocation2 + $0x139] ss:$3 sm:$0xff] }
 0x12a   : > { %v3658_v47 = vpop.permute.xlu1 %3657 }
 0x12b   : > { %3886 = vrot.lane.b32.xlu1 %v3805_v53, %s6107_s1  ;;  %3677 = vrot.lane.b32.xlu0 %v3596_v34, %s6108_s22  ;;  %v3992_v16 = vsel %vm2982_vm2, %v6514_v7, %v3658_v47  ;;  %v702_v53 = vld [vmem:[%s6230_s23 + $0x328] sm:$0xff]  ;;  %v701_v34 = vld [vmem:[%s6230_s23 + $0x320] sm:$0xff] }
 0x12c   : > { %v4035_v50 = vsel %vm4034_vm3, %v3992_v16, %v3867_v2  ;;  %v3345_v47 = vld [vmem:[#allocation2 + $0x13a] ss:$3 sm:$0xff] }
 0x12d   : > { %5906 = vmatmul.msk.f32.vlgmr.msra.gmra.mxu0 %vm4080_vm4, %v4035_v50 }
 0x130   : > { %1034 = vperm.xlu2 %6034, %v662_v57  }
 0x133   : > { %1044 = vperm.xlu1 %6033, %v664_v17   ;;  %1039 = vperm.xlu0 %6032, %v663_v8   ;;  %v3873_v63 = vpop.permute.xlu2 %3872  ;;  %v703_v17 = vld [vmem:[%s6230_s23 + $0x330] sm:$0xff] }
 0x134   : > { %v3869_v7 = vpop.permute.xlu1 %3868 }
 0x135   : > { %v3660_v12 = vpop.permute.xlu0 %3659 }
 0x136   : > { %v3993_v56 = vsel %vm2982_vm2, %v6525_v18, %v3660_v12  ;;  %v666_v18 = vld [vmem:[%s6230_s23 + $0x208] sm:$0xff] }
 0x137   : > { %v4036_v3 = vsel %vm4034_vm3, %v3993_v56, %v3869_v7 }
 0x138   : > { %3679 = vrot.lane.b32.xlu2 %v3598_v43, %s6108_s22  ;;  %5907 = vmatmul.msk.f32.gmra.mxu0 %vm4080_vm4, %v4036_v3 }
 0x13b   : > { %1049 = vperm.xlu1 %6033, %v665_v13   ;;  %3888 = vrot.lane.b32.xlu0 %v3807_v9, %s6107_s1  ;;  %v704_v9 = vld [vmem:[%s6230_s23 + $0x338] sm:$0xff] }
 0x13f   : > { %v3871_v19 = vpop.permute.xlu0 %3870 }
 0x140   : > { %v4037_v15 = vsel %vm4034_vm3, %v3994_v48, %v3871_v19  ;;  %1054 = vperm.xlu2 %6034, %v666_v18   ;;  %v1398_v18 = vmul.f32 %v6907_v6, %v6962_v32 }
 0x141   : > { %5908 = vmatmul.msk.f32.gmra.mxu0 %vm4080_vm4, %v4037_v15 }
 0x142   : > { %v3668_v22 = vpop.permute.xlu2 %3667 }
 0x143   : > { %1134 = vperm.xlu1 %6033, %v682_v54   ;;  %1059 = vperm.xlu0 %6032, %v667_v44  }
 0x148   : > { %1139 = vperm.xlu2 %6034, %v683_v10  }
 0x14a   : > { %v7125_v62 = vpop.permute.xlu2 %964 }
 0x14b   : > { %1149 = vperm.xlu1 %6033, %v685_v24   ;;  %1144 = vperm.xlu0 %6032, %v684_v21   ;;  %v3664_v38 = vpop.permute.xlu1 %3663  ;;  %v7145_v50 = vmul.f32 %v6879_v40, %v7125_v62  ;;  %v7153_v7 = vmul.f32 %v6885_v27, %v7125_v62 }
 0x14c   : > { %v3995_v55 = vsel %vm2982_vm2, %v6657_v31, %v3664_v38  ;;  %v3289_v31 = vmax.f32 %v3135_v23, %v3219_v25  ;;  %v706_v23 = vld [vmem:[%s6230_s23 + $0x348] sm:$0xff] }
 0x14d   : > { %v4038_v59 = vsel %vm4034_vm3, %v3995_v55, %v3873_v63  ;;  %v1824_v3 = vrot.slane %v7145_v50, 1  ;;  %v2576_v15 = vrot.slane %v7153_v7, 2  ;;  %v1400_v50 = vmul.f32 %v6907_v6, %v7125_v62 }
 0x14e   : > { %5909 = vmatmul.msk.f32.gmra.mxu0 %vm4080_vm4, %v4038_v59  ;;  %v3415_v16 = vmax.f32 %v3289_v31, %v3345_v47 }
 0x150   : > { %1154 = vperm.xlu2 %6034, %v686_v36   ;;  %v3461_v8 = vadd.f32 %v7074_v1, %v3415_v16 }
 0x152   : > { %v7134_v46 = vpop.permute.xlu2 %3878  ;;  %v7165_v19 = vmax.f32 %v3461_v8, 0.0 }
 0x153   : > { %1164 = vperm.xlu1 %6033, %v688_v11   ;;  %1159 = vperm.xlu0 %6032, %v687_v37  }
 0x154   : > { %v3808_v25 = vrot.slane %v7165_v19, 2  ;;  %v3599_v41 = vrot.slane %v7165_v19, 1 }
 0x155   : > { %v3875_v49 = vpop.permute.xlu1 %3874  ;;  %v3666_v20 = vpop.permute.xlu0 %3665 }
 0x156   : > { %v3996_v28 = vsel %vm2982_vm2, %v6733_v14, %v3666_v20  ;;  %v3997_v14 = vsel %vm2982_vm2, %v6797_v51, %v3668_v22  ;;  %v705_v51 = vld [vmem:[%s6230_s23 + $0x340] sm:$0xff] }
 0x157   : > { %v4039_v2 = vsel %vm4034_vm3, %v3996_v28, %v3875_v49 }
 0x158   : > { %5910 = vmatmul.msk.f32.gmra.mxu0 %vm4080_vm4, %v4039_v2  ;;  %1224 = vperm.xlu2 %6034, %v700_v5  }
 0x15a   : > { %v985_v42 = vpop.permute.xlu2 %984 }
 0x15b   : > { %1234 = vperm.xlu1 %6033, %v702_v53   ;;  %1229 = vperm.xlu0 %6032, %v701_v34   ;;  %v7173_v22 = vmul.f32 %v6879_v40, %v985_v42  ;;  %v7178_v21 = vmul.f32 %v6885_v27, %v985_v42  ;;  %v1404_v31 = vmul.f32 %v6907_v6, %v985_v42 }
 0x15d   : > { %v960_v57 = vpop.permute.xlu1 %959  ;;  %v3877_v35 = vpop.permute.xlu0 %3876  ;;  %v2584_v34 = vrot.slane %v7178_v21, 2 }
 0x15e   : > { %v1526_v12 = vmul.f32 %v6879_v40, %v960_v57  ;;  %v2278_v56 = vmul.f32 %v6885_v27, %v960_v57  ;;  %v4040_v43 = vsel %vm4034_vm3, %v3997_v14, %v3877_v35  ;;  %v1399_v48 = vmul.f32 %v6907_v6, %v960_v57 }
 0x15f   : > { %v3809_v14 = vsel %vm2482_vm1, %v3806_v4, %v3808_v25  ;;  %v3600_v57 = vsel %vm1730_vm0, %v3597_v60, %v3599_v41 }
 0x160   : > { %v1822_v13 = vrot.slane %v1526_v12, 1  ;;  %v2574_v63 = vrot.slane %v2278_v56, 2  ;;  %5911 = vmatmul.msk.f32.gmra.mxu0 %vm4080_vm4, %v4040_v43  ;;  %1239 = vperm.xlu2 %6034, %v703_v17   ;;  %v668_v56 = vld [vmem:[%s6230_s23 + $0x218] sm:$0xff] }
 0x162   : > { %v1823_v54 = vsel %vm1730_vm0, %v1820_v58, %v1822_v13  ;;  %v1825_v44 = vsel %vm1730_vm0, %v1822_v13, %v1824_v3  ;;  %v7175_v10 = vpop.permute.xlu2 %989  ;;  %v2575_v45 = vsel %vm2482_vm1, %v2572_v39, %v2574_v63  ;;  %v2577_v58 = vsel %vm2482_vm1, %v2574_v63, %v2576_v15 }
 0x163   : > { %v2150_v24 = vadd.f32 %v1823_v54, %v1398_v18  ;;  %v2151_v32 = vadd.f32 %v1825_v44, %v1399_v48  ;;  %1249 = vperm.xlu1 %6033, %v705_v51   ;;  %1244 = vperm.xlu0 %6032, %v704_v9   ;;  %v7186_v38 = vmul.f32 %v6879_v40, %v7175_v10  ;;  %v1832_v39 = vrot.slane %v7173_v22, 1  ;;  %v3137_v51 = vld [vmem:[#allocation2 + $0x150] ss:$3 sm:$0xff]  ;;  %v670_v48 = vld [vmem:[%s6230_s23 + $0x228] sm:$0xff] }
 0x164   : > { %v7190_v55 = vmul.f32 %v6885_v27, %v7175_v10 }
 0x165   : > { %v2902_v59 = vadd.f32 %v2575_v45, %v2150_v24  ;;  %v2903_v36 = vadd.f32 %v2577_v58, %v2151_v32  ;;  %v3670_v11 = vpop.permute.xlu1 %3669  ;;  %v970_v37 = vpop.permute.xlu0 %969  ;;  %v1834_v49 = vrot.slane %v7186_v38, 1  ;;  %v669_v24 = vld [vmem:[%s6230_s23 + $0x220] sm:$0xff] }
 0x166   : > { %v2586_v20 = vrot.slane %v7190_v55, 2  ;;  %v3998_v5 = vsel %vm2982_vm2, %v6838_v33, %v3670_v11  ;;  %v1528_v28 = vmul.f32 %v6879_v40, %v970_v37  ;;  %v2280_v2 = vmul.f32 %v6885_v27, %v970_v37 }
 0x167   : > { %3028 = vst.msk [vmem:[#allocation2 + $0x168] sm:$0xff] %vm2982_vm2, %v2902_v59  ;;  %v4041_v53 = vsel %vm4034_vm3, %v3998_v5, %v7134_v46  ;;  %v1835_v47 = vsel %vm1730_vm0, %v1832_v39, %v1834_v49  ;;  %v1401_v32 = vmul.f32 %v6907_v6, %v970_v37 }
 0x168   : > { %3029 = vst.msk [vmem:[#allocation2 + $0x170] sm:$0xff] %vm2982_vm2, %v2903_v36  ;;  %5912 = vmatmul.msk.f32.gmra.mxu0 %vm4080_vm4, %v4041_v53  ;;  %1254 = vperm.xlu2 %6034, %v706_v23   ;;  %v2156_v33 = vadd.f32 %v1835_v47, %v1404_v31  ;;  %v1826_v16 = vrot.slane %v1528_v28, 1  ;;  %v2578_v42 = vrot.slane %v2280_v2, 2  ;;  %v2587_v46 = vsel %vm2482_vm1, %v2584_v34, %v2586_v20 }
 0x16a   : > { %v7227_v35 = vpop.permute.xlu2 %3673  ;;  %v2908_v17 = vadd.f32 %v2587_v46, %v2156_v33  ;;  %v1827_v62 = vsel %vm1730_vm0, %v1824_v3, %v1826_v16  ;;  %v2579_v4 = vsel %vm2482_vm1, %v2576_v15, %v2578_v42  ;;  %v3221_v15 = vld [vmem:[#allocation2 + $0x151] ss:$3 sm:$0xff] }
 0x16b   : > { %3890 = vrot.lane.b32.xlu1 %v3809_v14, %s6107_s1  ;;  %3681 = vrot.lane.b32.xlu0 %v3600_v57, %s6108_s22  ;;  %v2152_v8 = vadd.f32 %v1827_v62, %v1400_v50  ;;  %v3290_v23 = vmax.f32 %v3137_v51, %v3221_v15  ;;  %v689_v33 = vld [vmem:[%s6230_s23 + $0x2c0] sm:$0xff]  ;;  %v1405_v15 = vmul.f32 %v6907_v6, %v7175_v10 }
 0x16c   : > { %3034 = vst.msk [vmem:[#allocation2 + $0x198] sm:$0xff] %vm2982_vm2, %v2908_v17  ;;  %v3347_v14 = vld [vmem:[#allocation2 + $0x152] ss:$3 sm:$0xff]  ;;  %v690_v17 = vld [vmem:[%s6230_s23 + $0x2c8] sm:$0xff]  ;;  %v4000_v10 = vsel %vm2982_vm2, %v7001_v52, %v7227_v35 }
 0x16d   : > { %v980_v7 = vpop.permute.xlu1 %979  ;;  %v975_v12 = vpop.permute.xlu0 %974  ;;  %v2904_v60 = vadd.f32 %v2579_v4, %v2152_v8  ;;  %v3416_v57 = vmax.f32 %v3290_v23, %v3347_v14 }
 0x16e   : > { %v1530_v43 = vmul.f32 %v6879_v40, %v980_v7  ;;  %v2282_v13 = vmul.f32 %v6885_v27, %v980_v7  ;;  %v1529_v3 = vmul.f32 %v6879_v40, %v975_v12  ;;  %v2281_v63 = vmul.f32 %v6885_v27, %v975_v12 }
 0x16f   : > { %3030 = vst.msk [vmem:[#allocation2 + $0x178] sm:$0xff] %vm2982_vm2, %v2904_v60  ;;  %v1403_v54 = vmul.f32 %v6907_v6, %v980_v7  ;;  %v1402_v45 = vmul.f32 %v6907_v6, %v975_v12  ;;  %v707_v7 = vld [vmem:[%s6230_s23 + $0x350] sm:$0xff] }
 0x170   : > { %v1830_v9 = vrot.slane %v1530_v43, 1  ;;  %v2582_v18 = vrot.slane %v2282_v13, 2  ;;  %1064 = vperm.xlu2 %6034, %v668_v56   ;;  %v1828_v44 = vrot.slane %v1529_v3, 1  ;;  %v2580_v22 = vrot.slane %v2281_v63, 2  ;;  %v709_v63 = vld [vmem:[%s6230_s23 + $0x360] sm:$0xff] }
 0x172   : > { %v1833_v21 = vsel %vm1730_vm0, %v1830_v9, %v1832_v39  ;;  %v7246_v58 = vpop.permute.xlu2 %1009  ;;  %v1829_v36 = vsel %vm1730_vm0, %v1826_v16, %v1828_v44  ;;  %v1831_v11 = vsel %vm1730_vm0, %v1828_v44, %v1830_v9  ;;  %v2585_v5 = vsel %vm2482_vm1, %v2582_v18, %v2584_v34 }
 0x173   : > { %v2155_v59 = vadd.f32 %v1833_v21, %v1403_v54  ;;  %1074 = vperm.xlu1 %6033, %v670_v48   ;;  %v2153_v31 = vadd.f32 %v1829_v36, %v1401_v32  ;;  %v2154_v28 = vadd.f32 %v1831_v11, %v1402_v45  ;;  %1069 = vperm.xlu0 %6032, %v669_v24   ;;  %v708_v48 = vld [vmem:[%s6230_s23 + $0x358] sm:$0xff] }
 0x174   : > { %v2581_v39 = vsel %vm2482_vm1, %v2578_v42, %v2580_v22  ;;  %v2583_v2 = vsel %vm2482_vm1, %v2580_v22, %v2582_v18  ;;  %v691_v42 = vld [vmem:[%s6230_s23 + $0x2d0] sm:$0xff]  ;;  %v7285_v21 = vmul.f32 %v6879_v40, %v7246_v58  ;;  %v7296_v23 = vmul.f32 %v6885_v27, %v7246_v58 }
 0x175   : > { %v2907_v37 = vadd.f32 %v2585_v5, %v2155_v59  ;;  %v3881_v53 = vpop.permute.xlu1 %3880  ;;  %v3672_v47 = vpop.permute.xlu0 %3671  ;;  %v2905_v16 = vadd.f32 %v2581_v39, %v2153_v31  ;;  %v2906_v50 = vadd.f32 %v2583_v2, %v2154_v28  ;;  %v671_v2 = vld [vmem:[%s6230_s23 + $0x230] sm:$0xff] }
 0x176   : > { %v3999_v46 = vsel %vm2982_vm2, %v6912_v30, %v3672_v47  ;;  %v3462_v30 = vadd.f32 %v7074_v1, %v3416_v57  ;;  %v1842_v35 = vrot.slane %v7285_v21, 1  ;;  %v3223_v57 = vld [vmem:[#allocation2 + $0x169] ss:$3 sm:$0xff] }
 0x177   : > { %3033 = vst.msk [vmem:[#allocation2 + $0x190] sm:$0xff] %vm2982_vm2, %v2907_v37  ;;  %v4042_v34 = vsel %vm4034_vm3, %v3999_v46, %v3881_v53 }
 0x178   : > { %3031 = vst.msk [vmem:[#allocation2 + $0x180] sm:$0xff] %vm2982_vm2, %v2905_v16  ;;  %5913 = vmatmul.msk.f32.gmra.mxu0 %vm4080_vm4, %v4042_v34  ;;  %1169 = vperm.xlu2 %6034, %v689_v33   ;;  %v7271_v13 = vmax.f32 %v3462_v30, 0.0  ;;  %v2594_v16 = vrot.slane %v7296_v23, 2  ;;  %v3139_v34 = vld [vmem:[#allocation2 + $0x168] ss:$3 sm:$0xff] }
 0x179   : > { %3032 = vst.msk [vmem:[#allocation2 + $0x188] sm:$0xff] %vm2982_vm2, %v2906_v50 }
 0x17a   : > { %v7263_v62 = vpop.permute.xlu2 %3884  ;;  %v3601_v32 = vrot.slane %v7271_v13, 1  ;;  %v3810_v55 = vrot.slane %v7271_v13, 2 }
 0x17b   : > { %1179 = vperm.xlu1 %6033, %v691_v42   ;;  %1174 = vperm.xlu0 %6032, %v690_v17  }
 0x17d   : > { %v1000_v8 = vpop.permute.xlu1 %999  ;;  %v995_v4 = vpop.permute.xlu0 %994 }
 0x17e   : > { %v1534_v12 = vmul.f32 %v6879_v40, %v1000_v8  ;;  %v2286_v56 = vmul.f32 %v6885_v27, %v1000_v8  ;;  %v1533_v60 = vmul.f32 %v6879_v40, %v995_v4  ;;  %v2285_v43 = vmul.f32 %v6885_v27, %v995_v4 }
 0x17f   : > { %v1406_v54 = vmul.f32 %v6907_v6, %v995_v4  ;;  %v1407_v53 = vmul.f32 %v6907_v6, %v1000_v8  ;;  %v3811_v8 = vsel %vm2482_vm1, %v3808_v25, %v3810_v55  ;;  %v672_v25 = vld [vmem:[%s6230_s23 + $0x238] sm:$0xff] }
 0x180   : > { %v1838_v3 = vrot.slane %v1534_v12, 1  ;;  %1259 = vperm.xlu2 %6034, %v707_v7   ;;  %v2590_v51 = vrot.slane %v2286_v56, 2  ;;  %v1836_v9 = vrot.slane %v1533_v60, 1  ;;  %v2588_v18 = vrot.slane %v2285_v43, 2 }
 0x182   : > { %v1030_v44 = vpop.permute.xlu2 %1029  ;;  %v1837_v22 = vsel %vm1730_vm0, %v1834_v49, %v1836_v9  ;;  %v1839_v24 = vsel %vm1730_vm0, %v1836_v9, %v1838_v3  ;;  %v2589_v38 = vsel %vm2482_vm1, %v2586_v20, %v2588_v18  ;;  %v2591_v49 = vsel %vm2482_vm1, %v2588_v18, %v2590_v51 }
 0x183   : > { %1269 = vperm.xlu1 %6033, %v709_v63   ;;  %v2157_v45 = vadd.f32 %v1837_v22, %v1405_v15  ;;  %v2158_v59 = vadd.f32 %v1839_v24, %v1406_v54  ;;  %1264 = vperm.xlu0 %6032, %v708_v48   ;;  %v3602_v20 = vsel %vm1730_vm0, %v3599_v41, %v3601_v32 }
 0x184   : > { %v7319_v46 = vmul.f32 %v6879_v40, %v1030_v44  ;;  %v7324_v30 = vmul.f32 %v6885_v27, %v1030_v44  ;;  %v3291_v9 = vmax.f32 %v3139_v34, %v3223_v57  ;;  %v1413_v54 = vmul.f32 %v6907_v6, %v1030_v44 }
 0x185   : > { %v1005_v36 = vpop.permute.xlu1 %1004  ;;  %v3883_v11 = vpop.permute.xlu0 %3882  ;;  %v2909_v5 = vadd.f32 %v2589_v38, %v2157_v45  ;;  %v2910_v31 = vadd.f32 %v2591_v49, %v2158_v59  ;;  %v3349_v38 = vld [vmem:[#allocation2 + $0x16a] ss:$3 sm:$0xff] }
 0x186   : > { %v1535_v28 = vmul.f32 %v6879_v40, %v1005_v36  ;;  %v2287_v37 = vmul.f32 %v6885_v27, %v1005_v36  ;;  %v4043_v52 = vsel %vm4034_vm3, %v4000_v10, %v3883_v11  ;;  %v1408_v47 = vmul.f32 %v6907_v6, %v1005_v36 }
 0x187   : > { %3035 = vst.msk [vmem:[#allocation2 + $0x1a0] sm:$0xff] %vm2982_vm2, %v2909_v5  ;;  %5914 = vmatmul.msk.f32.gmra.mxu0 %vm4080_vm4, %v4043_v52  ;;  %v2602_v45 = vrot.slane %v7324_v30, 2  ;;  %v3417_v11 = vmax.f32 %v3291_v9, %v3349_v38  ;;  %v693_v52 = vld [vmem:[%s6230_s23 + $0x2e0] sm:$0xff] }
 0x188   : > { %v1840_v39 = vrot.slane %v1535_v28, 1  ;;  %3683 = vrot.lane.b32.xlu2 %v3602_v20, %s6108_s22  ;;  %3036 = vst.msk [vmem:[#allocation2 + $0x1a8] sm:$0xff] %vm2982_vm2, %v2910_v31  ;;  %v2592_v33 = vrot.slane %v2287_v37, 2  ;;  %v7395_v30 = vld [vmem:[%s10020_s3] ss:$0 sm:$0xff] }
 0x18a   : > { %v1841_v41 = vsel %vm1730_vm0, %v1838_v3, %v1840_v39  ;;  %v1843_v50 = vsel %vm1730_vm0, %v1840_v39, %v1842_v35  ;;  %v7321_v14 = vpop.permute.xlu2 %1034  ;;  %v2593_v4 = vsel %vm2482_vm1, %v2590_v51, %v2592_v33  ;;  %v2595_v7 = vsel %vm2482_vm1, %v2592_v33, %v2594_v16  ;;  %v7376_v39 = vld [vmem:[%s10020_s3 + $0x1] ss:$0 sm:$0xff] }
 0x18b   : > { %v2159_v42 = vadd.f32 %v1841_v41, %v1407_v53  ;;  %v2160_v17 = vadd.f32 %v1843_v50, %v1408_v47  ;;  %1079 = vperm.xlu1 %6033, %v671_v2   ;;  %3892 = vrot.lane.b32.xlu0 %v3811_v8, %s6107_s1  ;;  %v7336_v12 = vmul.f32 %v6879_v40, %v7321_v14  ;;  %v1850_v51 = vrot.slane %v7319_v46, 1  ;;  %v7382_v2 = vld [vmem:[%s10020_s3 + $0x2] ss:$0 sm:$0xff]  ;;  %v710_v46 = vld [vmem:[%s6230_s23 + $0x368] sm:$0xff] }
 0x18c   : > { %v7340_v56 = vmul.f32 %v6885_v27, %v7321_v14  ;;  %v3463_v47 = vadd.f32 %v7074_v1, %v3417_v11 }
 0x18d   : > { %v2911_v60 = vadd.f32 %v2593_v4, %v2159_v42  ;;  %v2912_v43 = vadd.f32 %v2595_v7, %v2160_v17  ;;  %v3676_v3 = vpop.permute.xlu1 %3675  ;;  %v1015_v63 = vpop.permute.xlu0 %1014  ;;  %v1852_v18 = vrot.slane %v7336_v12, 1  ;;  %v694_v17 = vld [vmem:[%s6230_s23 + $0x2e8] sm:$0xff] }
 0x18e   : > { %v2604_v48 = vrot.slane %v7340_v56, 2  ;;  %v4001_v15 = vsel %vm2982_vm2, %v7042_v0, %v3676_v3  ;;  %v1537_v22 = vmul.f32 %v6879_v40, %v1015_v63  ;;  %v2289_v24 = vmul.f32 %v6885_v27, %v1015_v63  ;;  %v692_v0 = vld [vmem:[%s6230_s23 + $0x2d8] sm:$0xff]  ;;  %v673_v27 = vld [vmem:[%s6230_s23 + $0x240] sm:$0xff] }
 0x18f   : > { %3037 = vst.msk [vmem:[#allocation2 + $0x1b0] sm:$0xff] %vm2982_vm2, %v2911_v60  ;;  %v4044_v21 = vsel %vm4034_vm3, %v4001_v15, %v7263_v62  ;;  %v1853_v59 = vsel %vm1730_vm0, %v1850_v51, %v1852_v18  ;;  %v1409_v62 = vmul.f32 %v6907_v6, %v7246_v58  ;;  %v1410_v8 = vmul.f32 %v7395_v30, %v1015_v63 }
 0x190   : > { %3038 = vst.msk [vmem:[#allocation2 + $0x1b8] sm:$0xff] %vm2982_vm2, %v2912_v43  ;;  %5915 = vmatmul.msk.f32.gmra.mxu0 %vm4080_vm4, %v4044_v21  ;;  %1084 = vperm.xlu2 %6034, %v672_v25   ;;  %v2165_v44 = vadd.f32 %v1853_v59, %v1413_v54  ;;  %v1844_v10 = vrot.slane %v1537_v22, 1  ;;  %v2596_v40 = vrot.slane %v2289_v24, 2  ;;  %v2605_v49 = vsel %vm2482_vm1, %v2602_v45, %v2604_v48  ;;  %v711_v59 = vld [vmem:[%s6230_s23 + $0x370] sm:$0xff] }
 0x191   : > { %v7402_v43 = vmax.f32 %v3463_v47, 0.0 }
 0x192   : > { %v7367_v36 = vpop.permute.xlu2 %3679  ;;  %v2917_v23 = vadd.f32 %v2605_v49, %v2165_v44  ;;  %v1845_v5 = vsel %vm1730_vm0, %v1842_v35, %v1844_v10  ;;  %v2597_v28 = vsel %vm2482_vm1, %v2594_v16, %v2596_v40 }
 0x193   : > { %1184 = vperm.xlu1 %6033, %v692_v0   ;;  %v2161_v31 = vadd.f32 %v1845_v5, %v1409_v62  ;;  %1089 = vperm.xlu0 %6032, %v673_v27   ;;  %v3603_v27 = vrot.slane %v7402_v43, 1  ;;  %v3812_v62 = vrot.slane %v7402_v43, 2  ;;  %v4003_v12 = vsel %vm2982_vm2, %v7081_v61, %v7367_v36 }
 0x194   : > { %3043 = vst.msk [vmem:[#allocation2 + $0x1e0] sm:$0xff] %vm2982_vm2, %v2917_v23 }
 0x195   : > { %v1025_v37 = vpop.permute.xlu1 %1024  ;;  %v1020_v58 = vpop.permute.xlu0 %1019  ;;  %v2913_v20 = vadd.f32 %v2597_v28, %v2161_v31  ;;  %v3141_v31 = vld [vmem:[#allocation2 + $0x180] ss:$3 sm:$0xff]  ;;  %v3225_v28 = vld [vmem:[#allocation2 + $0x181] ss:$3 sm:$0xff] }
 0x196   : > { %v1539_v35 = vmul.f32 %v7376_v39, %v1025_v37  ;;  %v2291_v53 = vmul.f32 %v7382_v2, %v1025_v37  ;;  %v1538_v33 = vmul.f32 %v7376_v39, %v1020_v58  ;;  %v2290_v16 = vmul.f32 %v7382_v2, %v1020_v58 }
 0x197   : > { %3039 = vst.msk [vmem:[#allocation2 + $0x1c0] sm:$0xff] %vm2982_vm2, %v2913_v20  ;;  %v1412_v34 = vmul.f32 %v6907_v6, %v1025_v37  ;;  %v1411_v7 = vmul.f32 %v7395_v30, %v1020_v58  ;;  %v3813_v58 = vsel %vm2482_vm1, %v3810_v55, %v3812_v62  ;;  %v675_v20 = vld [vmem:[%s6230_s23 + $0x250] sm:$0xff] }
 0x198   : > { %v1848_v41 = vrot.slane %v1539_v35, 1  ;;  %v2600_v50 = vrot.slane %v2291_v53, 2  ;;  %1189 = vperm.xlu2 %6034, %v693_v52   ;;  %v1846_v57 = vrot.slane %v1538_v33, 1  ;;  %v2598_v42 = vrot.slane %v2290_v16, 2  ;;  %v674_v33 = vld [vmem:[%s6230_s23 + $0x248] sm:$0xff] }
 0x199   : > { %v3292_v16 = vmax.f32 %v3141_v31, %v3225_v28 }
 0x19a   : > { %v1851_v4 = vsel %vm1730_vm0, %v1848_v41, %v1850_v51  ;;  %v7400_v60 = vpop.permute.xlu2 %1054  ;;  %v1847_v3 = vsel %vm1730_vm0, %v1844_v10, %v1846_v57  ;;  %v1849_v25 = vsel %vm1730_vm0, %v1846_v57, %v1848_v41  ;;  %v2603_v9 = vsel %vm2482_vm1, %v2600_v50, %v2602_v45 }
 0x19b   : > { %v2164_v6 = vadd.f32 %v1851_v4, %v1412_v34  ;;  %1274 = vperm.xlu1 %6033, %v710_v46   ;;  %v2162_v15 = vadd.f32 %v1847_v3, %v1410_v8  ;;  %v2163_v54 = vadd.f32 %v1849_v25, %v1411_v7  ;;  %1194 = vperm.xlu0 %6032, %v694_v17   ;;  %v3143_v4 = vld [vmem:[#allocation2 + $0x198] ss:$3 sm:$0xff]  ;;  %v3227_v7 = vld [vmem:[#allocation2 + $0x199] ss:$3 sm:$0xff] }
 0x19c   : > { %v2599_v51 = vsel %vm2482_vm1, %v2596_v40, %v2598_v42  ;;  %v2601_v22 = vsel %vm2482_vm1, %v2598_v42, %v2600_v50  ;;  %v712_v40 = vld [vmem:[%s6230_s23 + $0x378] sm:$0xff]  ;;  %v1414_v41 = vmul.f32 %v7395_v30, %v7321_v14  ;;  %v7454_v42 = vmul.f32 %v7376_v39, %v7400_v60  ;;  %v3351_v14 = vld [vmem:[#allocation2 + $0x182] ss:$3 sm:$0xff] }
 0x19d   : > { %v2916_v63 = vadd.f32 %v2603_v9, %v2164_v6  ;;  %v3887_v24 = vpop.permute.xlu1 %3886  ;;  %v3678_v21 = vpop.permute.xlu0 %3677  ;;  %v2914_v0 = vadd.f32 %v2599_v51, %v2162_v15  ;;  %v2915_v44 = vadd.f32 %v2601_v22, %v2163_v54  ;;  %v676_v9 = vld [vmem:[%s6230_s23 + $0x258] sm:$0xff]  ;;  %v3418_v15 = vmax.f32 %v3292_v16, %v3351_v14 }
 0x19e   : > { %v4002_v10 = vsel %vm2982_vm2, %v7056_v26, %v3678_v21  ;;  %v3604_v26 = vsel %vm1730_vm0, %v3601_v32, %v3603_v27  ;;  %v7467_v54 = vmul.f32 %v7382_v2, %v7400_v60  ;;  %v3293_v51 = vmax.f32 %v3143_v4, %v3227_v7  ;;  %v678_v21 = vld [vmem:[%s6230_s23 + $0x268] sm:$0xff] }
 0x19f   : > { %3042 = vst.msk [vmem:[#allocation2 + $0x1d8] sm:$0xff] %vm2982_vm2, %v2916_v63  ;;  %v4045_v45 = vsel %vm4034_vm3, %v4002_v10, %v3887_v24  ;;  %v1860_v22 = vrot.slane %v7454_v42, 1  ;;  %v677_v10 = vld [vmem:[%s6230_s23 + $0x260] sm:$0xff] }
 0x1a0   : > { %3040 = vst.msk [vmem:[#allocation2 + $0x1c8] sm:$0xff] %vm2982_vm2, %v2914_v0  ;;  %5916 = vmatmul.msk.f32.gmra.mxu0 %vm4080_vm4, %v4045_v45  ;;  %1279 = vperm.xlu2 %6034, %v711_v59   ;;  %v3464_v45 = vadd.f32 %v7074_v1, %v3418_v15  ;;  %v681_v42 = vld [vmem:[%s6230_s23 + $0x280] sm:$0xff] }
 0x1a1   : > { %3041 = vst.msk [vmem:[#allocation2 + $0x1d0] sm:$0xff] %vm2982_vm2, %v2915_v44 }
 0x1a2   : > { %v7424_v38 = vpop.permute.xlu2 %1139  ;;  %v7495_v16 = vmax.f32 %v3464_v45, 0.0 }
 0x1a3   : > { %3685 = vrot.lane.b32.xlu1 %v3604_v26, %s6108_s22  ;;  %1284 = vperm.xlu0 %6032, %v712_v40   ;;  %v2612_v40 = vrot.slane %v7467_v54, 2 }
 0x1a5   : > { %v1045_v49 = vpop.permute.xlu1 %1044  ;;  %v1040_v11 = vpop.permute.xlu0 %1039 }
 0x1a6   : > { %v1543_v23 = vmul.f32 %v7376_v39, %v1045_v49  ;;  %v7430_v5 = vmul.f32 %v7382_v2, %v1045_v49  ;;  %v1542_v32 = vmul.f32 %v7376_v39, %v1040_v11  ;;  %v2294_v37 = vmul.f32 %v7382_v2, %v1040_v11 }
 0x1a7   : > { %v1415_v50 = vmul.f32 %v7395_v30, %v1040_v11  ;;  %v1416_v59 = vmul.f32 %v7395_v30, %v1045_v49 }
 0x1a8   : > { %v1856_v52 = vrot.slane %v1543_v23, 1  ;;  %3894 = vrot.lane.b32.xlu2 %v3813_v58, %s6107_s1  ;;  %v2608_v35 = vrot.slane %v7430_v5, 2  ;;  %v1854_v53 = vrot.slane %v1542_v32, 1  ;;  %v2606_v47 = vrot.slane %v2294_v37, 2  ;;  %v3353_v5 = vld [vmem:[#allocation2 + $0x19a] ss:$3 sm:$0xff] }
 0x1a9   : > { %v3419_v28 = vmax.f32 %v3293_v51, %v3353_v5  ;;  %v7488_v32 = vmul.f32 %v7376_v39, %v7424_v38 }
 0x1aa   : > { %v7446_v46 = vpop.permute.xlu2 %1154  ;;  %v4224_v34 = vpop.f32.mrf.mxu0  ;;  %v1855_v55 = vsel %vm1730_vm0, %v1852_v18, %v1854_v53  ;;  %v1857_v57 = vsel %vm1730_vm0, %v1854_v53, %v1856_v52  ;;  %v2607_v18 = vsel %vm2482_vm1, %v2604_v48, %v2606_v47  ;;  %v2609_v6 = vsel %vm2482_vm1, %v2606_v47, %v2608_v35 }
 0x1ab   : > { %1099 = vperm.xlu1 %6033, %v675_v20   ;;  %v2166_v17 = vadd.f32 %v1855_v55, %v1414_v41  ;;  %v2167_v8 = vadd.f32 %v1857_v57, %v1415_v50  ;;  %1094 = vperm.xlu0 %6032, %v674_v33   ;;  %4350 = vst.msk [vmem:[#allocation3] sm:$0xff] %vm4034_vm3, %v4224_v34  ;;  %v679_v33 = vld [vmem:[%s6230_s23 + $0x270] sm:$0xff]  ;;  %v1894_v14 = vrot.slane %v7488_v32, 1 }
 0x1ac   : > { %v7499_v41 = vmul.f32 %v7382_v2, %v7424_v38  ;;  %v7546_v51 = vmul.f32 %v7376_v39, %v7446_v46 }
 0x1ad   : > { %v1050_v3 = vpop.permute.xlu1 %1049  ;;  %v3889_v25 = vpop.permute.xlu0 %3888  ;;  %v2918_v63 = vadd.f32 %v2607_v18, %v2166_v17  ;;  %v2919_v61 = vadd.f32 %v2609_v6, %v2167_v8  ;;  %v3465_v17 = vadd.f32 %v7074_v1, %v3419_v28  ;;  %v3145_v8 = vld [vmem:[#allocation2 + $0x1b0] ss:$3 sm:$0xff]  ;;  %v9980_v1 = vrot.slane %v7495_v16, 2 }
 0x1ae   : > { %v1544_v56 = vmul.f32 %v7376_v39, %v1050_v3  ;;  %v2296_v48 = vmul.f32 %v7382_v2, %v1050_v3  ;;  %v4046_v36 = vsel %vm4034_vm3, %v4003_v12, %v3889_v25  ;;  %v1417_v0 = vmul.f32 %v7395_v30, %v1050_v3  ;;  %v3229_v12 = vld [vmem:[#allocation2 + $0x1b1] ss:$3 sm:$0xff] }
 0x1af   : > { %3044 = vst.msk [vmem:[#allocation2 + $0x1e8] sm:$0xff] %vm2982_vm2, %v2918_v63  ;;  %5917 = vmatmul.msk.f32.gmra.mxu0 %vm4080_vm4, %v4046_v36  ;;  %v680_v25 = vld [vmem:[%s6230_s23 + $0x278] sm:$0xff]  ;;  %v2646_v15 = vrot.slane %v7499_v41, 2  ;;  %v3294_v36 = vmax.f32 %v3145_v8, %v3229_v12  ;;  %v7562_v45 = vsel %vm2482_vm1, %v3812_v62, %v9980_v1  ;;  %v1435_v8 = vmul.f32 %v7395_v30, %v7424_v38 }
 0x1b0   : > { %v1858_v24 = vrot.slane %v1544_v56, 1  ;;  %1104 = vperm.xlu2 %6034, %v676_v9   ;;  %3045 = vst.msk [vmem:[#allocation2 + $0x1f0] sm:$0xff] %vm2982_vm2, %v2919_v61  ;;  %v2610_v44 = vrot.slane %v2296_v48, 2  ;;  %v1418_v9 = vmul.f32 %v7395_v30, %v7400_v60  ;;  %v9979_v61 = vrot.slane %v7495_v16, 1 }
 0x1b1   : > { %v7542_v60 = vmax.f32 %v3465_v17, 0.0  ;;  %v3231_v17 = vld [vmem:[#allocation2 + $0x1c9] ss:$3 sm:$0xff] }
 0x1b2   : > { %v1859_v26 = vsel %vm1730_vm0, %v1856_v52, %v1858_v24  ;;  %v1861_v11 = vsel %vm1730_vm0, %v1858_v24, %v1860_v22  ;;  %v7484_v23 = vpop.permute.xlu2 %1224  ;;  %v2611_v37 = vsel %vm2482_vm1, %v2608_v35, %v2610_v44  ;;  %v2613_v58 = vsel %vm2482_vm1, %v2610_v44, %v2612_v40 }
 0x1b3   : > { %v2168_v31 = vadd.f32 %v1859_v26, %v1416_v59  ;;  %v2169_v49 = vadd.f32 %v1861_v11, %v1417_v0  ;;  %1114 = vperm.xlu1 %6033, %v678_v21   ;;  %1109 = vperm.xlu0 %6032, %v677_v10   ;;  %v695_v10 = vld [vmem:[%s6230_s23 + $0x2f0] sm:$0xff]  ;;  %v7566_v26 = vmul.f32 %v7382_v2, %v7446_v46 }
 0x1b4   : > { %v7578_v62 = vsel %vm1730_vm0, %v3603_v27, %v9979_v61 }
 0x1b5   : > { %v2920_v52 = vadd.f32 %v2611_v37, %v2168_v31  ;;  %v2921_v20 = vadd.f32 %v2613_v58, %v2169_v49  ;;  %v1135_v53 = vpop.permute.xlu1 %1134  ;;  %v7492_v47 = vpop.permute.xlu0 %1059  ;;  %v3355_v49 = vld [vmem:[#allocation2 + $0x1b2] ss:$3 sm:$0xff]  ;;  %v3816_v58 = vrot.slane %v7542_v60, 2 }
 0x1b6   : > { %v7502_v50 = vmul.f32 %v7376_v39, %v1135_v53  ;;  %v7505_v35 = vmul.f32 %v7382_v2, %v1135_v53  ;;  %v4227_v34 = vpop.f32.mrf.mxu0  ;;  %v7510_v55 = vmul.f32 %v7376_v39, %v7492_v47  ;;  %v7514_v57 = vmul.f32 %v7382_v2, %v7492_v47  ;;  %v697_v37 = vld [vmem:[%s6230_s23 + $0x300] sm:$0xff] }
 0x1b7   : > { %3046 = vst.msk [vmem:[#allocation2 + $0x1f8] sm:$0xff] %vm2982_vm2, %v2920_v52  ;;  %v1434_v18 = vmul.f32 %v7395_v30, %v1135_v53  ;;  %v3420_v52 = vmax.f32 %v3294_v36, %v3355_v49  ;;  %v1900_v53 = vrot.slane %v7546_v51, 1  ;;  %v7629_v41 = vld [vmem:[#allocation2 + $0x1e0] ss:$3 sm:$0xff] }
 0x1b8   : > { %3047 = vst.msk [vmem:[#allocation2 + $0x200] sm:$0xff] %vm2982_vm2, %v2921_v20  ;;  %v9978_v4 = vrot.slane %v7502_v50, 1  ;;  %v9977_v7 = vrot.slane %v7505_v35, 2  ;;  %1119 = vperm.xlu2 %6034, %v679_v33   ;;  %v1862_v6 = vrot.slane %v7510_v55, 1  ;;  %v2614_v3 = vrot.slane %v7514_v57, 2 }
 0x1b9   : > { %4351 = vst.msk [vmem:[#allocation3 + $0x8] sm:$0xff] %vm4034_vm3, %v4227_v34  ;;  %v3147_v20 = vld [vmem:[#allocation2 + $0x1c8] ss:$3 sm:$0xff] }
 0x1ba   : > { %v1895_v54 = vsel %vm1730_vm0, %v9978_v4, %v1894_v14  ;;  %v7536_v63 = vpop.permute.xlu2 %1239  ;;  %v1863_v48 = vsel %vm1730_vm0, %v1860_v22, %v1862_v6  ;;  %v2647_v24 = vsel %vm2482_vm1, %v9977_v7, %v2646_v15  ;;  %v2615_v22 = vsel %vm2482_vm1, %v2612_v40, %v2614_v3 }
 0x1bb   : > { %v2186_v56 = vadd.f32 %v1895_v54, %v1434_v18  ;;  %1129 = vperm.xlu1 %6033, %v681_v42   ;;  %v2170_v21 = vadd.f32 %v1863_v48, %v1418_v9  ;;  %1124 = vperm.xlu0 %6032, %v680_v25   ;;  %v696_v18 = vld [vmem:[%s6230_s23 + $0x2f8] sm:$0xff]  ;;  %v2652_v9 = vrot.slane %v7566_v26, 2  ;;  %v698_v25 = vld [vmem:[%s6230_s23 + $0x308] sm:$0xff] }
 0x1bd   : > { %v2938_v59 = vadd.f32 %v2647_v24, %v2186_v56  ;;  %v1150_v0 = vpop.permute.xlu1 %1149  ;;  %v1145_v44 = vpop.permute.xlu0 %1144  ;;  %v2922_v11 = vadd.f32 %v2615_v22, %v2170_v21 }
 0x1be   : > { %v1564_v5 = vmul.f32 %v7376_v39, %v1150_v0  ;;  %v2316_v31 = vmul.f32 %v7382_v2, %v1150_v0  ;;  %v4230_v40 = vpop.f32.mrf.mxu0  ;;  %v1563_v28 = vmul.f32 %v7376_v39, %v1145_v44  ;;  %v2315_v42 = vmul.f32 %v7382_v2, %v1145_v44 }
 0x1bf   : > { %3064 = vst.msk [vmem:[#allocation2 + $0x288] sm:$0xff] %vm2982_vm2, %v2938_v59  ;;  %v1437_v27 = vmul.f32 %v7395_v30, %v1150_v0  ;;  %v1436_v56 = vmul.f32 %v7395_v30, %v1145_v44  ;;  %v3295_v59 = vmax.f32 %v3147_v20, %v3231_v17  ;;  %v7607_v44 = vld [vmem:[%s10021_s18] ss:$0 sm:$0xff] }
 0x1c0   : > { %3048 = vst.msk [vmem:[#allocation2 + $0x208] sm:$0xff] %vm2982_vm2, %v2922_v11  ;;  %v1898_v33 = vrot.slane %v1564_v5, 1  ;;  %v2650_v34 = vrot.slane %v2316_v31, 2  ;;  %1199 = vperm.xlu2 %6034, %v695_v10   ;;  %v1896_v12 = vrot.slane %v1563_v28, 1  ;;  %v2648_v48 = vrot.slane %v2315_v42, 2  ;;  %v713_v28 = vld [vmem:[%s6230_s23 + $0x380] sm:$0xff] }
 0x1c1   : > { %4352 = vst.msk [vmem:[#allocation3 + $0x10] sm:$0xff] %vm4034_vm3, %v4230_v40  ;;  %v7610_v32 = vadd.f32 %v7607_v44, %v3420_v52  ;;  %v3357_v42 = vld [vmem:[#allocation2 + $0x1ca] ss:$3 sm:$0xff] }
 0x1c2   : > { %v1901_v54 = vsel %vm1730_vm0, %v1898_v33, %v1900_v53  ;;  %v7595_v36 = vpop.permute.xlu2 %1254  ;;  %v1897_v24 = vsel %vm1730_vm0, %v1894_v14, %v1896_v12  ;;  %v1899_v21 = vsel %vm1730_vm0, %v1896_v12, %v1898_v33  ;;  %v2653_v22 = vsel %vm2482_vm1, %v2650_v34, %v2652_v9 }
 0x1c3   : > { %v2189_v38 = vadd.f32 %v1901_v54, %v1437_v27  ;;  %1209 = vperm.xlu1 %6033, %v697_v37   ;;  %v2187_v0 = vadd.f32 %v1897_v24, %v1435_v8  ;;  %v2188_v10 = vadd.f32 %v1899_v21, %v1436_v56  ;;  %1204 = vperm.xlu0 %6032, %v696_v18   ;;  %v715_v56 = vld [vmem:[%s6230_s23 + $0x390] sm:$0xff]  ;;  %v714_v21 = vld [vmem:[%s6230_s23 + $0x388] sm:$0xff] }
 0x1c4   : > { %v7614_v14 = vmul.f32 %v7376_v39, %v7484_v23  ;;  %v2649_v5 = vsel %vm2482_vm1, %v2646_v15, %v2648_v48  ;;  %v2651_v31 = vsel %vm2482_vm1, %v2648_v48, %v2650_v34  ;;  %v1438_v37 = vmul.f32 %v7395_v30, %v7446_v46  ;;  %v7631_v15 = vld [vmem:[#allocation2 + $0x1e1] ss:$3 sm:$0xff] }
 0x1c5   : > { %v2941_v11 = vadd.f32 %v2653_v22, %v2189_v38  ;;  %v7620_v40 = vpop.permute.xlu1 %1164  ;;  %v1160_v49 = vpop.permute.xlu0 %1159  ;;  %v2939_v52 = vadd.f32 %v2649_v5, %v2187_v0  ;;  %v2940_v20 = vadd.f32 %v2651_v31, %v2188_v10  ;;  %v7635_v34 = vmul.f32 %v7395_v30, %v7484_v23 }
 0x1c6   : > { %v7627_v33 = vmul.f32 %v7376_v39, %v7620_v40  ;;  %v7640_v46 = vmul.f32 %v7376_v39, %v7536_v63  ;;  %v7644_v17 = vmul.f32 %v7382_v2, %v7620_v40  ;;  %v7646_v8 = vmax.f32 %v3295_v59, %v3357_v42 }
 0x1c7   : > { %3067 = vst.msk [vmem:[#allocation2 + $0x2a0] sm:$0xff] %vm2982_vm2, %v2941_v11  ;;  %v7650_v27 = vmul.f32 %v7382_v2, %v7536_v63  ;;  %v1566_v18 = vmul.f32 %v7376_v39, %v1160_v49  ;;  %v2318_v54 = vmul.f32 %v7382_v2, %v1160_v49  ;;  %v9982_v48 = vrot.slane %v7614_v14, 1 }
 0x1c8   : > { %3065 = vst.msk [vmem:[#allocation2 + $0x290] sm:$0xff] %vm2982_vm2, %v2939_v52  ;;  %v1904_v12 = vrot.slane %v7627_v33, 1  ;;  %1289 = vperm.xlu2 %6034, %v713_v28   ;;  %v7660_v38 = vmul.f32 %v7382_v2, %v7484_v23  ;;  %v1419_v24 = vmul.f32 %v7395_v30, %v7492_v47  ;;  %v3296_v59 = vmax.f32 %v7629_v41, %v7631_v15 }
 0x1c9   : > { %3066 = vst.msk [vmem:[#allocation2 + $0x298] sm:$0xff] %vm2982_vm2, %v2940_v20  ;;  %v7670_v22 = vmul.f32 %v7395_v30, %v7536_v63  ;;  %v2656_v0 = vrot.slane %v7644_v17, 2  ;;  %v1902_v10 = vrot.slane %v1566_v18, 1  ;;  %v2654_v11 = vrot.slane %v2318_v54, 2 }
 0x1ca   : > { %v7673_v5 = vpop.permute.xlu2 %1064  ;;  %v1934_v23 = vrot.slane %v7640_v46, 1  ;;  %v1439_v47 = vmul.f32 %v7395_v30, %v1160_v49  ;;  %v2686_v52 = vrot.slane %v7650_v27, 2  ;;  %v7688_v20 = vmul.f32 %v7376_v39, %v7595_v36 }
 0x1cb   : > { %1299 = vperm.xlu1 %6033, %v715_v56   ;;  %v7679_v31 = vmul.f32 %v7376_v39, %v7673_v5  ;;  %v7683_v28 = vmul.f32 %v7382_v2, %v7673_v5  ;;  %v4233_v63 = vpop.f32.mrf.mxu0  ;;  %v1903_v49 = vsel %vm1730_vm0, %v1900_v53, %v1902_v10  ;;  %v1905_v42 = vsel %vm1730_vm0, %v1902_v10, %v1904_v12 }
 0x1cc   : > { %1294 = vperm.xlu0 %6032, %v714_v21   ;;  %v2190_v18 = vadd.f32 %v1903_v49, %v1438_v37  ;;  %v2191_v54 = vadd.f32 %v1905_v42, %v1439_v47  ;;  %4353 = vst.msk [vmem:[#allocation3 + $0x18] sm:$0xff] %vm4034_vm3, %v4233_v63  ;;  %v2655_v51 = vsel %vm2482_vm1, %v2652_v9, %v2654_v11 }
 0x1cd   : > { %v1235_v56 = vpop.permute.xlu1 %1234  ;;  %v1864_v7 = vrot.slane %v7679_v31, 1  ;;  %v2616_v4 = vrot.slane %v7683_v28, 2  ;;  %v1230_v61 = vpop.permute.xlu0 %1229  ;;  %v2657_v53 = vsel %vm2482_vm1, %v2654_v11, %v2656_v0  ;;  %v7709_v10 = vmul.f32 %v7382_v2, %v7595_v36 }
 0x1ce   : > { %v1581_v37 = vmul.f32 %v7376_v39, %v1235_v56  ;;  %v2333_v21 = vmul.f32 %v7382_v2, %v1235_v56  ;;  %v2942_v47 = vadd.f32 %v2655_v51, %v2190_v18  ;;  %v2943_v49 = vadd.f32 %v2657_v53, %v2191_v54 }
 0x1cf   : > { %v1865_v26 = vsel %vm1730_vm0, %v1862_v6, %v1864_v7  ;;  %v1580_v11 = vmul.f32 %v7376_v39, %v1230_v61  ;;  %v1440_v1 = vmul.f32 %v7395_v30, %v7620_v40  ;;  %v1454_v18 = vmul.f32 %v7395_v30, %v1235_v56 }
 0x1d0   : > { %v1932_v9 = vrot.slane %v1581_v37, 1  ;;  %v2684_v63 = vrot.slane %v2333_v21, 2  ;;  %v2171_v42 = vadd.f32 %v1865_v26, %v1419_v24  ;;  %3687 = vrot.lane.b32.xlu2 %v7578_v62, %s6108_s22  ;;  %3068 = vst.msk [vmem:[#allocation2 + $0x2a8] sm:$0xff] %vm2982_vm2, %v2942_v47  ;;  %v2617_v55 = vsel %vm2482_vm1, %v2614_v3, %v2616_v4 }
 0x1d1   : > { %v2332_v6 = vmul.f32 %v7382_v2, %v1230_v61  ;;  %3069 = vst.msk [vmem:[#allocation2 + $0x2b0] sm:$0xff] %vm2982_vm2, %v2943_v49  ;;  %v1453_v40 = vmul.f32 %v7395_v30, %v1230_v61  ;;  %v1930_v54 = vrot.slane %v1580_v11, 1  ;;  %v9981_v37 = vrot.slane %v7660_v38, 2 }
 0x1d2   : > { %v1935_v62 = vsel %vm1730_vm0, %v1932_v9, %v1934_v23  ;;  %v2923_v24 = vadd.f32 %v2617_v55, %v2171_v42  ;;  %v7735_v51 = vpop.permute.xlu2 %1169  ;;  %v2687_v57 = vsel %vm2482_vm1, %v2684_v63, %v2686_v52  ;;  %v1940_v47 = vrot.slane %v7688_v20, 1  ;;  %v699_v55 = vld [vmem:[%s6230_s23 + $0x310] sm:$0xff]  ;;  %v3361_v20 = vld [vmem:[#allocation2 + $0x1fa] ss:$3 sm:$0xff] }
 0x1d3   : > { %v2206_v56 = vadd.f32 %v1935_v62, %v1454_v18  ;;  %v2682_v3 = vrot.slane %v2332_v6, 2  ;;  %1214 = vperm.xlu1 %6033, %v698_v25   ;;  %v7742_v53 = vmul.f32 %v7376_v39, %v7735_v51  ;;  %v1931_v61 = vsel %vm1730_vm0, %v9982_v48, %v1930_v54 }
 0x1d4   : > { %3049 = vst.msk [vmem:[#allocation2 + $0x210] sm:$0xff] %vm2982_vm2, %v2923_v24  ;;  %v1933_v21 = vsel %vm1730_vm0, %v1930_v54, %v1932_v9  ;;  %3896 = vrot.lane.b32.xlu0 %v7562_v45, %s6107_s1  ;;  %v7754_v25 = vmul.f32 %v7382_v2, %v7735_v51  ;;  %v2204_v26 = vadd.f32 %v1931_v61, %v7635_v34 }
 0x1d5   : > { %v2958_v49 = vadd.f32 %v2687_v57, %v2206_v56  ;;  %v2205_v42 = vadd.f32 %v1933_v21, %v1453_v40  ;;  %v1250_v11 = vpop.permute.xlu1 %1249  ;;  %v4236_v18 = vpop.f32.mrf.mxu0  ;;  %v2683_v9 = vsel %vm2482_vm1, %v9981_v37, %v2682_v3  ;;  %v2685_v45 = vsel %vm2482_vm1, %v2682_v3, %v2684_v63  ;;  %v717_v21 = vld [vmem:[%s6230_s23 + $0x3a0] sm:$0xff] }
 0x1d6   : > { %v1584_v6 = vmul.f32 %v7376_v39, %v1250_v11  ;;  %v2336_v62 = vmul.f32 %v7382_v2, %v1250_v11  ;;  %4354 = vst.msk [vmem:[#allocation3 + $0x20] sm:$0xff] %vm4034_vm3, %v4236_v18  ;;  %v1245_v24 = vpop.permute.xlu0 %1244  ;;  %v2956_v34 = vadd.f32 %v2683_v9, %v2204_v26  ;;  %v1906_v54 = vrot.slane %v7742_v53, 1 }
 0x1d7   : > { %3084 = vst.msk [vmem:[#allocation2 + $0x328] sm:$0xff] %vm2982_vm2, %v2958_v49  ;;  %v2957_v40 = vadd.f32 %v2685_v45, %v2205_v42  ;;  %v2658_v56 = vrot.slane %v7754_v25, 2  ;;  %v2692_v57 = vrot.slane %v7709_v10, 2  ;;  %v1583_v3 = vmul.f32 %v7376_v39, %v1245_v24  ;;  %v716_v42 = vld [vmem:[%s6230_s23 + $0x398] sm:$0xff] }
 0x1d8   : > { %v1938_v61 = vrot.slane %v1584_v6, 1  ;;  %v2690_v63 = vrot.slane %v2336_v62, 2  ;;  %1219 = vperm.xlu2 %6034, %v699_v55   ;;  %3082 = vst.msk [vmem:[#allocation2 + $0x318] sm:$0xff] %vm2982_vm2, %v2956_v34  ;;  %v1457_v18 = vmul.f32 %v7395_v30, %v1250_v11  ;;  %v1907_v49 = vsel %vm1730_vm0, %v1904_v12, %v1906_v54 }
 0x1d9   : > { %v1456_v26 = vmul.f32 %v7395_v30, %v1245_v24  ;;  %v2335_v10 = vmul.f32 %v7382_v2, %v1245_v24  ;;  %3083 = vst.msk [vmem:[#allocation2 + $0x320] sm:$0xff] %vm2982_vm2, %v2957_v40  ;;  %v2192_v9 = vadd.f32 %v1907_v49, %v1440_v1  ;;  %v2659_v33 = vsel %vm2482_vm1, %v2656_v0, %v2658_v56  ;;  %v3151_v40 = vld [vmem:[#allocation2 + $0x1f8] ss:$3 sm:$0xff] }
 0x1da   : > { %v1941_v55 = vsel %vm1730_vm0, %v1938_v61, %v1940_v47  ;;  %v1936_v11 = vrot.slane %v1583_v3, 1  ;;  %v7791_v12 = vpop.permute.xlu2 %1259  ;;  %v2693_v6 = vsel %vm2482_vm1, %v2690_v63, %v2692_v57  ;;  %v3235_v3 = vld [vmem:[#allocation2 + $0x1f9] ss:$3 sm:$0xff] }
 0x1db   : > { %v2209_v45 = vadd.f32 %v1941_v55, %v1457_v18  ;;  %v2688_v62 = vrot.slane %v2335_v10, 2  ;;  %1309 = vperm.xlu1 %6033, %v717_v21   ;;  %v7796_v24 = vmul.f32 %v7376_v39, %v7791_v12  ;;  %v2944_v1 = vadd.f32 %v2659_v33, %v2192_v9  ;;  %v718_v9 = vld [vmem:[%s6230_s23 + $0x3a8] sm:$0xff] }
 0x1dc   : > { %v1937_v17 = vsel %vm1730_vm0, %v1934_v23, %v1936_v11  ;;  %v1939_v0 = vsel %vm1730_vm0, %v1936_v11, %v1938_v61  ;;  %1304 = vperm.xlu0 %6032, %v716_v42   ;;  %v7804_v34 = vmul.f32 %v7382_v2, %v7791_v12  ;;  %v1458_v21 = vmul.f32 %v7395_v30, %v7595_v36 }
 0x1dd   : > { %v2961_v18 = vadd.f32 %v2693_v6, %v2209_v45  ;;  %v2207_v49 = vadd.f32 %v1937_v17, %v7670_v22  ;;  %v2208_v10 = vadd.f32 %v1939_v0, %v1456_v26  ;;  %v3891_v55 = vpop.permute.xlu1 %3890  ;;  %v4239_v46 = vpop.f32.mrf.mxu0  ;;  %3070 = vst.msk [vmem:[#allocation2 + $0x2b8] sm:$0xff] %vm2982_vm2, %v2944_v1  ;;  %v2689_v23 = vsel %vm2482_vm1, %v2686_v52, %v2688_v62  ;;  %v3359_v45 = vld [vmem:[#allocation2 + $0x1e2] ss:$3 sm:$0xff]  ;;  %v3165_v1 = vld [vmem:[#allocation2 + $0x2a0] ss:$3 sm:$0xff] }
 0x1de   : > { %v2691_v61 = vsel %vm2482_vm1, %v2688_v62, %v2690_v63  ;;  %v1942_v42 = vrot.slane %v7796_v24, 1  ;;  %v2694_v33 = vrot.slane %v7804_v34, 2  ;;  %v3682_v36 = vpop.permute.xlu0 %3681  ;;  %v3297_v6 = vmax.f32 %v3151_v40, %v3235_v3  ;;  %4355 = vst.msk [vmem:[#allocation3 + $0x28] sm:$0xff] %vm4034_vm3, %v4239_v46  ;;  %v3249_v17 = vld [vmem:[#allocation2 + $0x2a1] ss:$3 sm:$0xff] }
 0x1df   : > { %3087 = vst.msk [vmem:[#allocation2 + $0x340] sm:$0xff] %vm2982_vm2, %v2961_v18  ;;  %v2959_v22 = vadd.f32 %v2689_v23, %v2207_v49  ;;  %v2960_v26 = vadd.f32 %v2691_v61, %v2208_v10  ;;  %v4004_v11 = vsel %vm2982_vm2, %v7096_v29, %v3682_v36  ;;  %v7828_v63 = vmax.f32 %v7610_v32, 0.0  ;;  %v3163_v46 = vld [vmem:[#allocation2 + $0x288] ss:$3 sm:$0xff] }
 0x1e0   : > { %v1943_v27 = vsel %vm1730_vm0, %v1940_v47, %v1942_v42  ;;  %v4047_v52 = vsel %vm4034_vm3, %v4004_v11, %v3891_v55  ;;  %1314 = vperm.xlu2 %6034, %v718_v9   ;;  %v3422_v29 = vmax.f32 %v3296_v59, %v3359_v45  ;;  %v2695_v47 = vsel %vm2482_vm1, %v2692_v57, %v2694_v33  ;;  %v719_v55 = vld [vmem:[%s6230_s23 + $0x3b0] sm:$0xff] }
 0x1e1   : > { %3085 = vst.msk [vmem:[#allocation2 + $0x330] sm:$0xff] %vm2982_vm2, %v2959_v22  ;;  %v2210_v62 = vadd.f32 %v1943_v27, %v1458_v21  ;;  %5918 = vmatmul.msk.f32.gmra.mxu0 %vm4080_vm4, %v4047_v52  ;;  %v10023_v32 = vrot.slane %v7495_v16, 2  ;;  %v3467_v59 = vadd.f32 %v7607_v44, %v7646_v8  ;;  %v10024_v40 = vrot.slane %v7542_v60, 1  ;;  %v3247_v9 = vld [vmem:[#allocation2 + $0x289] ss:$3 sm:$0xff] }
 0x1e2   : > { %3086 = vst.msk [vmem:[#allocation2 + $0x338] sm:$0xff] %vm2982_vm2, %v2960_v26  ;;  %v7844_v15 = vpop.permute.xlu2 %3683  ;;  %v10025_v57 = vrot.slane %v7495_v16, 1  ;;  %v3423_v21 = vmax.f32 %v3297_v6, %v3361_v20  ;;  %v3818_v18 = vrot.slane %v7828_v63, 2  ;;  %v3468_v49 = vadd.f32 %v7607_v44, %v3422_v29  ;;  %v721_v29 = vld [vmem:[%s6230_s23 + $0x3c0] sm:$0xff] }
 0x1e3   : > { %v3817_v41 = vsel %vm2482_vm1, %v10023_v32, %v3816_v58  ;;  %v2962_v0 = vadd.f32 %v2695_v47, %v2210_v62  ;;  %v3304_v23 = vmax.f32 %v3165_v1, %v3249_v17  ;;  %v3609_v26 = vrot.slane %v7828_v63, 1  ;;  %v3375_v32 = vld [vmem:[#allocation2 + $0x2a2] ss:$3 sm:$0xff]  ;;  %v720_v17 = vld [vmem:[%s6230_s23 + $0x3b8] sm:$0xff] }
 0x1e4   : > { %3898 = vrot.lane.b32.xlu1 %v3817_v41, %s6107_s1  ;;  %v3608_v3 = vsel %vm1730_vm0, %v10025_v57, %v10024_v40  ;;  %v7871_v11 = vmax.f32 %v3467_v59, 0.0  ;;  %v3469_v27 = vadd.f32 %v7607_v44, %v3423_v21  ;;  %v7881_v62 = vsel %vm2482_vm1, %v3816_v58, %v3818_v18 }
 0x1e5   : > { %3689 = vrot.lane.b32.xlu0 %v3608_v3, %s6108_s22  ;;  %3088 = vst.msk [vmem:[#allocation2 + $0x348] sm:$0xff] %vm2982_vm2, %v2962_v0  ;;  %v7858_v8 = vpop.permute.xlu1 %1074  ;;  %v4242_v10 = vpop.f32.mrf.mxu0  ;;  %v7883_v20 = vmax.f32 %v3468_v49, 0.0  ;;  %v3303_v47 = vmax.f32 %v3163_v46, %v3247_v9  ;;  %v3430_v0 = vmax.f32 %v3304_v23, %v3375_v32  ;;  %v1420_v40 = vmul.f32 %v7395_v30, %v7673_v5  ;;  %v3373_v9 = vld [vmem:[#allocation2 + $0x28a] ss:$3 sm:$0xff] }
 0x1e6   : > { %v7863_v61 = vmul.f32 %v7376_v39, %v7858_v8  ;;  %v7867_v36 = vmul.f32 %v7382_v2, %v7858_v8  ;;  %4356 = vst.msk [vmem:[#allocation3 + $0x30] sm:$0xff] %vm4034_vm3, %v4242_v10  ;;  %v1070_v22 = vpop.permute.xlu0 %1069  ;;  %v10026_v58 = vrot.slane %v7542_v60, 1  ;;  %v3611_v49 = vrot.slane %v7871_v11, 1 }
 0x1e7   : > { %v1548_v45 = vmul.f32 %v7376_v39, %v1070_v22  ;;  %v2300_v6 = vmul.f32 %v7382_v2, %v1070_v22  ;;  %v1421_v57 = vmul.f32 %v7395_v30, %v1070_v22  ;;  %v3820_v5 = vrot.slane %v7871_v11, 2 }
 0x1e8   : > { %v9984_v52 = vrot.slane %v7863_v61, 1  ;;  %1319 = vperm.xlu2 %6034, %v719_v55   ;;  %v9983_v41 = vrot.slane %v7867_v36, 2  ;;  %v3610_v21 = vsel %vm1730_vm0, %v10026_v58, %v3609_v26  ;;  %v7903_v46 = vmax.f32 %v3469_v27, 0.0 }
 0x1e9   : > { %v1866_v59 = vrot.slane %v1548_v45, 1  ;;  %v2618_v1 = vrot.slane %v2300_v6, 2  ;;  %v3613_v45 = vrot.slane %v7883_v20, 1  ;;  %v3429_v6 = vmax.f32 %v3303_v47, %v3373_v9  ;;  %v3177_v37 = vld [vmem:[#allocation2 + $0x330] ss:$3 sm:$0xff] }
 0x1ea   : > { %v7890_v3 = vpop.permute.xlu2 %1084  ;;  %v3822_v27 = vrot.slane %v7883_v20, 2  ;;  %v3476_v32 = vadd.f32 %v7607_v44, %v3430_v0  ;;  %v7921_v28 = vsel %vm1730_vm0, %v3609_v26, %v3611_v49  ;;  %v9986_v0 = vrot.slane %v7903_v46, 2  ;;  %v3261_v48 = vld [vmem:[#allocation2 + $0x331] ss:$3 sm:$0xff] }
 0x1eb   : > { %v1867_v10 = vsel %vm1730_vm0, %v1864_v7, %v1866_v59  ;;  %v1869_v55 = vsel %vm1730_vm0, %v1866_v59, %v9984_v52  ;;  %v2619_v7 = vsel %vm2482_vm1, %v2616_v4, %v2618_v1  ;;  %v2621_v31 = vsel %vm2482_vm1, %v2618_v1, %v9983_v41  ;;  %v722_v1 = vld [vmem:[%s6230_s23 + $0x3c8] sm:$0xff] }
 0x1ec   : > { %1329 = vperm.xlu1 %6033, %v721_v29   ;;  %v2172_v23 = vadd.f32 %v1867_v10, %v1420_v40  ;;  %v2173_v22 = vadd.f32 %v1869_v55, %v1421_v57  ;;  %v7929_v57 = vsel %vm2482_vm1, %v3818_v18, %v3820_v5  ;;  %v9985_v58 = vrot.slane %v7903_v46, 1 }
 0x1ed   : > { %1324 = vperm.xlu0 %6032, %v720_v17   ;;  %v7912_v29 = vpop.permute.xlu1 %1179  ;;  %v3475_v9 = vadd.f32 %v7607_v44, %v3429_v6  ;;  %v1441_v18 = vmul.f32 %v7395_v30, %v7735_v51 }
 0x1ee   : > { %v2924_v59 = vadd.f32 %v2619_v7, %v2172_v23  ;;  %v2925_v40 = vadd.f32 %v2621_v31, %v2173_v22  ;;  %v7918_v17 = vmul.f32 %v7376_v39, %v7912_v29  ;;  %v1175_v47 = vpop.permute.xlu0 %1174  ;;  %v7925_v4 = vmul.f32 %v7382_v2, %v7912_v29  ;;  %v3175_v23 = vld [vmem:[#allocation2 + $0x318] ss:$3 sm:$0xff]  ;;  %v3259_v22 = vld [vmem:[#allocation2 + $0x319] ss:$3 sm:$0xff] }
 0x1ef   : > { %v1569_v55 = vmul.f32 %v7376_v39, %v1175_v47  ;;  %v2321_v26 = vmul.f32 %v7382_v2, %v1175_v47  ;;  %v7943_v7 = vsel %vm1730_vm0, %v3611_v49, %v3613_v45  ;;  %v7946_v31 = vsel %vm2482_vm1, %v3820_v5, %v3822_v27 }
 0x1f0   : > { %3050 = vst.msk [vmem:[#allocation2 + $0x218] sm:$0xff] %vm2982_vm2, %v2924_v59  ;;  %v1910_v10 = vrot.slane %v7918_v17, 1  ;;  %3691 = vrot.lane.b32.xlu2 %v3610_v21, %s6108_s22  ;;  %v7948_v59 = vmax.f32 %v3476_v32, 0.0  ;;  %v1459_v21 = vmul.f32 %v7395_v30, %v7791_v12  ;;  %v9987_v6 = vrot.slane %v7925_v4, 2 }
 0x1f1   : > { %3051 = vst.msk [vmem:[#allocation2 + $0x220] sm:$0xff] %vm2982_vm2, %v2925_v40  ;;  %v1908_v41 = vrot.slane %v1569_v55, 1  ;;  %v2660_v52 = vrot.slane %v2321_v26, 2  ;;  %v7958_v49 = vsel %vm2982_vm2, %v7165_v19, %v7844_v15  ;;  %v1442_v5 = vmul.f32 %v7395_v30, %v1175_v47 }
 0x1f2   : > { %v7953_v51 = vpop.permute.xlu2 %1189  ;;  %v7964_v32 = vsel %vm2482_vm1, %v3822_v27, %v9986_v0  ;;  %v3309_v12 = vmax.f32 %v3175_v23, %v3259_v22  ;;  %v7974_v19 = vmax.f32 %v3475_v9, 0.0  ;;  %v3310_v15 = vmax.f32 %v3177_v37, %v3261_v48  ;;  %v723_v23 = vld [vmem:[%s6230_s23 + $0x3d0] sm:$0xff]  ;;  %v3385_v9 = vld [vmem:[#allocation2 + $0x31a] ss:$3 sm:$0xff] }
 0x1f3   : > { %v1909_v40 = vsel %vm1730_vm0, %v1906_v54, %v1908_v41  ;;  %v1911_v55 = vsel %vm1730_vm0, %v1908_v41, %v1910_v10  ;;  %v7982_v53 = vsel %vm1730_vm0, %v3613_v45, %v9985_v58  ;;  %v9991_v54 = vrot.slane %v7948_v59, 2 }
 0x1f4   : > { %1334 = vperm.xlu1 %6033, %v722_v1   ;;  %v2193_v47 = vadd.f32 %v1909_v40, %v1441_v18  ;;  %v2194_v1 = vadd.f32 %v1911_v55, %v1442_v5  ;;  %v2663_v48 = vsel %vm2482_vm1, %v2660_v52, %v9987_v6  ;;  %v3387_v18 = vld [vmem:[#allocation2 + $0x332] ss:$3 sm:$0xff]  ;;  %v3435_v5 = vmax.f32 %v3309_v12, %v3385_v9 }
 0x1f5   : > { %3900 = vrot.lane.b32.xlu0 %v7881_v62, %s6107_s1  ;;  %v7976_v26 = vpop.permute.xlu1 %1269  ;;  %v4245_v27 = vpop.f32.mrf.mxu0  ;;  %v2661_v62 = vsel %vm2482_vm1, %v2658_v56, %v2660_v52  ;;  %v724_v55 = vld [vmem:[%s6230_s23 + $0x3d8] sm:$0xff]  ;;  %v9988_v58 = vrot.slane %v7974_v19, 2  ;;  %v3436_v0 = vmax.f32 %v3310_v15, %v3387_v18  ;;  %v9989_v12 = vrot.slane %v7974_v19, 1  ;;  %v8053_v18 = vld [vmem:[%s10020_s3 + $0x2] ss:$0 sm:$0xff] }
 0x1f6   : > { %v7993_v37 = vmul.f32 %v7376_v39, %v7976_v26  ;;  %v7997_v41 = vmul.f32 %v7382_v2, %v7976_v26  ;;  %4357 = vst.msk [vmem:[#allocation3 + $0x38] sm:$0xff] %vm4034_vm3, %v4245_v27  ;;  %v1265_v45 = vpop.permute.xlu0 %1264  ;;  %v2945_v22 = vadd.f32 %v2661_v62, %v2193_v47  ;;  %v2946_v25 = vadd.f32 %v2663_v48, %v2194_v1 }
 0x1f7   : > { %v1587_v56 = vmul.f32 %v7376_v39, %v1265_v45  ;;  %v2339_v40 = vmul.f32 %v7382_v2, %v1265_v45  ;;  %v1422_v27 = vmul.f32 %v7395_v30, %v7858_v8  ;;  %v1460_v2 = vmul.f32 %v7395_v30, %v1265_v45 }
 0x1f8   : > { %v9995_v52 = vrot.slane %v7993_v37, 1  ;;  %1339 = vperm.xlu2 %6034, %v723_v23   ;;  %v3153_v6 = vld [vmem:[#allocation2 + $0x210] ss:$3 sm:$0xff]  ;;  %3071 = vst.msk [vmem:[#allocation2 + $0x2c0] sm:$0xff] %vm2982_vm2, %v2945_v22  ;;  %v9992_v47 = vrot.slane %v7997_v41, 2  ;;  %v8019_v8 = vsel %vm2482_vm1, %v9988_v58, %v9991_v54  ;;  %v9990_v15 = vrot.slane %v7948_v59, 1 }
 0x1f9   : > { %v1944_v39 = vrot.slane %v1587_v56, 1  ;;  %v3237_v1 = vld [vmem:[#allocation2 + $0x211] ss:$3 sm:$0xff]  ;;  %3072 = vst.msk [vmem:[#allocation2 + $0x2c8] sm:$0xff] %vm2982_vm2, %v2946_v25  ;;  %v2696_v23 = vrot.slane %v2339_v40, 2  ;;  %v3481_v45 = vadd.f32 %v7607_v44, %v3435_v5  ;;  %v3482_v56 = vadd.f32 %v7607_v44, %v3436_v0 }
 0x1fa   : > { %v8012_v62 = vpop.permute.xlu2 %1279  ;;  %v3298_v9 = vmax.f32 %v3153_v6, %v3237_v1  ;;  %v8034_v22 = vld [vmem:[%s10020_s3 + $0x1] ss:$0 sm:$0xff] }
 0x1fb   : > { %v1945_v48 = vsel %vm1730_vm0, %v1942_v42, %v1944_v39  ;;  %v1947_v30 = vsel %vm1730_vm0, %v1944_v39, %v9995_v52  ;;  %v8038_v24 = vmul.f32 %v8034_v22, %v7890_v3  ;;  %v2697_v0 = vsel %vm2482_vm1, %v2694_v33, %v2696_v23  ;;  %v3363_v34 = vld [vmem:[#allocation2 + $0x212] ss:$3 sm:$0xff] }
 0x1fc   : > { %3693 = vrot.lane.b32.xlu1 %v7921_v28, %s6108_s22  ;;  %v2211_v42 = vadd.f32 %v1945_v48, %v1459_v21  ;;  %v2212_v25 = vadd.f32 %v1947_v30, %v1460_v2  ;;  %v8044_v28 = vld [vmem:[%s10020_s3] ss:$0 sm:$0xff]  ;;  %v8057_v21 = vmul.f32 %v8053_v18, %v7890_v3  ;;  %v2699_v5 = vsel %vm2482_vm1, %v2696_v23, %v9992_v47 }
 0x1fd   : > { %1344 = vperm.xlu0 %6032, %v724_v55   ;;  %v8048_v6 = vmul.f32 %v8044_v28, %v7890_v3  ;;  %v1080_v40 = vpop.permute.xlu1 %1079  ;;  %v8071_v3 = vsel %vm1730_vm0, %v9989_v12, %v9990_v15  ;;  %v8076_v48 = vmax.f32 %v3481_v45, 0.0  ;;  %v3424_v30 = vmax.f32 %v3298_v9, %v3363_v34 }
 0x1fe   : > { %v2963_v55 = vadd.f32 %v2697_v0, %v2211_v42  ;;  %v2964_v39 = vadd.f32 %v2699_v5, %v2212_v25  ;;  %v1550_v1 = vmul.f32 %v8034_v22, %v1080_v40  ;;  %v3893_v2 = vpop.permute.xlu0 %3892  ;;  %v2302_v33 = vmul.f32 %v8053_v18, %v1080_v40 }
 0x1ff   : > { %v4048_v23 = vsel %vm4034_vm3, %v7958_v49, %v3893_v2  ;;  %v1872_v42 = vrot.slane %v8038_v24, 1  ;;  %v8081_v25 = vmul.f32 %v8034_v22, %v7953_v51  ;;  %v8087_v5 = vmax.f32 %v3482_v56, 0.0 }
 0x200   : > { %3089 = vst.msk [vmem:[#allocation2 + $0x350] sm:$0xff] %vm2982_vm2, %v2963_v55  ;;  %v1870_v0 = vrot.slane %v1550_v1, 1  ;;  %5919 = vmatmul.msk.f32.gmra.mxu0 %vm4080_vm4, %v4048_v23  ;;  %3902 = vrot.lane.b32.xlu2 %v7929_v57, %s6107_s1  ;;  %v1443_v49 = vmul.f32 %v8044_v28, %v7912_v29  ;;  %v8093_v45 = vmul.f32 %v8053_v18, %v7953_v51  ;;  %v2622_v55 = vrot.slane %v2302_v33, 2  ;;  %v725_v1 = vld [vmem:[%s6230_s23 + $0x3e0] sm:$0xff] }
 0x201   : > { %3090 = vst.msk [vmem:[#allocation2 + $0x358] sm:$0xff] %vm2982_vm2, %v2964_v39  ;;  %v1423_v9 = vmul.f32 %v8044_v28, %v1080_v40  ;;  %v2624_v2 = vrot.slane %v8057_v21, 2  ;;  %v8101_v57 = vmul.f32 %v8044_v28, %v7953_v51  ;;  %v10027_v56 = vrot.slane %v7863_v61, 1  ;;  %v3167_v58 = vld [vmem:[#allocation2 + $0x2b8] ss:$3 sm:$0xff] }
 0x202   : > { %v1873_v34 = vsel %vm1730_vm0, %v1870_v0, %v1872_v42  ;;  %v8109_v23 = vpop.permute.xlu2 %3894  ;;  %v9993_v33 = vrot.slane %v8076_v48, 1  ;;  %v3470_v51 = vadd.f32 %v7607_v44, %v3424_v30  ;;  %v3251_v12 = vld [vmem:[#allocation2 + $0x2b9] ss:$3 sm:$0xff]  ;;  %v9996_v61 = vrot.slane %v8081_v25, 1 }
 0x203   : > { %v1871_v29 = vsel %vm1730_vm0, %v10027_v56, %v1870_v0  ;;  %v2175_v40 = vadd.f32 %v1873_v34, %v1423_v9  ;;  %v10028_v56 = vrot.slane %v7867_v36, 2  ;;  %v9994_v0 = vrot.slane %v8087_v5, 1 }
 0x204   : > { %v2174_v39 = vadd.f32 %v1871_v29, %v1422_v27  ;;  %3695 = vrot.lane.b32.xlu1 %v7943_v7, %s6108_s22  ;;  %v2625_v27 = vsel %vm2482_vm1, %v2622_v55, %v2624_v2  ;;  %v8125_v7 = vmul.f32 %v8044_v28, %v7976_v26  ;;  %v2666_v30 = vrot.slane %v8093_v45, 2  ;;  %v4248_v34 = vpop.f32.mrf.mxu0 }
 0x205   : > { %v2623_v15 = vsel %vm2482_vm1, %v10028_v56, %v2622_v55  ;;  %1349 = vperm.xlu0 %6032, %v725_v1   ;;  %v2927_v29 = vadd.f32 %v2625_v27, %v2175_v40  ;;  %v1185_v54 = vpop.permute.xlu1 %1184  ;;  %4358 = vst.msk [vmem:[#allocation3 + $0x40] sm:$0xff] %vm4034_vm3, %v4248_v34  ;;  %v3305_v47 = vmax.f32 %v3167_v58, %v3251_v12  ;;  %v8140_v40 = vmax.f32 %v3470_v51, 0.0 }
 0x206   : > { %v2926_v9 = vadd.f32 %v2623_v15, %v2174_v39  ;;  %v1571_v36 = vmul.f32 %v8034_v22, %v1185_v54  ;;  %v2323_v56 = vmul.f32 %v8053_v18, %v1185_v54  ;;  %v1090_v55 = vpop.permute.xlu0 %1089  ;;  %v8145_v27 = vmul.f32 %v8034_v22, %v8012_v62 }
 0x207   : > { %v8134_v26 = vmul.f32 %v8034_v22, %v1090_v55  ;;  %v8137_v15 = vmul.f32 %v8053_v18, %v1090_v55  ;;  %3053 = vst.msk [vmem:[#allocation2 + $0x230] sm:$0xff] %vm2982_vm2, %v2927_v29  ;;  %v8154_v12 = vsel %vm1730_vm0, %v9993_v33, %v9994_v0  ;;  %v8158_v51 = vmul.f32 %v8044_v28, %v8012_v62 }
 0x208   : > { %3052 = vst.msk [vmem:[#allocation2 + $0x228] sm:$0xff] %vm2982_vm2, %v2926_v9  ;;  %v1912_v34 = vrot.slane %v1571_v36, 1  ;;  %v2664_v58 = vrot.slane %v2323_v56, 2  ;;  %3904 = vrot.lane.b32.xlu2 %v7946_v31, %s6107_s1  ;;  %v1444_v9 = vmul.f32 %v8044_v28, %v1185_v54  ;;  %v3377_v56 = vld [vmem:[#allocation2 + $0x2ba] ss:$3 sm:$0xff]  ;;  %v8165_v31 = vmul.f32 %v8053_v18, %v8012_v62 }
 0x209   : > { %v1874_v29 = vrot.slane %v8134_v26, 1  ;;  %v2626_v36 = vrot.slane %v8137_v15, 2  ;;  %v3431_v54 = vmax.f32 %v3305_v47, %v3377_v56  ;;  %v9997_v17 = vrot.slane %v8140_v40, 2  ;;  %v3263_v56 = vld [vmem:[#allocation2 + $0x349] ss:$3 sm:$0xff] }
 0x20a   : > { %v1913_v33 = vsel %vm1730_vm0, %v1910_v10, %v1912_v34  ;;  %v1915_v0 = vsel %vm1730_vm0, %v1912_v34, %v9996_v61  ;;  %v8173_v52 = vpop.permute.xlu2 %1104  ;;  %v1950_v10 = vrot.slane %v8145_v27, 1  ;;  %v10029_v34 = vrot.slane %v7925_v4, 2 }
 0x20b   : > { %v2195_v1 = vadd.f32 %v1913_v33, %v1443_v49  ;;  %v2196_v39 = vadd.f32 %v1915_v0, %v1444_v9  ;;  %v1875_v62 = vsel %vm1730_vm0, %v1872_v42, %v1874_v29  ;;  %v2667_v47 = vsel %vm2482_vm1, %v2664_v58, %v2666_v30  ;;  %v3179_v9 = vld [vmem:[#allocation2 + $0x348] ss:$3 sm:$0xff] }
 0x20c   : > { %3906 = vrot.lane.b32.xlu1 %v7964_v32, %s6107_s1  ;;  %v2665_v61 = vsel %vm2482_vm1, %v10029_v34, %v2664_v58  ;;  %v2176_v49 = vadd.f32 %v1875_v62, %v8048_v6  ;;  %v2627_v32 = vsel %vm2482_vm1, %v2624_v2, %v2626_v36  ;;  %v9998_v0 = vrot.slane %v8140_v40, 1 }
 0x20d   : > { %3697 = vrot.lane.b32.xlu0 %v7982_v53, %s6108_s22  ;;  %v2947_v24 = vadd.f32 %v2665_v61, %v2195_v1  ;;  %v2948_v42 = vadd.f32 %v2667_v47, %v2196_v39  ;;  %v1275_v4 = vpop.permute.xlu1 %1274  ;;  %v4251_v33 = vpop.f32.mrf.mxu0  ;;  %v3477_v61 = vadd.f32 %v7607_v44, %v3431_v54  ;;  %v2702_v21 = vrot.slane %v8165_v31, 2 }
 0x20e   : > { %v2928_v58 = vadd.f32 %v2627_v32, %v2176_v49  ;;  %v1589_v6 = vmul.f32 %v8034_v22, %v1275_v4  ;;  %v2341_v62 = vmul.f32 %v8053_v18, %v1275_v4  ;;  %4359 = vst.msk [vmem:[#allocation3 + $0x48] sm:$0xff] %vm4034_vm3, %v4251_v33  ;;  %v1195_v53 = vpop.permute.xlu0 %1194  ;;  %v10030_v1 = vrot.slane %v8087_v5, 2 }
 0x20f   : > { %3073 = vst.msk [vmem:[#allocation2 + $0x2d0] sm:$0xff] %vm2982_vm2, %v2947_v24  ;;  %v8206_v2 = vmul.f32 %v8034_v22, %v1195_v53  ;;  %v10031_v39 = vrot.slane %v8076_v48, 2  ;;  %v10032_v47 = vrot.slane %v7903_v46, 2  ;;  %v8222_v32 = vmul.f32 %v8053_v18, %v1195_v53 }
 0x210   : > { %3074 = vst.msk [vmem:[#allocation2 + $0x2d8] sm:$0xff] %vm2982_vm2, %v2948_v42  ;;  %v1948_v54 = vrot.slane %v1589_v6, 1  ;;  %v2700_v24 = vrot.slane %v2341_v62, 2  ;;  %3711 = vrot.lane.b32.xlu2 %v8071_v3, %s6108_s22  ;;  %v3311_v33 = vmax.f32 %v3179_v9, %v3263_v56  ;;  %v10033_v42 = vrot.slane %v7903_v46, 1 }
 0x211   : > { %v3851_v34 = vsel %vm2482_vm1, %v10031_v39, %v10030_v1  ;;  %v8218_v49 = vsel %vm2482_vm1, %v10032_v47, %v9997_v17  ;;  %v8227_v1 = vmul.f32 %v8044_v28, %v1090_v55  ;;  %3054 = vst.msk [vmem:[#allocation2 + $0x238] sm:$0xff] %vm2982_vm2, %v2928_v58  ;;  %v1462_v39 = vmul.f32 %v8044_v28, %v1275_v4 }
 0x212   : > { %v1916_v47 = vrot.slane %v8206_v2, 1  ;;  %v3618_v6 = vsel %vm1730_vm0, %v10033_v42, %v9998_v0  ;;  %v10034_v62 = vrot.slane %v7993_v37, 1  ;;  %v1951_v55 = vsel %vm1730_vm0, %v1948_v54, %v1950_v10  ;;  %v1120_v4 = vpop.permute.xlu2 %1119 }
 0x213   : > { %v8245_v9 = vmul.f32 %v8034_v22, %v8173_v52  ;;  %v8247_v56 = vmax.f32 %v3477_v61, 0.0  ;;  %v2214_v17 = vadd.f32 %v1951_v55, %v1462_v39  ;;  %v10035_v37 = vrot.slane %v8081_v25, 1 }
 0x214   : > { %v1949_v3 = vsel %vm1730_vm0, %v10034_v62, %v1948_v54  ;;  %v2668_v62 = vrot.slane %v8222_v32, 2  ;;  %3920 = vrot.lane.b32.xlu1 %v8019_v8, %s6107_s1  ;;  %v3389_v54 = vld [vmem:[#allocation2 + $0x34a] ss:$3 sm:$0xff]  ;;  %v10036_v0 = vrot.slane %v7997_v41, 2  ;;  %v8269_v8 = vmul.f32 %v8053_v18, %v8173_v52 }
 0x215   : > { %v2213_v58 = vadd.f32 %v1949_v3, %v8125_v7  ;;  %v1917_v42 = vsel %vm1730_vm0, %v10035_v37, %v1916_v47  ;;  %v2703_v7 = vsel %vm2482_vm1, %v2700_v24, %v2702_v21  ;;  %3723 = vrot.lane.b32.xlu0 %v8154_v12, %s6108_s22  ;;  %v3437_v25 = vmax.f32 %v3311_v33, %v3389_v54 }
 0x216   : > { %v2701_v61 = vsel %vm2482_vm1, %v10036_v0, %v2700_v24  ;;  %v2197_v39 = vadd.f32 %v1917_v42, %v8101_v57  ;;  %v2966_v55 = vadd.f32 %v2703_v7, %v2214_v17  ;;  %v2669_v41 = vsel %vm2482_vm1, %v2666_v30, %v2668_v62  ;;  %v3686_v0 = vpop.permute.xlu1 %3685  ;;  %v1285_v17 = vpop.permute.xlu0 %1284 }
 0x217   : > { %v2965_v3 = vadd.f32 %v2701_v61, %v2213_v58  ;;  %v1880_v24 = vrot.slane %v8245_v9, 1  ;;  %v8278_v37 = vmul.f32 %v8034_v22, %v1120_v4  ;;  %v4006_v12 = vsel %vm2982_vm2, %v7271_v13, %v3686_v0 }
 0x218   : > { %v2949_v57 = vadd.f32 %v2669_v41, %v2197_v39  ;;  %v8284_v33 = vmul.f32 %v8053_v18, %v1120_v4  ;;  %v8287_v45 = vmul.f32 %v8034_v22, %v1285_v17  ;;  %v8290_v30 = vmul.f32 %v8053_v18, %v1285_v17  ;;  %3092 = vst.msk [vmem:[#allocation2 + $0x368] sm:$0xff] %vm2982_vm2, %v2966_v55  ;;  %v3155_v61 = vld [vmem:[#allocation2 + $0x228] ss:$3 sm:$0xff]  ;;  %v3239_v7 = vld [vmem:[#allocation2 + $0x229] ss:$3 sm:$0xff] }
 0x219   : > { %3091 = vst.msk [vmem:[#allocation2 + $0x360] sm:$0xff] %vm2982_vm2, %v2965_v3  ;;  %v4049_v58 = vsel %vm4034_vm3, %v4006_v12, %v8109_v23  ;;  %v8297_v13 = vmul.f32 %v8044_v28, %v8173_v52  ;;  %3932 = vrot.lane.b32.xlu2 %v3851_v34, %s6107_s1  ;;  %v9999_v42 = vrot.slane %v8247_v56, 2  ;;  %v3483_v54 = vadd.f32 %v7607_v44, %v3437_v25  ;;  %v3365_v41 = vld [vmem:[#allocation2 + $0x22a] ss:$3 sm:$0xff] }
 0x21a   : > { %5920 = vmatmul.msk.f32.gmra.mxu0 %vm4080_vm4, %v4049_v58  ;;  %v2632_v39 = vrot.slane %v8269_v8, 2  ;;  %3075 = vst.msk [vmem:[#allocation2 + $0x2e0] sm:$0xff] %vm2982_vm2, %v2949_v57  ;;  %v10002_v23 = vrot.slane %v8287_v45, 1  ;;  %v10000_v3 = vrot.slane %v8290_v30, 2  ;;  %v10001_v52 = vrot.slane %v8247_v56, 1  ;;  %v8313_v44 = vpop.permute.xlu2 %1199 }
 0x21b   : > { %v1446_v55 = vmul.f32 %v8044_v28, %v1195_v53  ;;  %v8310_v34 = vmul.f32 %v8044_v28, %v1120_v4  ;;  %v8315_v25 = vmax.f32 %v3483_v54, 0.0  ;;  %v8327_v53 = vmul.f32 %v8034_v22, %v8313_v44 }
 0x21c   : > { %v1953_v57 = vsel %vm1730_vm0, %v1950_v10, %v10002_v23  ;;  %3908 = vrot.lane.b32.xlu1 %v8218_v49, %s6107_s1  ;;  %v3299_v4 = vmax.f32 %v3155_v61, %v3239_v7  ;;  %v8330_v12 = vmul.f32 %v8044_v28, %v1285_v17  ;;  %v8336_v27 = vmul.f32 %v8053_v18, %v8313_v44 }
 0x21d   : > { %v2215_v58 = vadd.f32 %v1953_v57, %v8158_v51  ;;  %3699 = vrot.lane.b32.xlu0 %v3618_v6, %s6108_s22  ;;  %v10037_v10 = vrot.slane %v7948_v59, 2  ;;  %v2705_v17 = vsel %vm2482_vm1, %v2702_v21, %v10000_v3  ;;  %v10003_v51 = vrot.slane %v8327_v53, 1  ;;  %v4254_v6 = vpop.f32.mrf.mxu0 }
 0x21e   : > { %v1100_v54 = vpop.permute.xlu1 %1099  ;;  %v10038_v61 = vrot.slane %v7948_v59, 1  ;;  %v3643_v57 = vrot.slane %v8315_v25, 1  ;;  %4360 = vst.msk [vmem:[#allocation3 + $0x50] sm:$0xff] %vm4034_vm3, %v4254_v6  ;;  %v1095_v31 = vpop.permute.xlu0 %1094  ;;  %v10046_v9 = vrot.slane %v8140_v40, 2 }
 0x21f   : > { %v3841_v49 = vsel %vm2482_vm1, %v10037_v10, %v9999_v42  ;;  %v2967_v0 = vadd.f32 %v2705_v17, %v2215_v58  ;;  %v10005_v10 = vrot.slane %v8336_v27, 2  ;;  %v1554_v42 = vmul.f32 %v8034_v22, %v1100_v54 }
 0x220   : > { %v3632_v7 = vsel %vm1730_vm0, %v10038_v61, %v10001_v52  ;;  %v1919_v3 = vsel %vm1730_vm0, %v1916_v47, %v10003_v51  ;;  %v2306_v61 = vmul.f32 %v8053_v18, %v1100_v54  ;;  %v1553_v58 = vmul.f32 %v8034_v22, %v1095_v31 }
 0x221   : > { %v3425_v17 = vmax.f32 %v3299_v4, %v3365_v41  ;;  %3093 = vst.msk [vmem:[#allocation2 + $0x370] sm:$0xff] %vm2982_vm2, %v2967_v0  ;;  %v2198_v52 = vadd.f32 %v1919_v3, %v1446_v55  ;;  %v1427_v6 = vmul.f32 %v8044_v28, %v1100_v54  ;;  %v1878_v23 = vrot.slane %v1554_v42, 1  ;;  %3713 = vrot.lane.b32.xlu2 %v3632_v7, %s6108_s22  ;;  %v8394_v7 = vld [vmem:[%s10021_s18] ss:$0 sm:$0xff] }
 0x222   : > { %v2305_v21 = vmul.f32 %v8053_v18, %v1095_v31  ;;  %v2671_v2 = vsel %vm2482_vm1, %v2668_v62, %v10005_v10  ;;  %v2630_v47 = vrot.slane %v2306_v61, 2  ;;  %v1426_v51 = vmul.f32 %v8044_v28, %v1095_v31  ;;  %v8384_v54 = vpop.permute.xlu2 %1289 }
 0x223   : > { %v1876_v41 = vrot.slane %v1553_v58, 1  ;;  %v2950_v4 = vadd.f32 %v2671_v2, %v2198_v52  ;;  %v1881_v3 = vsel %vm1730_vm0, %v1878_v23, %v1880_v24  ;;  %v10039_v55 = vrot.slane %v8087_v5, 1 }
 0x224   : > { %v2628_v42 = vrot.slane %v2305_v21, 2  ;;  %v2179_v32 = vadd.f32 %v1881_v3, %v1427_v6  ;;  %3922 = vrot.lane.b32.xlu1 %v3841_v49, %s6107_s1  ;;  %v3471_v31 = vadd.f32 %v8394_v7, %v3425_v17  ;;  %v2633_v21 = vsel %vm2482_vm1, %v2630_v47, %v2632_v39 }
 0x225   : > { %v3644_v0 = vsel %vm1730_vm0, %v10039_v55, %v3643_v57  ;;  %v1877_v62 = vsel %vm1730_vm0, %v1874_v29, %v1876_v41  ;;  %v1879_v52 = vsel %vm1730_vm0, %v1876_v41, %v1878_v23  ;;  %3076 = vst.msk [vmem:[#allocation2 + $0x2e8] sm:$0xff] %vm2982_vm2, %v2950_v4  ;;  %v8409_v58 = vmul.f32 %v8034_v22, %v8384_v54 }
 0x226   : > { %v2177_v26 = vadd.f32 %v1877_v62, %v8227_v1  ;;  %v2178_v29 = vadd.f32 %v1879_v52, %v1426_v51  ;;  %v2629_v23 = vsel %vm2482_vm1, %v2626_v36, %v2628_v42  ;;  %v2931_v49 = vadd.f32 %v2633_v21, %v2179_v32  ;;  %3725 = vrot.lane.b32.xlu0 %v3644_v0, %s6108_s22  ;;  %v1115_v6 = vpop.permute.xlu1 %1114  ;;  %v1110_v2 = vpop.permute.xlu0 %1109  ;;  %v3169_v0 = vld [vmem:[#allocation2 + $0x2d0] ss:$3 sm:$0xff] }
 0x227   : > { %v2631_v61 = vsel %vm2482_vm1, %v2628_v42, %v2630_v47  ;;  %v8413_v17 = vmul.f32 %v8053_v18, %v8384_v54  ;;  %v1557_v15 = vmul.f32 %v8034_v22, %v1115_v6  ;;  %v10040_v36 = vrot.slane %v8315_v25, 2 }
 0x228   : > { %v2929_v1 = vadd.f32 %v2629_v23, %v2177_v26  ;;  %v2930_v51 = vadd.f32 %v2631_v61, %v2178_v29  ;;  %v10041_v47 = vrot.slane %v8087_v5, 2  ;;  %3057 = vst.msk [vmem:[#allocation2 + $0x250] sm:$0xff] %vm2982_vm2, %v2931_v49  ;;  %v10004_v4 = vrot.slane %v8409_v58, 1  ;;  %v3253_v26 = vld [vmem:[#allocation2 + $0x2d1] ss:$3 sm:$0xff] }
 0x229   : > { %v2706_v3 = vrot.slane %v8413_v17, 2  ;;  %v1430_v42 = vmul.f32 %v8044_v28, %v1115_v6  ;;  %v2309_v55 = vmul.f32 %v8053_v18, %v1115_v6  ;;  %v1884_v32 = vrot.slane %v1557_v15, 1 }
 0x22a   : > { %v3853_v41 = vsel %vm2482_vm1, %v10041_v47, %v10040_v36  ;;  %3055 = vst.msk [vmem:[#allocation2 + $0x240] sm:$0xff] %vm2982_vm2, %v2929_v1  ;;  %v1556_v62 = vmul.f32 %v8034_v22, %v1110_v2  ;;  %v2308_v52 = vmul.f32 %v8053_v18, %v1110_v2  ;;  %v8430_v21 = vmax.f32 %v3471_v31, 0.0 }
 0x22b   : > { %3934 = vrot.lane.b32.xlu2 %v3853_v41, %s6107_s1  ;;  %3056 = vst.msk [vmem:[#allocation2 + $0x248] sm:$0xff] %vm2982_vm2, %v2930_v51  ;;  %v10042_v29 = vrot.slane %v8287_v45, 1  ;;  %v10043_v49 = vrot.slane %v8290_v30, 2  ;;  %v2636_v6 = vrot.slane %v2309_v55, 2  ;;  %v1429_v1 = vmul.f32 %v8044_v28, %v1110_v2  ;;  %v3688_v45 = vpop.permute.xlu2 %3687 }
 0x22c   : > { %v10044_v15 = vrot.slane %v8278_v37, 1  ;;  %v1882_v36 = vrot.slane %v1556_v62, 1  ;;  %v2634_v47 = vrot.slane %v2308_v52, 2  ;;  %v3306_v30 = vmax.f32 %v3169_v0, %v3253_v26  ;;  %v4257_v0 = vpop.f32.mrf.mxu0 }
 0x22d   : > { %v1955_v23 = vsel %vm1730_vm0, %v10042_v29, %v10004_v4  ;;  %v2707_v61 = vsel %vm2482_vm1, %v10043_v49, %v2706_v3  ;;  %v3828_v29 = vrot.slane %v8430_v21, 2  ;;  %v3619_v4 = vrot.slane %v8430_v21, 1  ;;  %4361 = vst.msk [vmem:[#allocation3 + $0x58] sm:$0xff] %vm4034_vm3, %v4257_v0 }
 0x22e   : > { %v2216_v31 = vadd.f32 %v1955_v23, %v8330_v12  ;;  %v1887_v51 = vsel %vm1730_vm0, %v1884_v32, %v10044_v15  ;;  %v10045_v55 = vrot.slane %v8284_v33, 2  ;;  %v1883_v12 = vsel %vm1730_vm0, %v1880_v24, %v1882_v36  ;;  %v1130_v26 = vpop.permute.xlu1 %1129 }
 0x22f   : > { %v2182_v41 = vadd.f32 %v1887_v51, %v1430_v42  ;;  %v1885_v23 = vsel %vm1730_vm0, %v1882_v36, %v1884_v32  ;;  %v2180_v52 = vadd.f32 %v1883_v12, %v8297_v13  ;;  %v2635_v49 = vsel %vm2482_vm1, %v2632_v39, %v2634_v47  ;;  %v1125_v32 = vpop.permute.xlu0 %1124 }
 0x230   : > { %v2968_v10 = vadd.f32 %v2707_v61, %v2216_v31  ;;  %v2639_v2 = vsel %vm2482_vm1, %v2636_v6, %v10045_v55  ;;  %v2181_v42 = vadd.f32 %v1885_v23, %v1429_v1  ;;  %v2637_v61 = vsel %vm2482_vm1, %v2634_v47, %v2636_v6  ;;  %v3181_v1 = vld [vmem:[#allocation2 + $0x360] ss:$3 sm:$0xff]  ;;  %v3265_v31 = vld [vmem:[#allocation2 + $0x361] ss:$3 sm:$0xff] }
 0x231   : > { %v2934_v62 = vadd.f32 %v2639_v2, %v2182_v41  ;;  %v3829_v24 = vsel %vm2482_vm1, %v10046_v9, %v3828_v29  ;;  %v10047_v13 = vrot.slane %v8140_v40, 1  ;;  %v1560_v39 = vmul.f32 %v8034_v22, %v1130_v26  ;;  %v3379_v55 = vld [vmem:[#allocation2 + $0x2d2] ss:$3 sm:$0xff] }
 0x232   : > { %3094 = vst.msk [vmem:[#allocation2 + $0x378] sm:$0xff] %vm2982_vm2, %v2968_v10  ;;  %v2932_v10 = vadd.f32 %v2635_v49, %v2180_v52  ;;  %v2933_v6 = vadd.f32 %v2637_v61, %v2181_v42  ;;  %3910 = vrot.lane.b32.xlu1 %v3829_v24, %s6107_s1  ;;  %v2312_v15 = vmul.f32 %v8053_v18, %v1130_v26  ;;  %v3157_v61 = vld [vmem:[#allocation2 + $0x240] ss:$3 sm:$0xff]  ;;  %v3241_v9 = vld [vmem:[#allocation2 + $0x241] ss:$3 sm:$0xff] }
 0x233   : > { %v3620_v8 = vsel %vm1730_vm0, %v10047_v13, %v3619_v4  ;;  %3060 = vst.msk [vmem:[#allocation2 + $0x268] sm:$0xff] %vm2982_vm2, %v2934_v62  ;;  %v8480_v51 = vmul.f32 %v8044_v28, %v8313_v44  ;;  %v1433_v36 = vmul.f32 %v8044_v28, %v1130_v26  ;;  %v1890_v47 = vrot.slane %v1560_v39, 1  ;;  %v1220_v26 = vpop.permute.xlu2 %1219 }
 0x234   : > { %3701 = vrot.lane.b32.xlu0 %v3620_v8, %s6108_s22  ;;  %v1559_v41 = vmul.f32 %v8034_v22, %v1125_v32  ;;  %3058 = vst.msk [vmem:[#allocation2 + $0x258] sm:$0xff] %vm2982_vm2, %v2932_v10  ;;  %v2642_v2 = vrot.slane %v2312_v15, 2  ;;  %v2311_v12 = vmul.f32 %v8053_v18, %v1125_v32  ;;  %v3432_v23 = vmax.f32 %v3306_v30, %v3379_v55  ;;  %v3391_v8 = vld [vmem:[#allocation2 + $0x362] ss:$3 sm:$0xff] }
 0x235   : > { %v3312_v62 = vmax.f32 %v3181_v1, %v3265_v31  ;;  %v8489_v52 = vmul.f32 %v8044_v28, %v8384_v54  ;;  %3059 = vst.msk [vmem:[#allocation2 + $0x260] sm:$0xff] %vm2982_vm2, %v2933_v6  ;;  %v10048_v44 = vrot.slane %v7502_v50, 1  ;;  %v8497_v49 = vsel %vm2982_vm2, %v7402_v43, %v3688_v45 }
 0x236   : > { %v1888_v0 = vrot.slane %v1559_v41, 1  ;;  %v1432_v24 = vmul.f32 %v8044_v28, %v1125_v32  ;;  %v2640_v13 = vrot.slane %v2311_v12, 2  ;;  %v3478_v54 = vadd.f32 %v8394_v7, %v3432_v23  ;;  %v1210_v32 = vpop.permute.xlu1 %1209 }
 0x237   : > { %v1893_v42 = vsel %vm1730_vm0, %v1890_v47, %v10048_v44  ;;  %v10049_v39 = vrot.slane %v7505_v35, 2  ;;  %v10050_v1 = vrot.slane %v8278_v37, 1  ;;  %v3438_v31 = vmax.f32 %v3312_v62, %v3391_v8  ;;  %v1205_v23 = vpop.permute.xlu0 %1204 }
 0x238   : > { %v2185_v30 = vadd.f32 %v1893_v42, %v1433_v36  ;;  %v1891_v45 = vsel %vm1730_vm0, %v1888_v0, %v1890_v47  ;;  %v3300_v36 = vmax.f32 %v3157_v61, %v3241_v9  ;;  %v10051_v41 = vrot.slane %v8284_v33, 2 }
 0x239   : > { %v2645_v50 = vsel %vm2482_vm1, %v2642_v2, %v10049_v39  ;;  %v1889_v43 = vsel %vm1730_vm0, %v10050_v1, %v1888_v0  ;;  %v2184_v15 = vadd.f32 %v1891_v45, %v1432_v24  ;;  %v2643_v35 = vsel %vm2482_vm1, %v2640_v13, %v2642_v2 }
 0x23a   : > { %v2937_v10 = vadd.f32 %v2645_v50, %v2185_v30  ;;  %v2183_v6 = vadd.f32 %v1889_v43, %v8310_v34  ;;  %v2641_v55 = vsel %vm2482_vm1, %v10051_v41, %v2640_v13  ;;  %v8513_v12 = vmax.f32 %v3478_v54, 0.0 }
 0x23b   : > { %v3484_v37 = vadd.f32 %v8394_v7, %v3438_v31  ;;  %v2936_v62 = vadd.f32 %v2643_v35, %v2184_v15  ;;  %v8518_v34 = vmul.f32 %v8034_v22, %v1210_v32  ;;  %v8521_v44 = vmul.f32 %v8053_v18, %v1210_v32 }
 0x23c   : > { %3063 = vst.msk [vmem:[#allocation2 + $0x280] sm:$0xff] %vm2982_vm2, %v2937_v10  ;;  %v2935_v47 = vadd.f32 %v2641_v55, %v2183_v6  ;;  %v10010_v33 = vrot.slane %v8513_v12, 2  ;;  %v10009_v42 = vrot.slane %v8513_v12, 1  ;;  %v8528_v0 = vmul.f32 %v8034_v22, %v1220_v26  ;;  %v3367_v6 = vld [vmem:[#allocation2 + $0x242] ss:$3 sm:$0xff] }
 0x23d   : > { %v8525_v2 = vmax.f32 %v3484_v37, 0.0  ;;  %v8532_v61 = vmul.f32 %v8044_v28, %v1210_v32  ;;  %v1922_v9 = vrot.slane %v8518_v34, 1  ;;  %v1451_v30 = vmul.f32 %v8044_v28, %v1220_v26  ;;  %3062 = vst.msk [vmem:[#allocation2 + $0x278] sm:$0xff] %vm2982_vm2, %v2936_v62 }
 0x23e   : > { %3061 = vst.msk [vmem:[#allocation2 + $0x270] sm:$0xff] %vm2982_vm2, %v2935_v47  ;;  %v8537_v24 = vmul.f32 %v8053_v18, %v1220_v26  ;;  %v10052_v13 = vrot.slane %v8247_v56, 2  ;;  %v10053_v8 = vrot.slane %v8247_v56, 1  ;;  %v1926_v1 = vrot.slane %v8528_v0, 1  ;;  %v1315_v26 = vpop.permute.xlu2 %1314  ;;  %v3369_v0 = vld [vmem:[#allocation2 + $0x25a] ss:$3 sm:$0xff] }
 0x23f   : > { %v10007_v50 = vrot.slane %v8525_v2, 1  ;;  %v1575_v45 = vmul.f32 %v8034_v22, %v1205_v23  ;;  %v2327_v31 = vmul.f32 %v8053_v18, %v1205_v23  ;;  %v10006_v10 = vrot.slane %v8525_v2, 2 }
 0x240   : > { %v3843_v54 = vsel %vm2482_vm1, %v10052_v13, %v10010_v33  ;;  %v3634_v39 = vsel %vm1730_vm0, %v10053_v8, %v10009_v42  ;;  %v10011_v43 = vrot.slane %v8537_v24, 2  ;;  %v2674_v32 = vrot.slane %v8521_v44, 2 }
 0x241   : > { %3924 = vrot.lane.b32.xlu1 %v3843_v54, %s6107_s1  ;;  %3715 = vrot.lane.b32.xlu2 %v3634_v39, %s6108_s22  ;;  %v3646_v15 = vsel %vm1730_vm0, %v3643_v57, %v10007_v50  ;;  %v10054_v41 = vrot.slane %v7614_v14, 1  ;;  %v3426_v35 = vmax.f32 %v3300_v36, %v3367_v6  ;;  %v1448_v47 = vmul.f32 %v8044_v28, %v1205_v23  ;;  %v8571_v54 = vpop.permute.xlu1 %1299  ;;  %v1295_v39 = vpop.permute.xlu0 %1294 }
 0x242   : > { %3727 = vrot.lane.b32.xlu0 %v3646_v15, %s6108_s22  ;;  %v1920_v62 = vrot.slane %v1575_v45, 1  ;;  %v2672_v13 = vrot.slane %v2327_v31, 2  ;;  %v10055_v57 = vrot.slane %v7660_v38, 2  ;;  %v8581_v36 = vmul.f32 %v8034_v22, %v8571_v54 }
 0x243   : > { %v1929_v55 = vsel %vm1730_vm0, %v1926_v1, %v10054_v41  ;;  %v3472_v8 = vadd.f32 %v8394_v7, %v3426_v35  ;;  %v10056_v45 = vrot.slane %v8327_v53, 1  ;;  %v10057_v6 = vrot.slane %v8315_v25, 2 }
 0x244   : > { %v2203_v37 = vadd.f32 %v1929_v55, %v1451_v30  ;;  %v2681_v14 = vsel %vm2482_vm1, %v10011_v43, %v10055_v57  ;;  %v1470_v30 = vmul.f32 %v8044_v28, %v1315_v26  ;;  %v1923_v38 = vsel %vm1730_vm0, %v1920_v62, %v1922_v9 }
 0x245   : > { %v1921_v31 = vsel %vm1730_vm0, %v10056_v45, %v1920_v62  ;;  %v3855_v15 = vsel %vm2482_vm1, %v10057_v6, %v10006_v10  ;;  %v2200_v55 = vadd.f32 %v1923_v38, %v1448_v47  ;;  %v10058_v35 = vrot.slane %v8336_v27, 2 }
 0x246   : > { %v2955_v23 = vadd.f32 %v2681_v14, %v2203_v37  ;;  %v2199_v41 = vadd.f32 %v1921_v31, %v8480_v51  ;;  %v8599_v53 = vmax.f32 %v3472_v8, 0.0  ;;  %v2675_v62 = vsel %vm2482_vm1, %v2672_v13, %v2674_v32  ;;  %v8617_v45 = vpop.permute.xlu2 %1319  ;;  %v3159_v31 = vld [vmem:[#allocation2 + $0x258] ss:$3 sm:$0xff] }
 0x247   : > { %v2673_v37 = vsel %vm2482_vm1, %v10058_v35, %v2672_v13  ;;  %v8607_v57 = vmul.f32 %v8053_v18, %v8571_v54  ;;  %v8610_v14 = vmul.f32 %v8034_v22, %v1315_v26  ;;  %v8613_v51 = vmul.f32 %v8053_v18, %v1315_v26  ;;  %v3243_v13 = vld [vmem:[#allocation2 + $0x259] ss:$3 sm:$0xff] }
 0x248   : > { %3081 = vst.msk [vmem:[#allocation2 + $0x310] sm:$0xff] %vm2982_vm2, %v2955_v23  ;;  %v2951_v27 = vadd.f32 %v2673_v37, %v2199_v41  ;;  %v2952_v47 = vadd.f32 %v2675_v62, %v2200_v55  ;;  %v10008_v8 = vrot.slane %v8599_v53, 1  ;;  %v1958_v23 = vrot.slane %v8581_v36, 1 }
 0x249   : > { %3936 = vrot.lane.b32.xlu2 %v3855_v15, %s6107_s1  ;;  %v2710_v38 = vrot.slane %v8607_v57, 2  ;;  %v1964_v6 = vrot.slane %v8610_v14, 1  ;;  %v1466_v35 = vmul.f32 %v8044_v28, %v1295_v39  ;;  %v1593_v26 = vmul.f32 %v8034_v22, %v1295_v39  ;;  %v1215_v10 = vpop.permute.xlu1 %1214 }
 0x24a   : > { %3077 = vst.msk [vmem:[#allocation2 + $0x2f0] sm:$0xff] %vm2982_vm2, %v2951_v27  ;;  %v3622_v41 = vsel %vm1730_vm0, %v3619_v4, %v10008_v8  ;;  %v2345_v15 = vmul.f32 %v8053_v18, %v1295_v39  ;;  %v10012_v37 = vrot.slane %v8599_v53, 2  ;;  %v8637_v27 = vmul.f32 %v8034_v22, %v8617_v45 }
 0x24b   : > { %3078 = vst.msk [vmem:[#allocation2 + $0x2f8] sm:$0xff] %vm2982_vm2, %v2952_v47  ;;  %3703 = vrot.lane.b32.xlu0 %v3622_v41, %s6108_s22  ;;  %v1956_v62 = vrot.slane %v1593_v26, 1  ;;  %v8641_v50 = vmul.f32 %v8053_v18, %v8617_v45  ;;  %v3301_v4 = vmax.f32 %v3159_v31, %v3243_v13  ;;  %v1450_v47 = vmul.f32 %v8044_v28, %v1215_v10  ;;  %v3897_v41 = vpop.permute.xlu0 %3896 }
 0x24c   : > { %v2708_v8 = vrot.slane %v2345_v15, 2  ;;  %v3831_v39 = vsel %vm2482_vm1, %v3828_v29, %v10012_v37  ;;  %v1577_v26 = vmul.f32 %v8034_v22, %v1215_v10  ;;  %v10059_v42 = vrot.slane %v8409_v58, 1 }
 0x24d   : > { %v1959_v31 = vsel %vm1730_vm0, %v1956_v62, %v1958_v23  ;;  %v2329_v13 = vmul.f32 %v8053_v18, %v1215_v10  ;;  %v1966_v15 = vrot.slane %v8637_v27, 1  ;;  %v4050_v17 = vsel %vm4034_vm3, %v8497_v49, %v3897_v41 }
 0x24e   : > { %v1957_v33 = vsel %vm1730_vm0, %v10059_v42, %v1956_v62  ;;  %v2218_v29 = vadd.f32 %v1959_v31, %v1466_v35  ;;  %v2709_v37 = vsel %vm2482_vm1, %v2706_v3, %v2708_v8  ;;  %v2711_v58 = vsel %vm2482_vm1, %v2708_v8, %v2710_v38  ;;  %v3161_v3 = vld [vmem:[#allocation2 + $0x270] ss:$3 sm:$0xff]  ;;  %v3245_v31 = vld [vmem:[#allocation2 + $0x271] ss:$3 sm:$0xff]  ;;  %5921 = vmatmul.msk.f32.gmra.mxu0 %vm4080_vm4, %v4050_v17 }
 0x24f   : > { %v2217_v43 = vadd.f32 %v1957_v33, %v8489_v52  ;;  %v1924_v42 = vrot.slane %v1577_v26, 1  ;;  %v2676_v55 = vrot.slane %v2329_v13, 2  ;;  %v1967_v10 = vsel %vm1730_vm0, %v1964_v6, %v1966_v15 }
 0x250   : > { %v2718_v62 = vrot.slane %v8641_v50, 2  ;;  %v2970_v33 = vadd.f32 %v2711_v58, %v2218_v29  ;;  %v2222_v35 = vadd.f32 %v1967_v10, %v1470_v30  ;;  %v10061_v44 = vrot.slane %v8537_v24, 2  ;;  %v3371_v58 = vld [vmem:[#allocation2 + $0x272] ss:$3 sm:$0xff] }
 0x251   : > { %v2969_v52 = vadd.f32 %v2709_v37, %v2217_v43  ;;  %3912 = vrot.lane.b32.xlu2 %v3831_v39, %s6107_s1  ;;  %v1925_v8 = vsel %vm1730_vm0, %v1922_v9, %v1924_v42  ;;  %v1927_v26 = vsel %vm1730_vm0, %v1924_v42, %v1926_v1  ;;  %v2677_v43 = vsel %vm2482_vm1, %v2674_v32, %v2676_v55 }
 0x252   : > { %v2201_v49 = vadd.f32 %v1925_v8, %v8532_v61  ;;  %v2202_v30 = vadd.f32 %v1927_v26, %v1450_v47  ;;  %v10060_v37 = vrot.slane %v8613_v51, 2  ;;  %3096 = vst.msk [vmem:[#allocation2 + $0x388] sm:$0xff] %vm2982_vm2, %v2970_v33  ;;  %v2679_v9 = vsel %vm2482_vm1, %v2676_v55, %v10061_v44  ;;  %v1310_v61 = vpop.permute.xlu1 %1309  ;;  %v3171_v47 = vld [vmem:[#allocation2 + $0x2e8] ss:$3 sm:$0xff]  ;;  %v3255_v41 = vld [vmem:[#allocation2 + $0x2e9] ss:$3 sm:$0xff] }
 0x253   : > { %3095 = vst.msk [vmem:[#allocation2 + $0x380] sm:$0xff] %vm2982_vm2, %v2969_v52  ;;  %v3302_v32 = vmax.f32 %v3161_v3, %v3245_v31  ;;  %v3427_v39 = vmax.f32 %v3301_v4, %v3369_v0  ;;  %v1596_v42 = vmul.f32 %v8034_v22, %v1310_v61  ;;  %v1305_v10 = vpop.permute.xlu0 %1304  ;;  %v1467_v52 = vmul.f32 %v8044_v28, %v8571_v54 }
 0x254   : > { %v2719_v34 = vsel %vm2482_vm1, %v10060_v37, %v2718_v62  ;;  %v2953_v13 = vadd.f32 %v2677_v43, %v2201_v49  ;;  %v2954_v29 = vadd.f32 %v2679_v9, %v2202_v30  ;;  %v2348_v33 = vmul.f32 %v8053_v18, %v1310_v61  ;;  %v3381_v43 = vld [vmem:[#allocation2 + $0x2ea] ss:$3 sm:$0xff]  ;;  %v8712_v30 = vpop.permute.xlu2 %3691 }
 0x255   : > { %v2974_v1 = vadd.f32 %v2719_v34, %v2222_v35  ;;  %v3428_v24 = vmax.f32 %v3302_v32, %v3371_v58  ;;  %v3473_v55 = vadd.f32 %v8394_v7, %v3427_v39  ;;  %v1962_v4 = vrot.slane %v1596_v42, 1 }
 0x256   : > { %3079 = vst.msk [vmem:[#allocation2 + $0x300] sm:$0xff] %vm2982_vm2, %v2953_v13  ;;  %v1595_v35 = vmul.f32 %v8034_v22, %v1305_v10  ;;  %v2347_v17 = vmul.f32 %v8053_v18, %v1305_v10  ;;  %v3307_v3 = vmax.f32 %v3171_v47, %v3255_v41  ;;  %v1469_v8 = vmul.f32 %v8044_v28, %v1310_v61 }
 0x257   : > { %3100 = vst.msk [vmem:[#allocation2 + $0x3a8] sm:$0xff] %vm2982_vm2, %v2974_v1  ;;  %v3474_v31 = vadd.f32 %v8394_v7, %v3428_v24  ;;  %v8706_v54 = vmax.f32 %v3473_v55, 0.0  ;;  %v2714_v26 = vrot.slane %v2348_v33, 2  ;;  %v1965_v49 = vsel %vm1730_vm0, %v1962_v4, %v1964_v6 }
 0x258   : > { %3080 = vst.msk [vmem:[#allocation2 + $0x308] sm:$0xff] %vm2982_vm2, %v2954_v29  ;;  %v1960_v22 = vrot.slane %v1595_v35, 1  ;;  %v2712_v37 = vrot.slane %v2347_v17, 2  ;;  %v3433_v18 = vmax.f32 %v3307_v3, %v3381_v43  ;;  %v2221_v44 = vadd.f32 %v1965_v49, %v1469_v8 }
 0x259   : > { %v8714_v34 = vmax.f32 %v3474_v31, 0.0  ;;  %v3832_v0 = vrot.slane %v8706_v54, 2  ;;  %v1468_v9 = vmul.f32 %v8044_v28, %v1305_v10  ;;  %v3623_v1 = vrot.slane %v8706_v54, 1 }
 0x25a   : > { %v10062_v32 = vrot.slane %v8613_v51, 2  ;;  %v1961_v6 = vsel %vm1730_vm0, %v1958_v23, %v1960_v22  ;;  %v1963_v39 = vsel %vm1730_vm0, %v1960_v22, %v1962_v4  ;;  %v3899_v29 = vpop.permute.xlu1 %3898  ;;  %v2713_v51 = vsel %vm2482_vm1, %v2710_v38, %v2712_v37  ;;  %v3183_v36 = vld [vmem:[#allocation2 + $0x378] ss:$3 sm:$0xff]  ;;  %v3267_v10 = vld [vmem:[#allocation2 + $0x379] ss:$3 sm:$0xff] }
 0x25b   : > { %v3834_v61 = vrot.slane %v8714_v34, 2  ;;  %v3625_v47 = vrot.slane %v8714_v34, 1  ;;  %v2219_v13 = vadd.f32 %v1961_v6, %v1467_v52  ;;  %v2220_v28 = vadd.f32 %v1963_v39, %v1468_v9  ;;  %v3690_v42 = vpop.permute.xlu0 %3689  ;;  %v8772_v39 = vld [vmem:[%s10020_s3 + $0x1] ss:$0 sm:$0xff] }
 0x25c   : > { %v2717_v14 = vsel %vm2482_vm1, %v2714_v26, %v10062_v32  ;;  %v3479_v58 = vadd.f32 %v8394_v7, %v3433_v18  ;;  %v2715_v57 = vsel %vm2482_vm1, %v2712_v37, %v2714_v26  ;;  %v4008_v33 = vsel %vm2982_vm2, %v7495_v16, %v3690_v42  ;;  %v3393_v26 = vld [vmem:[#allocation2 + $0x37a] ss:$3 sm:$0xff]  ;;  %v8756_v16 = vpop.permute.xlu2 %1339 }
 0x25d   : > { %v2973_v41 = vadd.f32 %v2717_v14, %v2221_v44  ;;  %v3835_v23 = vsel %vm2482_vm1, %v3832_v0, %v3834_v61  ;;  %v3626_v52 = vsel %vm1730_vm0, %v3623_v1, %v3625_v47  ;;  %v2971_v38 = vadd.f32 %v2713_v51, %v2219_v13  ;;  %v8780_v13 = vld [vmem:[%s10020_s3 + $0x2] ss:$0 sm:$0xff] }
 0x25e   : > { %3916 = vrot.lane.b32.xlu0 %v3835_v23, %s6107_s1  ;;  %3707 = vrot.lane.b32.xlu1 %v3626_v52, %s6108_s22  ;;  %v2972_v24 = vadd.f32 %v2715_v57, %v2220_v28  ;;  %v8746_v55 = vmax.f32 %v3479_v58, 0.0  ;;  %v4051_v17 = vsel %vm4034_vm3, %v4008_v33, %v3899_v29  ;;  %v3313_v3 = vmax.f32 %v3183_v36, %v3267_v10  ;;  %v4260_v28 = vpop.f32.mrf.mxu0 }
 0x25f   : > { %3099 = vst.msk [vmem:[#allocation2 + $0x3a0] sm:$0xff] %vm2982_vm2, %v2973_v41  ;;  %v3173_v4 = vld [vmem:[#allocation2 + $0x300] ss:$3 sm:$0xff]  ;;  %v3257_v35 = vld [vmem:[#allocation2 + $0x301] ss:$3 sm:$0xff]  ;;  %5922 = vmatmul.msk.f32.gmra.mxu0 %vm4080_vm4, %v4051_v17  ;;  %v10063_v18 = vrot.slane %v8513_v12, 2 }
 0x260   : > { %3097 = vst.msk [vmem:[#allocation2 + $0x390] sm:$0xff] %vm2982_vm2, %v2971_v38  ;;  %v3844_v31 = vrot.slane %v8746_v55, 2  ;;  %v3635_v8 = vrot.slane %v8746_v55, 1  ;;  %v3308_v43 = vmax.f32 %v3173_v4, %v3257_v35  ;;  %v3439_v49 = vmax.f32 %v3313_v3, %v3393_v26  ;;  %v3383_v22 = vld [vmem:[#allocation2 + $0x302] ss:$3 sm:$0xff] }
 0x261   : > { %3098 = vst.msk [vmem:[#allocation2 + $0x398] sm:$0xff] %vm2982_vm2, %v2972_v24  ;;  %v10064_v9 = vrot.slane %v8513_v12, 1  ;;  %v8800_v4 = vld [vmem:[%s10020_s3] ss:$0 sm:$0xff] }
 0x262   : > { %v3434_v37 = vmax.f32 %v3308_v43, %v3383_v22  ;;  %v3845_v44 = vsel %vm2482_vm1, %v10063_v18, %v3844_v31  ;;  %v3485_v14 = vadd.f32 %v8394_v7, %v3439_v49  ;;  %v1330_v6 = vpop.permute.xlu1 %1329  ;;  %4362 = vst.msk [vmem:[#allocation3 + $0x60] sm:$0xff] %vm4034_vm3, %v4260_v28  ;;  %v1471_v35 = vmul.f32 %v8800_v4, %v8617_v45 }
 0x263   : > { %v3636_v32 = vsel %vm1730_vm0, %v10064_v9, %v3635_v8  ;;  %v8775_v41 = vmul.f32 %v8772_v39, %v1330_v6  ;;  %v8783_v29 = vmul.f32 %v8780_v13, %v1330_v6  ;;  %v1325_v51 = vpop.permute.xlu0 %1324  ;;  %v4009_v43 = vsel %vm2982_vm2, %v7542_v60, %v8712_v30 }
 0x264   : > { %v8785_v58 = vmax.f32 %v3485_v14, 0.0  ;;  %v1599_v42 = vmul.f32 %v8772_v39, %v1325_v51  ;;  %v2351_v36 = vmul.f32 %v8780_v13, %v1325_v51  ;;  %v3480_v52 = vadd.f32 %v8394_v7, %v3434_v37  ;;  %v3903_v28 = vpop.permute.xlu2 %3902 }
 0x265   : > { %v1970_v10 = vrot.slane %v8775_v41, 1  ;;  %v2722_v23 = vrot.slane %v8783_v29, 2  ;;  %v1472_v17 = vmul.f32 %v8800_v4, %v1325_v51  ;;  %v10065_v49 = vrot.slane %v8525_v2, 1 }
 0x266   : > { %3926 = vrot.lane.b32.xlu0 %v3845_v44, %s6107_s1  ;;  %3717 = vrot.lane.b32.xlu1 %v3636_v32, %s6108_s22  ;;  %v3856_v57 = vrot.slane %v8785_v58, 2  ;;  %v3647_v38 = vrot.slane %v8785_v58, 1  ;;  %v1968_v24 = vrot.slane %v1599_v42, 1  ;;  %v2720_v33 = vrot.slane %v2351_v36, 2 }
 0x267   : > { %v8819_v18 = vmul.f32 %v8772_v39, %v8756_v16  ;;  %v8822_v30 = vmax.f32 %v3480_v52, 0.0  ;;  %v10066_v9 = vrot.slane %v8525_v2, 2  ;;  %v8835_v29 = vmul.f32 %v8780_v13, %v8756_v16 }
 0x268   : > { %v3185_v3 = vld [vmem:[#allocation2 + $0x390] ss:$3 sm:$0xff]  ;;  %v3269_v26 = vld [vmem:[#allocation2 + $0x391] ss:$3 sm:$0xff]  ;;  %v3648_v22 = vsel %vm1730_vm0, %v10065_v49, %v3647_v38  ;;  %v1969_v37 = vsel %vm1730_vm0, %v1966_v15, %v1968_v24  ;;  %v1971_v45 = vsel %vm1730_vm0, %v1968_v24, %v1970_v10  ;;  %v2721_v15 = vsel %vm2482_vm1, %v2718_v62, %v2720_v33  ;;  %v3395_v24 = vld [vmem:[#allocation2 + $0x392] ss:$3 sm:$0xff] }
 0x269   : > { %3729 = vrot.lane.b32.xlu2 %v3648_v22, %s6108_s22  ;;  %v2223_v44 = vadd.f32 %v1969_v37, %v1471_v35  ;;  %v2224_v60 = vadd.f32 %v1971_v45, %v1472_v17  ;;  %v3857_v27 = vsel %vm2482_vm1, %v10066_v9, %v3856_v57  ;;  %v2723_v32 = vsel %vm2482_vm1, %v2720_v33, %v2722_v23 }
 0x26a   : > { %v1335_v14 = vpop.permute.xlu1 %1334  ;;  %v3314_v41 = vmax.f32 %v3185_v3, %v3269_v26  ;;  %v10067_v35 = vrot.slane %v7974_v19, 1  ;;  %v1974_v3 = vrot.slane %v8819_v18, 1  ;;  %v1473_v26 = vmul.f32 %v8800_v4, %v1330_v6 }
 0x26b   : > { %v2975_v51 = vadd.f32 %v2721_v15, %v2223_v44  ;;  %v2976_v42 = vadd.f32 %v2723_v32, %v2224_v60  ;;  %v1601_v36 = vmul.f32 %v8772_v39, %v1335_v14  ;;  %v3901_v52 = vpop.permute.xlu0 %3900  ;;  %v2353_v62 = vmul.f32 %v8780_v13, %v1335_v14 }
 0x26c   : > { %v3628_v50 = vsel %vm1730_vm0, %v3625_v47, %v10067_v35  ;;  %v4052_v33 = vsel %vm4034_vm3, %v4009_v43, %v3901_v52  ;;  %v3440_v17 = vmax.f32 %v3314_v41, %v3395_v24  ;;  %v3637_v47 = vrot.slane %v8822_v30, 1 }
 0x26d   : > { %3101 = vst.msk [vmem:[#allocation2 + $0x3b0] sm:$0xff] %vm2982_vm2, %v2975_v51  ;;  %v1972_v49 = vrot.slane %v1601_v36, 1  ;;  %v1474_v22 = vmul.f32 %v8800_v4, %v1335_v14  ;;  %v2724_v37 = vrot.slane %v2353_v62, 2  ;;  %5923 = vmatmul.msk.f32.gmra.mxu0 %vm4080_vm4, %v4052_v33  ;;  %v2726_v45 = vrot.slane %v8835_v29, 2 }
 0x26e   : > { %3709 = vrot.lane.b32.xlu0 %v3628_v50, %s6108_s22  ;;  %3938 = vrot.lane.b32.xlu1 %v3857_v27, %s6107_s1  ;;  %3102 = vst.msk [vmem:[#allocation2 + $0x3b8] sm:$0xff] %vm2982_vm2, %v2976_v42  ;;  %v3486_v43 = vadd.f32 %v8394_v7, %v3440_v17  ;;  %v10068_v44 = vrot.slane %v8599_v53, 1 }
 0x26f   : > { %v1973_v18 = vsel %vm1730_vm0, %v1970_v10, %v1972_v49  ;;  %v1975_v6 = vsel %vm1730_vm0, %v1972_v49, %v1974_v3  ;;  %v2725_v15 = vsel %vm2482_vm1, %v2722_v23, %v2724_v37  ;;  %v2727_v32 = vsel %vm2482_vm1, %v2724_v37, %v2726_v45 }
 0x270   : > { %v3624_v60 = vsel %vm1730_vm0, %v10068_v44, %v3623_v1  ;;  %v2225_v9 = vadd.f32 %v1973_v18, %v1473_v26  ;;  %v2226_v27 = vadd.f32 %v1975_v6, %v1474_v22  ;;  %v8866_v14 = vmax.f32 %v3486_v43, 0.0 }
 0x271   : > { %3705 = vrot.lane.b32.xlu2 %v3624_v60, %s6108_s22  ;;  %v3638_v10 = vsel %vm1730_vm0, %v3635_v8, %v3637_v47  ;;  %v10069_v23 = vrot.slane %v8599_v53, 2  ;;  %v10070_v22 = vrot.slane %v7974_v19, 2 }
 0x272   : > { %v2977_v41 = vadd.f32 %v2725_v15, %v2225_v9  ;;  %v2978_v29 = vadd.f32 %v2727_v32, %v2226_v27  ;;  %v3694_v51 = vpop.permute.xlu1 %3693  ;;  %v3858_v35 = vrot.slane %v8866_v14, 2  ;;  %v3846_v32 = vrot.slane %v8822_v30, 2 }
 0x273   : > { %v4010_v1 = vsel %vm2982_vm2, %v7828_v63, %v3694_v51  ;;  %v1345_v42 = vpop.permute.xlu0 %1344  ;;  %v3833_v36 = vsel %vm2482_vm1, %v10069_v23, %v3832_v0  ;;  %v3905_v63 = vpop.permute.xlu2 %3904  ;;  %v3649_v0 = vrot.slane %v8866_v14, 1  ;;  %v3837_v37 = vsel %vm2482_vm1, %v3834_v61, %v10070_v22 }
 0x274   : > { %3103 = vst.msk [vmem:[#allocation2 + $0x3c0] sm:$0xff] %vm2982_vm2, %v2977_v41  ;;  %v1603_v52 = vmul.f32 %v8772_v39, %v1345_v42  ;;  %v2355_v24 = vmul.f32 %v8780_v13, %v1345_v42  ;;  %v4053_v8 = vsel %vm4034_vm3, %v4010_v1, %v3903_v28  ;;  %v1475_v28 = vmul.f32 %v8800_v4, %v8756_v16 }
 0x275   : > { %3104 = vst.msk [vmem:[#allocation2 + $0x3c8] sm:$0xff] %vm2982_vm2, %v2978_v29  ;;  %v3187_v50 = vld [vmem:[#allocation2 + $0x3a8] ss:$3 sm:$0xff]  ;;  %v3271_v62 = vld [vmem:[#allocation2 + $0x3a9] ss:$3 sm:$0xff]  ;;  %5924 = vmatmul.msk.f32.gmra.mxu0 %vm4080_vm4, %v4053_v8  ;;  %v3859_v44 = vsel %vm2482_vm1, %v3856_v57, %v3858_v35  ;;  %v3650_v16 = vsel %vm1730_vm0, %v3647_v38, %v3649_v0 }
 0x276   : > { %3719 = vrot.lane.b32.xlu0 %v3638_v10, %s6108_s22  ;;  %3914 = vrot.lane.b32.xlu1 %v3833_v36, %s6107_s1  ;;  %v1976_v33 = vrot.slane %v1603_v52, 1  ;;  %v2728_v17 = vrot.slane %v2355_v24, 2  ;;  %v3315_v26 = vmax.f32 %v3187_v50, %v3271_v62  ;;  %v3397_v49 = vld [vmem:[#allocation2 + $0x3aa] ss:$3 sm:$0xff] }
 0x278   : > { %v1977_v43 = vsel %vm1730_vm0, %v1974_v3, %v1976_v33  ;;  %v3441_v18 = vmax.f32 %v3315_v26, %v3397_v49  ;;  %v2729_v60 = vsel %vm2482_vm1, %v2726_v45, %v2728_v17 }
 0x279   : > { %3918 = vrot.lane.b32.xlu2 %v3837_v37, %s6107_s1  ;;  %v2227_v6 = vadd.f32 %v1977_v43, %v1475_v28 }
 0x27a   : > { %v3696_v9 = vpop.permute.xlu1 %3695  ;;  %v3487_v61 = vadd.f32 %v8394_v7, %v3441_v18 }
 0x27b   : > { %v2979_v3 = vadd.f32 %v2729_v60, %v2227_v6  ;;  %v4011_v27 = vsel %vm2982_vm2, %v7871_v11, %v3696_v9  ;;  %v1350_v15 = vpop.permute.xlu0 %1349  ;;  %v3712_v51 = vpop.permute.xlu2 %3711  ;;  %v4393_v9 = vld [vmem:[#allocation3] ss:$3 sm:$0xff] }
 0x27c   : > { %v1604_v10 = vmul.f32 %v8772_v39, %v1350_v15  ;;  %v2356_v57 = vmul.f32 %v8780_v13, %v1350_v15  ;;  %v4054_v41 = vsel %vm4034_vm3, %v4011_v27, %v3905_v63  ;;  %v1477_v38 = vmul.f32 %v8800_v4, %v1350_v15 }
 0x27d   : > { %3105 = vst.msk [vmem:[#allocation2 + $0x3d0] sm:$0xff] %vm2982_vm2, %v2979_v3  ;;  %5925 = vmatmul.msk.f32.gmra.mxu0 %vm4080_vm4, %v4054_v41  ;;  %v8920_v11 = vmax.f32 %v3487_v61, 0.0  ;;  %v1476_v39 = vmul.f32 %v8800_v4, %v1345_v42  ;;  %v3847_v13 = vsel %vm2482_vm1, %v3844_v31, %v3846_v32  ;;  %v4263_v63 = vpop.f32.mrf.mxu0  ;;  %v10071_v31 = vrot.slane %v8076_v48, 2  ;;  %v4421_v61 = vld [vmem:[#allocation3 + $0x1] ss:$3 sm:$0xff] }
 0x27e   : > { %3940 = vrot.lane.b32.xlu0 %v3859_v44, %s6107_s1  ;;  %3731 = vrot.lane.b32.xlu1 %v3650_v16, %s6108_s22  ;;  %v1978_v45 = vrot.slane %v1604_v10, 1  ;;  %v2730_v29 = vrot.slane %v2356_v57, 2  ;;  %4363 = vst.msk [vmem:[#allocation3 + $0x68] sm:$0xff] %vm4034_vm3, %v4263_v63  ;;  %v4423_v44 = vld [vmem:[#allocation3 + $0x19] ss:$3 sm:$0xff]  ;;  %v4019_v3 = vsel %vm2982_vm2, %v7974_v19, %v3712_v51 }
 0x27f   : > { %v3651_v8 = vrot.slane %v8920_v11, 1  ;;  %v3849_v42 = vsel %vm2482_vm1, %v3846_v32, %v10071_v31  ;;  %v3860_v43 = vrot.slane %v8920_v11, 2  ;;  %v8971_v63 = vld [vmem:[%s9958_s4] ss:$0 sm:$0xff] }
 0x280   : > { %v1979_v1 = vsel %vm1730_vm0, %v1976_v33, %v1978_v45  ;;  %v2229_v23 = vadd.f32 %v1978_v45, %v1477_v38  ;;  %v2731_v52 = vsel %vm2482_vm1, %v2728_v17, %v2730_v29  ;;  %v10072_v33 = vrot.slane %v8076_v48, 1  ;;  %v4427_v31 = vld [vmem:[#allocation3 + $0x49] ss:$3 sm:$0xff] }
 0x281   : > { %3928 = vrot.lane.b32.xlu2 %v3847_v13, %s6107_s1  ;;  %v2228_v36 = vadd.f32 %v1979_v1, %v1476_v39  ;;  %v3652_v18 = vsel %vm1730_vm0, %v3649_v0, %v3651_v8  ;;  %v3861_v0 = vsel %vm2482_vm1, %v3858_v35, %v3860_v43  ;;  %v4465_v13 = vld [vmem:[#allocation3 + $0x1a] ss:$3 sm:$0xff] }
 0x282   : > { %v2981_v24 = vadd.f32 %v2730_v29, %v2229_v23  ;;  %v3907_v50 = vpop.permute.xlu1 %3906  ;;  %v3640_v26 = vsel %vm1730_vm0, %v3637_v47, %v10072_v33  ;;  %v4448_v29 = vmax.f32 %v4393_v9, %v4421_v61 }
 0x283   : > { %v2980_v62 = vadd.f32 %v2731_v52, %v2228_v36  ;;  %v3698_v4 = vpop.permute.xlu0 %3697  ;;  %v3933_v16 = vpop.permute.xlu2 %3932 }
 0x284   : > { %3108 = vst.msk [vmem:[#allocation2 + $0x3e0] sm:$0x3f] %vm3107_vm5, %v2981_v24  ;;  %v4012_v17 = vsel %vm2982_vm2, %v7883_v20, %v3698_v4  ;;  %v3189_v28 = vld [vmem:[#allocation2 + $0x3c0] ss:$3 sm:$0xff]  ;;  %v3273_v49 = vld [vmem:[#allocation2 + $0x3c1] ss:$3 sm:$0xff] }
 0x285   : > { %3106 = vst.msk [vmem:[#allocation2 + $0x3d8] sm:$0xff] %vm2982_vm2, %v2980_v62  ;;  %v4055_v22 = vsel %vm4034_vm3, %v4012_v17, %v3907_v50  ;;  %v3316_v37 = vmax.f32 %v3189_v28, %v3273_v49  ;;  %v3399_v47 = vld [vmem:[#allocation2 + $0x3c2] ss:$3 sm:$0xff]  ;;  %v4395_v20 = vld [vmem:[#allocation3 + $0x18] ss:$3 sm:$0xff] }
 0x286   : > { %3930 = vrot.lane.b32.xlu0 %v3849_v42, %s6107_s1  ;;  %3721 = vrot.lane.b32.xlu1 %v3640_v26, %s6108_s22  ;;  %v4449_v15 = vmax.f32 %v4395_v20, %v4423_v44  ;;  %v4463_v24 = vld [vmem:[#allocation3 + $0x2] ss:$3 sm:$0xff]  ;;  %v4467_v44 = vld [vmem:[#allocation3 + $0x32] ss:$3 sm:$0xff] }
 0x287   : > { %5926 = vmatmul.msk.f32.gmra.mxu0 %vm4080_vm4, %v4055_v22  ;;  %v3442_v6 = vmax.f32 %v3316_v37, %v3399_v47  ;;  %v4397_v50 = vld [vmem:[#allocation3 + $0x30] ss:$3 sm:$0xff]  ;;  %v4425_v62 = vld [vmem:[#allocation3 + $0x31] ss:$3 sm:$0xff]  ;;  %v4490_v33 = vmax.f32 %v4448_v29, %v4463_v24 }
 0x288   : > { %v4491_v23 = vmax.f32 %v4449_v15, %v4465_v13  ;;  %v4399_v4 = vld [vmem:[#allocation3 + $0x48] ss:$3 sm:$0xff]  ;;  %v4450_v22 = vmax.f32 %v4397_v50, %v4425_v62 }
 0x289   : > { %3733 = vrot.lane.b32.xlu2 %v3652_v18, %s6108_s22  ;;  %v3488_v60 = vadd.f32 %v8394_v7, %v3442_v6  ;;  %v4451_v37 = vmax.f32 %v4399_v4, %v4427_v31 }
 0x28a   : > { %v3921_v27 = vpop.permute.xlu1 %3920  ;;  %v4492_v61 = vmax.f32 %v4450_v22, %v4467_v44 }
 0x28b   : > { %v3724_v32 = vpop.permute.xlu0 %3723  ;;  %v4062_v10 = vsel %vm4034_vm3, %v4019_v3, %v3921_v27  ;;  %v8956_v57 = vmax.f32 %v3488_v60, 0.0  ;;  %v3714_v17 = vpop.permute.xlu2 %3713 }
 0x28c   : > { %v4025_v41 = vsel %vm2982_vm2, %v8076_v48, %v3724_v32  ;;  %5933 = vmatmul.msk.f32.vlgmr.msra.gmra.mxu2 %vm4080_vm4, %v4062_v10  ;;  %v3191_v38 = vld [vmem:[#allocation2 + $0x3d8] ss:$3 sm:$0xf]  ;;  %v3275_v45 = vld [vmem:[#allocation2 + $0x3d9] ss:$3 sm:$0xf] }
 0x28d   : > { %v4068_v19 = vsel %vm4034_vm3, %v4025_v41, %v3933_v16  ;;  %v3862_v35 = vrot.slane %v8956_v57, 2  ;;  %v3653_v51 = vrot.slane %v8956_v57, 1  ;;  %v3317_v39 = vmax.f32 %v3191_v38, %v3275_v45  ;;  %v3401_v1 = vld [vmem:[#allocation2 + $0x3da] ss:$3 sm:$0xf] }
 0x28e   : > { %3942 = vrot.lane.b32.xlu1 %v3861_v0, %s6107_s1  ;;  %5939 = vmatmul.msk.f32.vlgmr.msra.gmra.mxu3 %vm4080_vm4, %v4068_v19  ;;  %v4469_v16 = vld [vmem:[#allocation3 + $0x4a] ss:$3 sm:$0xff]  ;;  %v4020_v0 = vsel %vm2982_vm2, %v7948_v59, %v3714_v17  ;;  %v4510_v41 = vadd.f32 %v8971_v63, %v4492_v61 }
 0x28f   : > { %v3863_v48 = vsel %vm2482_vm1, %v3860_v43, %v3862_v35  ;;  %v3654_v36 = vsel %vm1730_vm0, %v3651_v8, %v3653_v51  ;;  %v3443_v52 = vmax.f32 %v3317_v39, %v3401_v1  ;;  %v4509_v8 = vadd.f32 %v8971_v63, %v4491_v23 }
 0x290   : > { %3944 = vrot.lane.b32.xlu0 %v3863_v48, %s6107_s1  ;;  %v9011_v1 = vmax.f32 %v4510_v41, 0.0 }
 0x291   : > { %3735 = vrot.lane.b32.xlu2 %v3654_v36, %s6108_s22  ;;  %v3489_v42 = vadd.f32 %v8394_v7, %v3443_v52  ;;  %v4508_v7 = vadd.f32 %v8971_v63, %v4490_v33  ;;  %v8986_v20 = vmax.f32 %v4509_v8, 0.0 }
 0x292   : > { %v3909_v26 = vpop.permute.xlu1 %3908  ;;  %v4622_v50 = vrot.slane %v9011_v1, 2 }
 0x293   : > { %v3700_v28 = vpop.permute.xlu0 %3699  ;;  %v8977_v49 = vmax.f32 %v3489_v42, 0.0  ;;  %v8993_v3 = vmax.f32 %v4508_v7, 0.0  ;;  %v4620_v10 = vrot.slane %v8986_v20, 2  ;;  %v4551_v29 = vrot.slane %v8986_v20, 1  ;;  %v3935_v19 = vpop.permute.xlu2 %3934 }
 0x294   : > { %v4013_v43 = vsel %vm2982_vm2, %v7903_v46, %v3700_v28  ;;  %v4493_v46 = vmax.f32 %v4451_v37, %v4469_v16 }
 0x295   : > { %v4056_v18 = vsel %vm4034_vm3, %v4013_v43, %v3909_v26  ;;  %v3864_v47 = vrot.slane %v8977_v49, 2  ;;  %v3655_v6 = vrot.slane %v8977_v49, 1  ;;  %v4550_v39 = vrot.slane %v8993_v3, 1 }
 0x296   : > { %5927 = vmatmul.msk.f32.gmra.mxu0 %vm4080_vm4, %v4056_v18  ;;  %v4511_v38 = vadd.f32 %v8971_v63, %v4493_v46  ;;  %v4623_v22 = vsel %vm2482_vm1, %v4620_v10, %v4622_v50 }
 0x297   : > { %v3865_v60 = vsel %vm2482_vm1, %v3862_v35, %v3864_v47  ;;  %v3656_v9 = vsel %vm1730_vm0, %v3653_v51, %v3655_v6  ;;  %v4266_v15 = vpop.f32.mrf.mxu0  ;;  %v4619_v35 = vrot.slane %v8993_v3, 2  ;;  %v4552_v48 = vsel %vm1730_vm0, %v4550_v39, %v4551_v29 }
 0x298   : > { %3739 = vrot.lane.b32.xlu0 %v3655_v6, %s6108_s22  ;;  %3737 = vrot.lane.b32.xlu1 %v3656_v9, %s6108_s22  ;;  %4364 = vst.msk [vmem:[#allocation3 + $0x70] sm:$0xff] %vm4034_vm3, %v4266_v15  ;;  %v9013_v23 = vmax.f32 %v4511_v38, 0.0  ;;  %s10013_s22 = smov 32  }
 0x299   : > { %3946 = vrot.lane.b32.xlu2 %v3865_v60, %s6107_s1  ;;  %v4621_v13 = vsel %vm2482_vm1, %v4619_v35, %v4620_v10 }
 0x29a   : > { %v3923_v27 = vpop.permute.xlu1 %3922  ;;  %v4555_v36 = vrot.slane %v9013_v23, 1  ;;  %v4624_v18 = vrot.slane %v9013_v23, 2 }
 0x29b   : > { %v4063_v32 = vsel %vm4034_vm3, %v4020_v0, %v3923_v27  ;;  %v3726_v45 = vpop.permute.xlu0 %3725  ;;  %v3716_v43 = vpop.permute.xlu2 %3715 }
 0x29c   : > { %5934 = vmatmul.msk.f32.gmra.mxu2 %vm4080_vm4, %v4063_v32  ;;  %v4026_v59 = vsel %vm2982_vm2, %v8087_v5, %v3726_v45  ;;  %v4553_v5 = vrot.slane %v9011_v1, 1  ;;  %v4625_v16 = vsel %vm2482_vm1, %v4622_v50, %v4624_v18  ;;  %v4021_v60 = vsel %vm2982_vm2, %v8247_v56, %v3716_v43  ;;  %v4719_v43 = vld [vmem:[%s9959_s5 + $0x10] sm:$0xff] }
 0x29d   : > { %v4069_v51 = vsel %vm4034_vm3, %v4026_v59, %v3935_v19 }
 0x29e   : > { %5940 = vmatmul.msk.f32.gmra.mxu3 %vm4080_vm4, %v4069_v51  ;;  %v4556_v8 = vsel %vm1730_vm0, %v4553_v5, %v4555_v36  ;;  %v4554_v17 = vsel %vm1730_vm0, %v4551_v29, %v4553_v5 }
 0x29f   : > { %v4401_v52 = vld [vmem:[#allocation3 + $0x60] ss:$3 sm:$0xff]  ;;  %v4429_v24 = vld [vmem:[#allocation3 + $0x61] ss:$3 sm:$0xff]  ;;  %v4471_v4 = vld [vmem:[#allocation3 + $0x62] ss:$3 sm:$0xff] }
 0x2a0   : > { %4646 = vrot.lane.b32.xlu0 %v4621_v13, %s10013_s22  ;;  %3948 = vrot.lane.b32.xlu1 %v3864_v47, %s6107_s1  ;;  %v4452_v62 = vmax.f32 %v4401_v52, %v4429_v24 }
 0x2a1   : > { %4577 = vrot.lane.b32.xlu2 %v4552_v48, %s6107_s1 }
 0x2a2   : > { %v4494_v33 = vmax.f32 %v4452_v62, %v4471_v4 }
 0x2a3   : > { %v3937_v61 = vpop.permute.xlu2 %3936 }
 0x2a4   : > { %v3911_v31 = vpop.permute.xlu1 %3910  ;;  %v4512_v37 = vadd.f32 %v8971_v63, %v4494_v33 }
 0x2a6   : > { %v3702_v42 = vpop.permute.xlu0 %3701 }
 0x2a7   : > { %v4014_v26 = vsel %vm2982_vm2, %v8140_v40, %v3702_v42  ;;  %v9033_v40 = vmax.f32 %v4512_v37, 0.0  ;;  %v4720_v37 = vld [vmem:[%s9959_s5 + $0x18] sm:$0xff] }
 0x2a8   : > { %v4057_v28 = vsel %vm4034_vm3, %v4014_v26, %v3911_v31  ;;  %4581 = vrot.lane.b32.xlu0 %v4556_v8, %s6107_s1  ;;  %4579 = vrot.lane.b32.xlu1 %v4554_v17, %s6107_s1  ;;  %v4722_v26 = vld [vmem:[%s9959_s5 + $0x28] sm:$0xff]  ;;  %v4721_v8 = vld [vmem:[%s9959_s5 + $0x20] sm:$0xff] }
 0x2a9   : > { %5928 = vmatmul.msk.f32.gmra.mxu0 %vm4080_vm4, %v4057_v28  ;;  %4648 = vrot.lane.b32.xlu2 %v4623_v22, %s10013_s22  ;;  %v4557_v47 = vrot.slane %v9033_v40, 1  ;;  %v4626_v6 = vrot.slane %v9033_v40, 2 }
 0x2aa   : > { %4776 = vmatpush.msrb.mxu1 %v4722_v26 }
 0x2ab   : > { %v4558_v7 = vsel %vm1730_vm0, %v4555_v36, %v4557_v47  ;;  %v4627_v44 = vsel %vm2482_vm1, %v4624_v18, %v4626_v6  ;;  %v3913_v10 = vpop.permute.xlu2 %3912 }
 0x2ac   : > { %4777 = vmatpush.msrb.mxu1 %v4721_v8 }
 0x2ae   : > { %4778 = vmatpush.msrb.mxu1 %v4720_v37 }
 0x2b0   : > { %4652 = vrot.lane.b32.xlu0 %v4627_v44, %s10013_s22  ;;  %4650 = vrot.lane.b32.xlu1 %v4625_v16, %s10013_s22 }
 0x2b1   : > { %4583 = vrot.lane.b32.xlu2 %v4558_v7, %s6107_s1  ;;  %4779 = vmatpush.msrb.mxu1 %v4719_v43 }
 0x2b3   : > { %v3925_v9 = vpop.permute.xlu1 %3924 }
 0x2b4   : > { %v4064_v46 = vsel %vm4034_vm3, %v4021_v60, %v3925_v9  ;;  %v3728_v0 = vpop.permute.xlu0 %3727 }
 0x2b5   : > { %5935 = vmatmul.msk.f32.gmra.mxu2 %vm4080_vm4, %v4064_v46  ;;  %v4027_v27 = vsel %vm2982_vm2, %v8315_v25, %v3728_v0 }
 0x2b6   : > { %v4070_v15 = vsel %vm4034_vm3, %v4027_v27, %v3937_v61  ;;  %v4717_v61 = vld [vmem:[%s9959_s5] sm:$0xff] }
 0x2b7   : > { %5941 = vmatmul.msk.f32.gmra.mxu3 %vm4080_vm4, %v4070_v15 }
 0x2bd   : > { %v3704_v32 = vpop.permute.xlu0 %3703 }
 0x2be   : > { %v4015_v41 = vsel %vm2982_vm2, %v8430_v21, %v3704_v32 }
 0x2bf   : > { %v4058_v56 = vsel %vm4034_vm3, %v4015_v41, %v3913_v10 }
 0x2c0   : > { %5929 = vmatmul.msk.f32.gmra.mxu0 %vm4080_vm4, %v4058_v56 }
 0x2c3   : > { %v3730_v38 = vpop.permute.xlu2 %3729 }
 0x2cb   : > { %v4269_v45 = vpop.f32.mrf.mxu0  ;;  %v3706_v35 = vpop.permute.xlu2 %3705 }
 0x2cc   : > { %4365 = vst.msk [vmem:[#allocation3 + $0x78] sm:$0xff] %vm4034_vm3, %v4269_v45  ;;  %v4016_v62 = vsel %vm2982_vm2, %v8599_v53, %v3706_v35 }
 0x2d0   : > { %v3708_v29 = vpop.permute.xlu1 %3707  ;;  %v3917_v19 = vpop.permute.xlu0 %3916 }
 0x2d1   : > { %v4017_v25 = vsel %vm2982_vm2, %v8706_v54, %v3708_v29  ;;  %v4028_v54 = vsel %vm2982_vm2, %v8525_v2, %v3730_v38 }
 0x2d2   : > { %v4060_v59 = vsel %vm4034_vm3, %v4017_v25, %v3917_v19 }
 0x2d3   : > { %5931 = vmatmul.msk.f32.vlgmr.msra.gmra.mxu1 %vm4080_vm4, %v4060_v59  ;;  %v3919_v5 = vpop.permute.xlu2 %3918 }
 0x2d8   : > { %v3718_v51 = vpop.permute.xlu1 %3717  ;;  %v3927_v21 = vpop.permute.xlu0 %3926 }
 0x2d9   : > { %v4022_v39 = vsel %vm2982_vm2, %v8513_v12, %v3718_v51 }
 0x2da   : > { %v4065_v13 = vsel %vm4034_vm3, %v4022_v39, %v3927_v21 }
 0x2db   : > { %5936 = vmatmul.msk.f32.gmra.mxu2 %vm4080_vm4, %v4065_v13  ;;  %v3929_v42 = vpop.permute.xlu2 %3928 }
 0x2dc   : > { %v4272_v48 = vpop.f32.mrf.mxu0 }
 0x2dd   : > { %4366 = vst.msk [vmem:[#allocation3 + $0x80] sm:$0xff] %vm4034_vm3, %v4272_v48 }
 0x2e0   : > { %v3939_v36 = vpop.permute.xlu1 %3938  ;;  %v3710_v52 = vpop.permute.xlu0 %3709 }
 0x2e1   : > { %v4018_v24 = vsel %vm2982_vm2, %v8714_v34, %v3710_v52  ;;  %v4071_v50 = vsel %vm4034_vm3, %v4028_v54, %v3939_v36 }
 0x2e2   : > { %5942 = vmatmul.msk.f32.gmra.mxu3 %vm4080_vm4, %v4071_v50  ;;  %v4061_v12 = vsel %vm4034_vm3, %v4018_v24, %v3919_v5 }
 0x2e3   : > { %5932 = vmatmul.msk.f32.gmra.mxu1 %vm4080_vm4, %v4061_v12  ;;  %v3734_v18 = vpop.permute.xlu2 %3733 }
 0x2e4   : > { %v4030_v25 = vsel %vm2982_vm2, %v8866_v14, %v3734_v18 }
 0x2e8   : > { %v3915_v4 = vpop.permute.xlu1 %3914  ;;  %v3720_v31 = vpop.permute.xlu0 %3719 }
 0x2e9   : > { %v4059_v2 = vsel %vm4034_vm3, %v4016_v62, %v3915_v4  ;;  %v4023_v33 = vsel %vm2982_vm2, %v8746_v55, %v3720_v31 }
 0x2ea   : > { %5930 = vmatmul.msk.f32.gmra.mxu0 %vm4080_vm4, %v4059_v2  ;;  %v4066_v34 = vsel %vm4034_vm3, %v4023_v33, %v3929_v42  ;;  %v4275_v53 = vpop.f32.mrf.mxu0 }
 0x2eb   : > { %5937 = vmatmul.msk.f32.gmra.mxu2 %vm4080_vm4, %v4066_v34  ;;  %4367 = vst.msk [vmem:[#allocation3 + $0x88] sm:$0xff] %vm4034_vm3, %v4275_v53  ;;  %v3736_v56 = vpop.permute.xlu2 %3735 }
 0x2f0   : > { %v3732_v55 = vpop.permute.xlu1 %3731  ;;  %v3941_v17 = vpop.permute.xlu0 %3940 }
 0x2f1   : > { %v4029_v28 = vsel %vm2982_vm2, %v8785_v58, %v3732_v55  ;;  %v4718_v58 = vld [vmem:[%s9959_s5 + $0x8] sm:$0xff] }
 0x2f2   : > { %v4072_v22 = vsel %vm4034_vm3, %v4029_v28, %v3941_v17  ;;  %v4278_v7 = vpop.f32.mrf.mxu0  ;;  %v4403_v44 = vld [vmem:[#allocation3 + $0x78] ss:$3 sm:$0xff]  ;;  %v4431_v16 = vld [vmem:[#allocation3 + $0x79] ss:$3 sm:$0xff]  ;;  %v4473_v9 = vld [vmem:[#allocation3 + $0x7a] ss:$3 sm:$0xff]  ;;  %4780 = vmatpush.msrb.mxu1 %v4718_v58 }
 0x2f3   : > { %5943 = vmatmul.msk.f32.gmra.mxu3 %vm4080_vm4, %v4072_v22  ;;  %4368 = vst.msk [vmem:[#allocation3 + $0x90] sm:$0xff] %vm4034_vm3, %v4278_v7  ;;  %v4453_v60 = vmax.f32 %v4403_v44, %v4431_v16 }
 0x2f4   : > { %4781 = vmatpush.msrb.mxu1 %v4717_v61 }
 0x2f5   : > { %v4495_v46 = vmax.f32 %v4453_v60, %v4473_v9 }
 0x2f7   : > { %v4513_v32 = vadd.f32 %v8971_v63, %v4495_v46 }
 0x2f8   : > { %v3722_v0 = vpop.permute.xlu1 %3721  ;;  %v3931_v27 = vpop.permute.xlu0 %3930 }
 0x2f9   : > { %v4024_v15 = vsel %vm2982_vm2, %v8822_v30, %v3722_v0  ;;  %v9115_v41 = vmax.f32 %v4513_v32, 0.0 }
 0x2fa   : > { %v4067_v10 = vsel %vm4034_vm3, %v4024_v15, %v3931_v27  ;;  %v4281_v38 = vpop.f32.mrf.mxu0 }
 0x2fb   : > { %5938 = vmatmul.msk.f32.gmra.mxu2 %vm4080_vm4, %v4067_v10  ;;  %4369 = vst.msk [vmem:[#allocation3 + $0x98] sm:$0xff] %vm4034_vm3, %v4281_v38  ;;  %v4628_v45 = vrot.slane %v9115_v41, 2  ;;  %v4559_v29 = vrot.slane %v9115_v41, 1 }
 0x2fd   : > { %v4629_v30 = vsel %vm2482_vm1, %v4626_v6, %v4628_v45  ;;  %v4560_v19 = vsel %vm1730_vm0, %v4557_v47, %v4559_v29  ;;  %v4031_v6 = vsel %vm2982_vm2, %v8920_v11, %v3736_v56  ;;  %v3947_v47 = vpop.permute.xlu2 %3946 }
 0x2fe   : > { %4654 = vrot.lane.b32.xlu2 %v4629_v30, %s10013_s22  ;;  %4585 = vrot.lane.b32.xlu1 %v4560_v19, %s6107_s1 }
 0x300   : > { %v3943_v59 = vpop.permute.xlu1 %3942 }
 0x301   : > { %v4073_v35 = vsel %vm4034_vm3, %v4030_v25, %v3943_v59 }
 0x302   : > { %5944 = vmatmul.msk.f32.gmra.mxu3 %vm4080_vm4, %v4073_v35  ;;  %v3945_v51 = vpop.permute.xlu0 %3944 }
 0x303   : > { %v4074_v39 = vsel %vm4034_vm3, %v4031_v6, %v3945_v51 }
 0x304   : > { %v4284_v21 = vpop.f32.mrf.mxu0 }
 0x305   : > { %4370 = vst.msk [vmem:[#allocation3 + $0xa0] sm:$0xff] %vm4034_vm3, %v4284_v21  ;;  %v4578_v12 = vpop.permute.xlu2 %4577 }
 0x30a   : > { %5945 = vmatmul.msk.f32.gmra.mxu3 %vm4080_vm4, %v4074_v39  ;;  %v3738_v14 = vpop.permute.xlu1 %3737  ;;  %v3740_v13 = vpop.permute.xlu0 %3739 }
 0x30b   : > { %v4032_v48 = vsel %vm2982_vm2, %v8956_v57, %v3738_v14  ;;  %v4688_v57 = vsel %vm4034_vm3, %v8993_v3, %v4578_v12  ;;  %v4033_v3 = vsel %vm2982_vm2, %v8977_v49, %v3740_v13 }
 0x30c   : > { %v4405_v5 = vld [vmem:[#allocation3 + $0x90] ss:$3 sm:$0xff]  ;;  %v4433_v54 = vld [vmem:[#allocation3 + $0x91] ss:$3 sm:$0xff]  ;;  %v4475_v52 = vld [vmem:[#allocation3 + $0x92] ss:$3 sm:$0xff]  ;;  %v4075_v24 = vsel %vm4034_vm3, %v4032_v48, %v3947_v47 }
 0x30d   : > { %v4454_v36 = vmax.f32 %v4405_v5, %v4433_v54  ;;  %v4649_v22 = vpop.permute.xlu2 %4648 }
 0x30f   : > { %v4496_v50 = vmax.f32 %v4454_v36, %v4475_v52  ;;  %v4305_v62 = vpop.f32.mrf.mxu2 }
 0x310   : > { %4377 = vst.msk [vmem:[#allocation3 + $0xd8] sm:$0xff] %vm4034_vm3, %v4305_v62 }
 0x311   : > { %v4514_v11 = vadd.f32 %v8971_v63, %v4496_v50  ;;  %v4323_v4 = vpop.f32.mrf.mxu3 }
 0x312   : > { %5946 = vmatmul.msk.f32.gmra.mxu3 %vm4080_vm4, %v4075_v24  ;;  %4383 = vst.msk [vmem:[#allocation3 + $0x108] sm:$0xff] %vm4034_vm3, %v4323_v4  ;;  %v3949_v31 = vpop.permute.xlu1 %3948  ;;  %v4647_v42 = vpop.permute.xlu0 %4646 }
 0x313   : > { %v9146_v2 = vmax.f32 %v4514_v11, 0.0  ;;  %v4703_v33 = vsel %vm4702_vm6, %v4688_v57, %v4647_v42  ;;  %v4287_v34 = vpop.f32.mrf.mxu0  ;;  %v4076_v8 = vsel %vm4034_vm3, %v4033_v3, %v3949_v31 }
 0x314   : > { %4371 = vst.msk [vmem:[#allocation3 + $0xa8] sm:$0xff] %vm4034_vm3, %v4287_v34  ;;  %5948 = vmatmul.msk.f32.vlgmr.msrb.gmra.mxu1 %vm4723_vm7, %v4703_v33 }
 0x315   : > { %v4630_v26 = vrot.slane %v9146_v2, 2  ;;  %v4561_v53 = vrot.slane %v9146_v2, 1  ;;  %v4584_v60 = vpop.permute.xlu2 %4583 }
 0x316   : > { %v4691_v61 = vsel %vm4034_vm3, %v9013_v23, %v4584_v60 }
 0x317   : > { %v4631_v55 = vsel %vm2482_vm1, %v4628_v45, %v4630_v26  ;;  %v4562_v17 = vsel %vm1730_vm0, %v4559_v29, %v4561_v53 }
 0x318   : > { %4656 = vrot.lane.b32.xlu1 %v4631_v55, %s10013_s22  ;;  %4587 = vrot.lane.b32.xlu0 %v4562_v17, %s6107_s1 }
 0x31a   : > { %5947 = vmatmul.msk.f32.gmra.mxu3 %vm4080_vm4, %v4076_v8  ;;  %v4580_v28 = vpop.permute.xlu1 %4579  ;;  %v4582_v49 = vpop.permute.xlu0 %4581 }
 0x31b   : > { %v4689_v37 = vsel %vm4034_vm3, %v8986_v20, %v4580_v28  ;;  %v4690_v7 = vsel %vm4034_vm3, %v9011_v1, %v4582_v49 }
 0x31c   : > { %v4704_v43 = vsel %vm4702_vm6, %v4689_v37, %v4649_v22 }
 0x31d   : > { %5949 = vmatmul.msk.f32.gmra.mxu1 %vm4723_vm7, %v4704_v43 }
 0x31f   : > { %v4308_v18 = vpop.f32.mrf.mxu2 }
 0x320   : > { %4378 = vst.msk [vmem:[#allocation3 + $0xe0] sm:$0xff] %vm4034_vm3, %v4308_v18 }
 0x321   : > { %v4326_v44 = vpop.f32.mrf.mxu3 }
 0x322   : > { %v4651_v16 = vpop.permute.xlu1 %4650  ;;  %4384 = vst.msk [vmem:[#allocation3 + $0x110] sm:$0xff] %vm4034_vm3, %v4326_v44  ;;  %v4653_v9 = vpop.permute.xlu0 %4652 }
 0x323   : > { %v4705_v58 = vsel %vm4702_vm6, %v4690_v7, %v4651_v16  ;;  %v4706_v46 = vsel %vm4702_vm6, %v4691_v61, %v4653_v9 }
 0x325   : > { %5950 = vmatmul.msk.f32.gmra.mxu1 %vm4723_vm7, %v4705_v58 }
 0x326   : > { %v4290_v20 = vpop.f32.mrf.mxu0 }
 0x327   : > { %4372 = vst.msk [vmem:[#allocation3 + $0xb0] sm:$0xff] %vm4034_vm3, %v4290_v20 }
 0x32d   : > { %5951 = vmatmul.msk.f32.gmra.mxu1 %vm4723_vm7, %v4706_v46 }
 0x338   : > { %v4311_v1 = vpop.f32.mrf.mxu2 }
 0x339   : > { %4379 = vst.msk [vmem:[#allocation3 + $0xe8] sm:$0xff] %vm4034_vm3, %v4311_v1 }
 0x33a   : > { %v4329_v0 = vpop.f32.mrf.mxu3 }
 0x33b   : > { %4385 = vst.msk [vmem:[#allocation3 + $0x118] sm:$0xff] %vm4034_vm3, %v4329_v0 }
 0x33d   : > { %v4293_v27 = vpop.f32.mrf.mxu0 }
 0x33e   : > { %4373 = vst.msk [vmem:[#allocation3 + $0xb8] sm:$0xff] %vm4034_vm3, %v4293_v27 }
 0x340   : > { %v4411_v6 = vld [vmem:[#allocation3 + $0xd8] ss:$3 sm:$0xff]  ;;  %v4439_v47 = vld [vmem:[#allocation3 + $0xd9] ss:$3 sm:$0xff]  ;;  %v4481_v13 = vld [vmem:[#allocation3 + $0xda] ss:$3 sm:$0xff] }
 0x341   : > { %v4457_v14 = vmax.f32 %v4411_v6, %v4439_v47 }
 0x342   : > { %v4415_v17 = vld [vmem:[#allocation3 + $0x108] ss:$3 sm:$0xff]  ;;  %v4443_v28 = vld [vmem:[#allocation3 + $0x109] ss:$3 sm:$0xff]  ;;  %v4485_v49 = vld [vmem:[#allocation3 + $0x10a] ss:$3 sm:$0xff] }
 0x343   : > { %v4499_v48 = vmax.f32 %v4457_v14, %v4481_v13  ;;  %v4459_v37 = vmax.f32 %v4415_v17, %v4443_v28 }
 0x345   : > { %v4407_v15 = vld [vmem:[#allocation3 + $0xa8] ss:$3 sm:$0xff]  ;;  %v4435_v32 = vld [vmem:[#allocation3 + $0xa9] ss:$3 sm:$0xff]  ;;  %v4477_v56 = vld [vmem:[#allocation3 + $0xaa] ss:$3 sm:$0xff]  ;;  %v4517_v24 = vadd.f32 %v8971_v63, %v4499_v48  ;;  %v4501_v7 = vmax.f32 %v4459_v37, %v4485_v49 }
 0x346   : > { %v4455_v10 = vmax.f32 %v4407_v15, %v4435_v32 }
 0x347   : > { %v9198_v31 = vmax.f32 %v4517_v24, 0.0  ;;  %v4519_v60 = vadd.f32 %v8971_v63, %v4501_v7 }
 0x348   : > { %v4497_v38 = vmax.f32 %v4455_v10, %v4477_v56 }
 0x349   : > { %v4567_v3 = vrot.slane %v9198_v31, 1  ;;  %v4636_v43 = vrot.slane %v9198_v31, 2  ;;  %v9221_v27 = vmax.f32 %v4519_v60, 0.0 }
 0x34a   : > { %v4515_v23 = vadd.f32 %v8971_v63, %v4497_v38 }
 0x34b   : > { %v4640_v48 = vrot.slane %v9221_v27, 2 }
 0x34c   : > { %v9180_v45 = vmax.f32 %v4515_v23, 0.0 }
 0x34e   : > { %v4632_v29 = vrot.slane %v9180_v45, 2  ;;  %v4563_v30 = vrot.slane %v9180_v45, 1 }
 0x350   : > { %v4299_v19 = vpop.f32.mrf.mxu1  ;;  %v4633_v25 = vsel %vm2482_vm1, %v4630_v26, %v4632_v29  ;;  %v4564_v59 = vsel %vm1730_vm0, %v4561_v53, %v4563_v30 }
 0x351   : > { %4375 = vst.msk [vmem:[#allocation3 + $0xc8] sm:$0xff] %vm4034_vm3, %v4299_v19  ;;  %4658 = vrot.lane.b32.xlu0 %v4633_v25, %s10013_s22  ;;  %4589 = vrot.lane.b32.xlu2 %v4564_v59, %s6107_s1  ;;  %v4571_v25 = vrot.slane %v9221_v27, 1 }
 0x358   : > { %v4655_v11 = vpop.permute.xlu2 %4654 }
 0x35e   : > { %v4314_v35 = vpop.f32.mrf.mxu2 }
 0x35f   : > { %4380 = vst.msk [vmem:[#allocation3 + $0xf0] sm:$0xff] %vm4034_vm3, %v4314_v35 }
 0x360   : > { %v4302_v51 = vpop.f32.mrf.mxu1 }
 0x361   : > { %4376 = vst.msk [vmem:[#allocation3 + $0xd0] sm:$0xff] %vm4034_vm3, %v4302_v51 }
 0x365   : > { %v4332_v21 = vpop.f32.mrf.mxu3 }
 0x366   : > { %4386 = vst.msk [vmem:[#allocation3 + $0x120] sm:$0xff] %vm4034_vm3, %v4332_v21 }
 0x367   : > { %v4296_v39 = vpop.f32.mrf.mxu0 }
 0x368   : > { %4374 = vst.msk [vmem:[#allocation3 + $0xc0] sm:$0xff] %vm4034_vm3, %v4296_v39 }
 0x36e   : > { %v4317_v5 = vpop.f32.mrf.mxu2 }
 0x36f   : > { %4381 = vst.msk [vmem:[#allocation3 + $0xf8] sm:$0xff] %vm4034_vm3, %v4317_v5  ;;  %v4409_v54 = vld [vmem:[#allocation3 + $0xc0] ss:$3 sm:$0xff]  ;;  %v4437_v36 = vld [vmem:[#allocation3 + $0xc1] ss:$3 sm:$0xff] }
 0x370   : > { %v4456_v52 = vmax.f32 %v4409_v54, %v4437_v36  ;;  %v4479_v50 = vld [vmem:[#allocation3 + $0xc2] ss:$3 sm:$0xff]  ;;  %v4586_v62 = vpop.permute.xlu1 %4585 }
 0x371   : > { %v4692_v4 = vsel %vm4034_vm3, %v9033_v40, %v4586_v62 }
 0x372   : > { %v4498_v12 = vmax.f32 %v4456_v52, %v4479_v50  ;;  %v4707_v42 = vsel %vm4702_vm6, %v4692_v4, %v4655_v11 }
 0x373   : > { %5952 = vmatmul.msk.f32.gmra.mxu1 %vm4723_vm7, %v4707_v42 }
 0x374   : > { %v4516_v57 = vadd.f32 %v8971_v63, %v4498_v12 }
 0x376   : > { %v4335_v33 = vpop.f32.mrf.mxu3  ;;  %v9202_v34 = vmax.f32 %v4516_v57, 0.0 }
 0x377   : > { %4387 = vst.msk [vmem:[#allocation3 + $0x128] sm:$0xff] %vm4034_vm3, %v4335_v33 }
 0x378   : > { %v4634_v26 = vrot.slane %v9202_v34, 2  ;;  %v4565_v53 = vrot.slane %v9202_v34, 1 }
 0x37a   : > { %v4635_v40 = vsel %vm2482_vm1, %v4632_v29, %v4634_v26  ;;  %v4568_v8 = vsel %vm1730_vm0, %v4565_v53, %v4567_v3  ;;  %v4566_v55 = vsel %vm1730_vm0, %v4563_v30, %v4565_v53  ;;  %v4637_v18 = vsel %vm2482_vm1, %v4634_v26, %v4636_v43 }
 0x37b   : > { %4660 = vrot.lane.b32.xlu2 %v4635_v40, %s10013_s22  ;;  %4593 = vrot.lane.b32.xlu0 %v4568_v8, %s6107_s1 }
 0x37c   : > { %4591 = vrot.lane.b32.xlu1 %v4566_v55, %s6107_s1 }
 0x37e   : > { %v4320_v22 = vpop.f32.mrf.mxu2 }
 0x37f   : > { %4382 = vst.msk [vmem:[#allocation3 + $0x100] sm:$0xff] %vm4034_vm3, %v4320_v22 }
 0x384   : > { %4662 = vrot.lane.b32.xlu1 %v4637_v18, %s10013_s22 }
 0x385   : > { %v4338_v44 = vpop.f32.mrf.mxu3 }
 0x386   : > { %4388 = vst.msk [vmem:[#allocation3 + $0x130] sm:$0xff] %vm4034_vm3, %v4338_v44  ;;  %v4413_v16 = vld [vmem:[#allocation3 + $0xf0] ss:$3 sm:$0xff]  ;;  %v4441_v58 = vld [vmem:[#allocation3 + $0xf1] ss:$3 sm:$0xff] }
 0x387   : > { %v4458_v20 = vmax.f32 %v4413_v16, %v4441_v58  ;;  %v4483_v9 = vld [vmem:[#allocation3 + $0xf2] ss:$3 sm:$0xff] }
 0x389   : > { %v4500_v61 = vmax.f32 %v4458_v20, %v4483_v9 }
 0x38a   : > { %v4657_v46 = vpop.permute.xlu1 %4656  ;;  %v4588_v1 = vpop.permute.xlu0 %4587 }
 0x38b   : > { %v4518_v0 = vadd.f32 %v8971_v63, %v4500_v61  ;;  %v4693_v15 = vsel %vm4034_vm3, %v9115_v41, %v4588_v1 }
 0x38c   : > { %v4708_v32 = vsel %vm4702_vm6, %v4693_v15, %v4657_v46 }
 0x38d   : > { %v9226_v10 = vmax.f32 %v4518_v0, 0.0  ;;  %v4341_v56 = vpop.f32.mrf.mxu3  ;;  %v4417_v38 = vld [vmem:[#allocation3 + $0x120] ss:$3 sm:$0xff]  ;;  %v4445_v23 = vld [vmem:[#allocation3 + $0x121] ss:$3 sm:$0xff]  ;;  %5953 = vmatmul.msk.f32.gmra.mxu1 %vm4723_vm7, %v4708_v32 }
 0x38e   : > { %4389 = vst.msk [vmem:[#allocation3 + $0x138] sm:$0xff] %vm4034_vm3, %v4341_v56  ;;  %v4460_v29 = vmax.f32 %v4417_v38, %v4445_v23  ;;  %v4487_v59 = vld [vmem:[#allocation3 + $0x122] ss:$3 sm:$0xff] }
 0x38f   : > { %v4638_v30 = vrot.slane %v9226_v10, 2  ;;  %v4569_v19 = vrot.slane %v9226_v10, 1 }
 0x390   : > { %v4502_v41 = vmax.f32 %v4460_v29, %v4487_v59  ;;  %v9292_v29 = vld [vmem:[%s9960_s6] ss:$0 sm:$0xff] }
 0x391   : > { %v4639_v35 = vsel %vm2482_vm1, %v4636_v43, %v4638_v30  ;;  %v4572_v51 = vsel %vm1730_vm0, %v4569_v19, %v4571_v25  ;;  %v4570_v21 = vsel %vm1730_vm0, %v4567_v3, %v4569_v19  ;;  %v4783_v47 = vpop.f32.mrf.mxu1  ;;  %v4641_v52 = vsel %vm2482_vm1, %v4638_v30, %v4640_v48 }
 0x392   : > { %4664 = vrot.lane.b32.xlu0 %v4639_v35, %s10013_s22  ;;  %4597 = vrot.lane.b32.xlu1 %v4572_v51, %s6107_s1  ;;  %v4520_v6 = vadd.f32 %v8971_v63, %v4502_v41  ;;  %4825 = vst.msk [vmem:[#allocation4] sm:$0xff] %vm4702_vm6, %v4783_v47 }
 0x393   : > { %4595 = vrot.lane.b32.xlu2 %v4570_v21, %s6107_s1 }
 0x394   : > { %v9241_v39 = vmax.f32 %v4520_v6, 0.0 }
 0x395   : > { %v4344_v14 = vpop.f32.mrf.mxu3 }
 0x396   : > { %v4573_v13 = vrot.slane %v9241_v39, 1  ;;  %v4642_v5 = vrot.slane %v9241_v39, 2  ;;  %4390 = vst.msk [vmem:[#allocation3 + $0x140] sm:$0xff] %vm4034_vm3, %v4344_v14 }
 0x398   : > { %v4574_v54 = vsel %vm1730_vm0, %v4571_v25, %v4573_v13  ;;  %v4643_v36 = vsel %vm2482_vm1, %v4640_v48, %v4642_v5 }
 0x39a   : > { %4599 = vrot.lane.b32.xlu0 %v4574_v54, %s6107_s1  ;;  %4668 = vrot.lane.b32.xlu1 %v4643_v36, %s10013_s22  ;;  %v4786_v24 = vpop.f32.mrf.mxu1 }
 0x39b   : > { %4666 = vrot.lane.b32.xlu2 %v4641_v52, %s10013_s22  ;;  %4826 = vst.msk [vmem:[#allocation4 + $0x8] sm:$0xff] %vm4702_vm6, %v4786_v24 }
 0x39d   : > { %v4347_v50 = vpop.f32.mrf.mxu3  ;;  %v4419_v62 = vld [vmem:[#allocation3 + $0x138] ss:$3 sm:$0x3f] }
 0x39e   : > { %4392 = vst.msk [vmem:[#allocation3 + $0x148] sm:$0x3] %vm4391_vm8, %v4347_v50 }
 0x3a2   : > { %v4789_v12 = vpop.f32.mrf.mxu1 }
 0x3a3   : > { %4827 = vst.msk [vmem:[#allocation4 + $0x10] sm:$0xff] %vm4702_vm6, %v4789_v12 }
 0x3a5   : > { %v4447_v11 = vld [vmem:[#allocation3 + $0x139] ss:$3 sm:$0x3f]  ;;  %v4489_v57 = vld [vmem:[#allocation3 + $0x13a] ss:$3 sm:$0x3f] }
 0x3a6   : > { %v4461_v4 = vmax.f32 %v4419_v62, %v4447_v11 }
 0x3a8   : > { %v4503_v42 = vmax.f32 %v4461_v4, %v4489_v57 }
 0x3aa   : > { %v4521_v33 = vadd.f32 %v8971_v63, %v4503_v42  ;;  %v4792_v26 = vpop.f32.mrf.mxu1  ;;  %v4840_v46 = vld [vmem:[#allocation4] ss:$3 sm:$0xff]  ;;  %v4850_v1 = vld [vmem:[#allocation4 + $0x1] ss:$3 sm:$0xff] }
 0x3ab   : > { %4828 = vst.msk [vmem:[#allocation4 + $0x18] sm:$0xff] %vm4702_vm6, %v4792_v26  ;;  %v4590_v63 = vpop.permute.xlu2 %4589  ;;  %v4859_v15 = vmax.f32 %v4840_v46, %v4850_v1  ;;  %v4966_v26 = vld [vmem:[%s9961_s7 + $0x48] sm:$0xff] }
 0x3ac   : > { %v9257_v53 = vmax.f32 %v4521_v33, 0.0  ;;  %v4694_v17 = vsel %vm4034_vm3, %v9146_v2, %v4590_v63  ;;  %v4967_v33 = vld [vmem:[%s9961_s7 + $0x50] sm:$0xff] }
 0x3ae   : > { %v4575_v3 = vrot.slane %v9257_v53, 1  ;;  %v4644_v40 = vrot.slane %v9257_v53, 2 }
 0x3b0   : > { %4603 = vrot.lane.b32.xlu1 %v4575_v3, %s6107_s1  ;;  %v4645_v8 = vsel %vm2482_vm1, %v4642_v5, %v4644_v40  ;;  %v4576_v55 = vsel %vm1730_vm0, %v4573_v13, %v4575_v3  ;;  %v4965_v3 = vld [vmem:[%s9961_s7 + $0x40] sm:$0xff] }
 0x3b1   : > { %4670 = vrot.lane.b32.xlu0 %v4645_v8, %s10013_s22  ;;  %4601 = vrot.lane.b32.xlu2 %v4576_v55, %s6107_s1  ;;  %v4963_v8 = vld [vmem:[%s9961_s7 + $0x30] sm:$0xff]  ;;  %v4962_v55 = vld [vmem:[%s9961_s7 + $0x28] sm:$0xff] }
 0x3b9   : > { %4672 = vrot.lane.b32.xlu2 %v4644_v40, %s10013_s22  ;;  %v4964_v40 = vld [vmem:[%s9961_s7 + $0x38] sm:$0xff] }
 0x3c3   : > { %v4659_v28 = vpop.permute.xlu0 %4658 }
 0x3c4   : > { %v4709_v22 = vsel %vm4702_vm6, %v4694_v17, %v4659_v28  ;;  %v4961_v17 = vld [vmem:[%s9961_s7 + $0x20] sm:$0xff]  ;;  %v4960_v28 = vld [vmem:[%s9961_s7 + $0x18] sm:$0xff] }
 0x3c5   : > { %5954 = vmatmul.msk.f32.gmra.mxu1 %vm4723_vm7, %v4709_v22  ;;  %v4959_v22 = vld [vmem:[%s9961_s7 + $0x10] sm:$0xff] }
 0x3d5   : > { %v4661_v43 = vpop.permute.xlu2 %4660 }
 0x3ed   : > { %v4594_v44 = vpop.permute.xlu0 %4593  ;;  %v4596_v20 = vpop.permute.xlu2 %4595 }
 0x3ee   : > { %v4592_v37 = vpop.permute.xlu1 %4591  ;;  %v4696_v2 = vsel %vm4034_vm3, %v9202_v34, %v4594_v44 }
 0x3ef   : > { %v4695_v49 = vsel %vm4034_vm3, %v9180_v45, %v4592_v37  ;;  %v4697_v45 = vsel %vm4034_vm3, %v9198_v31, %v4596_v20  ;;  %v4865_v31 = vld [vmem:[#allocation4 + $0x2] ss:$3 sm:$0xff] }
 0x3f0   : > { %v4710_v18 = vsel %vm4702_vm6, %v4695_v49, %v4661_v43  ;;  %v4795_v7 = vpop.f32.mrf.mxu1  ;;  %v4874_v23 = vmax.f32 %v4859_v15, %v4865_v31  ;;  %v4958_v37 = vld [vmem:[%s9961_s7 + $0x8] sm:$0xff] }
 0x3f1   : > { %5955 = vmatmul.msk.f32.gmra.mxu1 %vm4723_vm7, %v4710_v18  ;;  %4829 = vst.msk [vmem:[#allocation4 + $0x20] sm:$0xff] %vm4702_vm6, %v4795_v7  ;;  %v4957_v18 = vld [vmem:[%s9961_s7] sm:$0xff] }
 0x3f2   : > { %v4883_v41 = vadd.f32 %v9292_v29, %v4874_v23 }
 0x3f4   : > { %v9300_v47 = vmax.f32 %v4883_v41, 0.0 }
 0x3f5   : > { %v4667_v32 = vpop.permute.xlu2 %4666 }
 0x3f6   : > { %v4663_v16 = vpop.permute.xlu1 %4662  ;;  %v4922_v13 = vrot.slane %v9300_v47, 2  ;;  %v4898_v48 = vrot.slane %v9300_v47, 1 }
 0x3f7   : > { %v4711_v58 = vsel %vm4702_vm6, %v4696_v2, %v4663_v16 }
 0x3f9   : > { %5956 = vmatmul.msk.f32.gmra.mxu1 %vm4723_vm7, %v4711_v58 }
 0x404   : > { %v4665_v60 = vpop.permute.xlu0 %4664  ;;  %v4598_v61 = vpop.permute.xlu1 %4597 }
 0x405   : > { %v4712_v9 = vsel %vm4702_vm6, %v4697_v45, %v4665_v60  ;;  %v4698_v34 = vsel %vm4034_vm3, %v9226_v10, %v4598_v61 }
 0x406   : > { %5957 = vmatmul.msk.f32.gmra.mxu1 %vm4723_vm7, %v4712_v9  ;;  %v4713_v56 = vsel %vm4702_vm6, %v4698_v34, %v4667_v32 }
 0x40a   : > { %v4798_v0 = vpop.f32.mrf.mxu1 }
 0x40b   : > { %4830 = vst.msk [vmem:[#allocation4 + $0x28] sm:$0xff] %vm4702_vm6, %v4798_v0  ;;  %v4602_v52 = vpop.permute.xlu2 %4601 }
 0x40c   : > { %v4600_v38 = vpop.permute.xlu0 %4599  ;;  %v4669_v30 = vpop.permute.xlu1 %4668  ;;  %v4700_v24 = vsel %vm4034_vm3, %v9241_v39, %v4602_v52  ;;  %v4968_v39 = vld [vmem:[%s9961_s7 + $0x58] sm:$0xff] }
 0x40d   : > { %v4699_v10 = vsel %vm4034_vm3, %v9221_v27, %v4600_v38  ;;  %4989 = vmatpush.msrb.mxu2 %v4968_v39 }
 0x40e   : > { %5958 = vmatmul.msk.f32.gmra.mxu1 %vm4723_vm7, %v4713_v56  ;;  %v4714_v51 = vsel %vm4702_vm6, %v4699_v10, %v4669_v30 }
 0x40f   : > { %4990 = vmatpush.msrb.mxu2 %v4967_v33 }
 0x411   : > { %4991 = vmatpush.msrb.mxu2 %v4966_v26 }
 0x412   : > { %v4842_v19 = vld [vmem:[#allocation4 + $0x18] ss:$3 sm:$0xff]  ;;  %v4852_v25 = vld [vmem:[#allocation4 + $0x19] ss:$3 sm:$0xff]  ;;  %v4867_v35 = vld [vmem:[#allocation4 + $0x1a] ss:$3 sm:$0xff] }
 0x413   : > { %v4860_v59 = vmax.f32 %v4842_v19, %v4852_v25  ;;  %v4673_v4 = vpop.permute.xlu2 %4672  ;;  %4992 = vmatpush.msrb.mxu2 %v4965_v3 }
 0x415   : > { %v4875_v21 = vmax.f32 %v4860_v59, %v4867_v35  ;;  %4993 = vmatpush.msrb.mxu2 %v4964_v40 }
 0x416   : > { %5959 = vmatmul.msk.f32.gmra.mxu1 %vm4723_vm7, %v4714_v51 }
 0x417   : > { %v4884_v6 = vadd.f32 %v9292_v29, %v4875_v21  ;;  %4994 = vmatpush.msrb.mxu2 %v4963_v8 }
 0x419   : > { %v9302_v14 = vmax.f32 %v4884_v6, 0.0  ;;  %4995 = vmatpush.msrb.mxu2 %v4962_v55 }
 0x41b   : > { %v4923_v27 = vrot.slane %v9302_v14, 2  ;;  %v4899_v5 = vrot.slane %v9302_v14, 1  ;;  %4996 = vmatpush.msrb.mxu2 %v4961_v17 }
 0x41d   : > { %v4924_v54 = vsel %vm2482_vm1, %v4922_v13, %v4923_v27  ;;  %v4900_v36 = vsel %vm1730_vm0, %v4898_v48, %v4899_v5  ;;  %4997 = vmatpush.msrb.mxu2 %v4960_v28 }
 0x41e   : > { %4931 = vrot.lane.b32.xlu1 %v4924_v54, %s10014_s2  ;;  %4907 = vrot.lane.b32.xlu0 %v4900_v36, %s10013_s22 }
 0x41f   : > { %4998 = vmatpush.msrb.mxu2 %v4959_v22  ;;  %v5077_v22 = vld [vmem:[%s9963_s9 + $0x78] sm:$0xff] }
 0x420   : > { %5090 = vmatpush.msrb.mxu3 %v5077_v22  ;;  %v5158_v22 = vld [vmem:[%s9965_s11 + $0x38] sm:$0xff] }
 0x421   : > { %4999 = vmatpush.msrb.mxu2 %v4958_v37  ;;  %v5076_v37 = vld [vmem:[%s9963_s9 + $0x70] sm:$0xff] }
 0x422   : > { %v4604_v62 = vpop.permute.xlu1 %4603  ;;  %5091 = vmatpush.msrb.mxu3 %v5076_v37  ;;  %v5157_v37 = vld [vmem:[%s9965_s11 + $0x30] sm:$0xff] }
 0x423   : > { %v4671_v50 = vpop.permute.xlu0 %4670  ;;  %v4701_v11 = vsel %vm4034_vm3, %v9257_v53, %v4604_v62  ;;  %5000 = vmatpush.msrb.mxu2 %v4957_v18 }
 0x424   : > { %v4715_v12 = vsel %vm4702_vm6, %v4700_v24, %v4671_v50  ;;  %v4716_v57 = vsel %vm4702_vm6, %v4701_v11, %v4673_v4 }
 0x425   : > { %5960 = vmatmul.msk.f32.gmra.mxu1 %vm4723_vm7, %v4715_v12 }
 0x42d   : > { %5961 = vmatmul.msk.f32.gmra.mxu1 %vm4723_vm7, %v4716_v57 }
 0x442   : > { %v4801_v42 = vpop.f32.mrf.mxu1 }
 0x443   : > { %4831 = vst.msk [vmem:[#allocation4 + $0x30] sm:$0xff] %vm4702_vm6, %v4801_v42 }
 0x46e   : > { %v4804_v53 = vpop.f32.mrf.mxu1 }
 0x46f   : > { %4832 = vst.msk [vmem:[#allocation4 + $0x38] sm:$0xff] %vm4702_vm6, %v4804_v53 }
 0x476   : > { %v4807_v63 = vpop.f32.mrf.mxu1 }
 0x477   : > { %4833 = vst.msk [vmem:[#allocation4 + $0x40] sm:$0xff] %vm4702_vm6, %v4807_v63 }
 0x47e   : > { %v4844_v43 = vld [vmem:[#allocation4 + $0x30] ss:$3 sm:$0xff]  ;;  %v4854_v49 = vld [vmem:[#allocation4 + $0x31] ss:$3 sm:$0xff]  ;;  %v4869_v44 = vld [vmem:[#allocation4 + $0x32] ss:$3 sm:$0xff] }
 0x47f   : > { %v4861_v7 = vmax.f32 %v4844_v43, %v4854_v49  ;;  %v5075_v43 = vld [vmem:[%s9963_s9 + $0x68] sm:$0xff]  ;;  %v5074_v49 = vld [vmem:[%s9963_s9 + $0x60] sm:$0xff] }
 0x480   : > { %5092 = vmatpush.msrb.mxu3 %v5075_v43  ;;  %v5156_v43 = vld [vmem:[%s9965_s11 + $0x28] sm:$0xff] }
 0x481   : > { %v4876_v2 = vmax.f32 %v4861_v7, %v4869_v44  ;;  %v5073_v7 = vld [vmem:[%s9963_s9 + $0x58] sm:$0xff]  ;;  %v5072_v44 = vld [vmem:[%s9963_s9 + $0x50] sm:$0xff] }
 0x482   : > { %5093 = vmatpush.msrb.mxu3 %v5074_v49  ;;  %v5155_v49 = vld [vmem:[%s9965_s11 + $0x20] sm:$0xff] }
 0x483   : > { %v4810_v16 = vpop.f32.mrf.mxu1  ;;  %v4885_v58 = vadd.f32 %v9292_v29, %v4876_v2 }
 0x484   : > { %4834 = vst.msk [vmem:[#allocation4 + $0x48] sm:$0xff] %vm4702_vm6, %v4810_v16  ;;  %5094 = vmatpush.msrb.mxu3 %v5073_v7  ;;  %v9593_v7 = vld [vmem:[%s9965_s11 + $0xf8] sm:$0xff] }
 0x485   : > { %v4890_v20 = vmax.f32 %v4885_v58, 0.0  ;;  %v5071_v58 = vld [vmem:[%s9963_s9 + $0x48] sm:$0xff]  ;;  %5452 = vmatpush.msra.mxu1 %v9593_v7 }
 0x486   : > { %5095 = vmatpush.msrb.mxu3 %v5072_v44  ;;  %v9599_v44 = vld [vmem:[%s9965_s11 + $0xf0] sm:$0xff] }
 0x487   : > { %v4925_v45 = vrot.slane %v4890_v20, 2  ;;  %v4901_v60 = vrot.slane %v4890_v20, 1  ;;  %5453 = vmatpush.msra.mxu1 %v9599_v44 }
 0x488   : > { %5096 = vmatpush.msrb.mxu3 %v5071_v58  ;;  %v9611_v58 = vld [vmem:[%s9965_s11 + $0xe8] sm:$0xff] }
 0x489   : > { %v4926_v9 = vsel %vm2482_vm1, %v4923_v27, %v4925_v45  ;;  %v4902_v61 = vsel %vm1730_vm0, %v4899_v5, %v4901_v60  ;;  %5454 = vmatpush.msra.mxu1 %v9611_v58 }
 0x48a   : > { %4933 = vrot.lane.b32.xlu0 %v4926_v9, %s10014_s2  ;;  %4909 = vrot.lane.b32.xlu2 %v4902_v61, %s10013_s22  ;;  %v5069_v9 = vld [vmem:[%s9963_s9 + $0x38] sm:$0xff] }
 0x48b   : > { %v4813_v46 = vpop.f32.mrf.mxu1 }
 0x48c   : > { %4835 = vst.msk [vmem:[#allocation4 + $0x50] sm:$0xff] %vm4702_vm6, %v4813_v46  ;;  %v5068_v46 = vld [vmem:[%s9963_s9 + $0x30] sm:$0xff] }
 0x490   : > { %v4932_v1 = vpop.permute.xlu1 %4931  ;;  %v4908_v34 = vpop.permute.xlu0 %4907 }
 0x491   : > { %v4946_v0 = vsel %vm4702_vm6, %v9300_v47, %v4908_v34 }
 0x492   : > { %v4952_v15 = vsel %vm4951_vm9, %v4946_v0, %v4932_v1  ;;  %v6041_v1 = vld [vmem:[%s9962_s8] ss:$0 sm:$0xff]  ;;  %v5067_v0 = vld [vmem:[%s9963_s9 + $0x28] sm:$0xff] }
 0x493   : > { %v4816_v32 = vpop.f32.mrf.mxu1  ;;  %5962 = vmatmul.msk.f32.vlgmr.msrb.gmra.mxu2 %vm4969_vm10, %v4952_v15 }
 0x494   : > { %4836 = vst.msk [vmem:[#allocation4 + $0x58] sm:$0xff] %vm4702_vm6, %v4816_v32 }
 0x49b   : > { %v4846_v56 = vld [vmem:[#allocation4 + $0x48] ss:$3 sm:$0xff]  ;;  %v4856_v31 = vld [vmem:[#allocation4 + $0x49] ss:$3 sm:$0xff]  ;;  %v4871_v23 = vld [vmem:[#allocation4 + $0x4a] ss:$3 sm:$0xff] }
 0x49c   : > { %v4862_v38 = vmax.f32 %v4846_v56, %v4856_v31 }
 0x49e   : > { %v4877_v30 = vmax.f32 %v4862_v38, %v4871_v23 }
 0x4a0   : > { %v4886_v10 = vadd.f32 %v9292_v29, %v4877_v30 }
 0x4a2   : > { %v4891_v19 = vmax.f32 %v4886_v10, 0.0  ;;  %v4819_v25 = vpop.f32.mrf.mxu1 }
 0x4a3   : > { %4837 = vst.msk [vmem:[#allocation4 + $0x60] sm:$0xff] %vm4702_vm6, %v4819_v25 }
 0x4a4   : > { %v4927_v59 = vrot.slane %v4891_v19, 2  ;;  %v4903_v41 = vrot.slane %v4891_v19, 1 }
 0x4a6   : > { %v4928_v35 = vsel %vm2482_vm1, %v4925_v45, %v4927_v59  ;;  %v4904_v51 = vsel %vm1730_vm0, %v4901_v60, %v4903_v41 }
 0x4a7   : > { %4935 = vrot.lane.b32.xlu2 %v4928_v35, %s10014_s2  ;;  %4911 = vrot.lane.b32.xlu1 %v4904_v51, %s10013_s22  ;;  %v5066_v35 = vld [vmem:[%s9963_s9 + $0x20] sm:$0xff]  ;;  %v5065_v51 = vld [vmem:[%s9963_s9 + $0x18] sm:$0xff] }
 0x4aa   : > { %v4822_v21 = vpop.f32.mrf.mxu1 }
 0x4ab   : > { %4839 = vst.msk [vmem:[#allocation4 + $0x68] sm:$0xf] %vm4838_vm11, %v4822_v21  ;;  %v5064_v21 = vld [vmem:[%s9963_s9 + $0x10] sm:$0xff] }
 0x4b2   : > { %v4848_v6 = vld [vmem:[#allocation4 + $0x60] ss:$3 sm:$0xf]  ;;  %v4858_v47 = vld [vmem:[#allocation4 + $0x61] ss:$3 sm:$0xf] }
 0x4b3   : > { %v4863_v13 = vmax.f32 %v4848_v6, %v4858_v47  ;;  %v4873_v27 = vld [vmem:[#allocation4 + $0x62] ss:$3 sm:$0xf]  ;;  %v5063_v6 = vld [vmem:[%s9963_s9 + $0x8] sm:$0xff] }
 0x4b4   : > { %v5062_v47 = vld [vmem:[%s9963_s9] sm:$0xff] }
 0x4b5   : > { %v4878_v48 = vmax.f32 %v4863_v13, %v4873_v27  ;;  %v5085_v13 = vld [vmem:[%s9963_s9 + $0xb8] sm:$0xff]  ;;  %v5084_v27 = vld [vmem:[%s9963_s9 + $0xb0] sm:$0xff] }
 0x4b7   : > { %v4887_v5 = vadd.f32 %v9292_v29, %v4878_v48  ;;  %v5083_v48 = vld [vmem:[%s9963_s9 + $0xa8] sm:$0xff] }
 0x4b9   : > { %v4892_v54 = vmax.f32 %v4887_v5, 0.0  ;;  %v5082_v5 = vld [vmem:[%s9963_s9 + $0xa0] sm:$0xff] }
 0x4bb   : > { %v4905_v36 = vrot.slane %v4892_v54, 1  ;;  %v4929_v52 = vrot.slane %v4892_v54, 2 }
 0x4bd   : > { %4915 = vrot.lane.b32.xlu2 %v4905_v36, %s10013_s22  ;;  %v4930_v24 = vsel %vm2482_vm1, %v4927_v59, %v4929_v52  ;;  %v4906_v50 = vsel %vm1730_vm0, %v4903_v41, %v4905_v36  ;;  %v5080_v36 = vld [vmem:[%s9963_s9 + $0x90] sm:$0xff] }
 0x4be   : > { %4937 = vrot.lane.b32.xlu1 %v4930_v24, %s10014_s2  ;;  %4913 = vrot.lane.b32.xlu0 %v4906_v50, %s10013_s22  ;;  %v5078_v24 = vld [vmem:[%s9963_s9 + $0x80] sm:$0xff] }
 0x4c6   : > { %4939 = vrot.lane.b32.xlu0 %v4929_v52, %s10014_s2  ;;  %v5079_v52 = vld [vmem:[%s9963_s9 + $0x88] sm:$0xff] }
 0x4e4   : > { %v4910_v12 = vpop.permute.xlu2 %4909 }
 0x4e5   : > { %v4947_v62 = vsel %vm4702_vm6, %v9302_v14, %v4910_v12  ;;  %v9488_v12 = vld [vmem:[%s9966_s12 + $0x18] sm:$0xff] }
 0x4fc   : > { %v4934_v29 = vpop.permute.xlu0 %4933 }
 0x4fd   : > { %v4953_v11 = vsel %vm4951_vm9, %v4947_v62, %v4934_v29  ;;  %v9495_v29 = vld [vmem:[%s9966_s12 + $0x10] sm:$0xff] }
 0x4fe   : > { %5963 = vmatmul.msk.f32.gmra.mxu2 %vm4969_vm10, %v4953_v11  ;;  %v9500_v11 = vld [vmem:[%s9965_s11 + $0x78] sm:$0xff] }
 0x4ff   : > { %5168 = vmatpush.msra.mxu2 %v9500_v11 }
 0x501   : > { %v4936_v42 = vpop.permute.xlu2 %4935 }
 0x516   : > { %v5002_v4 = vpop.f32.mrf.mxu2 }
 0x517   : > { %5017 = vst.msk [vmem:[#allocation5] sm:$0xff] %vm4951_vm9, %v5002_v4  ;;  %v4916_v40 = vpop.permute.xlu2 %4915  ;;  %v9505_v4 = vld [vmem:[%s9965_s11 + $0x70] sm:$0xff] }
 0x518   : > { %v4950_v8 = vsel %vm4702_vm6, %v4892_v54, %v4916_v40  ;;  %v5081_v54 = vld [vmem:[%s9963_s9 + $0x98] sm:$0xff]  ;;  %5169 = vmatpush.msra.mxu2 %v9505_v4  ;;  %v9551_v40 = vld [vmem:[%s9965_s11 + $0x48] sm:$0xff] }
 0x519   : > { %v4912_v57 = vpop.permute.xlu1 %4911 }
 0x51a   : > { %v4948_v39 = vsel %vm4702_vm6, %v4890_v20, %v4912_v57  ;;  %v5070_v20 = vld [vmem:[%s9963_s9 + $0x40] sm:$0xff]  ;;  %v9512_v57 = vld [vmem:[%s9966_s12 + $0x8] sm:$0xff] }
 0x51b   : > { %v4954_v33 = vsel %vm4951_vm9, %v4948_v39, %v4936_v42  ;;  %5097 = vmatpush.msrb.mxu3 %v5070_v20  ;;  %v9517_v42 = vld [vmem:[%s9965_s11 + $0x68] sm:$0xff]  ;;  %v5151_v20 = vld [vmem:[%s9965_s11] sm:$0xff] }
 0x51c   : > { %5964 = vmatmul.msk.f32.gmra.mxu2 %vm4969_vm10, %v4954_v33  ;;  %v9524_v33 = vld [vmem:[%s9966_s12] sm:$0xff] }
 0x51d   : > { %5098 = vmatpush.msrb.mxu3 %v5069_v9  ;;  %5170 = vmatpush.msra.mxu2 %v9517_v42  ;;  %v9633_v9 = vld [vmem:[%s9965_s11 + $0xd0] sm:$0xff] }
 0x51f   : > { %5099 = vmatpush.msrb.mxu3 %v5068_v46  ;;  %v9647_v46 = vld [vmem:[%s9965_s11 + $0xc0] sm:$0xff] }
 0x521   : > { %5100 = vmatpush.msrb.mxu3 %v5067_v0 }
 0x523   : > { %5101 = vmatpush.msrb.mxu3 %v5066_v35 }
 0x525   : > { %5102 = vmatpush.msrb.mxu3 %v5065_v51 }
 0x527   : > { %5103 = vmatpush.msrb.mxu3 %v5064_v21 }
 0x529   : > { %5104 = vmatpush.msrb.mxu3 %v5063_v6 }
 0x52b   : > { %5105 = vmatpush.msrb.mxu3 %v5062_v47  ;;  %v6042_v47 = vld [vmem:[%s9964_s10] ss:$0 sm:$0xff] }
 0x52d   : > { %5121 = vmatpush.msra.mxu3 %v5085_v13 }
 0x52f   : > { %5122 = vmatpush.msra.mxu3 %v5084_v27 }
 0x530   : > { %v4938_v26 = vpop.permute.xlu1 %4937  ;;  %v4914_v53 = vpop.permute.xlu0 %4913 }
 0x531   : > { %v4949_v14 = vsel %vm4702_vm6, %v4891_v19, %v4914_v53  ;;  %5123 = vmatpush.msra.mxu3 %v5083_v48  ;;  %v9536_v53 = vld [vmem:[%s9965_s11 + $0x58] sm:$0xff] }
 0x532   : > { %v4955_v3 = vsel %vm4951_vm9, %v4949_v14, %v4938_v26  ;;  %v9529_v26 = vld [vmem:[%s9965_s11 + $0x60] sm:$0xff] }
 0x533   : > { %5965 = vmatmul.msk.f32.gmra.mxu2 %vm4969_vm10, %v4955_v3  ;;  %5124 = vmatpush.msra.mxu3 %v5082_v5  ;;  %v9545_v3 = vld [vmem:[%s9965_s11 + $0x50] sm:$0xff] }
 0x534   : > { %5171 = vmatpush.msra.mxu2 %v9529_v26 }
 0x535   : > { %5125 = vmatpush.msra.mxu3 %v5081_v54 }
 0x536   : > { %5172 = vmatpush.msra.mxu2 %v9536_v53 }
 0x537   : > { %5126 = vmatpush.msra.mxu3 %v5080_v36 }
 0x538   : > { %v4940_v55 = vpop.permute.xlu0 %4939  ;;  %5173 = vmatpush.msra.mxu2 %v9545_v3 }
 0x539   : > { %v4956_v63 = vsel %vm4951_vm9, %v4950_v8, %v4940_v55  ;;  %5127 = vmatpush.msra.mxu3 %v5079_v52 }
 0x53a   : > { %5174 = vmatpush.msra.mxu2 %v9551_v40 }
 0x53b   : > { %5966 = vmatmul.msk.f32.gmra.mxu2 %vm4969_vm10, %v4956_v63  ;;  %5128 = vmatpush.msra.mxu3 %v5078_v24  ;;  %v9724_v24 = vld [vmem:[%s9967_s13] sm:$0x1] }
 0x581   : > { %v5005_v17 = vpop.f32.mrf.mxu2 }
 0x582   : > { %5018 = vst.msk [vmem:[#allocation5 + $0x8] sm:$0xff] %vm4951_vm9, %v5005_v17  ;;  %v6111_v17 = vmov 0.0  }
 0x59f   : > { %v5008_v28 = vpop.f32.mrf.mxu2 }
 0x5a0   : > { %5019 = vst.msk [vmem:[#allocation5 + $0x10] sm:$0xff] %vm4951_vm9, %v5008_v28  ;;  %v5159_v28 = vld [vmem:[%s9965_s11 + $0x40] sm:$0xff] }
 0x5a1   : > { %5175 = vmatpush.msra.mxu2 %v5159_v28 }
 0x5a3   : > { %5176 = vmatpush.msra.mxu2 %v5158_v22 }
 0x5a5   : > { %5177 = vmatpush.msra.mxu2 %v5157_v37 }
 0x5a7   : > { %v5023_v2 = vld [vmem:[#allocation5] ss:$3 sm:$0xff]  ;;  %v5027_v16 = vld [vmem:[#allocation5 + $0x1] ss:$3 sm:$0xff]  ;;  %v5033_v61 = vld [vmem:[#allocation5 + $0x2] ss:$3 sm:$0xff]  ;;  %5178 = vmatpush.msra.mxu2 %v5156_v43 }
 0x5a8   : > { %v5030_v45 = vmax.f32 %v5023_v2, %v5027_v16  ;;  %v5153_v2 = vld [vmem:[%s9965_s11 + $0x10] sm:$0xff]  ;;  %v5152_v16 = vld [vmem:[%s9965_s11 + $0x8] sm:$0xff] }
 0x5a9   : > { %5179 = vmatpush.msra.mxu2 %v5155_v49 }
 0x5aa   : > { %v5036_v34 = vmax.f32 %v5030_v45, %v5033_v61  ;;  %v9619_v45 = vld [vmem:[%s9965_s11 + $0xe0] sm:$0xff]  ;;  %v9642_v61 = vld [vmem:[%s9965_s11 + $0xc8] sm:$0xff] }
 0x5ab   : > { %5455 = vmatpush.msra.mxu1 %v9619_v45 }
 0x5ac   : > { %v5042_v31 = vadd.f32 %v6041_v1, %v5036_v34  ;;  %v9661_v34 = vld [vmem:[%s9965_s11 + $0xb0] sm:$0xff] }
 0x5ae   : > { %v9437_v10 = vmax.f32 %v5042_v31, 0.0  ;;  %v9686_v31 = vld [vmem:[%s9965_s11 + $0x90] sm:$0xff] }
 0x5b0   : > { %v5048_v59 = vrot.slane %v9437_v10, 1  ;;  %v5057_v55 = vrot.slane %v9437_v10, 2 }
 0x5b6   : > { %v5011_v18 = vpop.f32.mrf.mxu2 }
 0x5b7   : > { %5020 = vst.msk [vmem:[#allocation5 + $0x18] sm:$0xff] %vm4951_vm9, %v5011_v18  ;;  %v5154_v18 = vld [vmem:[%s9965_s11 + $0x18] sm:$0xff] }
 0x5b8   : > { %5180 = vmatpush.msra.mxu2 %v5154_v18 }
 0x5ba   : > { %5181 = vmatpush.msra.mxu2 %v5153_v2 }
 0x5bc   : > { %5182 = vmatpush.msra.mxu2 %v5152_v16 }
 0x5be   : > { %v5014_v60 = vpop.f32.mrf.mxu2  ;;  %v5025_v15 = vld [vmem:[#allocation5 + $0x18] ss:$3 sm:$0x7]  ;;  %v5029_v32 = vld [vmem:[#allocation5 + $0x19] ss:$3 sm:$0x7]  ;;  %5183 = vmatpush.msra.mxu2 %v5151_v20 }
 0x5bf   : > { %5022 = vst.msk [vmem:[#allocation5 + $0x20] sm:$0x3] %vm5021_vm12, %v5014_v60  ;;  %v5031_v56 = vmax.f32 %v5025_v15, %v5029_v32  ;;  %v9626_v60 = vld [vmem:[%s9965_s11 + $0xd8] sm:$0xff]  ;;  %v9668_v15 = vld [vmem:[%s9965_s11 + $0xa8] sm:$0xff]  ;;  %v9674_v32 = vld [vmem:[%s9965_s11 + $0xa0] sm:$0xff] }
 0x5c0   : > { %5258 = vmatpush.msrb.mxu2 %v9500_v11  ;;  %5456 = vmatpush.msra.mxu1 %v9626_v60 }
 0x5c2   : > { %5259 = vmatpush.msrb.mxu2 %v9505_v4  ;;  %5457 = vmatpush.msra.mxu1 %v9633_v9 }
 0x5c4   : > { %5260 = vmatpush.msrb.mxu2 %v9517_v42  ;;  %5458 = vmatpush.msra.mxu1 %v9642_v61 }
 0x5c6   : > { %v5035_v38 = vld [vmem:[#allocation5 + $0x1a] ss:$3 sm:$0x7]  ;;  %5261 = vmatpush.msrb.mxu2 %v9529_v26  ;;  %5459 = vmatpush.msra.mxu1 %v9647_v46 }
 0x5c7   : > { %v5037_v23 = vmax.f32 %v5031_v56, %v5035_v38  ;;  %v9680_v56 = vld [vmem:[%s9965_s11 + $0x98] sm:$0xff] }
 0x5c8   : > { %5262 = vmatpush.msrb.mxu2 %v9536_v53 }
 0x5c9   : > { %v5043_v30 = vadd.f32 %v6041_v1, %v5037_v23  ;;  %v9654_v1 = vld [vmem:[%s9965_s11 + $0xb8] sm:$0xff]  ;;  %v9692_v23 = vld [vmem:[%s9965_s11 + $0x88] sm:$0xff] }
 0x5ca   : > { %5263 = vmatpush.msrb.mxu2 %v9545_v3  ;;  %5460 = vmatpush.msra.mxu1 %v9654_v1 }
 0x5cb   : > { %v9439_v19 = vmax.f32 %v5043_v30, 0.0  ;;  %v9698_v30 = vld [vmem:[%s9965_s11 + $0x80] sm:$0xff] }
 0x5cc   : > { %5264 = vmatpush.msrb.mxu2 %v9551_v40  ;;  %5461 = vmatpush.msra.mxu1 %v9661_v34 }
 0x5cd   : > { %v5049_v25 = vrot.slane %v9439_v19, 1  ;;  %v5058_v8 = vrot.slane %v9439_v19, 2 }
 0x5ce   : > { %5265 = vmatpush.msrb.mxu2 %v5159_v28  ;;  %5462 = vmatpush.msra.mxu1 %v9668_v15 }
 0x5cf   : > { %5053 = vrot.lane.b32.xlu2 %v5049_v25, %s10014_s2  ;;  %v5050_v41 = vsel %vm1730_vm0, %v5048_v59, %v5049_v25  ;;  %v5059_v63 = vsel %vm2482_vm1, %v5057_v55, %v5058_v8 }
 0x5d0   : > { %5051 = vrot.lane.b32.xlu1 %v5050_v41, %s10014_s2  ;;  %5266 = vmatpush.msrb.mxu2 %v5158_v22  ;;  %v9705_v41 = vld [vmem:[%s9968_s14] sm:$0x1] }
 0x5d1   : > { %5463 = vmatpush.msra.mxu1 %v9674_v32 }
 0x5d2   : > { %5267 = vmatpush.msrb.mxu2 %v5157_v37 }
 0x5d3   : > { %5464 = vmatpush.msra.mxu1 %v9680_v56 }
 0x5d4   : > { %5268 = vmatpush.msrb.mxu2 %v5156_v43 }
 0x5d5   : > { %5465 = vmatpush.msra.mxu1 %v9686_v31 }
 0x5d6   : > { %5269 = vmatpush.msrb.mxu2 %v5155_v49 }
 0x5d7   : > { %5466 = vmatpush.msra.mxu1 %v9692_v23 }
 0x5d8   : > { %5270 = vmatpush.msrb.mxu2 %v5154_v18 }
 0x5d9   : > { %5467 = vmatpush.msra.mxu1 %v9698_v30 }
 0x5da   : > { %5271 = vmatpush.msrb.mxu2 %v5153_v2 }
 0x5dc   : > { %5272 = vmatpush.msrb.mxu2 %v5152_v16 }
 0x5de   : > { %5273 = vmatpush.msrb.mxu2 %v5151_v20 }
 0x629   : > { %v5054_v39 = vpop.permute.xlu2 %5053 }
 0x62a   : > { %v5061_v14 = vsel %vm4951_vm9, %v9439_v19, %v5054_v39 }
 0x642   : > { %v5052_v50 = vpop.permute.xlu1 %5051 }
 0x643   : > { %v5060_v62 = vsel %vm4951_vm9, %v9437_v10, %v5052_v50 }
 0x644   : > { %5106 = vmatmul.f32.vlgmr.msrb.gmra.mxu3 %v5060_v62 }
 0x645   : > { %5208 = vmatpush.msrb.mxu3 %v9488_v12 }
 0x647   : > { %5209 = vmatpush.msrb.mxu3 %v9495_v29 }
 0x649   : > { %5210 = vmatpush.msrb.mxu3 %v9512_v57 }
 0x64b   : > { %5211 = vmatpush.msrb.mxu3 %v9524_v33 }
 0x64c   : > { %5109 = vmatmul.f32.gmra.mxu3 %v5061_v14 }
 0x654   : > { %5967 = vmatmul.msk.f32.vlgmr.msra.gmra.mxu3 %vm4951_vm9, %v5059_v63 }
 0x655   : > { %5295 = vmatpush.msra.mxu3 %v9488_v12 }
 0x657   : > { %5296 = vmatpush.msra.mxu3 %v9495_v29 }
 0x659   : > { %5297 = vmatpush.msra.mxu3 %v9512_v57 }
 0x65b   : > { %5298 = vmatpush.msra.mxu3 %v9524_v33 }
 0x65c   : > { %5968 = vmatmul.msk.f32.gmra.mxu3 %vm4951_vm9, %v5058_v8 }
 0x664   : > { %5212 = vmatmul.f32.vlgmr.msrb.gmra.mxu3 %v6111_v17 }
 0x665   : > { %5346 = vmatpush.msrb.mxu3 %v9500_v11 }
 0x667   : > { %5347 = vmatpush.msrb.mxu3 %v9505_v4 }
 0x669   : > { %5348 = vmatpush.msrb.mxu3 %v9517_v42 }
 0x66b   : > { %5349 = vmatpush.msrb.mxu3 %v9529_v26 }
 0x66d   : > { %5350 = vmatpush.msrb.mxu3 %v9536_v53 }
 0x66f   : > { %5351 = vmatpush.msrb.mxu3 %v9545_v3 }
 0x671   : > { %5352 = vmatpush.msrb.mxu3 %v9551_v40 }
 0x673   : > { %5353 = vmatpush.msrb.mxu3 %v5159_v28 }
 0x675   : > { %5354 = vmatpush.msrb.mxu3 %v5158_v22 }
 0x677   : > { %5355 = vmatpush.msrb.mxu3 %v5157_v37 }
 0x679   : > { %5356 = vmatpush.msrb.mxu3 %v5156_v43 }
 0x67b   : > { %5357 = vmatpush.msrb.mxu3 %v5155_v49 }
 0x67d   : > { %5358 = vmatpush.msrb.mxu3 %v5154_v18 }
 0x67f   : > { %5359 = vmatpush.msrb.mxu3 %v5153_v2 }
 0x681   : > { %5360 = vmatpush.msrb.mxu3 %v5152_v16 }
 0x683   : > { %5361 = vmatpush.msrb.mxu3 %v5151_v20 }
 0x6c7   : > { %v5107_v0 = vpop.f32.mrf.mxu3 }
 0x6cf   : > { %v5110_v38 = vpop.f32.mrf.mxu3 }
 0x6d7   : > { %v5130_v10 = vpop.f32.mrf.mxu3 }
 0x6d8   : > { %v5131_v19 = vadd.f32 %v5130_v10, %v5107_v0 }
 0x6da   : > { %5136 = vst [vmem:[#allocation6] sm:$0xff] %v5131_v19 }
 0x6df   : > { %v5133_v25 = vpop.f32.mrf.mxu3 }
 0x6e0   : > { %v5134_v59 = vadd.f32 %v5133_v25, %v5110_v38 }
 0x6e1   : > { %v5138_v35 = vld [vmem:[#allocation6] ss:$3 sm:$0x7]  ;;  %v5140_v51 = vld [vmem:[#allocation6 + $0x1] ss:$3 sm:$0x7] }
 0x6e2   : > { %5137 = vst [vmem:[#allocation6 + $0x8] sm:$0x1] %v5134_v59  ;;  %v5141_v6 = vmax.f32 %v5138_v35, %v5140_v51 }
 0x6e7   : > { %v5213_v21 = vpop.f32.mrf.mxu3 }
 0x6e8   : > { %v5214_v13 = vadd.f32 %v5213_v21, %v9705_v41 }
 0x6e9   : > { %v5143_v27 = vld [vmem:[#allocation6 + $0x2] ss:$3 sm:$0x7] }
 0x6ea   : > { %v5144_v48 = vmax.f32 %v5141_v6, %v5143_v27  ;;  %5237 = vrot.lane.b32.xlu0 %v5214_v13, %s10014_s2 }
 0x6ec   : > { %v5149_v5 = vadd.f32 %v6042_v47, %v5144_v48 }
 0x6ee   : > { %v9712_v54 = vmax.f32 %v5149_v5, 0.0 }
 0x6f0   : > { %5184 = vmatmul.f32.vlgmr.msra.gmra.mxu2 %v9712_v54  ;;  %v5344_v36 = vrot.slane %v9712_v54, 2  ;;  %v5256_v52 = vrot.slane %v9712_v54, 1 }
 0x6f1   : > { %5383 = vmatpush.msra.mxu2 %v9488_v12 }
 0x6f2   : > { %5468 = vmatmul.f32.vlgmr.msra.gmra.mxu1 %v5344_v36 }
 0x6f3   : > { %5384 = vmatpush.msra.mxu2 %v9495_v29 }
 0x6f5   : > { %5385 = vmatpush.msra.mxu2 %v9512_v57 }
 0x6f7   : > { %5386 = vmatpush.msra.mxu2 %v9524_v33 }
 0x6f8   : > { %5274 = vmatmul.f32.vlgmr.msrb.gmra.mxu2 %v5256_v52 }
 0x75c   : > { %v5238_v3 = vpop.permute.xlu0 %5237 }
 0x773   : > { %v5185_v50 = vpop.f32.mrf.mxu2 }
 0x774   : > { %v5186_v62 = vadd.f32 %v5185_v50, %v9724_v24 }
 0x776   : > { %v5216_v11 = vadd.f32 %v5214_v13, %v5186_v62 }
 0x778   : > { %v5969_v12 = vmul.f32 -1.442695, %v5216_v11 }
 0x77a   : > { %6043 = vpow2.f32 %v5969_v12 }
 0x77b   : > { %v5275_v10 = vpop.f32.mrf.mxu2 }
 0x77c   : > { %v5276_v19 = vadd.f32 %v5275_v10, %v9724_v24 }
 0x780   : > { %v6044_v4 = vpop.eup %6043 }
 0x781   : > { %v5220_v29 = vadd.f32 1.0, %v6044_v4 }
 0x783   : > { %6045 = vrcp.f32 %v5220_v29  ;;  %v5232_v26 = vand.u32 2147483648, %v5220_v29  ;;  %v5230_v53 = vand.u32 2147483647, %v5220_v29  ;;  %vm5226_vm14 = vweird.f32 %v5220_v29 }
 0x785   : > { %v5233_v40 = vor.u32 1.1754944e-38, %v5232_v26  ;;  %vm5231_vm0 = vcmp.eq.f32.partialorder %v5230_v53, 8.507059e+37  ;;  %v5994_v53 = vld [vmem:[%s9966_s12 + $0x38] sm:$0xff] }
 0x786   : > { %5491 = vmatpush.msrb.mxu2 %v5994_v53  ;;  %5661 = vmatpush.msrb.mxu1 %v5994_v53 }
 0x789   : > { %v6046_v57 = vpop.eup %6045 }
 0x78a   : > { %v5222_v42 = vmul.f32 %v6046_v57, %v5220_v29  ;;  %vm5227_vm13 = vweird.f32 %v6046_v57 }
 0x78b   : > { %vm5228_vm15 = vmor %vm5226_vm14, %vm5227_vm13 }
 0x78c   : > { %v5223_v39 = vsub.f32 1.0, %v5222_v42 }
 0x78e   : > { %v5224_v33 = vmul.f32 %v6046_v57, %v5223_v39 }
 0x790   : > { %v5225_v14 = vadd.f32 %v6046_v57, %v5224_v33 }
 0x792   : > { %v5229_v8 = vsel %vm5228_vm15, %v6046_v57, %v5225_v14  ;;  %v5993_v14 = vld [vmem:[%s9966_s12 + $0x30] sm:$0xff] }
 0x793   : > { %v5234_v55 = vsel %vm5231_vm0, %v5233_v40, %v5229_v8  ;;  %5492 = vmatpush.msrb.mxu2 %v5993_v14  ;;  %5662 = vmatpush.msrb.mxu1 %v5993_v14  ;;  %v5991_v40 = vld [vmem:[%s9966_s12 + $0x20] sm:$0xff] }
 0x794   : > { %v5240_v63 = vmul.f32 %v5238_v3, %v5234_v55  ;;  %v5247_v43 = vsub.f32 1.0, %v5234_v55  ;;  %v5253_v18 = vmul.f32 0.0, %v5234_v55  ;;  %v5992_v3 = vld [vmem:[%s9966_s12 + $0x28] sm:$0xff] }
 0x795   : > { %5493 = vmatpush.msrb.mxu2 %v5992_v3  ;;  %5663 = vmatpush.msrb.mxu1 %v5992_v3 }
 0x796   : > { %5242 = vrot.lane.b32.xlu1 %v5240_v63, %s10014_s2 }
 0x797   : > { %5494 = vmatpush.msrb.mxu2 %v5991_v40  ;;  %5664 = vmatpush.msrb.mxu1 %v5991_v40 }
 0x808   : > { %v5243_v28 = vpop.permute.xlu1 %5242 }
 0x809   : > { %v5245_v22 = vadd.f32 %v5243_v28, %v5186_v62 }
 0x80b   : > { %6047 = vtanh.f32 %v5245_v22 }
 0x811   : > { %v6048_v37 = vpop.eup %6047 }
 0x812   : > { %5249 = vrot.lane.b32.xlu2 %v6048_v37, %s6112_s27 }
 0x86c   : > { %v5250_v49 = vpop.permute.xlu2 %5249 }
 0x86d   : > { %v5252_v2 = vmul.f32 %v5250_v49, %v5247_v43 }
 0x86f   : > { %v9729_v16 = vadd.f32 %v5253_v18, %v5252_v2 }
 0x871   : > { %5279 = vrot.lane.b32.xlu0 %v9729_v16, %s6112_s27 }
 0x8e3   : > { %v5280_v20 = vpop.permute.xlu0 %5279 }
 0x8e4   : > { %5970 = vmatmul.msk.f32.vlgmr.msra.gmra.mxu3 %vm4702_vm6, %v5280_v20 }
 0x8e5   : > { %5538 = vmatpush.msra.mxu3 %v9593_v7 }
 0x8e7   : > { %5539 = vmatpush.msra.mxu3 %v9599_v44 }
 0x8e9   : > { %5540 = vmatpush.msra.mxu3 %v9611_v58 }
 0x8eb   : > { %5541 = vmatpush.msra.mxu3 %v9619_v45 }
 0x8ec   : > { %5362 = vmatmul.f32.vlgmr.msrb.gmra.mxu3 %v5344_v36 }
 0x8ed   : > { %5542 = vmatpush.msra.mxu3 %v9626_v60 }
 0x8ef   : > { %5543 = vmatpush.msra.mxu3 %v9633_v9 }
 0x8f1   : > { %5544 = vmatpush.msra.mxu3 %v9642_v61 }
 0x8f3   : > { %5545 = vmatpush.msra.mxu3 %v9647_v46 }
 0x8f5   : > { %5546 = vmatpush.msra.mxu3 %v9654_v1 }
 0x8f7   : > { %5547 = vmatpush.msra.mxu3 %v9661_v34 }
 0x8f9   : > { %5548 = vmatpush.msra.mxu3 %v9668_v15 }
 0x8fb   : > { %5549 = vmatpush.msra.mxu3 %v9674_v32 }
 0x8fd   : > { %5550 = vmatpush.msra.mxu3 %v9680_v56 }
 0x8ff   : > { %5551 = vmatpush.msra.mxu3 %v9686_v31 }
 0x901   : > { %5552 = vmatpush.msra.mxu3 %v9692_v23 }
 0x903   : > { %5553 = vmatpush.msra.mxu3 %v9698_v30 }
 0x904   : > { %5554 = vmatmul.f32.vlgmr.msra.gmra.mxu3 %v5256_v52 }
 0x967   : > { %v5300_v0 = vpop.f32.mrf.mxu3 }
 0x968   : > { %v5301_v38 = vadd.f32 %v5300_v0, %v9705_v41 }
 0x96a   : > { %5324 = vrot.lane.b32.xlu1 %v5301_v38, %s10014_s2  ;;  %v5303_v25 = vadd.f32 %v5301_v38, %v5276_v19 }
 0x96c   : > { %v5971_v59 = vmul.f32 -1.442695, %v5303_v25 }
 0x96e   : > { %6049 = vpow2.f32 %v5971_v59 }
 0x974   : > { %v6050_v35 = vpop.eup %6049 }
 0x975   : > { %v5307_v51 = vadd.f32 1.0, %v6050_v35 }
 0x977   : > { %6051 = vrcp.f32 %v5307_v51  ;;  %v5319_v48 = vand.u32 2147483648, %v5307_v51  ;;  %vm5313_vm3 = vweird.f32 %v5307_v51  ;;  %v5317_v5 = vand.u32 2147483647, %v5307_v51 }
 0x979   : > { %v5320_v52 = vor.u32 1.1754944e-38, %v5319_v48  ;;  %vm5318_vm5 = vcmp.eq.f32.partialorder %v5317_v5, 8.507059e+37 }
 0x97d   : > { %v6052_v21 = vpop.eup %6051 }
 0x97e   : > { %v5309_v6 = vmul.f32 %v6052_v21, %v5307_v51  ;;  %vm5314_vm2 = vweird.f32 %v6052_v21  ;;  %v5363_v51 = vpop.f32.mrf.mxu3 }
 0x97f   : > { %vm5315_vm4 = vmor %vm5313_vm3, %vm5314_vm2 }
 0x980   : > { %v5310_v47 = vsub.f32 1.0, %v5309_v6 }
 0x982   : > { %v5311_v13 = vmul.f32 %v6052_v21, %v5310_v47 }
 0x984   : > { %v5312_v27 = vadd.f32 %v6052_v21, %v5311_v13 }
 0x986   : > { %v5316_v36 = vsel %vm5315_vm4, %v6052_v21, %v5312_v27 }
 0x987   : > { %v5321_v62 = vsel %vm5318_vm5, %v5320_v52, %v5316_v36  ;;  %v5555_v21 = vpop.f32.mrf.mxu3 }
 0x988   : > { %v5334_v57 = vsub.f32 1.0, %v5321_v62  ;;  %v5340_v39 = vmul.f32 %v5321_v62, %v9729_v16 }
 0x9dc   : > { %v5325_v50 = vpop.permute.xlu1 %5324 }
 0x9dd   : > { %v5327_v11 = vmul.f32 %v5325_v50, %v5321_v62 }
 0x9df   : > { %5329 = vrot.lane.b32.xlu2 %v5327_v11, %s10014_s2 }
 0xa39   : > { %v5330_v12 = vpop.permute.xlu2 %5329 }
 0xa3a   : > { %v5332_v4 = vadd.f32 %v5330_v12, %v5276_v19 }
 0xa3c   : > { %6053 = vtanh.f32 %v5332_v4 }
 0xa42   : > { %v6054_v29 = vpop.eup %6053 }
 0xa43   : > { %5336 = vrot.lane.b32.xlu0 %v6054_v29, %s6112_s27 }
 0xab5   : > { %v5337_v42 = vpop.permute.xlu0 %5336 }
 0xab6   : > { %v5339_v26 = vmul.f32 %v5337_v42, %v5334_v57 }
 0xab8   : > { %v9756_v33 = vadd.f32 %v5340_v39, %v5339_v26 }
 0xaba   : > { %5367 = vrot.lane.b32.xlu1 %v9756_v33, %s6112_s27 }
 0xb2c   : > { %v5368_v8 = vpop.permute.xlu1 %5367 }
 0xb2d   : > { %5972 = vmatmul.msk.f32.vlgmr.msra.gmra.mxu2 %vm4702_vm6, %v5368_v8 }
 0xb2e   : > { %5575 = vmatpush.msra.mxu2 %v5994_v53 }
 0xb30   : > { %5576 = vmatpush.msra.mxu2 %v5993_v14 }
 0xb32   : > { %5577 = vmatpush.msra.mxu2 %v5992_v3  ;;  %v5364_v3 = vadd.f32 %v5363_v51, %v9724_v24 }
 0xb34   : > { %5578 = vmatpush.msra.mxu2 %v5991_v40 }
 0xb35   : > { %5495 = vmatmul.f32.vlgmr.msrb.gmra.mxu2 %v6111_v17 }
 0xb36   : > { %5624 = vmatpush.msrb.mxu2 %v9593_v7  ;;  %v9795_v7 = vld [vmem:[%s9968_s14 + $0x1] sm:$0x1] }
 0xb38   : > { %5625 = vmatpush.msrb.mxu2 %v9599_v44 }
 0xb3a   : > { %5626 = vmatpush.msrb.mxu2 %v9611_v58 }
 0xb3c   : > { %5627 = vmatpush.msrb.mxu2 %v9619_v45  ;;  %v9802_v45 = vld [vmem:[%s9967_s13 + $0x1] sm:$0x1] }
 0xb3d   : > { %v5556_v6 = vadd.f32 %v9802_v45, %v5555_v21 }
 0xb3e   : > { %5628 = vmatpush.msrb.mxu2 %v9626_v60  ;;  %v5469_v60 = vpop.f32.mrf.mxu1 }
 0xb40   : > { %5629 = vmatpush.msrb.mxu2 %v9633_v9  ;;  %v5470_v9 = vadd.f32 %v9802_v45, %v5469_v60 }
 0xb42   : > { %5630 = vmatpush.msrb.mxu2 %v9642_v61 }
 0xb44   : > { %5631 = vmatpush.msrb.mxu2 %v9647_v46 }
 0xb46   : > { %5632 = vmatpush.msrb.mxu2 %v9654_v1 }
 0xb48   : > { %5633 = vmatpush.msrb.mxu2 %v9661_v34 }
 0xb4a   : > { %5634 = vmatpush.msrb.mxu2 %v9668_v15 }
 0xb4c   : > { %5635 = vmatpush.msrb.mxu2 %v9674_v32 }
 0xb4e   : > { %5636 = vmatpush.msrb.mxu2 %v9680_v56 }
 0xb50   : > { %5637 = vmatpush.msrb.mxu2 %v9686_v31 }
 0xb52   : > { %5638 = vmatpush.msrb.mxu2 %v9692_v23 }
 0xb54   : > { %5639 = vmatpush.msrb.mxu2 %v9698_v30 }
 0xbb0   : > { %v9790_v17 = vpop.f32.mrf.mxu2 }
 0xbb1   : > { %v5389_v39 = vadd.f32 %v9790_v17, %v9705_v41 }
 0xbb3   : > { %v5391_v40 = vadd.f32 %v5389_v39, %v5364_v3 }
 0xbb5   : > { %v5973_v8 = vmul.f32 -1.442695, %v5391_v40 }
 0xbb8   : > { %v5496_v44 = vpop.f32.mrf.mxu2 }
 0xbb9   : > { %v5497_v58 = vadd.f32 %v9795_v7, %v5496_v44 }
 0xbbb   : > { %5520 = vrot.lane.b32.xlu2 %v5497_v58, %s10014_s2  ;;  %v5499_v61 = vadd.f32 %v5497_v58, %v5470_v9 }
 0xbbd   : > { %v5996_v46 = vmul.f32 -1.442695, %v5499_v61 }
 0xbbf   : > { %6055 = vpow2.f32 %v5996_v46 }
 0xbc5   : > { %v6056_v1 = vpop.eup %6055 }
 0xbc6   : > { %v5503_v34 = vadd.f32 1.0, %v6056_v1 }
 0xbc8   : > { %6057 = vrcp.f32 %v5503_v34  ;;  %v5515_v30 = vand.u32 2147483648, %v5503_v34  ;;  %vm5509_vm8 = vweird.f32 %v5503_v34  ;;  %v5513_v55 = vand.u32 2147483647, %v5503_v34 }
 0xbca   : > { %v5516_v28 = vor.u32 1.1754944e-38, %v5515_v30  ;;  %vm5514_vm12 = vcmp.eq.f32.partialorder %v5513_v55, 8.507059e+37 }
 0xbce   : > { %v6058_v15 = vpop.eup %6057 }
 0xbcf   : > { %v5505_v32 = vmul.f32 %v6058_v15, %v5503_v34  ;;  %vm5510_vm7 = vweird.f32 %v6058_v15 }
 0xbd0   : > { %vm5511_vm11 = vmor %vm5509_vm8, %vm5510_vm7 }
 0xbd1   : > { %v5506_v56 = vsub.f32 1.0, %v5505_v32 }
 0xbd3   : > { %v5507_v31 = vmul.f32 %v6058_v15, %v5506_v56 }
 0xbd5   : > { %v5508_v23 = vadd.f32 %v6058_v15, %v5507_v31 }
 0xbd7   : > { %v5512_v63 = vsel %vm5511_vm11, %v6058_v15, %v5508_v23 }
 0xbd8   : > { %v5517_v37 = vsel %vm5514_vm12, %v5516_v28, %v5512_v63 }
 0xbd9   : > { %v5530_v20 = vsub.f32 1.0, %v5517_v37  ;;  %v5536_v38 = vmul.f32 0.0, %v5517_v37 }
 0xc15   : > { %v5521_v22 = vpop.permute.xlu2 %5520 }
 0xc16   : > { %v5523_v43 = vmul.f32 %v5521_v22, %v5517_v37 }
 0xc18   : > { %5525 = vrot.lane.b32.xlu0 %v5523_v43, %s10014_s2 }
 0xc8a   : > { %v5526_v49 = vpop.permute.xlu0 %5525 }
 0xc8b   : > { %v5528_v18 = vadd.f32 %v5526_v49, %v5470_v9 }
 0xc8d   : > { %6059 = vtanh.f32 %v5528_v18 }
 0xc93   : > { %v6060_v2 = vpop.eup %6059 }
 0xc94   : > { %5532 = vrot.lane.b32.xlu1 %v6060_v2, %s6112_s27 }
 0xd06   : > { %v5533_v0 = vpop.permute.xlu1 %5532 }
 0xd07   : > { %v5535_v10 = vmul.f32 %v5533_v0, %v5530_v20 }
 0xd09   : > { %v9807_v19 = vadd.f32 %v5536_v38, %v5535_v10 }
 0xd0b   : > { %5559 = vrot.lane.b32.xlu2 %v9807_v19, %s6112_s27 }
 0xd65   : > { %v5560_v25 = vpop.permute.xlu2 %5559 }
 0xd66   : > { %5997 = vmatmul.msk.f32.vlgmr.msra.gmra.mxu2 %vm4702_vm6, %v5560_v25 }
 0xd6e   : > { %5640 = vmatmul.f32.vlgmr.msrb.gmra.mxu2 %v9712_v54 }
 0xde9   : > { %v5580_v59 = vpop.f32.mrf.mxu2 }
 0xdea   : > { %v5581_v35 = vadd.f32 %v9795_v7, %v5580_v59 }
 0xdec   : > { %5604 = vrot.lane.b32.xlu0 %v5581_v35, %s10014_s2  ;;  %v5583_v47 = vadd.f32 %v5581_v35, %v5556_v6 }
 0xdee   : > { %v5998_v13 = vmul.f32 -1.442695, %v5583_v47 }
 0xdf0   : > { %6061 = vpow2.f32 %v5998_v13 }
 0xdf1   : > { %v5641_v2 = vpop.f32.mrf.mxu2 }
 0xdf2   : > { %v5642_v20 = vadd.f32 %v9802_v45, %v5641_v2 }
 0xdf6   : > { %v6062_v27 = vpop.eup %6061 }
 0xdf7   : > { %v5587_v48 = vadd.f32 1.0, %v6062_v27 }
 0xdf9   : > { %6063 = vrcp.f32 %v5587_v48  ;;  %v5599_v62 = vand.u32 2147483648, %v5587_v48  ;;  %vm5593_vm14 = vweird.f32 %v5587_v48  ;;  %v5597_v11 = vand.u32 2147483647, %v5587_v48 }
 0xdfb   : > { %v5600_v4 = vor.u32 1.1754944e-38, %v5599_v62  ;;  %vm5598_vm0 = vcmp.eq.f32.partialorder %v5597_v11, 8.507059e+37  ;;  %v5342_v62 = vmax.f32 %v9729_v16, %v9756_v33 }
 0xdff   : > { %v6064_v5 = vpop.eup %6063 }
 0xe00   : > { %v5589_v36 = vmul.f32 %v6064_v5, %v5587_v48  ;;  %vm5594_vm13 = vweird.f32 %v6064_v5 }
 0xe01   : > { %vm5595_vm15 = vmor %vm5593_vm14, %vm5594_vm13  ;;  %vm5851_vm13 = vcmask 0  }
 0xe02   : > { %v5590_v52 = vsub.f32 1.0, %v5589_v36 }
 0xe04   : > { %v5591_v50 = vmul.f32 %v6064_v5, %v5590_v52 }
 0xe06   : > { %v5592_v54 = vadd.f32 %v6064_v5, %v5591_v50 }
 0xe08   : > { %v5596_v12 = vsel %vm5595_vm15, %v6064_v5, %v5592_v54 }
 0xe09   : > { %v5601_v57 = vsel %vm5598_vm0, %v5600_v4, %v5596_v12  ;;  %v5754_v4 = vld [vmem:[%s9969_s15 + $0xb8] sm:$0xff] }
 0xe0a   : > { %v5614_v17 = vsub.f32 1.0, %v5601_v57  ;;  %v5620_v1 = vmul.f32 %v5601_v57, %v9807_v19  ;;  %5787 = vmatpush.msrb.mxu3 %v5754_v4 }
 0xe5e   : > { %v5605_v29 = vpop.permute.xlu0 %5604 }
 0xe5f   : > { %v5607_v42 = vmul.f32 %v5605_v29, %v5601_v57  ;;  %v5753_v29 = vld [vmem:[%s9969_s15 + $0xb0] sm:$0xff]  ;;  %v5752_v57 = vld [vmem:[%s9969_s15 + $0xa8] sm:$0xff] }
 0xe60   : > { %5788 = vmatpush.msrb.mxu3 %v5753_v29 }
 0xe61   : > { %5609 = vrot.lane.b32.xlu1 %v5607_v42, %s10014_s2  ;;  %v5751_v42 = vld [vmem:[%s9969_s15 + $0xa0] sm:$0xff] }
 0xe62   : > { %5789 = vmatpush.msrb.mxu3 %v5752_v57 }
 0xe64   : > { %5790 = vmatpush.msrb.mxu3 %v5751_v42 }
 0xe69   : > { %5412 = vrot.lane.b32.xlu1 %v5389_v39, %s10014_s2  ;;  %v5750_v39 = vld [vmem:[%s9969_s15 + $0x98] sm:$0xff] }
 0xe6a   : > { %5791 = vmatpush.msrb.mxu3 %v5750_v39 }
 0xed3   : > { %v5610_v26 = vpop.permute.xlu1 %5609 }
 0xed4   : > { %v5612_v53 = vadd.f32 %v5610_v26, %v5556_v6 }
 0xed6   : > { %6065 = vtanh.f32 %v5612_v53 }
 0xed7   : > { %6067 = vpow2.f32 %v5973_v8 }
 0xedb   : > { %v5413_v23 = vpop.permute.xlu1 %5412 }
 0xedc   : > { %v6066_v14 = vpop.eup %6065 }
 0xedd   : > { %5616 = vrot.lane.b32.xlu2 %v6066_v14, %s6112_s27  ;;  %v6068_v44 = vpop.eup %6067 }
 0xede   : > { %v5395_v58 = vadd.f32 1.0, %v6068_v44  ;;  %v5749_v44 = vld [vmem:[%s9969_s15 + $0x90] sm:$0xff] }
 0xedf   : > { %5792 = vmatpush.msrb.mxu3 %v5749_v44 }
 0xee0   : > { %6069 = vrcp.f32 %v5395_v58  ;;  %v5407_v24 = vand.u32 2147483648, %v5395_v58  ;;  %vm5401_vm3 = vweird.f32 %v5395_v58  ;;  %v5405_v56 = vand.u32 2147483647, %v5395_v58 }
 0xee2   : > { %v5408_v30 = vor.u32 1.1754944e-38, %v5407_v24  ;;  %vm5406_vm5 = vcmp.eq.f32.partialorder %v5405_v56, 8.507059e+37  ;;  %v5736_v24 = vld [vmem:[%s9969_s15 + $0x28] sm:$0xff]  ;;  %v5735_v56 = vld [vmem:[%s9969_s15 + $0x20] sm:$0xff] }
 0xee6   : > { %v6070_v60 = vpop.eup %6069 }
 0xee7   : > { %v5397_v9 = vmul.f32 %v6070_v60, %v5395_v58  ;;  %vm5402_vm2 = vweird.f32 %v6070_v60  ;;  %v5748_v58 = vld [vmem:[%s9969_s15 + $0x88] sm:$0xff] }
 0xee8   : > { %vm5403_vm4 = vmor %vm5401_vm3, %vm5402_vm2  ;;  %5793 = vmatpush.msrb.mxu3 %v5748_v58 }
 0xee9   : > { %v5398_v61 = vsub.f32 1.0, %v5397_v9  ;;  %v5744_v9 = vld [vmem:[%s9969_s15 + $0x68] sm:$0xff] }
 0xeeb   : > { %v5399_v41 = vmul.f32 %v6070_v60, %v5398_v61  ;;  %v5743_v61 = vld [vmem:[%s9969_s15 + $0x60] sm:$0xff] }
 0xeed   : > { %v5400_v15 = vadd.f32 %v6070_v60, %v5399_v41  ;;  %v5742_v41 = vld [vmem:[%s9969_s15 + $0x58] sm:$0xff] }
 0xeef   : > { %v5404_v31 = vsel %vm5403_vm4, %v6070_v60, %v5400_v15  ;;  %v5747_v60 = vld [vmem:[%s9969_s15 + $0x80] sm:$0xff]  ;;  %v5737_v15 = vld [vmem:[%s9969_s15 + $0x30] sm:$0xff] }
 0xef0   : > { %v5409_v55 = vsel %vm5406_vm5, %v5408_v30, %v5404_v31  ;;  %5794 = vmatpush.msrb.mxu3 %v5747_v60 }
 0xef1   : > { %v5415_v63 = vmul.f32 %v5413_v23, %v5409_v55  ;;  %v5422_v36 = vsub.f32 1.0, %v5409_v55  ;;  %v5428_v50 = vmul.f32 %v5409_v55, %v9756_v33  ;;  %v5734_v23 = vld [vmem:[%s9969_s15 + $0x18] sm:$0xff] }
 0xf37   : > { %v5617_v46 = vpop.permute.xlu2 %5616 }
 0xf38   : > { %v5619_v34 = vmul.f32 %v5617_v46, %v5614_v17  ;;  %v5741_v17 = vld [vmem:[%s9969_s15 + $0x50] sm:$0xff]  ;;  %v5740_v46 = vld [vmem:[%s9969_s15 + $0x48] sm:$0xff] }
 0xf3a   : > { %v9823_v32 = vadd.f32 %v5620_v1, %v5619_v34  ;;  %v5739_v1 = vld [vmem:[%s9969_s15 + $0x40] sm:$0xff]  ;;  %v5738_v34 = vld [vmem:[%s9969_s15 + $0x38] sm:$0xff] }
 0xf3c   : > { %5645 = vrot.lane.b32.xlu0 %v9823_v32, %s6112_s27 }
 0xf44   : > { %5417 = vrot.lane.b32.xlu0 %v5415_v63, %s10014_s2 }
 0xfae   : > { %v5646_v28 = vpop.permute.xlu0 %5645 }
 0xfaf   : > { %5999 = vmatmul.msk.f32.vlgmr.msrb.gmra.mxu1 %vm4702_vm6, %v5646_v28  ;;  %v5733_v28 = vld [vmem:[%s9969_s15 + $0x10] sm:$0xff] }
 0xfb6   : > { %v5418_v22 = vpop.permute.xlu0 %5417 }
 0xfb7   : > { %v5420_v37 = vadd.f32 %v5418_v22, %v5364_v3  ;;  %v5343_v3 = vadd.f32 %v9756_v33, %v9729_v16  ;;  %v5746_v16 = vld [vmem:[%s9969_s15 + $0x78] sm:$0xff]  ;;  %v5745_v33 = vld [vmem:[%s9969_s15 + $0x70] sm:$0xff]  ;;  %v5623_v22 = vadd.f32 %v9823_v32, %v9807_v19 }
 0xfb8   : > { %5759 = vmatpush.msra.mxu1 %v5746_v16 }
 0xfb9   : > { %6071 = vtanh.f32 %v5420_v37 }
 0xfba   : > { %5760 = vmatpush.msra.mxu1 %v5745_v33 }
 0xfbc   : > { %5761 = vmatpush.msra.mxu1 %v5744_v9 }
 0xfbe   : > { %5762 = vmatpush.msra.mxu1 %v5743_v61 }
 0xfbf   : > { %v6072_v18 = vpop.eup %6071 }
 0xfc0   : > { %5763 = vmatpush.msra.mxu1 %v5742_v41 }
 0xfc2   : > { %5764 = vmatpush.msra.mxu1 %v5741_v17 }
 0xfc4   : > { %5765 = vmatpush.msra.mxu1 %v5740_v46 }
 0xfc6   : > { %5766 = vmatpush.msra.mxu1 %v5739_v1 }
 0xfc8   : > { %5767 = vmatpush.msra.mxu1 %v5738_v34 }
 0xfca   : > { %5768 = vmatpush.msra.mxu1 %v5737_v15 }
 0xfcc   : > { %5769 = vmatpush.msra.mxu1 %v5736_v24 }
 0xfce   : > { %5770 = vmatpush.msra.mxu1 %v5735_v56 }
 0xfd0   : > { %5771 = vmatpush.msra.mxu1 %v5734_v23 }
 0xfd2   : > { %5772 = vmatpush.msra.mxu1 %v5733_v28 }
0x102c   : > { %v5666_v43 = vpop.f32.mrf.mxu1 }
0x102d   : > { %v5667_v49 = vadd.f32 %v9795_v7, %v5666_v43  ;;  %v5732_v43 = vld [vmem:[%s9969_s15 + $0x8] sm:$0xff] }
0x102e   : > { %5773 = vmatpush.msra.mxu1 %v5732_v43 }
0x102f   : > { %5690 = vrot.lane.b32.xlu2 %v5667_v49, %s10014_s2  ;;  %v5669_v0 = vadd.f32 %v5667_v49, %v5642_v20 }
0x1031   : > { %v6000_v38 = vmul.f32 -1.442695, %v5669_v0  ;;  %v5731_v0 = vld [vmem:[%s9969_s15] sm:$0xff] }
0x1032   : > { %5774 = vmatpush.msra.mxu1 %v5731_v0 }
0x1033   : > { %6073 = vpow2.f32 %v6000_v38  ;;  %v5803_v38 = vld [vmem:[%s9971_s17 + $0x18] sm:$0x3f] }
0x1034   : > { %6002 = vmatpush.msk.msra.mxu2 %vm2482_vm1, %v5803_v38  ;;  %vm5805_vm1 = vcmask 244736  }
0x1037   : > { %5424 = vrot.lane.b32.xlu2 %v6072_v18, %s6112_s27 }
0x1039   : > { %v6074_v10 = vpop.eup %6073 }
0x103a   : > { %v5673_v25 = vadd.f32 1.0, %v6074_v10  ;;  %v5622_v10 = vmax.f32 %v9807_v19, %v9823_v32  ;;  %v5800_v19 = vld [vmem:[%s9971_s17] sm:$0xff] }
0x103c   : > { %6075 = vrcp.f32 %v5673_v25  ;;  %v5685_v6 = vand.u32 2147483648, %v5673_v25  ;;  %vm5679_vm8 = vweird.f32 %v5673_v25  ;;  %v5683_v47 = vand.u32 2147483647, %v5673_v25 }
0x103e   : > { %v5686_v27 = vor.u32 1.1754944e-38, %v5685_v6  ;;  %vm5684_vm12 = vcmp.eq.f32.partialorder %v5683_v47, 8.507059e+37  ;;  %v5802_v47 = vld [vmem:[%s9971_s17 + $0x10] sm:$0xff] }
0x103f   : > { %5825 = vmatpush.msra.mxu2 %v5802_v47 }
0x1042   : > { %v6076_v59 = vpop.eup %6075 }
0x1043   : > { %v5675_v35 = vmul.f32 %v6076_v59, %v5673_v25  ;;  %vm5680_vm7 = vweird.f32 %v6076_v59 }
0x1044   : > { %vm5681_vm11 = vmor %vm5679_vm8, %vm5680_vm7 }
0x1045   : > { %v5676_v51 = vsub.f32 1.0, %v5675_v35 }
0x1047   : > { %v5677_v21 = vmul.f32 %v6076_v59, %v5676_v51 }
0x1049   : > { %v5678_v7 = vadd.f32 %v6076_v59, %v5677_v21 }
0x104b   : > { %v5682_v13 = vsel %vm5681_vm11, %v6076_v59, %v5678_v7 }
0x104c   : > { %v9833_v48 = vsel %vm5684_vm12, %v5686_v27, %v5682_v13  ;;  %v5801_v13 = vld [vmem:[%s9971_s17 + $0x8] sm:$0xff] }
0x104d   : > { %v5700_v31 = vsub.f32 1.0, %v9833_v48  ;;  %v5706_v55 = vmul.f32 %v9833_v48, %v9823_v32  ;;  %5826 = vmatpush.msra.mxu2 %v5801_v13  ;;  %v5755_v32 = vld [vmem:[%s9970_s16] sm:$0x1] }
0x104f   : > { %5827 = vmatpush.msra.mxu2 %v5800_v19 }
0x1089   : > { %v5691_v45 = vpop.permute.xlu2 %5690 }
0x108a   : > { %v5693_v5 = vmul.f32 %v5691_v45, %v9833_v48 }
0x108c   : > { %5695 = vrot.lane.b32.xlu1 %v5693_v5, %s10014_s2 }
0x1091   : > { %v5425_v52 = vpop.permute.xlu2 %5424 }
0x1092   : > { %v5427_v54 = vmul.f32 %v5425_v52, %v5422_v36  ;;  %v5804_v52 = vld [vmem:[#allocation7] sm:$0x1] }
0x1094   : > { %v5429_v11 = vadd.f32 %v5428_v50, %v5427_v54 }
0x1096   : > { %v5430_v12 = vmax.f32 %v5342_v62, %v5429_v11  ;;  %5724 = vrot.lane.b32.xlu1 %v5429_v11, %s6112_s27  ;;  %v5431_v40 = vadd.f32 %v5429_v11, %v5343_v3 }
0x1098   : > { %5712 = vrot.lane.b32.xlu2 %v5430_v12, %s6112_s27  ;;  %v5432_v8 = vmul.f32 0.33333334, %v5431_v40 }
0x10f2   : > { %v5713_v59 = vpop.permute.xlu2 %5712 }
0x10fe   : > { %v5696_v26 = vpop.permute.xlu1 %5695 }
0x10ff   : > { %v5698_v53 = vadd.f32 %v5696_v26, %v5642_v20 }
0x1101   : > { %6077 = vtanh.f32 %v5698_v53 }
0x1107   : > { %v6078_v14 = vpop.eup %6077 }
0x1108   : > { %5702 = vrot.lane.b32.xlu0 %v6078_v14, %s6112_s27  ;;  %v5725_v49 = vpop.permute.xlu1 %5724  ;;  %s600_s27 = scalar_lea.vmem %s9973_s19, %s10076_s21 }
0x1110   : > { %5716 = vrot.lane.b32.xlu0 %v5432_v8, %s10073_s0 }
0x117a   : > { %v5703_v30 = vpop.permute.xlu0 %5702 }
0x117b   : > { %v5705_v63 = vmul.f32 %v5703_v30, %v5700_v31 }
0x117d   : > { %v5707_v37 = vadd.f32 %v5706_v55, %v5705_v63 }
0x117f   : > { %v5709_v18 = vadd.f32 %v5707_v37, %v5623_v22  ;;  %v5730_v2 = vsel %vm4702_vm6, %v5725_v49, %v5707_v37  ;;  %v5708_v25 = vmax.f32 %v5622_v10, %v5707_v37 }
0x1180   : > { %6001 = vmatmul.msk.f32.vlgmr.msrb.gmra.mxu3 %vm4951_vm9, %v5730_v2 }
0x1181   : > { %v5710_v20 = vmul.f32 0.33333334, %v5709_v18  ;;  %v5727_v51 = vsel %vm4702_vm6, %v5713_v59, %v5708_v25 }
0x1182   : > { %v5717_v35 = vpop.permute.xlu0 %5716 }
0x1183   : > { %5720 = vrot.lane.b32.xlu1 %v5710_v20, %s10074_s26  ;;  %v5728_v21 = vsel %vm4951_vm9, %v5727_v51, %v5717_v35 }
0x11f5   : > { %v5721_v7 = vpop.permute.xlu1 %5720 }
0x11f6   : > { %v5729_v6 = vsel %vm4969_vm10, %v5728_v21, %v5721_v7 }
0x11f7   : > { %5775 = vmatmul.f32.vlgmr.msra.gmra.mxu1 %v5729_v6 }
0x1203   : > { %v5796_v48 = vpop.f32.mrf.mxu3 }
0x1274   : > { %v5776_v27 = vpop.f32.mrf.mxu1 }
0x1275   : > { %v5777_v45 = vadd.f32 %v5776_v27, %v5755_v32 }
0x1277   : > { %v5797_v5 = vadd.f32 %v5796_v48, %v5777_v45 }
0x1279   : > { %v5799_v36 = vmax.f32 %v5797_v5, 0.0 }
0x127b   : > { %6003 = vmatmul.msk.f32.vlgmr.msra.gmra.mxu2 %vm5805_vm1, %v5799_v36 }
0x12fe   : > { %v5829_v50 = vpop.f32.mrf.mxu2 }
0x12ff   : > { %v5830_v54 = vadd.f32 %v5829_v50, %v5804_v52 }
0x1301   : > { %v6004_v62 = vmul.f32 -1.442695, %v5830_v54 }
0x1303   : > { %6079 = vpow2.f32 %v6004_v62 }
0x1309   : > { %v6080_v11 = vpop.eup %6079 }
0x130a   : > { %v5835_v12 = vadd.f32 1.0, %v6080_v11 }
0x130c   : > { %6081 = vrcp.f32 %v5835_v12  ;;  %v5847_v42 = vand.u32 2147483648, %v5835_v12  ;;  %v5845_v26 = vand.u32 2147483647, %v5835_v12  ;;  %vm5841_vm9 = vweird.f32 %v5835_v12 }
0x130e   : > { %v5848_v14 = vor.u32 1.1754944e-38, %v5847_v42  ;;  %vm5846_vm14 = vcmp.eq.f32.partialorder %v5845_v26, 8.507059e+37 }
0x1312   : > { %v6082_v4 = vpop.eup %6081 }
0x1313   : > { %v5837_v29 = vmul.f32 %v6082_v4, %v5835_v12  ;;  %vm5842_vm6 = vweird.f32 %v6082_v4 }
0x1314   : > { %vm5843_vm10 = vmor %vm5841_vm9, %vm5842_vm6 }
0x1315   : > { %v5838_v57 = vsub.f32 1.0, %v5837_v29 }
0x1317   : > { %v5839_v39 = vmul.f32 %v6082_v4, %v5838_v57 }
0x1319   : > { %v5840_v53 = vadd.f32 %v6082_v4, %v5839_v39 }
0x131b   : > { %v5844_v3 = vsel %vm5843_vm10, %v6082_v4, %v5840_v53 }
0x131c   : > { %v5849_v40 = vsel %vm5846_vm14, %v5848_v14, %v5844_v3 }
0x131d   : > { %5852 = vst.msk [vmem:[%s600_s27] sm:$0x1] %vm5851_vm13, %v5849_v40 }
0x131e PF: > { %s31_s20 = sadd.s32 1, %s6104_s20  }
0x131f   : > { %p28_p4 = scmp.ge.s32.totalorder %s31_s20, 4  }
0x1321   :  { %30 = sbr.rel (!%p28_p4) target bundleno = 5 (0x5), region = 317 }

</bundles_post_ra>
